<compile_context>
chip_gen: v6e
topology: v6e:2x2x1
jax: 0.10.0
libtpu: 0.0.40
codegen_flags: <defaults>
</compile_context>

<pallas_src>
import functools

import jax
import jax.numpy as jnp
from jax.experimental import pallas as pl
from jax.experimental.pallas import tpu as pltpu


# ---------------------------------------------------------------------------
# Fused Pallas kernel: the whole 6-block network in one kernel body
# ---------------------------------------------------------------------------
def _net_kernel(*refs, dilations, K, Pmax):
    """Fused forward of all blocks.

    refs layout (positional, as passed by pallas_call):
      refs[0]                      x_ref     (B, L, Cin0)  input, channels-last
      refs[1 : 1+6*nl]             per-layer params, 6 each:
                                     wb    (Cin_l, Cb)    block-diag bottleneck w
                                     bb    (1, Cb)
                                     wdf   (K*Cb, Cout)   block-diag dilated w (taps stacked)
                                     bd    (1, Cout)
                                     gamma (1, Cout)
                                     beta  (1, Cout)
      refs[1+6*nl]                 o_ref     (B, L, Cout)  output
      refs[2+6*nl]                 act_ref   (B, L, Cout)  VMEM scratch (inter-block act)
      refs[3+6*nl]                 hpad_ref  (B, L+2*Pmax, Cb) VMEM scratch (padded bneck act)
    """
    nl = len(dilations)
    x_ref = refs[0]
    prefs = refs[1:1 + 6 * nl]
    o_ref = refs[1 + 6 * nl]
    act_ref = refs[2 + 6 * nl]
    hpad_ref = refs[3 + 6 * nl]

    B, L, _ = x_ref.shape
    _, _, Cout = o_ref.shape
    _, _, Cb = hpad_ref.shape
    eps = 1e-5

    # Zero the two Pmax-wide pad bands ONCE.  Every layer writes its bottleneck
    # activation into the fixed [Pmax, Pmax+L) band, so the pad bands stay
    # valid zeros for all (smaller) per-layer pad widths.
    hpad_ref[:, 0:Pmax, :] = jnp.zeros((B, Pmax, Cb), jnp.float32)
    hpad_ref[:, Pmax + L:Pmax + L + Pmax, :] = jnp.zeros((B, Pmax, Cb), jnp.float32)

    x0 = x_ref[...]

    for li, dil in enumerate(dilations):
        wb, bb, wdf, bd, gamma, beta = prefs[6 * li:6 * li + 6]

        if li == 0:
            inp = x0                                        # (B, L, Cin0)
            res = jnp.concatenate([x0, x0], axis=-1)        # x.repeat(1, 2, 1)
        else:
            inp = act_ref[...]                              # (B, L, Cout)
            res = inp
        Cin = inp.shape[-1]

        # ---- bottleneck 1x1 grouped conv (block-diagonal dense matmul) ----
        h = jnp.dot(inp.reshape(B * L, Cin), wb[...],
                    preferred_element_type=jnp.float32) + bb[...]
        hpad_ref[:, Pmax:Pmax + L, :] = h.reshape(B, L, Cb)

        # ---- dilated grouped conv: K shifted taps fused into one matmul ----
        P = (K - 1) // 2 * dil
        start = Pmax - P                                    # static per layer
        taps = jnp.concatenate(
            [hpad_ref[:, start + k * dil:start + k * dil + L, :].reshape(B * L, Cb)
             for k in range(K)], axis=-1)                   # (B*L, K*Cb)
        y = jnp.dot(taps, wdf[...],
                    preferred_element_type=jnp.float32) + bd[...]

        # ---- ReLU + residual + BatchNorm1d (batch stats, biased var) ----
        z = jnp.maximum(y, 0.0) + res.reshape(B * L, Cout)
        mean = jnp.mean(z, axis=0, keepdims=True)
        cen = z - mean
        var = jnp.mean(cen * cen, axis=0, keepdims=True)
        scale = gamma[...] * jax.lax.rsqrt(var + eps)
        out = cen * scale + beta[...]

        # ---- single full-width store per block ----
        if li == nl - 1:
            o_ref[...] = out.reshape(B, L, Cout)
        else:
            act_ref[...] = out.reshape(B, L, Cout)


def net_forward(x_ncl, kparams, *, dilations, ksize):
    """Whole net in one pallas_call.  kparams: per-layer tuples of packed weights."""
    x = jnp.transpose(x_ncl, (0, 2, 1))                     # NCL -> NLC
    B, L, _ = x.shape
    Cb = kparams[0][1].shape[-1]
    Cout = kparams[0][3].shape[-1]
    Pmax = (ksize - 1) // 2 * max(dilations)

    flat = [a for lp in kparams for a in lp]
    kern = functools.partial(_net_kernel, dilations=tuple(dilations),
                             K=ksize, Pmax=Pmax)
    vmem = pl.BlockSpec(memory_space=pltpu.MemorySpace.VMEM)

    out = pl.pallas_call(
        kern,
        out_shape=jax.ShapeDtypeStruct((B, L, Cout), jnp.float32),
        in_specs=[vmem] * (1 + len(flat)),
        out_specs=vmem,
        scratch_shapes=[pltpu.VMEM((B, L, Cout), jnp.float32),
                        pltpu.VMEM((B, L + 2 * Pmax, Cb), jnp.float32)],
    )(x, *flat)
    return jnp.transpose(out, (0, 2, 1))                    # NLC -> NCL


# ---------------------------------------------------------------------------
# Parameter setup (deterministic, PyTorch-layout weights) + one-time packing
# ---------------------------------------------------------------------------
def init_block_params(key, in_ch, out_ch, bneck, ksize, gb, gd):
    k1, k2, k3, k4 = jax.random.split(key, 4)
    return dict(
        wb_t=jax.random.normal(k1, (bneck, in_ch // gb, 1), jnp.float32) * 0.1,
        bb=jax.random.normal(k2, (bneck,), jnp.float32) * 0.1,
        wd_t=jax.random.normal(k3, (out_ch, bneck // gd, ksize), jnp.float32) * 0.05,
        bd=jax.random.normal(k4, (out_ch,), jnp.float32) * 0.1,
        gamma=jnp.ones((out_ch,), jnp.float32),   # BatchNorm1d default affine
        beta=jnp.zeros((out_ch,), jnp.float32),
        gb=gb, gd=gd,
    )


def _dense_bottleneck(wb_t, gb):
    """PyTorch (Cb, Cin//gb, 1) grouped 1x1 weight -> block-diagonal (Cin, Cb)."""
    Cb, Cing, _ = wb_t.shape
    Cin = Cing * gb
    Cbb = Cb // gb
    w = jnp.zeros((Cin, Cb), jnp.float32)
    for g in range(gb):
        blk = wb_t[g * Cbb:(g + 1) * Cbb, :, 0]             # (Cbb, Cing)
        w = w.at[g * Cing:(g + 1) * Cing, g * Cbb:(g + 1) * Cbb].set(blk.T)
    return w


def _dense_dilated(wd_t, gd):
    """PyTorch (Cout, Cb//gd, K) grouped weight -> tap-stacked block-diag (K*Cb, Cout)."""
    Cout, Cbg, K = wd_t.shape
    Cb = Cbg * gd
    Coutg = Cout // gd
    w = jnp.zeros((K, Cb, Cout), jnp.float32)
    for g in range(gd):
        blk = jnp.transpose(wd_t[g * Coutg:(g + 1) * Coutg], (2, 1, 0))  # (K, Cbg, Coutg)
        w = w.at[:, g * Cbg:(g + 1) * Cbg, g * Coutg:(g + 1) * Coutg].set(blk)
    return w.reshape(K * Cb, Cout)


def pack_kernel_params(p):
    """One-time packing: grouped PyTorch weights -> kernel-friendly dense layouts."""
    Cb = p["wb_t"].shape[0]
    Cout = p["wd_t"].shape[0]
    return (_dense_bottleneck(p["wb_t"], p["gb"]),
            p["bb"].reshape(1, Cb),
            _dense_dilated(p["wd_t"], p["gd"]),
            p["bd"].reshape(1, Cout),
            p["gamma"].reshape(1, Cout),
            p["beta"].reshape(1, Cout))


# ---------------------------------------------------------------------------
# Pure-JAX reference (NCL, lax.conv) for correctness checking
# ---------------------------------------------------------------------------
def ref_block(x, p, dilation, first):
    dn = ("NCH", "OIH", "NCH")
    prec = jax.lax.Precision.HIGHEST
    K = p["wd_t"].shape[-1]
    P = (K - 1) // 2 * dilation
    h = jax.lax.conv_general_dilated(
        x, p["wb_t"], (1,), "VALID", feature_group_count=p["gb"],
        dimension_numbers=dn, precision=prec) + p["bb"][None, :, None]
    y = jax.lax.conv_general_dilated(
        h, p["wd_t"], (1,), [(P, P)], rhs_dilation=(dilation,),
        feature_group_count=p["gd"], dimension_numbers=dn,
        precision=prec) + p["bd"][None, :, None]
    res = jnp.concatenate([x, x], axis=1) if first else x
    z = jnp.maximum(y, 0.0) + res
    mean = jnp.mean(z, axis=(0, 2), keepdims=True)
    var = jnp.mean(jnp.square(z - mean), axis=(0, 2), keepdims=True)
    return (p["gamma"][None, :, None] * (z - mean) / jnp.sqrt(var + 1e-5)
            + p["beta"][None, :, None])


def ref_net(x, params_list, dilations):
    for i, (p, d) in enumerate(zip(params_list, dilations)):
        x = ref_block(x, p, d, first=(i == 0))
    return x


# ---------------------------------------------------------------------------
if __name__ == "__main__":
    # Small config consistent with the module:
    #   dilated_bottleneck_net(in_channel=16, out_channel=16, bottleneck=8,
    #                          kernel_size=5, dilation=1, groups=2)
    B, L = 2, 64
    in_ch, out_ch, bneck, ksize, base_d, groups = 16, 16, 8, 5, 1, 2

    key = jax.random.PRNGKey(0)
    keys = jax.random.split(key, 8)

    params_list = []
    dilations = []
    # layer0: bottle groups=1, dilated conv firstlayergroups=2, out=2*out_ch
    params_list.append(init_block_params(keys[0], in_ch, out_ch * 2,
                                         bneck * 2, ksize, gb=1, gd=groups))
    dilations.append(base_d)
    # layers 1..5: groups=2 on both convs, dilation doubles each layer
    for i in range(1, 6):
        params_list.append(init_block_params(keys[i], out_ch * 2, out_ch * 2,
                                             bneck * 2, ksize, gb=groups,
                                             gd=groups))
        dilations.append(base_d * (2 ** i))

    # One-time weight packing (outside the per-forward path).
    kparams = tuple(pack_kernel_params(p) for p in params_list)

    fwd = jax.jit(functools.partial(net_forward,
                                    dilations=tuple(dilations), ksize=ksize))

    x = jax.random.normal(keys[6], (B, in_ch, L), jnp.float32)  # NCL like torch

    out = jax.block_until_ready(fwd(x, kparams))
    ref = jax.block_until_ready(ref_net(x, params_list, dilations))

    assert out.shape == (B, out_ch * 2, L), out.shape
    assert jnp.allclose(out, ref, atol=1e-2, rtol=1e-2), (
        float(jnp.max(jnp.abs(out - ref))))

    print("KERNEL_OK")
</pallas_src>

<mosaic_0001>
module attributes {stable_mosaic.version = 11 : i64} {
  func.func @_net_kernel(%arg0: memref<2x64x16xf32, #tpu.memory_space<vmem>>, %arg1: memref<16x16xf32, #tpu.memory_space<vmem>>, %arg2: memref<1x16xf32, #tpu.memory_space<vmem>>, %arg3: memref<80x32xf32, #tpu.memory_space<vmem>>, %arg4: memref<1x32xf32, #tpu.memory_space<vmem>>, %arg5: memref<1x32xf32, #tpu.memory_space<vmem>>, %arg6: memref<1x32xf32, #tpu.memory_space<vmem>>, %arg7: memref<32x16xf32, #tpu.memory_space<vmem>>, %arg8: memref<1x16xf32, #tpu.memory_space<vmem>>, %arg9: memref<80x32xf32, #tpu.memory_space<vmem>>, %arg10: memref<1x32xf32, #tpu.memory_space<vmem>>, %arg11: memref<1x32xf32, #tpu.memory_space<vmem>>, %arg12: memref<1x32xf32, #tpu.memory_space<vmem>>, %arg13: memref<32x16xf32, #tpu.memory_space<vmem>>, %arg14: memref<1x16xf32, #tpu.memory_space<vmem>>, %arg15: memref<80x32xf32, #tpu.memory_space<vmem>>, %arg16: memref<1x32xf32, #tpu.memory_space<vmem>>, %arg17: memref<1x32xf32, #tpu.memory_space<vmem>>, %arg18: memref<1x32xf32, #tpu.memory_space<vmem>>, %arg19: memref<32x16xf32, #tpu.memory_space<vmem>>, %arg20: memref<1x16xf32, #tpu.memory_space<vmem>>, %arg21: memref<80x32xf32, #tpu.memory_space<vmem>>, %arg22: memref<1x32xf32, #tpu.memory_space<vmem>>, %arg23: memref<1x32xf32, #tpu.memory_space<vmem>>, %arg24: memref<1x32xf32, #tpu.memory_space<vmem>>, %arg25: memref<32x16xf32, #tpu.memory_space<vmem>>, %arg26: memref<1x16xf32, #tpu.memory_space<vmem>>, %arg27: memref<80x32xf32, #tpu.memory_space<vmem>>, %arg28: memref<1x32xf32, #tpu.memory_space<vmem>>, %arg29: memref<1x32xf32, #tpu.memory_space<vmem>>, %arg30: memref<1x32xf32, #tpu.memory_space<vmem>>, %arg31: memref<32x16xf32, #tpu.memory_space<vmem>>, %arg32: memref<1x16xf32, #tpu.memory_space<vmem>>, %arg33: memref<80x32xf32, #tpu.memory_space<vmem>>, %arg34: memref<1x32xf32, #tpu.memory_space<vmem>>, %arg35: memref<1x32xf32, #tpu.memory_space<vmem>>, %arg36: memref<1x32xf32, #tpu.memory_space<vmem>>, %arg37: memref<2x64x32xf32, #tpu.memory_space<vmem>>, %arg38: memref<2x64x32xf32, #tpu.memory_space<vmem>>, %arg39: memref<2x192x16xf32, #tpu.memory_space<vmem>>) attributes {dimension_semantics = [], scalar_prefetch = 0 : i64, scratch_operands = 2 : i64, tpu.core_type = #tpu.core_type<tc>} {
    %cst = arith.constant 0.000000e+00 : f32
    %0 = vector.broadcast %cst : f32 to vector<2x64x16xf32>
    %c0 = arith.constant 0 : index
    %c0_0 = arith.constant 0 : index
    %c0_1 = arith.constant 0 : index
    %1 = vector.load %arg39[%c0, %c0_0, %c0_1] : memref<2x192x16xf32, #tpu.memory_space<vmem>>, vector<2x64x16xf32>
    tpu.vector_store %arg39[%c0, %c0_0, %c0_1], %0 {strides = array<i32>} : memref<2x192x16xf32, #tpu.memory_space<vmem>>, vector<2x64x16xf32>,
    %cst_2 = arith.constant 0.000000e+00 : f32
    %2 = vector.broadcast %cst_2 : f32 to vector<2x64x16xf32>
    %c0_3 = arith.constant 0 : index
    %c128 = arith.constant 128 : index
    %c0_4 = arith.constant 0 : index
    %3 = vector.load %arg39[%c0_3, %c128, %c0_4] : memref<2x192x16xf32, #tpu.memory_space<vmem>>, vector<2x64x16xf32>
    tpu.vector_store %arg39[%c0_3, %c128, %c0_4], %2 {strides = array<i32>} : memref<2x192x16xf32, #tpu.memory_space<vmem>>, vector<2x64x16xf32>,
    %c0_5 = arith.constant 0 : index
    %c0_6 = arith.constant 0 : index
    %c0_7 = arith.constant 0 : index
    %4 = vector.load %arg0[%c0_5, %c0_6, %c0_7] : memref<2x64x16xf32, #tpu.memory_space<vmem>>, vector<2x64x16xf32>
    %5 = tpu.concatenate %4, %4 in 2 : vector<2x64x16xf32>, vector<2x64x16xf32> -> vector<2x64x32xf32>
    %6 = vector.shape_cast %4 : vector<2x64x16xf32> to vector<128x16xf32>
    %c0_8 = arith.constant 0 : index
    %c0_9 = arith.constant 0 : index
    %7 = vector.load %arg1[%c0_8, %c0_9] : memref<16x16xf32, #tpu.memory_space<vmem>>, vector<16x16xf32>
    %cst_10 = arith.constant dense<0.000000e+00> : vector<128x16xf32>
    %8 = tpu.matmul %6, %7, %cst_10 {dimension_numbers = #tpu.dot_dimension_numbers<[1], [0], [0], [1], [0, 0, 1, 1], [], []>} : vector<128x16xf32>, vector<16x16xf32>, vector<128x16xf32> -> vector<128x16xf32>
    %c0_11 = arith.constant 0 : index
    %c0_12 = arith.constant 0 : index
    %9 = vector.load %arg2[%c0_11, %c0_12] : memref<1x16xf32, #tpu.memory_space<vmem>>, vector<1x16xf32>
    %10 = vector.broadcast %9 : vector<1x16xf32> to vector<128x16xf32>
    %11 = arith.addf %8, %10 : vector<128x16xf32>
    %12 = vector.shape_cast %11 : vector<128x16xf32> to vector<2x64x16xf32>
    %c0_13 = arith.constant 0 : index
    %c64 = arith.constant 64 : index
    %c0_14 = arith.constant 0 : index
    %13 = vector.load %arg39[%c0_13, %c64, %c0_14] : memref<2x192x16xf32, #tpu.memory_space<vmem>>, vector<2x64x16xf32>
    tpu.vector_store %arg39[%c0_13, %c64, %c0_14], %12 {strides = array<i32>} : memref<2x192x16xf32, #tpu.memory_space<vmem>>, vector<2x64x16xf32>,
    %c0_15 = arith.constant 0 : index
    %c62 = arith.constant 62 : index
    %c0_16 = arith.constant 0 : index
    %14 = vector.load %arg39[%c0_15, %c62, %c0_16] : memref<2x192x16xf32, #tpu.memory_space<vmem>>, vector<2x64x16xf32>
    %15 = vector.shape_cast %14 : vector<2x64x16xf32> to vector<128x16xf32>
    %c0_17 = arith.constant 0 : index
    %c63 = arith.constant 63 : index
    %c0_18 = arith.constant 0 : index
    %16 = vector.load %arg39[%c0_17, %c63, %c0_18] : memref<2x192x16xf32, #tpu.memory_space<vmem>>, vector<2x64x16xf32>
    %17 = vector.shape_cast %16 : vector<2x64x16xf32> to vector<128x16xf32>
    %c0_19 = arith.constant 0 : index
    %c64_20 = arith.constant 64 : index
    %c0_21 = arith.constant 0 : index
    %18 = vector.load %arg39[%c0_19, %c64_20, %c0_21] : memref<2x192x16xf32, #tpu.memory_space<vmem>>, vector<2x64x16xf32>
    %19 = vector.shape_cast %18 : vector<2x64x16xf32> to vector<128x16xf32>
    %c0_22 = arith.constant 0 : index
    %c65 = arith.constant 65 : index
    %c0_23 = arith.constant 0 : index
    %20 = vector.load %arg39[%c0_22, %c65, %c0_23] : memref<2x192x16xf32, #tpu.memory_space<vmem>>, vector<2x64x16xf32>
    %21 = vector.shape_cast %20 : vector<2x64x16xf32> to vector<128x16xf32>
    %c0_24 = arith.constant 0 : index
    %c66 = arith.constant 66 : index
    %c0_25 = arith.constant 0 : index
    %22 = vector.load %arg39[%c0_24, %c66, %c0_25] : memref<2x192x16xf32, #tpu.memory_space<vmem>>, vector<2x64x16xf32>
    %23 = vector.shape_cast %22 : vector<2x64x16xf32> to vector<128x16xf32>
    %24 = tpu.concatenate %15, %17, %19, %21, %23 in 1 : vector<128x16xf32>, vector<128x16xf32>, vector<128x16xf32>, vector<128x16xf32>, vector<128x16xf32> -> vector<128x80xf32>
    %c0_26 = arith.constant 0 : index
    %c0_27 = arith.constant 0 : index
    %25 = vector.load %arg3[%c0_26, %c0_27] : memref<80x32xf32, #tpu.memory_space<vmem>>, vector<80x32xf32>
    %cst_28 = arith.constant dense<0.000000e+00> : vector<128x32xf32>
    %26 = tpu.matmul %24, %25, %cst_28 {dimension_numbers = #tpu.dot_dimension_numbers<[1], [0], [0], [1], [0, 0, 1, 1], [], []>} : vector<128x80xf32>, vector<80x32xf32>, vector<128x32xf32> -> vector<128x32xf32>
    %c0_29 = arith.constant 0 : index
    %c0_30 = arith.constant 0 : index
    %27 = vector.load %arg4[%c0_29, %c0_30] : memref<1x32xf32, #tpu.memory_space<vmem>>, vector<1x32xf32>
    %28 = vector.broadcast %27 : vector<1x32xf32> to vector<128x32xf32>
    %29 = arith.addf %26, %28 : vector<128x32xf32>
    %cst_31 = arith.constant 0.000000e+00 : f32
    %30 = vector.broadcast %cst_31 : f32 to vector<128x32xf32>
    %31 = arith.maximumf %29, %30 : vector<128x32xf32>
    %32 = vector.shape_cast %5 : vector<2x64x32xf32> to vector<128x32xf32>
    %33 = arith.addf %31, %32 : vector<128x32xf32>
    %cst_32 = arith.constant dense<0.000000e+00> : vector<32xf32>
    %34 = vector.multi_reduction <add>, %33, %cst_32 [0] : vector<128x32xf32> to vector<32xf32>
    %35 = vector.shape_cast %34 : vector<32xf32> to vector<1x32xf32>
    %cst_33 = arith.constant 1.280000e+02 : f32
    %36 = vector.broadcast %cst_33 : f32 to vector<1x32xf32>
    %37 = arith.divf %35, %36 : vector<1x32xf32>
    %38 = vector.broadcast %37 : vector<1x32xf32> to vector<128x32xf32>
    %39 = arith.subf %33, %38 : vector<128x32xf32>
    %40 = arith.mulf %39, %39 : vector<128x32xf32>
    %cst_34 = arith.constant dense<0.000000e+00> : vector<32xf32>
    %41 = vector.multi_reduction <add>, %40, %cst_34 [0] : vector<128x32xf32> to vector<32xf32>
    %42 = vector.shape_cast %41 : vector<32xf32> to vector<1x32xf32>
    %cst_35 = arith.constant 1.280000e+02 : f32
    %43 = vector.broadcast %cst_35 : f32 to vector<1x32xf32>
    %44 = arith.divf %42, %43 : vector<1x32xf32>
    %c0_36 = arith.constant 0 : index
    %c0_37 = arith.constant 0 : index
    %45 = vector.load %arg5[%c0_36, %c0_37] : memref<1x32xf32, #tpu.memory_space<vmem>>, vector<1x32xf32>
    %cst_38 = arith.constant 9.99999974E-6 : f32
    %46 = vector.broadcast %cst_38 : f32 to vector<1x32xf32>
    %47 = arith.addf %44, %46 : vector<1x32xf32>
    %48 = math.rsqrt %47 : vector<1x32xf32>
    %49 = arith.mulf %45, %48 : vector<1x32xf32>
    %50 = vector.broadcast %49 : vector<1x32xf32> to vector<128x32xf32>
    %51 = arith.mulf %39, %50 : vector<128x32xf32>
    %c0_39 = arith.constant 0 : index
    %c0_40 = arith.constant 0 : index
    %52 = vector.load %arg6[%c0_39, %c0_40] : memref<1x32xf32, #tpu.memory_space<vmem>>, vector<1x32xf32>
    %53 = vector.broadcast %52 : vector<1x32xf32> to vector<128x32xf32>
    %54 = arith.addf %51, %53 : vector<128x32xf32>
    %55 = vector.shape_cast %54 : vector<128x32xf32> to vector<2x64x32xf32>
    %c0_41 = arith.constant 0 : index
    %c0_42 = arith.constant 0 : index
    %c0_43 = arith.constant 0 : index
    %56 = vector.load %arg38[%c0_41, %c0_42, %c0_43] : memref<2x64x32xf32, #tpu.memory_space<vmem>>, vector<2x64x32xf32>
    tpu.vector_store %arg38[%c0_41, %c0_42, %c0_43], %55 {strides = array<i32>} : memref<2x64x32xf32, #tpu.memory_space<vmem>>, vector<2x64x32xf32>,
    %c0_44 = arith.constant 0 : index
    %c0_45 = arith.constant 0 : index
    %c0_46 = arith.constant 0 : index
    %57 = vector.load %arg38[%c0_44, %c0_45, %c0_46] : memref<2x64x32xf32, #tpu.memory_space<vmem>>, vector<2x64x32xf32>
    %58 = vector.shape_cast %57 : vector<2x64x32xf32> to vector<128x32xf32>
    %c0_47 = arith.constant 0 : index
    %c0_48 = arith.constant 0 : index
    %59 = vector.load %arg7[%c0_47, %c0_48] : memref<32x16xf32, #tpu.memory_space<vmem>>, vector<32x16xf32>
    %cst_49 = arith.constant dense<0.000000e+00> : vector<128x16xf32>
    %60 = tpu.matmul %58, %59, %cst_49 {dimension_numbers = #tpu.dot_dimension_numbers<[1], [0], [0], [1], [0, 0, 1, 1], [], []>} : vector<128x32xf32>, vector<32x16xf32>, vector<128x16xf32> -> vector<128x16xf32>
    %c0_50 = arith.constant 0 : index
    %c0_51 = arith.constant 0 : index
    %61 = vector.load %arg8[%c0_50, %c0_51] : memref<1x16xf32, #tpu.memory_space<vmem>>, vector<1x16xf32>
    %62 = vector.broadcast %61 : vector<1x16xf32> to vector<128x16xf32>
    %63 = arith.addf %60, %62 : vector<128x16xf32>
    %64 = vector.shape_cast %63 : vector<128x16xf32> to vector<2x64x16xf32>
    %c0_52 = arith.constant 0 : index
    %c64_53 = arith.constant 64 : index
    %c0_54 = arith.constant 0 : index
    %65 = vector.load %arg39[%c0_52, %c64_53, %c0_54] : memref<2x192x16xf32, #tpu.memory_space<vmem>>, vector<2x64x16xf32>
    tpu.vector_store %arg39[%c0_52, %c64_53, %c0_54], %64 {strides = array<i32>} : memref<2x192x16xf32, #tpu.memory_space<vmem>>, vector<2x64x16xf32>,
    %c0_55 = arith.constant 0 : index
    %c60 = arith.constant 60 : index
    %c0_56 = arith.constant 0 : index
    %66 = vector.load %arg39[%c0_55, %c60, %c0_56] : memref<2x192x16xf32, #tpu.memory_space<vmem>>, vector<2x64x16xf32>
    %67 = vector.shape_cast %66 : vector<2x64x16xf32> to vector<128x16xf32>
    %c0_57 = arith.constant 0 : index
    %c62_58 = arith.constant 62 : index
    %c0_59 = arith.constant 0 : index
    %68 = vector.load %arg39[%c0_57, %c62_58, %c0_59] : memref<2x192x16xf32, #tpu.memory_space<vmem>>, vector<2x64x16xf32>
    %69 = vector.shape_cast %68 : vector<2x64x16xf32> to vector<128x16xf32>
    %c0_60 = arith.constant 0 : index
    %c64_61 = arith.constant 64 : index
    %c0_62 = arith.constant 0 : index
    %70 = vector.load %arg39[%c0_60, %c64_61, %c0_62] : memref<2x192x16xf32, #tpu.memory_space<vmem>>, vector<2x64x16xf32>
    %71 = vector.shape_cast %70 : vector<2x64x16xf32> to vector<128x16xf32>
    %c0_63 = arith.constant 0 : index
    %c66_64 = arith.constant 66 : index
    %c0_65 = arith.constant 0 : index
    %72 = vector.load %arg39[%c0_63, %c66_64, %c0_65] : memref<2x192x16xf32, #tpu.memory_space<vmem>>, vector<2x64x16xf32>
    %73 = vector.shape_cast %72 : vector<2x64x16xf32> to vector<128x16xf32>
    %c0_66 = arith.constant 0 : index
    %c68 = arith.constant 68 : index
    %c0_67 = arith.constant 0 : index
    %74 = vector.load %arg39[%c0_66, %c68, %c0_67] : memref<2x192x16xf32, #tpu.memory_space<vmem>>, vector<2x64x16xf32>
    %75 = vector.shape_cast %74 : vector<2x64x16xf32> to vector<128x16xf32>
    %76 = tpu.concatenate %67, %69, %71, %73, %75 in 1 : vector<128x16xf32>, vector<128x16xf32>, vector<128x16xf32>, vector<128x16xf32>, vector<128x16xf32> -> vector<128x80xf32>
    %c0_68 = arith.constant 0 : index
    %c0_69 = arith.constant 0 : index
    %77 = vector.load %arg9[%c0_68, %c0_69] : memref<80x32xf32, #tpu.memory_space<vmem>>, vector<80x32xf32>
    %cst_70 = arith.constant dense<0.000000e+00> : vector<128x32xf32>
    %78 = tpu.matmul %76, %77, %cst_70 {dimension_numbers = #tpu.dot_dimension_numbers<[1], [0], [0], [1], [0, 0, 1, 1], [], []>} : vector<128x80xf32>, vector<80x32xf32>, vector<128x32xf32> -> vector<128x32xf32>
    %c0_71 = arith.constant 0 : index
    %c0_72 = arith.constant 0 : index
    %79 = vector.load %arg10[%c0_71, %c0_72] : memref<1x32xf32, #tpu.memory_space<vmem>>, vector<1x32xf32>
    %80 = vector.broadcast %79 : vector<1x32xf32> to vector<128x32xf32>
    %81 = arith.addf %78, %80 : vector<128x32xf32>
    %cst_73 = arith.constant 0.000000e+00 : f32
    %82 = vector.broadcast %cst_73 : f32 to vector<128x32xf32>
    %83 = arith.maximumf %81, %82 : vector<128x32xf32>
    %84 = vector.shape_cast %57 : vector<2x64x32xf32> to vector<128x32xf32>
    %85 = arith.addf %83, %84 : vector<128x32xf32>
    %cst_74 = arith.constant dense<0.000000e+00> : vector<32xf32>
    %86 = vector.multi_reduction <add>, %85, %cst_74 [0] : vector<128x32xf32> to vector<32xf32>
    %87 = vector.shape_cast %86 : vector<32xf32> to vector<1x32xf32>
    %cst_75 = arith.constant 1.280000e+02 : f32
    %88 = vector.broadcast %cst_75 : f32 to vector<1x32xf32>
    %89 = arith.divf %87, %88 : vector<1x32xf32>
    %90 = vector.broadcast %89 : vector<1x32xf32> to vector<128x32xf32>
    %91 = arith.subf %85, %90 : vector<128x32xf32>
    %92 = arith.mulf %91, %91 : vector<128x32xf32>
    %cst_76 = arith.constant dense<0.000000e+00> : vector<32xf32>
    %93 = vector.multi_reduction <add>, %92, %cst_76 [0] : vector<128x32xf32> to vector<32xf32>
    %94 = vector.shape_cast %93 : vector<32xf32> to vector<1x32xf32>
    %cst_77 = arith.constant 1.280000e+02 : f32
    %95 = vector.broadcast %cst_77 : f32 to vector<1x32xf32>
    %96 = arith.divf %94, %95 : vector<1x32xf32>
    %c0_78 = arith.constant 0 : index
    %c0_79 = arith.constant 0 : index
    %97 = vector.load %arg11[%c0_78, %c0_79] : memref<1x32xf32, #tpu.memory_space<vmem>>, vector<1x32xf32>
    %cst_80 = arith.constant 9.99999974E-6 : f32
    %98 = vector.broadcast %cst_80 : f32 to vector<1x32xf32>
    %99 = arith.addf %96, %98 : vector<1x32xf32>
    %100 = math.rsqrt %99 : vector<1x32xf32>
    %101 = arith.mulf %97, %100 : vector<1x32xf32>
    %102 = vector.broadcast %101 : vector<1x32xf32> to vector<128x32xf32>
    %103 = arith.mulf %91, %102 : vector<128x32xf32>
    %c0_81 = arith.constant 0 : index
    %c0_82 = arith.constant 0 : index
    %104 = vector.load %arg12[%c0_81, %c0_82] : memref<1x32xf32, #tpu.memory_space<vmem>>, vector<1x32xf32>
    %105 = vector.broadcast %104 : vector<1x32xf32> to vector<128x32xf32>
    %106 = arith.addf %103, %105 : vector<128x32xf32>
    %107 = vector.shape_cast %106 : vector<128x32xf32> to vector<2x64x32xf32>
    %c0_83 = arith.constant 0 : index
    %c0_84 = arith.constant 0 : index
    %c0_85 = arith.constant 0 : index
    %108 = vector.load %arg38[%c0_83, %c0_84, %c0_85] : memref<2x64x32xf32, #tpu.memory_space<vmem>>, vector<2x64x32xf32>
    tpu.vector_store %arg38[%c0_83, %c0_84, %c0_85], %107 {strides = array<i32>} : memref<2x64x32xf32, #tpu.memory_space<vmem>>, vector<2x64x32xf32>,
    %c0_86 = arith.constant 0 : index
    %c0_87 = arith.constant 0 : index
    %c0_88 = arith.constant 0 : index
    %109 = vector.load %arg38[%c0_86, %c0_87, %c0_88] : memref<2x64x32xf32, #tpu.memory_space<vmem>>, vector<2x64x32xf32>
    %110 = vector.shape_cast %109 : vector<2x64x32xf32> to vector<128x32xf32>
    %c0_89 = arith.constant 0 : index
    %c0_90 = arith.constant 0 : index
    %111 = vector.load %arg13[%c0_89, %c0_90] : memref<32x16xf32, #tpu.memory_space<vmem>>, vector<32x16xf32>
    %cst_91 = arith.constant dense<0.000000e+00> : vector<128x16xf32>
    %112 = tpu.matmul %110, %111, %cst_91 {dimension_numbers = #tpu.dot_dimension_numbers<[1], [0], [0], [1], [0, 0, 1, 1], [], []>} : vector<128x32xf32>, vector<32x16xf32>, vector<128x16xf32> -> vector<128x16xf32>
    %c0_92 = arith.constant 0 : index
    %c0_93 = arith.constant 0 : index
    %113 = vector.load %arg14[%c0_92, %c0_93] : memref<1x16xf32, #tpu.memory_space<vmem>>, vector<1x16xf32>
    %114 = vector.broadcast %113 : vector<1x16xf32> to vector<128x16xf32>
    %115 = arith.addf %112, %114 : vector<128x16xf32>
    %116 = vector.shape_cast %115 : vector<128x16xf32> to vector<2x64x16xf32>
    %c0_94 = arith.constant 0 : index
    %c64_95 = arith.constant 64 : index
    %c0_96 = arith.constant 0 : index
    %117 = vector.load %arg39[%c0_94, %c64_95, %c0_96] : memref<2x192x16xf32, #tpu.memory_space<vmem>>, vector<2x64x16xf32>
    tpu.vector_store %arg39[%c0_94, %c64_95, %c0_96], %116 {strides = array<i32>} : memref<2x192x16xf32, #tpu.memory_space<vmem>>, vector<2x64x16xf32>,
    %c0_97 = arith.constant 0 : index
    %c56 = arith.constant 56 : index
    %c0_98 = arith.constant 0 : index
    %118 = vector.load %arg39[%c0_97, %c56, %c0_98] : memref<2x192x16xf32, #tpu.memory_space<vmem>>, vector<2x64x16xf32>
    %119 = vector.shape_cast %118 : vector<2x64x16xf32> to vector<128x16xf32>
    %c0_99 = arith.constant 0 : index
    %c60_100 = arith.constant 60 : index
    %c0_101 = arith.constant 0 : index
    %120 = vector.load %arg39[%c0_99, %c60_100, %c0_101] : memref<2x192x16xf32, #tpu.memory_space<vmem>>, vector<2x64x16xf32>
    %121 = vector.shape_cast %120 : vector<2x64x16xf32> to vector<128x16xf32>
    %c0_102 = arith.constant 0 : index
    %c64_103 = arith.constant 64 : index
    %c0_104 = arith.constant 0 : index
    %122 = vector.load %arg39[%c0_102, %c64_103, %c0_104] : memref<2x192x16xf32, #tpu.memory_space<vmem>>, vector<2x64x16xf32>
    %123 = vector.shape_cast %122 : vector<2x64x16xf32> to vector<128x16xf32>
    %c0_105 = arith.constant 0 : index
    %c68_106 = arith.constant 68 : index
    %c0_107 = arith.constant 0 : index
    %124 = vector.load %arg39[%c0_105, %c68_106, %c0_107] : memref<2x192x16xf32, #tpu.memory_space<vmem>>, vector<2x64x16xf32>
    %125 = vector.shape_cast %124 : vector<2x64x16xf32> to vector<128x16xf32>
    %c0_108 = arith.constant 0 : index
    %c72 = arith.constant 72 : index
    %c0_109 = arith.constant 0 : index
    %126 = vector.load %arg39[%c0_108, %c72, %c0_109] : memref<2x192x16xf32, #tpu.memory_space<vmem>>, vector<2x64x16xf32>
    %127 = vector.shape_cast %126 : vector<2x64x16xf32> to vector<128x16xf32>
    %128 = tpu.concatenate %119, %121, %123, %125, %127 in 1 : vector<128x16xf32>, vector<128x16xf32>, vector<128x16xf32>, vector<128x16xf32>, vector<128x16xf32> -> vector<128x80xf32>
    %c0_110 = arith.constant 0 : index
    %c0_111 = arith.constant 0 : index
    %129 = vector.load %arg15[%c0_110, %c0_111] : memref<80x32xf32, #tpu.memory_space<vmem>>, vector<80x32xf32>
    %cst_112 = arith.constant dense<0.000000e+00> : vector<128x32xf32>
    %130 = tpu.matmul %128, %129, %cst_112 {dimension_numbers = #tpu.dot_dimension_numbers<[1], [0], [0], [1], [0, 0, 1, 1], [], []>} : vector<128x80xf32>, vector<80x32xf32>, vector<128x32xf32> -> vector<128x32xf32>
    %c0_113 = arith.constant 0 : index
    %c0_114 = arith.constant 0 : index
    %131 = vector.load %arg16[%c0_113, %c0_114] : memref<1x32xf32, #tpu.memory_space<vmem>>, vector<1x32xf32>
    %132 = vector.broadcast %131 : vector<1x32xf32> to vector<128x32xf32>
    %133 = arith.addf %130, %132 : vector<128x32xf32>
    %cst_115 = arith.constant 0.000000e+00 : f32
    %134 = vector.broadcast %cst_115 : f32 to vector<128x32xf32>
    %135 = arith.maximumf %133, %134 : vector<128x32xf32>
    %136 = vector.shape_cast %109 : vector<2x64x32xf32> to vector<128x32xf32>
    %137 = arith.addf %135, %136 : vector<128x32xf32>
    %cst_116 = arith.constant dense<0.000000e+00> : vector<32xf32>
    %138 = vector.multi_reduction <add>, %137, %cst_116 [0] : vector<128x32xf32> to vector<32xf32>
    %139 = vector.shape_cast %138 : vector<32xf32> to vector<1x32xf32>
    %cst_117 = arith.constant 1.280000e+02 : f32
    %140 = vector.broadcast %cst_117 : f32 to vector<1x32xf32>
    %141 = arith.divf %139, %140 : vector<1x32xf32>
    %142 = vector.broadcast %141 : vector<1x32xf32> to vector<128x32xf32>
    %143 = arith.subf %137, %142 : vector<128x32xf32>
    %144 = arith.mulf %143, %143 : vector<128x32xf32>
    %cst_118 = arith.constant dense<0.000000e+00> : vector<32xf32>
    %145 = vector.multi_reduction <add>, %144, %cst_118 [0] : vector<128x32xf32> to vector<32xf32>
    %146 = vector.shape_cast %145 : vector<32xf32> to vector<1x32xf32>
    %cst_119 = arith.constant 1.280000e+02 : f32
    %147 = vector.broadcast %cst_119 : f32 to vector<1x32xf32>
    %148 = arith.divf %146, %147 : vector<1x32xf32>
    %c0_120 = arith.constant 0 : index
    %c0_121 = arith.constant 0 : index
    %149 = vector.load %arg17[%c0_120, %c0_121] : memref<1x32xf32, #tpu.memory_space<vmem>>, vector<1x32xf32>
    %cst_122 = arith.constant 9.99999974E-6 : f32
    %150 = vector.broadcast %cst_122 : f32 to vector<1x32xf32>
    %151 = arith.addf %148, %150 : vector<1x32xf32>
    %152 = math.rsqrt %151 : vector<1x32xf32>
    %153 = arith.mulf %149, %152 : vector<1x32xf32>
    %154 = vector.broadcast %153 : vector<1x32xf32> to vector<128x32xf32>
    %155 = arith.mulf %143, %154 : vector<128x32xf32>
    %c0_123 = arith.constant 0 : index
    %c0_124 = arith.constant 0 : index
    %156 = vector.load %arg18[%c0_123, %c0_124] : memref<1x32xf32, #tpu.memory_space<vmem>>, vector<1x32xf32>
    %157 = vector.broadcast %156 : vector<1x32xf32> to vector<128x32xf32>
    %158 = arith.addf %155, %157 : vector<128x32xf32>
    %159 = vector.shape_cast %158 : vector<128x32xf32> to vector<2x64x32xf32>
    %c0_125 = arith.constant 0 : index
    %c0_126 = arith.constant 0 : index
    %c0_127 = arith.constant 0 : index
    %160 = vector.load %arg38[%c0_125, %c0_126, %c0_127] : memref<2x64x32xf32, #tpu.memory_space<vmem>>, vector<2x64x32xf32>
    tpu.vector_store %arg38[%c0_125, %c0_126, %c0_127], %159 {strides = array<i32>} : memref<2x64x32xf32, #tpu.memory_space<vmem>>, vector<2x64x32xf32>,
    %c0_128 = arith.constant 0 : index
    %c0_129 = arith.constant 0 : index
    %c0_130 = arith.constant 0 : index
    %161 = vector.load %arg38[%c0_128, %c0_129, %c0_130] : memref<2x64x32xf32, #tpu.memory_space<vmem>>, vector<2x64x32xf32>
    %162 = vector.shape_cast %161 : vector<2x64x32xf32> to vector<128x32xf32>
    %c0_131 = arith.constant 0 : index
    %c0_132 = arith.constant 0 : index
    %163 = vector.load %arg19[%c0_131, %c0_132] : memref<32x16xf32, #tpu.memory_space<vmem>>, vector<32x16xf32>
    %cst_133 = arith.constant dense<0.000000e+00> : vector<128x16xf32>
    %164 = tpu.matmul %162, %163, %cst_133 {dimension_numbers = #tpu.dot_dimension_numbers<[1], [0], [0], [1], [0, 0, 1, 1], [], []>} : vector<128x32xf32>, vector<32x16xf32>, vector<128x16xf32> -> vector<128x16xf32>
    %c0_134 = arith.constant 0 : index
    %c0_135 = arith.constant 0 : index
    %165 = vector.load %arg20[%c0_134, %c0_135] : memref<1x16xf32, #tpu.memory_space<vmem>>, vector<1x16xf32>
    %166 = vector.broadcast %165 : vector<1x16xf32> to vector<128x16xf32>
    %167 = arith.addf %164, %166 : vector<128x16xf32>
    %168 = vector.shape_cast %167 : vector<128x16xf32> to vector<2x64x16xf32>
    %c0_136 = arith.constant 0 : index
    %c64_137 = arith.constant 64 : index
    %c0_138 = arith.constant 0 : index
    %169 = vector.load %arg39[%c0_136, %c64_137, %c0_138] : memref<2x192x16xf32, #tpu.memory_space<vmem>>, vector<2x64x16xf32>
    tpu.vector_store %arg39[%c0_136, %c64_137, %c0_138], %168 {strides = array<i32>} : memref<2x192x16xf32, #tpu.memory_space<vmem>>, vector<2x64x16xf32>,
    %c0_139 = arith.constant 0 : index
    %c48 = arith.constant 48 : index
    %c0_140 = arith.constant 0 : index
    %170 = vector.load %arg39[%c0_139, %c48, %c0_140] : memref<2x192x16xf32, #tpu.memory_space<vmem>>, vector<2x64x16xf32>
    %171 = vector.shape_cast %170 : vector<2x64x16xf32> to vector<128x16xf32>
    %c0_141 = arith.constant 0 : index
    %c56_142 = arith.constant 56 : index
    %c0_143 = arith.constant 0 : index
    %172 = vector.load %arg39[%c0_141, %c56_142, %c0_143] : memref<2x192x16xf32, #tpu.memory_space<vmem>>, vector<2x64x16xf32>
    %173 = vector.shape_cast %172 : vector<2x64x16xf32> to vector<128x16xf32>
    %c0_144 = arith.constant 0 : index
    %c64_145 = arith.constant 64 : index
    %c0_146 = arith.constant 0 : index
    %174 = vector.load %arg39[%c0_144, %c64_145, %c0_146] : memref<2x192x16xf32, #tpu.memory_space<vmem>>, vector<2x64x16xf32>
    %175 = vector.shape_cast %174 : vector<2x64x16xf32> to vector<128x16xf32>
    %c0_147 = arith.constant 0 : index
    %c72_148 = arith.constant 72 : index
    %c0_149 = arith.constant 0 : index
    %176 = vector.load %arg39[%c0_147, %c72_148, %c0_149] : memref<2x192x16xf32, #tpu.memory_space<vmem>>, vector<2x64x16xf32>
    %177 = vector.shape_cast %176 : vector<2x64x16xf32> to vector<128x16xf32>
    %c0_150 = arith.constant 0 : index
    %c80 = arith.constant 80 : index
    %c0_151 = arith.constant 0 : index
    %178 = vector.load %arg39[%c0_150, %c80, %c0_151] : memref<2x192x16xf32, #tpu.memory_space<vmem>>, vector<2x64x16xf32>
    %179 = vector.shape_cast %178 : vector<2x64x16xf32> to vector<128x16xf32>
    %180 = tpu.concatenate %171, %173, %175, %177, %179 in 1 : vector<128x16xf32>, vector<128x16xf32>, vector<128x16xf32>, vector<128x16xf32>, vector<128x16xf32> -> vector<128x80xf32>
    %c0_152 = arith.constant 0 : index
    %c0_153 = arith.constant 0 : index
    %181 = vector.load %arg21[%c0_152, %c0_153] : memref<80x32xf32, #tpu.memory_space<vmem>>, vector<80x32xf32>
    %cst_154 = arith.constant dense<0.000000e+00> : vector<128x32xf32>
    %182 = tpu.matmul %180, %181, %cst_154 {dimension_numbers = #tpu.dot_dimension_numbers<[1], [0], [0], [1], [0, 0, 1, 1], [], []>} : vector<128x80xf32>, vector<80x32xf32>, vector<128x32xf32> -> vector<128x32xf32>
    %c0_155 = arith.constant 0 : index
    %c0_156 = arith.constant 0 : index
    %183 = vector.load %arg22[%c0_155, %c0_156] : memref<1x32xf32, #tpu.memory_space<vmem>>, vector<1x32xf32>
    %184 = vector.broadcast %183 : vector<1x32xf32> to vector<128x32xf32>
    %185 = arith.addf %182, %184 : vector<128x32xf32>
    %cst_157 = arith.constant 0.000000e+00 : f32
    %186 = vector.broadcast %cst_157 : f32 to vector<128x32xf32>
    %187 = arith.maximumf %185, %186 : vector<128x32xf32>
    %188 = vector.shape_cast %161 : vector<2x64x32xf32> to vector<128x32xf32>
    %189 = arith.addf %187, %188 : vector<128x32xf32>
    %cst_158 = arith.constant dense<0.000000e+00> : vector<32xf32>
    %190 = vector.multi_reduction <add>, %189, %cst_158 [0] : vector<128x32xf32> to vector<32xf32>
    %191 = vector.shape_cast %190 : vector<32xf32> to vector<1x32xf32>
    %cst_159 = arith.constant 1.280000e+02 : f32
    %192 = vector.broadcast %cst_159 : f32 to vector<1x32xf32>
    %193 = arith.divf %191, %192 : vector<1x32xf32>
    %194 = vector.broadcast %193 : vector<1x32xf32> to vector<128x32xf32>
    %195 = arith.subf %189, %194 : vector<128x32xf32>
    %196 = arith.mulf %195, %195 : vector<128x32xf32>
    %cst_160 = arith.constant dense<0.000000e+00> : vector<32xf32>
    %197 = vector.multi_reduction <add>, %196, %cst_160 [0] : vector<128x32xf32> to vector<32xf32>
    %198 = vector.shape_cast %197 : vector<32xf32> to vector<1x32xf32>
    %cst_161 = arith.constant 1.280000e+02 : f32
    %199 = vector.broadcast %cst_161 : f32 to vector<1x32xf32>
    %200 = arith.divf %198, %199 : vector<1x32xf32>
    %c0_162 = arith.constant 0 : index
    %c0_163 = arith.constant 0 : index
    %201 = vector.load %arg23[%c0_162, %c0_163] : memref<1x32xf32, #tpu.memory_space<vmem>>, vector<1x32xf32>
    %cst_164 = arith.constant 9.99999974E-6 : f32
    %202 = vector.broadcast %cst_164 : f32 to vector<1x32xf32>
    %203 = arith.addf %200, %202 : vector<1x32xf32>
    %204 = math.rsqrt %203 : vector<1x32xf32>
    %205 = arith.mulf %201, %204 : vector<1x32xf32>
    %206 = vector.broadcast %205 : vector<1x32xf32> to vector<128x32xf32>
    %207 = arith.mulf %195, %206 : vector<128x32xf32>
    %c0_165 = arith.constant 0 : index
    %c0_166 = arith.constant 0 : index
    %208 = vector.load %arg24[%c0_165, %c0_166] : memref<1x32xf32, #tpu.memory_space<vmem>>, vector<1x32xf32>
    %209 = vector.broadcast %208 : vector<1x32xf32> to vector<128x32xf32>
    %210 = arith.addf %207, %209 : vector<128x32xf32>
    %211 = vector.shape_cast %210 : vector<128x32xf32> to vector<2x64x32xf32>
    %c0_167 = arith.constant 0 : index
    %c0_168 = arith.constant 0 : index
    %c0_169 = arith.constant 0 : index
    %212 = vector.load %arg38[%c0_167, %c0_168, %c0_169] : memref<2x64x32xf32, #tpu.memory_space<vmem>>, vector<2x64x32xf32>
    tpu.vector_store %arg38[%c0_167, %c0_168, %c0_169], %211 {strides = array<i32>} : memref<2x64x32xf32, #tpu.memory_space<vmem>>, vector<2x64x32xf32>,
    %c0_170 = arith.constant 0 : index
    %c0_171 = arith.constant 0 : index
    %c0_172 = arith.constant 0 : index
    %213 = vector.load %arg38[%c0_170, %c0_171, %c0_172] : memref<2x64x32xf32, #tpu.memory_space<vmem>>, vector<2x64x32xf32>
    %214 = vector.shape_cast %213 : vector<2x64x32xf32> to vector<128x32xf32>
    %c0_173 = arith.constant 0 : index
    %c0_174 = arith.constant 0 : index
    %215 = vector.load %arg25[%c0_173, %c0_174] : memref<32x16xf32, #tpu.memory_space<vmem>>, vector<32x16xf32>
    %cst_175 = arith.constant dense<0.000000e+00> : vector<128x16xf32>
    %216 = tpu.matmul %214, %215, %cst_175 {dimension_numbers = #tpu.dot_dimension_numbers<[1], [0], [0], [1], [0, 0, 1, 1], [], []>} : vector<128x32xf32>, vector<32x16xf32>, vector<128x16xf32> -> vector<128x16xf32>
    %c0_176 = arith.constant 0 : index
    %c0_177 = arith.constant 0 : index
    %217 = vector.load %arg26[%c0_176, %c0_177] : memref<1x16xf32, #tpu.memory_space<vmem>>, vector<1x16xf32>
    %218 = vector.broadcast %217 : vector<1x16xf32> to vector<128x16xf32>
    %219 = arith.addf %216, %218 : vector<128x16xf32>
    %220 = vector.shape_cast %219 : vector<128x16xf32> to vector<2x64x16xf32>
    %c0_178 = arith.constant 0 : index
    %c64_179 = arith.constant 64 : index
    %c0_180 = arith.constant 0 : index
    %221 = vector.load %arg39[%c0_178, %c64_179, %c0_180] : memref<2x192x16xf32, #tpu.memory_space<vmem>>, vector<2x64x16xf32>
    tpu.vector_store %arg39[%c0_178, %c64_179, %c0_180], %220 {strides = array<i32>} : memref<2x192x16xf32, #tpu.memory_space<vmem>>, vector<2x64x16xf32>,
    %c0_181 = arith.constant 0 : index
    %c32 = arith.constant 32 : index
    %c0_182 = arith.constant 0 : index
    %222 = vector.load %arg39[%c0_181, %c32, %c0_182] : memref<2x192x16xf32, #tpu.memory_space<vmem>>, vector<2x64x16xf32>
    %223 = vector.shape_cast %222 : vector<2x64x16xf32> to vector<128x16xf32>
    %c0_183 = arith.constant 0 : index
    %c48_184 = arith.constant 48 : index
    %c0_185 = arith.constant 0 : index
    %224 = vector.load %arg39[%c0_183, %c48_184, %c0_185] : memref<2x192x16xf32, #tpu.memory_space<vmem>>, vector<2x64x16xf32>
    %225 = vector.shape_cast %224 : vector<2x64x16xf32> to vector<128x16xf32>
    %c0_186 = arith.constant 0 : index
    %c64_187 = arith.constant 64 : index
    %c0_188 = arith.constant 0 : index
    %226 = vector.load %arg39[%c0_186, %c64_187, %c0_188] : memref<2x192x16xf32, #tpu.memory_space<vmem>>, vector<2x64x16xf32>
    %227 = vector.shape_cast %226 : vector<2x64x16xf32> to vector<128x16xf32>
    %c0_189 = arith.constant 0 : index
    %c80_190 = arith.constant 80 : index
    %c0_191 = arith.constant 0 : index
    %228 = vector.load %arg39[%c0_189, %c80_190, %c0_191] : memref<2x192x16xf32, #tpu.memory_space<vmem>>, vector<2x64x16xf32>
    %229 = vector.shape_cast %228 : vector<2x64x16xf32> to vector<128x16xf32>
    %c0_192 = arith.constant 0 : index
    %c96 = arith.constant 96 : index
    %c0_193 = arith.constant 0 : index
    %230 = vector.load %arg39[%c0_192, %c96, %c0_193] : memref<2x192x16xf32, #tpu.memory_space<vmem>>, vector<2x64x16xf32>
    %231 = vector.shape_cast %230 : vector<2x64x16xf32> to vector<128x16xf32>
    %232 = tpu.concatenate %223, %225, %227, %229, %231 in 1 : vector<128x16xf32>, vector<128x16xf32>, vector<128x16xf32>, vector<128x16xf32>, vector<128x16xf32> -> vector<128x80xf32>
    %c0_194 = arith.constant 0 : index
    %c0_195 = arith.constant 0 : index
    %233 = vector.load %arg27[%c0_194, %c0_195] : memref<80x32xf32, #tpu.memory_space<vmem>>, vector<80x32xf32>
    %cst_196 = arith.constant dense<0.000000e+00> : vector<128x32xf32>
    %234 = tpu.matmul %232, %233, %cst_196 {dimension_numbers = #tpu.dot_dimension_numbers<[1], [0], [0], [1], [0, 0, 1, 1], [], []>} : vector<128x80xf32>, vector<80x32xf32>, vector<128x32xf32> -> vector<128x32xf32>
    %c0_197 = arith.constant 0 : index
    %c0_198 = arith.constant 0 : index
    %235 = vector.load %arg28[%c0_197, %c0_198] : memref<1x32xf32, #tpu.memory_space<vmem>>, vector<1x32xf32>
    %236 = vector.broadcast %235 : vector<1x32xf32> to vector<128x32xf32>
    %237 = arith.addf %234, %236 : vector<128x32xf32>
    %cst_199 = arith.constant 0.000000e+00 : f32
    %238 = vector.broadcast %cst_199 : f32 to vector<128x32xf32>
    %239 = arith.maximumf %237, %238 : vector<128x32xf32>
    %240 = vector.shape_cast %213 : vector<2x64x32xf32> to vector<128x32xf32>
    %241 = arith.addf %239, %240 : vector<128x32xf32>
    %cst_200 = arith.constant dense<0.000000e+00> : vector<32xf32>
    %242 = vector.multi_reduction <add>, %241, %cst_200 [0] : vector<128x32xf32> to vector<32xf32>
    %243 = vector.shape_cast %242 : vector<32xf32> to vector<1x32xf32>
    %cst_201 = arith.constant 1.280000e+02 : f32
    %244 = vector.broadcast %cst_201 : f32 to vector<1x32xf32>
    %245 = arith.divf %243, %244 : vector<1x32xf32>
    %246 = vector.broadcast %245 : vector<1x32xf32> to vector<128x32xf32>
    %247 = arith.subf %241, %246 : vector<128x32xf32>
    %248 = arith.mulf %247, %247 : vector<128x32xf32>
    %cst_202 = arith.constant dense<0.000000e+00> : vector<32xf32>
    %249 = vector.multi_reduction <add>, %248, %cst_202 [0] : vector<128x32xf32> to vector<32xf32>
    %250 = vector.shape_cast %249 : vector<32xf32> to vector<1x32xf32>
    %cst_203 = arith.constant 1.280000e+02 : f32
    %251 = vector.broadcast %cst_203 : f32 to vector<1x32xf32>
    %252 = arith.divf %250, %251 : vector<1x32xf32>
    %c0_204 = arith.constant 0 : index
    %c0_205 = arith.constant 0 : index
    %253 = vector.load %arg29[%c0_204, %c0_205] : memref<1x32xf32, #tpu.memory_space<vmem>>, vector<1x32xf32>
    %cst_206 = arith.constant 9.99999974E-6 : f32
    %254 = vector.broadcast %cst_206 : f32 to vector<1x32xf32>
    %255 = arith.addf %252, %254 : vector<1x32xf32>
    %256 = math.rsqrt %255 : vector<1x32xf32>
    %257 = arith.mulf %253, %256 : vector<1x32xf32>
    %258 = vector.broadcast %257 : vector<1x32xf32> to vector<128x32xf32>
    %259 = arith.mulf %247, %258 : vector<128x32xf32>
    %c0_207 = arith.constant 0 : index
    %c0_208 = arith.constant 0 : index
    %260 = vector.load %arg30[%c0_207, %c0_208] : memref<1x32xf32, #tpu.memory_space<vmem>>, vector<1x32xf32>
    %261 = vector.broadcast %260 : vector<1x32xf32> to vector<128x32xf32>
    %262 = arith.addf %259, %261 : vector<128x32xf32>
    %263 = vector.shape_cast %262 : vector<128x32xf32> to vector<2x64x32xf32>
    %c0_209 = arith.constant 0 : index
    %c0_210 = arith.constant 0 : index
    %c0_211 = arith.constant 0 : index
    %264 = vector.load %arg38[%c0_209, %c0_210, %c0_211] : memref<2x64x32xf32, #tpu.memory_space<vmem>>, vector<2x64x32xf32>
    tpu.vector_store %arg38[%c0_209, %c0_210, %c0_211], %263 {strides = array<i32>} : memref<2x64x32xf32, #tpu.memory_space<vmem>>, vector<2x64x32xf32>,
    %c0_212 = arith.constant 0 : index
    %c0_213 = arith.constant 0 : index
    %c0_214 = arith.constant 0 : index
    %265 = vector.load %arg38[%c0_212, %c0_213, %c0_214] : memref<2x64x32xf32, #tpu.memory_space<vmem>>, vector<2x64x32xf32>
    %266 = vector.shape_cast %265 : vector<2x64x32xf32> to vector<128x32xf32>
    %c0_215 = arith.constant 0 : index
    %c0_216 = arith.constant 0 : index
    %267 = vector.load %arg31[%c0_215, %c0_216] : memref<32x16xf32, #tpu.memory_space<vmem>>, vector<32x16xf32>
    %cst_217 = arith.constant dense<0.000000e+00> : vector<128x16xf32>
    %268 = tpu.matmul %266, %267, %cst_217 {dimension_numbers = #tpu.dot_dimension_numbers<[1], [0], [0], [1], [0, 0, 1, 1], [], []>} : vector<128x32xf32>, vector<32x16xf32>, vector<128x16xf32> -> vector<128x16xf32>
    %c0_218 = arith.constant 0 : index
    %c0_219 = arith.constant 0 : index
    %269 = vector.load %arg32[%c0_218, %c0_219] : memref<1x16xf32, #tpu.memory_space<vmem>>, vector<1x16xf32>
    %270 = vector.broadcast %269 : vector<1x16xf32> to vector<128x16xf32>
    %271 = arith.addf %268, %270 : vector<128x16xf32>
    %272 = vector.shape_cast %271 : vector<128x16xf32> to vector<2x64x16xf32>
    %c0_220 = arith.constant 0 : index
    %c64_221 = arith.constant 64 : index
    %c0_222 = arith.constant 0 : index
    %273 = vector.load %arg39[%c0_220, %c64_221, %c0_222] : memref<2x192x16xf32, #tpu.memory_space<vmem>>, vector<2x64x16xf32>
    tpu.vector_store %arg39[%c0_220, %c64_221, %c0_222], %272 {strides = array<i32>} : memref<2x192x16xf32, #tpu.memory_space<vmem>>, vector<2x64x16xf32>,
    %c0_223 = arith.constant 0 : index
    %c0_224 = arith.constant 0 : index
    %c0_225 = arith.constant 0 : index
    %274 = vector.load %arg39[%c0_223, %c0_224, %c0_225] : memref<2x192x16xf32, #tpu.memory_space<vmem>>, vector<2x64x16xf32>
    %275 = vector.shape_cast %274 : vector<2x64x16xf32> to vector<128x16xf32>
    %c0_226 = arith.constant 0 : index
    %c32_227 = arith.constant 32 : index
    %c0_228 = arith.constant 0 : index
    %276 = vector.load %arg39[%c0_226, %c32_227, %c0_228] : memref<2x192x16xf32, #tpu.memory_space<vmem>>, vector<2x64x16xf32>
    %277 = vector.shape_cast %276 : vector<2x64x16xf32> to vector<128x16xf32>
    %c0_229 = arith.constant 0 : index
    %c64_230 = arith.constant 64 : index
    %c0_231 = arith.constant 0 : index
    %278 = vector.load %arg39[%c0_229, %c64_230, %c0_231] : memref<2x192x16xf32, #tpu.memory_space<vmem>>, vector<2x64x16xf32>
    %279 = vector.shape_cast %278 : vector<2x64x16xf32> to vector<128x16xf32>
    %c0_232 = arith.constant 0 : index
    %c96_233 = arith.constant 96 : index
    %c0_234 = arith.constant 0 : index
    %280 = vector.load %arg39[%c0_232, %c96_233, %c0_234] : memref<2x192x16xf32, #tpu.memory_space<vmem>>, vector<2x64x16xf32>
    %281 = vector.shape_cast %280 : vector<2x64x16xf32> to vector<128x16xf32>
    %c0_235 = arith.constant 0 : index
    %c128_236 = arith.constant 128 : index
    %c0_237 = arith.constant 0 : index
    %282 = vector.load %arg39[%c0_235, %c128_236, %c0_237] : memref<2x192x16xf32, #tpu.memory_space<vmem>>, vector<2x64x16xf32>
    %283 = vector.shape_cast %282 : vector<2x64x16xf32> to vector<128x16xf32>
    %284 = tpu.concatenate %275, %277, %279, %281, %283 in 1 : vector<128x16xf32>, vector<128x16xf32>, vector<128x16xf32>, vector<128x16xf32>, vector<128x16xf32> -> vector<128x80xf32>
    %c0_238 = arith.constant 0 : index
    %c0_239 = arith.constant 0 : index
    %285 = vector.load %arg33[%c0_238, %c0_239] : memref<80x32xf32, #tpu.memory_space<vmem>>, vector<80x32xf32>
    %cst_240 = arith.constant dense<0.000000e+00> : vector<128x32xf32>
    %286 = tpu.matmul %284, %285, %cst_240 {dimension_numbers = #tpu.dot_dimension_numbers<[1], [0], [0], [1], [0, 0, 1, 1], [], []>} : vector<128x80xf32>, vector<80x32xf32>, vector<128x32xf32> -> vector<128x32xf32>
    %c0_241 = arith.constant 0 : index
    %c0_242 = arith.constant 0 : index
    %287 = vector.load %arg34[%c0_241, %c0_242] : memref<1x32xf32, #tpu.memory_space<vmem>>, vector<1x32xf32>
    %288 = vector.broadcast %287 : vector<1x32xf32> to vector<128x32xf32>
    %289 = arith.addf %286, %288 : vector<128x32xf32>
    %cst_243 = arith.constant 0.000000e+00 : f32
    %290 = vector.broadcast %cst_243 : f32 to vector<128x32xf32>
    %291 = arith.maximumf %289, %290 : vector<128x32xf32>
    %292 = vector.shape_cast %265 : vector<2x64x32xf32> to vector<128x32xf32>
    %293 = arith.addf %291, %292 : vector<128x32xf32>
    %cst_244 = arith.constant dense<0.000000e+00> : vector<32xf32>
    %294 = vector.multi_reduction <add>, %293, %cst_244 [0] : vector<128x32xf32> to vector<32xf32>
    %295 = vector.shape_cast %294 : vector<32xf32> to vector<1x32xf32>
    %cst_245 = arith.constant 1.280000e+02 : f32
    %296 = vector.broadcast %cst_245 : f32 to vector<1x32xf32>
    %297 = arith.divf %295, %296 : vector<1x32xf32>
    %298 = vector.broadcast %297 : vector<1x32xf32> to vector<128x32xf32>
    %299 = arith.subf %293, %298 : vector<128x32xf32>
    %300 = arith.mulf %299, %299 : vector<128x32xf32>
    %cst_246 = arith.constant dense<0.000000e+00> : vector<32xf32>
    %301 = vector.multi_reduction <add>, %300, %cst_246 [0] : vector<128x32xf32> to vector<32xf32>
    %302 = vector.shape_cast %301 : vector<32xf32> to vector<1x32xf32>
    %cst_247 = arith.constant 1.280000e+02 : f32
    %303 = vector.broadcast %cst_247 : f32 to vector<1x32xf32>
    %304 = arith.divf %302, %303 : vector<1x32xf32>
    %c0_248 = arith.constant 0 : index
    %c0_249 = arith.constant 0 : index
    %305 = vector.load %arg35[%c0_248, %c0_249] : memref<1x32xf32, #tpu.memory_space<vmem>>, vector<1x32xf32>
    %cst_250 = arith.constant 9.99999974E-6 : f32
    %306 = vector.broadcast %cst_250 : f32 to vector<1x32xf32>
    %307 = arith.addf %304, %306 : vector<1x32xf32>
    %308 = math.rsqrt %307 : vector<1x32xf32>
    %309 = arith.mulf %305, %308 : vector<1x32xf32>
    %310 = vector.broadcast %309 : vector<1x32xf32> to vector<128x32xf32>
    %311 = arith.mulf %299, %310 : vector<128x32xf32>
    %c0_251 = arith.constant 0 : index
    %c0_252 = arith.constant 0 : index
    %312 = vector.load %arg36[%c0_251, %c0_252] : memref<1x32xf32, #tpu.memory_space<vmem>>, vector<1x32xf32>
    %313 = vector.broadcast %312 : vector<1x32xf32> to vector<128x32xf32>
    %314 = arith.addf %311, %313 : vector<128x32xf32>
    %315 = vector.shape_cast %314 : vector<128x32xf32> to vector<2x64x32xf32>
    %c0_253 = arith.constant 0 : index
    %c0_254 = arith.constant 0 : index
    %c0_255 = arith.constant 0 : index
    %316 = vector.load %arg37[%c0_253, %c0_254, %c0_255] : memref<2x64x32xf32, #tpu.memory_space<vmem>>, vector<2x64x32xf32>
    tpu.vector_store %arg37[%c0_253, %c0_254, %c0_255], %315 {strides = array<i32>} : memref<2x64x32xf32, #tpu.memory_space<vmem>>, vector<2x64x32xf32>,
    return
  }
}

</mosaic_0001>

<bundles_post_ra>
// kernel: net_forward.1
= control target key start
LH: loop header
LB: loop body
LE: loop exit
PB: predicated region body
PF: predicated region fallthrough
CT: control target
= control target key end

     0   :  { %s7309_s3 = smov 1   ;;  %vm154_vm0 = vcmask 130048   ;;  %v7310_v18 = vmov 0.0   ;;  %s7311_s10 = smov 2   ;;  %vm837_vm1 = vcmask 261120   ;;  %vm854_vm2 = vcmask 392192   ;;  %s10767_s0 = inlined_call_operand.smem [shape: u32[38], index: -1, kind: input, shape index: {}] }
   0x1   :  { %s6242_s6 = sld [smem:[%s10767_s0 + %s7309_s3]]   ;;  %162 = vst.msk [vmem:[#allocation3 + $0x38] sm:$0xff] %vm154_vm0, %v7310_v18  ;;  %155 = vst.msk [vmem:[#allocation3] sm:$0xff] %vm154_vm0, %v7310_v18  ;;  %s7312_s14 = smov 3   ;;  %vm871_vm3 = vcmask 523264   ;;  %vm905_vm4 = vcmask 654336  }
   0x2   :  { %s7360_s9 = sld [smem:[%s10767_s0]]   ;;  %156 = vst.msk [vmem:[#allocation3 + $0x8] sm:$0xff] %vm154_vm0, %v7310_v18  ;;  %157 = vst.msk [vmem:[#allocation3 + $0x10] sm:$0xff] %vm154_vm0, %v7310_v18  ;;  %s7313_s18 = smov 32  }
   0x3   :  { %158 = vst.msk [vmem:[#allocation3 + $0x18] sm:$0xff] %vm154_vm0, %v7310_v18  ;;  %159 = vst.msk [vmem:[#allocation3 + $0x20] sm:$0xff] %vm154_vm0, %v7310_v18  ;;  %s6243_s13 = sld [smem:[%s10767_s0 + %s7311_s10]]   ;;  %s7314_s19 = smov 16  }
   0x4   :  { %160 = vst.msk [vmem:[#allocation3 + $0x28] sm:$0xff] %vm154_vm0, %v7310_v18  ;;  %161 = vst.msk [vmem:[#allocation3 + $0x30] sm:$0xff] %vm154_vm0, %v7310_v18  ;;  %s7480_s17 = sld [smem:[%s10767_s0 + %s7312_s14]]   ;;  %s7315_s20 = smov 48  }
   0x5   :  { %163 = vst.msk [vmem:[#allocation3 + $0xc0] sm:$0xff] %vm154_vm0, %v7310_v18  ;;  %164 = vst.msk [vmem:[#allocation3 + $0xc8] sm:$0xff] %vm154_vm0, %v7310_v18  ;;  %s7316_s21 = smov 64   ;;  %s7317_s22 = smov 4  }
   0x6   :  { %165 = vst.msk [vmem:[#allocation3 + $0xd0] sm:$0xff] %vm154_vm0, %v7310_v18  ;;  %166 = vst.msk [vmem:[#allocation3 + $0xd8] sm:$0xff] %vm154_vm0, %v7310_v18  ;;  %s6245_s25 = sld [smem:[%s10767_s0 + %s7317_s22]]   ;;  %s7318_s26 = smov 7  }
   0x7   :  { %v284_v0 = vld [vmem:[%s6242_s6 + $0x8] sm:$0xff]  ;;  %v283_v1 = vld [vmem:[%s6242_s6] sm:$0xff]  ;;  %167 = vst.msk [vmem:[#allocation3 + $0xe0] sm:$0xff] %vm154_vm0, %v7310_v18  ;;  %168 = vst.msk [vmem:[#allocation3 + $0xe8] sm:$0xff] %vm154_vm0, %v7310_v18  ;;  %s7743_s29 = sld [smem:[%s10767_s0 + %s7318_s26]]   ;;  %s7319_s30 = smov 5  }
   0x8   :  { %6763 = vmatprep.subr.mxu0 %v284_v0  ;;  %v7363_v2 = vld [vmem:[%s7360_s9] sm:$0xff]  ;;  %v7368_v3 = vld [vmem:[%s7360_s9 + $0x8] sm:$0xff]  ;;  %v7371_v4 = vld [vmem:[%s7360_s9 + $0x10] sm:$0xff]  ;;  %169 = vst.msk [vmem:[#allocation3 + $0xf0] sm:$0xff] %vm154_vm0, %v7310_v18  ;;  %s6246_s3 = sld [smem:[%s10767_s0 + %s7319_s30]]   ;;  %s7320_s4 = smov 6  }
   0x9   :  { %6764 = vmatpush3.msra.mxu0 %v284_v0  ;;  %6767 = vmatprep.mubr.msk.f32.mxu0 %vm154_vm0, %v7363_v2  ;;  %v7378_v5 = vld [vmem:[%s7360_s9 + $0x18] sm:$0xff]  ;;  %v7381_v6 = vld [vmem:[%s7360_s9 + $0x20] sm:$0xff]  ;;  %v7388_v7 = vld [vmem:[%s7360_s9 + $0x28] sm:$0xff]  ;;  %170 = vst.msk [vmem:[#allocation3 + $0xf8] sm:$0xff] %vm154_vm0, %v7310_v18  ;;  %s6247_s7 = sld [smem:[%s10767_s0 + %s7320_s4]]   ;;  %s7321_s8 = smov 8  }
   0xa   :  { %6765 = vmatprep.subr.mxu0 %v283_v1  ;;  %v7391_v8 = vld [vmem:[%s7360_s9 + $0x30] sm:$0xff]  ;;  %v7398_v9 = vld [vmem:[%s7360_s9 + $0x38] sm:$0xff]  ;;  %v7401_v10 = vld [vmem:[%s7360_s9 + $0x40] sm:$0xff]  ;;  %171 = vst.msk [vmem:[#allocation3 + $0x80] sm:$0xff] %vm154_vm0, %v7310_v18  ;;  %s6249_s11 = sld [smem:[%s10767_s0 + %s7321_s8]]   ;;  %s7322_s12 = smov 9  }
   0xb   :  { %6766 = vmatpush3.msra.mxu0 %v283_v1  ;;  %v7408_v11 = vld [vmem:[%s7360_s9 + $0x48] sm:$0xff]  ;;  %v7411_v12 = vld [vmem:[%s7360_s9 + $0x50] sm:$0xff]  ;;  %v7418_v13 = vld [vmem:[%s7360_s9 + $0x58] sm:$0xff]  ;;  %172 = vst.msk [vmem:[#allocation3 + $0x88] sm:$0xff] %vm154_vm0, %v7310_v18  ;;  %s8006_s15 = sld [smem:[%s10767_s0 + %s7322_s12]]   ;;  %s7323_s16 = smov 10  }
   0xc   :  { %6768 = vmatmul.mubr.msk.f32.vlgmr.msra.gmra.mxu0 %vm154_vm0, %v7368_v3  ;;  %v7421_v14 = vld [vmem:[%s7360_s9 + $0x60] sm:$0xff]  ;;  %v7428_v15 = vld [vmem:[%s7360_s9 + $0x68] sm:$0xff]  ;;  %v7431_v16 = vld [vmem:[%s7360_s9 + $0x70] sm:$0xff]  ;;  %173 = vst.msk [vmem:[#allocation3 + $0x90] sm:$0xff] %vm154_vm0, %v7310_v18  ;;  %s6251_s23 = sld [smem:[%s10767_s0 + %s7323_s16]]   ;;  %s7324_s24 = smov 13  }
   0xd   :  { %6770 = vmatprep.mubr.msk.f32.mxu0 %vm154_vm0, %v7371_v4  ;;  %v7438_v17 = vld [vmem:[%s7360_s9 + $0x78] sm:$0xff]  ;;  %174 = vst.msk [vmem:[#allocation3 + $0x98] sm:$0xff] %vm154_vm0, %v7310_v18  ;;  %175 = vst.msk [vmem:[#allocation3 + $0xa0] sm:$0xff] %vm154_vm0, %v7310_v18  ;;  %v897_v19 = vld [vmem:[%s7480_s17 + $0x48] sm:$0xff]  ;;  %s6254_s27 = sld [smem:[%s10767_s0 + %s7324_s24]]   ;;  %s7325_s28 = smov 11  }
   0xe   :  { %176 = vst.msk [vmem:[#allocation3 + $0xa8] sm:$0xff] %vm154_vm0, %v7310_v18  ;;  %177 = vst.msk [vmem:[#allocation3 + $0xb0] sm:$0xff] %vm154_vm0, %v7310_v18  ;;  %v896_v20 = vld [vmem:[%s7480_s17 + $0x40] sm:$0xff]  ;;  %6791 = vmatprep.subr.mxu0 %v897_v19  ;;  %7215 = vmatprep.subr.mxu1 %v897_v19  ;;  %v895_v23 = vld [vmem:[%s7480_s17 + $0x38] sm:$0xff]  ;;  %s6252_s1 = sld [smem:[%s10767_s0 + %s7325_s28]]   ;;  %s7326_s2 = smov 12  }
   0xf   :  { %178 = vst.msk [vmem:[#allocation3 + $0xb8] sm:$0xff] %vm154_vm0, %v7310_v18  ;;  %179 = vst.msk [vmem:[#allocation3 + $0x140] sm:$0xff] %vm154_vm0, %v7310_v18  ;;  %v7484_v21 = vld [vmem:[%s6243_s13] ss:$0 sm:$0xff]  ;;  %6792 = vmatpush3.msra.mxu0 %v897_v19  ;;  %7225 = vmatpush3.msra.mxu1 %v897_v19  ;;  %v894_v26 = vld [vmem:[%s7480_s17 + $0x30] sm:$0xff]  ;;  %s6253_s5 = sld [smem:[%s10767_s0 + %s7326_s2]]   ;;  %s7327_s6 = smov 14  }
  0x10   :  { %6771 = vmatmul.mubr.msk.f32.gmra.mxu0 %vm154_vm0, %v7378_v5  ;;  %180 = vst.msk [vmem:[#allocation3 + $0x148] sm:$0xff] %vm154_vm0, %v7310_v18  ;;  %181 = vst.msk [vmem:[#allocation3 + $0x150] sm:$0xff] %vm154_vm0, %v7310_v18  ;;  %6793 = vmatprep.subr.mxu0 %v896_v20  ;;  %v893_v29 = vld [vmem:[%s7480_s17 + $0x28] sm:$0xff]  ;;  %v892_v31 = vld [vmem:[%s7480_s17 + $0x20] sm:$0xff]  ;;  %s7328_s10 = smov 15   ;;  %s6257_s16 = sld [smem:[%s10767_s0 + %s7314_s19]]  }
  0x11   :  { %6773 = vmatprep.mubr.msk.f32.mxu0 %vm154_vm0, %v7381_v6  ;;  %182 = vst.msk [vmem:[#allocation3 + $0x158] sm:$0xff] %vm154_vm0, %v7310_v18  ;;  %183 = vst.msk [vmem:[#allocation3 + $0x160] sm:$0xff] %vm154_vm0, %v7310_v18  ;;  %7216 = vmatprep.subr.mxu1 %v896_v20  ;;  %v891_v35 = vld [vmem:[%s7480_s17 + $0x18] sm:$0xff]  ;;  %v890_v39 = vld [vmem:[%s7480_s17 + $0x10] sm:$0xff]  ;;  %s8524_s13 = sld [smem:[%s10767_s0 + %s7328_s10]]  }
  0x12   :  { %184 = vst.msk [vmem:[#allocation3 + $0x168] sm:$0xff] %vm154_vm0, %v7310_v18  ;;  %185 = vst.msk [vmem:[#allocation3 + $0x170] sm:$0xff] %vm154_vm0, %v7310_v18  ;;  %6794 = vmatpush3.msra.mxu0 %v896_v20  ;;  %7226 = vmatpush3.msra.mxu1 %v896_v20  ;;  %v889_v46 = vld [vmem:[%s7480_s17 + $0x8] sm:$0xff]  ;;  %v888_v48 = vld [vmem:[%s7480_s17] sm:$0xff]  ;;  %s7329_s17 = smov 19  }
  0x13   :  { %186 = vst.msk [vmem:[#allocation3 + $0x178] sm:$0xff] %vm154_vm0, %v7310_v18  ;;  %6795 = vmatprep.subr.mxu0 %v895_v23  ;;  %7217 = vmatprep.subr.mxu1 %v895_v23  ;;  %s6260_s24 = sld [smem:[%s10767_s0 + %s7329_s17]]   ;;  %s7342_s17 = smov 29  }
  0x14   :  { %6774 = vmatmul.mubr.msk.f32.gmra.mxu0 %vm154_vm0, %v7388_v7  ;;  %7227 = vmatpush3.msra.mxu1 %v895_v23 }
  0x15   :  { %6776 = vmatprep.mubr.msk.f32.mxu0 %vm154_vm0, %v7391_v8  ;;  %6796 = vmatpush3.msra.mxu0 %v895_v23 }
  0x16   :  { %6797 = vmatprep.subr.mxu0 %v894_v26  ;;  %7218 = vmatprep.subr.mxu1 %v894_v26 }
  0x17   :  { %6798 = vmatpush3.msra.mxu0 %v894_v26  ;;  %7228 = vmatpush3.msra.mxu1 %v894_v26 }
  0x18   :  { %6777 = vmatmul.mubr.msk.f32.gmra.mxu0 %vm154_vm0, %v7398_v9  ;;  %6799 = vmatprep.subr.mxu0 %v893_v29 }
  0x19   :  { %6779 = vmatprep.mubr.msk.f32.mxu0 %vm154_vm0, %v7401_v10  ;;  %7219 = vmatprep.subr.mxu1 %v893_v29 }
  0x1a   :  { %6800 = vmatpush3.msra.mxu0 %v893_v29  ;;  %7229 = vmatpush3.msra.mxu1 %v893_v29 }
  0x1b   :  { %6801 = vmatprep.subr.mxu0 %v892_v31  ;;  %7220 = vmatprep.subr.mxu1 %v892_v31 }
  0x1c   :  { %6780 = vmatmul.mubr.msk.f32.gmra.mxu0 %vm154_vm0, %v7408_v11  ;;  %7230 = vmatpush3.msra.mxu1 %v892_v31 }
  0x1d   :  { %6782 = vmatprep.mubr.msk.f32.mxu0 %vm154_vm0, %v7411_v12  ;;  %6802 = vmatpush3.msra.mxu0 %v892_v31 }
  0x1e   :  { %6803 = vmatprep.subr.mxu0 %v891_v35  ;;  %7221 = vmatprep.subr.mxu1 %v891_v35 }
  0x1f   :  { %6804 = vmatpush3.msra.mxu0 %v891_v35  ;;  %7231 = vmatpush3.msra.mxu1 %v891_v35 }
  0x20   :  { %6783 = vmatmul.mubr.msk.f32.gmra.mxu0 %vm154_vm0, %v7418_v13  ;;  %6805 = vmatprep.subr.mxu0 %v890_v39 }
  0x21   :  { %6785 = vmatprep.mubr.msk.f32.mxu0 %vm154_vm0, %v7421_v14  ;;  %6806 = vmatpush3.msra.mxu0 %v890_v39 }
  0x22   :  { %7222 = vmatprep.subr.mxu1 %v890_v39  ;;  %6807 = vmatprep.subr.mxu0 %v889_v46 }
  0x23   :  { %6808 = vmatpush3.msra.mxu0 %v889_v46  ;;  %7232 = vmatpush3.msra.mxu1 %v890_v39 }
  0x24   :  { %6786 = vmatmul.mubr.msk.f32.gmra.mxu0 %vm154_vm0, %v7428_v15  ;;  %6809 = vmatprep.subr.mxu0 %v888_v48 }
  0x25   :  { %6788 = vmatprep.mubr.msk.f32.mxu0 %vm154_vm0, %v7431_v16  ;;  %6810 = vmatpush3.msra.mxu0 %v888_v48 }
  0x26   :  { %7223 = vmatprep.subr.mxu1 %v889_v46 }
  0x27   :  { %7233 = vmatpush3.msra.mxu1 %v889_v46 }
  0x28   :  { %6789 = vmatmul.mubr.msk.f32.gmra.mxu0 %vm154_vm0, %v7438_v17  ;;  %7224 = vmatprep.subr.mxu1 %v888_v48 }
  0x29   :  { %7234 = vmatpush3.msra.mxu1 %v888_v48 }
  0xcc   :  { %v6769_v22 = vpop.f32.mrf.mxu0 }
  0xcd   :  { %v396_v24 = vadd.f32 %v6769_v22, %v7484_v21 }
  0xce   :  { %v390_v25 = vpop.f32.mrf.mxu0 }
  0xcf   :  { %470 = vst.msk [vmem:[#allocation3 + $0x48] sm:$0xff] %vm154_vm0, %v396_v24  ;;  %v391_v27 = vadd.f32 %v7484_v21, %v390_v25 }
  0xd0   :  { %v6772_v28 = vpop.f32.mrf.mxu0 }
  0xd1   :  { %469 = vst.msk [vmem:[#allocation3 + $0x40] sm:$0xff] %vm154_vm0, %v391_v27  ;;  %v406_v30 = vadd.f32 %v6772_v28, %v7484_v21 }
  0xd2   :  { %v400_v32 = vpop.f32.mrf.mxu0 }
  0xd3   :  { %472 = vst.msk [vmem:[#allocation3 + $0x58] sm:$0xff] %vm154_vm0, %v406_v30  ;;  %v401_v33 = vadd.f32 %v7484_v21, %v400_v32 }
  0xd4   :  { %v6775_v34 = vpop.f32.mrf.mxu0 }
  0xd5   :  { %471 = vst.msk [vmem:[#allocation3 + $0x50] sm:$0xff] %vm154_vm0, %v401_v33  ;;  %v416_v36 = vadd.f32 %v6775_v34, %v7484_v21 }
  0xd6   :  { %v518_v37 = vld [vmem:[#allocation3 + $0x48] sm:$0xff]  ;;  %v410_v38 = vpop.f32.mrf.mxu0 }
  0xd7   :  { %474 = vst.msk [vmem:[#allocation3 + $0x68] sm:$0xff] %vm154_vm0, %v416_v36  ;;  %647 = vrot.lane.b32.xlu1 %v518_v37, %s7313_s18  ;;  %v411_v40 = vadd.f32 %v7484_v21, %v410_v38 }
  0xd8   :  { %v501_v41 = vld [vmem:[#allocation3 + $0x3f] sm:$0xff]  ;;  %v6778_v42 = vpop.f32.mrf.mxu0  ;;  %v502_v49 = vld [vmem:[#allocation3 + $0x47] sm:$0xff] }
  0xd9   :  { %473 = vst.msk [vmem:[#allocation3 + $0x60] sm:$0xff] %vm154_vm0, %v411_v40  ;;  %581 = vrot.lane.b32.xlu0 %v501_v41, %s7314_s19  ;;  %v426_v43 = vadd.f32 %v6778_v42, %v7484_v21  ;;  %v517_v44 = vld [vmem:[#allocation3 + $0x40] sm:$0xff] }
  0xda   :  { %v420_v45 = vpop.f32.mrf.mxu0  ;;  %v520_v50 = vld [vmem:[#allocation3 + $0x58] sm:$0xff]  ;;  %v533_v55 = vld [vmem:[#allocation3 + $0x41] sm:$0xff] }
  0xdb   :  { %645 = vrot.lane.b32.xlu1 %v517_v44, %s7313_s18  ;;  %476 = vst.msk [vmem:[#allocation3 + $0x78] sm:$0xff] %vm154_vm0, %v426_v43  ;;  %v421_v47 = vadd.f32 %v7484_v21, %v420_v45  ;;  %v549_v61 = vld [vmem:[#allocation3 + $0x42] sm:$0xff] }
  0xdc   :  { %v6781_v51 = vpop.f32.mrf.mxu0  ;;  %v534_v58 = vld [vmem:[#allocation3 + $0x49] sm:$0xff]  ;;  %v504_v23 = vld [vmem:[#allocation3 + $0x57] sm:$0xff] }
  0xdd   :  { %583 = vrot.lane.b32.xlu0 %v502_v49, %s7314_s19  ;;  %475 = vst.msk [vmem:[#allocation3 + $0x70] sm:$0xff] %vm154_vm0, %v421_v47  ;;  %v436_v52 = vadd.f32 %v6781_v51, %v7484_v21  ;;  %v503_v0 = vld [vmem:[#allocation3 + $0x4f] sm:$0xff] }
  0xde   :  { %v430_v53 = vpop.f32.mrf.mxu0  ;;  %v550_v19 = vld [vmem:[#allocation3 + $0x4a] sm:$0xff]  ;;  %v551_v30 = vld [vmem:[#allocation3 + $0x52] sm:$0xff] }
  0xdf   :  { %651 = vrot.lane.b32.xlu1 %v520_v50, %s7313_s18  ;;  %478 = vst.msk [vmem:[#allocation3 + $0x108] sm:$0xff] %vm154_vm0, %v436_v52  ;;  %v431_v54 = vadd.f32 %v7484_v21, %v430_v53  ;;  %v519_v26 = vld [vmem:[#allocation3 + $0x50] sm:$0xff]  ;;  %v522_v27 = vld [vmem:[#allocation3 + $0x68] sm:$0xff] }
  0xe0   :  { %v6784_v56 = vpop.f32.mrf.mxu0  ;;  %v535_v28 = vld [vmem:[#allocation3 + $0x51] sm:$0xff]  ;;  %v536_v29 = vld [vmem:[#allocation3 + $0x59] sm:$0xff]  ;;  %v506_v32 = vld [vmem:[#allocation3 + $0x67] sm:$0xff] }
  0xe1   :  { %709 = vrot.lane.b32.xlu0 %v533_v55, %s7315_s20  ;;  %477 = vst.msk [vmem:[#allocation3 + $0x100] sm:$0xff] %vm154_vm0, %v431_v54  ;;  %v446_v57 = vadd.f32 %v6784_v56, %v7484_v21  ;;  %v505_v31 = vld [vmem:[#allocation3 + $0x5f] sm:$0xff] }
  0xe2   :  { %v440_v59 = vpop.f32.mrf.mxu0  ;;  %v521_v33 = vld [vmem:[#allocation3 + $0x60] sm:$0xff]  ;;  %v524_v34 = vld [vmem:[#allocation3 + $0x78] sm:$0xff] }
  0xe3   :  { %711 = vrot.lane.b32.xlu1 %v534_v58, %s7315_s20  ;;  %480 = vst.msk [vmem:[#allocation3 + $0x118] sm:$0xff] %vm154_vm0, %v446_v57  ;;  %v441_v60 = vadd.f32 %v7484_v21, %v440_v59  ;;  %v537_v35 = vld [vmem:[#allocation3 + $0x61] sm:$0xff]  ;;  %v540_v36 = vld [vmem:[#allocation3 + $0x79] sm:$0xff] }
  0xe4   :  { %v6787_v62 = vpop.f32.mrf.mxu0  ;;  %v553_v37 = vld [vmem:[#allocation3 + $0x62] sm:$0xff]  ;;  %v556_v39 = vld [vmem:[#allocation3 + $0x7a] sm:$0xff]  ;;  %v507_v40 = vld [vmem:[#allocation3 + $0x6f] sm:$0xff] }
  0xe5   :  { %773 = vrot.lane.b32.xlu0 %v549_v61, %s7316_s21  ;;  %479 = vst.msk [vmem:[#allocation3 + $0x110] sm:$0xff] %vm154_vm0, %v441_v60  ;;  %v456_v63 = vadd.f32 %v6787_v62, %v7484_v21  ;;  %v538_v38 = vld [vmem:[#allocation3 + $0x69] sm:$0xff]  ;;  %v508_v42 = vld [vmem:[#allocation3 + $0x77] sm:$0xff] }
  0xe6   :  { %v450_v1 = vpop.f32.mrf.mxu0  ;;  %v554_v41 = vld [vmem:[#allocation3 + $0x6a] sm:$0xff]  ;;  %v555_v47 = vld [vmem:[#allocation3 + $0x72] sm:$0xff] }
  0xe7   :  { %585 = vrot.lane.b32.xlu1 %v503_v0, %s7314_s19  ;;  %482 = vst.msk [vmem:[#allocation3 + $0x128] sm:$0xff] %vm154_vm0, %v456_v63  ;;  %v451_v18 = vadd.f32 %v7484_v21, %v450_v1  ;;  %v523_v43 = vld [vmem:[#allocation3 + $0x70] sm:$0xff]  ;;  %v526_v44 = vld [vmem:[#allocation3 + $0x108] sm:$0xff] }
  0xe8   :  { %v6790_v20 = vpop.f32.mrf.mxu0  ;;  %v539_v45 = vld [vmem:[#allocation3 + $0x71] sm:$0xff]  ;;  %v509_v46 = vld [vmem:[#allocation3 + $0xff] sm:$0xff]  ;;  %v510_v48 = vld [vmem:[#allocation3 + $0x107] sm:$0xff] }
  0xe9   :  { %775 = vrot.lane.b32.xlu0 %v550_v19, %s7316_s21  ;;  %481 = vst.msk [vmem:[#allocation3 + $0x120] sm:$0xff] %vm154_vm0, %v451_v18  ;;  %v466_v22 = vadd.f32 %v6790_v20, %v7484_v21  ;;  %v525_v49 = vld [vmem:[#allocation3 + $0x100] sm:$0xff] }
  0xea   :  { %v460_v24 = vpop.f32.mrf.mxu0  ;;  %v528_v50 = vld [vmem:[#allocation3 + $0x118] sm:$0xff]  ;;  %v541_v51 = vld [vmem:[#allocation3 + $0x101] sm:$0xff] }
  0xeb   :  { %587 = vrot.lane.b32.xlu1 %v504_v23, %s7314_s19  ;;  %484 = vst.msk [vmem:[#allocation3 + $0x138] sm:$0xff] %vm154_vm0, %v466_v22  ;;  %v461_v25 = vadd.f32 %v7484_v21, %v460_v24  ;;  %v552_v21 = vld [vmem:[#allocation3 + $0x5a] sm:$0xff]  ;;  %v557_v53 = vld [vmem:[#allocation3 + $0x102] sm:$0xff] }
  0xec   :  { %v542_v52 = vld [vmem:[#allocation3 + $0x109] sm:$0xff]  ;;  %v512_v56 = vld [vmem:[#allocation3 + $0x117] sm:$0xff] }
  0xed   :  { %649 = vrot.lane.b32.xlu0 %v519_v26, %s7313_s18  ;;  %483 = vst.msk [vmem:[#allocation3 + $0x130] sm:$0xff] %vm154_vm0, %v461_v25  ;;  %v511_v54 = vld [vmem:[#allocation3 + $0x10f] sm:$0xff] }
  0xee   :  { %v558_v55 = vld [vmem:[#allocation3 + $0x10a] sm:$0xff]  ;;  %v559_v61 = vld [vmem:[#allocation3 + $0x112] sm:$0xff] }
  0xef   :  { %655 = vrot.lane.b32.xlu1 %v522_v27, %s7313_s18  ;;  %v527_v57 = vld [vmem:[#allocation3 + $0x110] sm:$0xff]  ;;  %v530_v58 = vld [vmem:[#allocation3 + $0x128] sm:$0xff] }
  0xf0   :  { %v543_v59 = vld [vmem:[#allocation3 + $0x111] sm:$0xff]  ;;  %v544_v60 = vld [vmem:[#allocation3 + $0x119] sm:$0xff]  ;;  %v514_v0 = vld [vmem:[#allocation3 + $0x127] sm:$0xff] }
  0xf1   :  { %713 = vrot.lane.b32.xlu0 %v535_v28, %s7315_s20  ;;  %v513_v62 = vld [vmem:[#allocation3 + $0x11f] sm:$0xff] }
  0xf2   :  { %v560_v63 = vld [vmem:[#allocation3 + $0x11a] sm:$0xff]  ;;  %v561_v22 = vld [vmem:[#allocation3 + $0x122] sm:$0xff] }
  0xf3   :  { %715 = vrot.lane.b32.xlu1 %v536_v29, %s7315_s20  ;;  %v529_v1 = vld [vmem:[#allocation3 + $0x120] sm:$0xff]  ;;  %v532_v18 = vld [vmem:[#allocation3 + $0x138] sm:$0xff] }
  0xf4   :  { %v545_v19 = vld [vmem:[#allocation3 + $0x121] sm:$0xff]  ;;  %v548_v20 = vld [vmem:[#allocation3 + $0x139] sm:$0xff]  ;;  %v546_v23 = vld [vmem:[#allocation3 + $0x129] sm:$0xff] }
  0xf5   :  { %777 = vrot.lane.b32.xlu0 %v551_v30, %s7316_s21  ;;  %v562_v24 = vld [vmem:[#allocation3 + $0x12a] sm:$0xff]  ;;  %v516_v30 = vld [vmem:[#allocation3 + $0x137] sm:$0xff] }
  0xf6   :  { %v515_v26 = vld [vmem:[#allocation3 + $0x12f] sm:$0xff] }
  0xf7   :  { %589 = vrot.lane.b32.xlu1 %v505_v31, %s7314_s19  ;;  %v531_v28 = vld [vmem:[#allocation3 + $0x130] sm:$0xff] }
  0xf9   :  { %779 = vrot.lane.b32.xlu0 %v552_v21, %s7316_s21  ;;  %v547_v21 = vld [vmem:[#allocation3 + $0x131] sm:$0xff] }
  0xfb   :  { %591 = vrot.lane.b32.xlu1 %v506_v32, %s7314_s19 }
  0xfd   :  { %653 = vrot.lane.b32.xlu0 %v521_v33, %s7313_s18  ;;  %v485_v33 = vld [vmem:[#allocation3 + $0x3e] sm:$0xff] }
  0xff   :  { %659 = vrot.lane.b32.xlu1 %v524_v34, %s7313_s18  ;;  %v564_v34 = vld [vmem:[#allocation3 + $0x13a] sm:$0xff] }
 0x101   :  { %717 = vrot.lane.b32.xlu0 %v537_v35, %s7315_s20 }
 0x103   :  { %723 = vrot.lane.b32.xlu1 %v540_v36, %s7315_s20 }
 0x105   :  { %781 = vrot.lane.b32.xlu0 %v553_v37, %s7316_s21  ;;  %v563_v37 = vld [vmem:[#allocation3 + $0x132] sm:$0xff] }
 0x107   :  { %719 = vrot.lane.b32.xlu1 %v538_v38, %s7315_s20 }
 0x109   :  { %787 = vrot.lane.b32.xlu0 %v556_v39, %s7316_s21 }
 0x10b   :  { %593 = vrot.lane.b32.xlu1 %v507_v40, %s7314_s19  ;;  %v486_v40 = vld [vmem:[#allocation3 + $0x46] sm:$0xff] }
 0x10d   :  { %783 = vrot.lane.b32.xlu0 %v554_v41, %s7316_s21 }
 0x10f   :  { %595 = vrot.lane.b32.xlu1 %v508_v42, %s7314_s19 }
 0x111   :  { %657 = vrot.lane.b32.xlu0 %v523_v43, %s7313_s18 }
 0x113   :  { %663 = vrot.lane.b32.xlu1 %v526_v44, %s7313_s18 }
 0x115   :  { %721 = vrot.lane.b32.xlu0 %v539_v45, %s7315_s20 }
 0x117   :  { %597 = vrot.lane.b32.xlu1 %v509_v46, %s7314_s19 }
 0x119   :  { %785 = vrot.lane.b32.xlu0 %v555_v47, %s7316_s21 }
 0x11b   :  { %599 = vrot.lane.b32.xlu1 %v510_v48, %s7314_s19 }
 0x11d   :  { %661 = vrot.lane.b32.xlu0 %v525_v49, %s7313_s18 }
 0x11f   :  { %667 = vrot.lane.b32.xlu1 %v528_v50, %s7313_s18 }
 0x121   :  { %725 = vrot.lane.b32.xlu0 %v541_v51, %s7315_s20 }
 0x123   :  { %727 = vrot.lane.b32.xlu1 %v542_v52, %s7315_s20 }
 0x125   :  { %789 = vrot.lane.b32.xlu0 %v557_v53, %s7316_s21 }
 0x127   :  { %601 = vrot.lane.b32.xlu1 %v511_v54, %s7314_s19  ;;  %v487_v54 = vld [vmem:[#allocation3 + $0x4e] sm:$0xff] }
 0x129   :  { %791 = vrot.lane.b32.xlu0 %v558_v55, %s7316_s21 }
 0x12b   :  { %603 = vrot.lane.b32.xlu1 %v512_v56, %s7314_s19 }
 0x12d   :  { %665 = vrot.lane.b32.xlu0 %v527_v57, %s7313_s18  ;;  %v488_v57 = vld [vmem:[#allocation3 + $0x56] sm:$0xff] }
 0x12f   :  { %671 = vrot.lane.b32.xlu1 %v530_v58, %s7313_s18 }
 0x131   :  { %729 = vrot.lane.b32.xlu0 %v543_v59, %s7315_s20 }
 0x133   :  { %731 = vrot.lane.b32.xlu1 %v544_v60, %s7315_s20 }
 0x135   :  { %793 = vrot.lane.b32.xlu0 %v559_v61, %s7316_s21 }
 0x137   :  { %605 = vrot.lane.b32.xlu1 %v513_v62, %s7314_s19 }
 0x139   :  { %795 = vrot.lane.b32.xlu0 %v560_v63, %s7316_s21 }
 0x13b   :  { %607 = vrot.lane.b32.xlu1 %v514_v0, %s7314_s19 }
 0x13d   :  { %669 = vrot.lane.b32.xlu0 %v529_v1, %s7313_s18 }
 0x13f   :  { %675 = vrot.lane.b32.xlu1 %v532_v18, %s7313_s18 }
 0x141   :  { %733 = vrot.lane.b32.xlu0 %v545_v19, %s7315_s20 }
 0x143   :  { %739 = vrot.lane.b32.xlu1 %v548_v20, %s7315_s20 }
 0x145   :  { %797 = vrot.lane.b32.xlu0 %v561_v22, %s7316_s21 }
 0x147   :  { %735 = vrot.lane.b32.xlu1 %v546_v23, %s7315_s20 }
 0x149   :  { %v648_v25 = vpop.permute.xlu1 %647  ;;  %799 = vrot.lane.b32.xlu0 %v562_v24, %s7316_s21 }
 0x14b   :  { %609 = vrot.lane.b32.xlu1 %v515_v26, %s7314_s19  ;;  %v582_v27 = vpop.permute.xlu0 %581 }
 0x14c   :  { %v821_v35 = vsel %vm154_vm0, %v485_v33, %v582_v27 }
 0x14d   :  { %v646_v29 = vpop.permute.xlu1 %645  ;;  %673 = vrot.lane.b32.xlu0 %v531_v28, %s7313_s18 }
 0x14e   :  { %v838_v39 = vsel %vm837_vm1, %v821_v35, %v646_v29 }
 0x14f   :  { %611 = vrot.lane.b32.xlu1 %v516_v30, %s7314_s19  ;;  %v584_v31 = vpop.permute.xlu0 %583 }
 0x150   :  { %v822_v41 = vsel %vm154_vm0, %v486_v40, %v584_v31  ;;  %v492_v31 = vld [vmem:[#allocation3 + $0x76] sm:$0xff] }
 0x151   :  { %v652_v32 = vpop.permute.xlu1 %651  ;;  %737 = vrot.lane.b32.xlu0 %v547_v21, %s7315_s20  ;;  %v839_v46 = vsel %vm837_vm1, %v822_v41, %v648_v25 }
 0x153   :  { %803 = vrot.lane.b32.xlu1 %v564_v34, %s7316_s21  ;;  %v710_v36 = vpop.permute.xlu0 %709 }
 0x154   :  { %v855_v42 = vsel %vm854_vm2, %v838_v39, %v710_v36  ;;  %v491_v36 = vld [vmem:[#allocation3 + $0x6e] sm:$0xff] }
 0x155   :  { %v712_v38 = vpop.permute.xlu1 %711  ;;  %801 = vrot.lane.b32.xlu0 %v563_v37, %s7316_s21 }
 0x156   :  { %v856_v47 = vsel %vm854_vm2, %v839_v46, %v712_v38 }
 0x157   :  { %v774_v43 = vpop.permute.xlu0 %773  ;;  %221 = vrot.lane.b32.xlu1 %v7368_v3, %s7314_s19 }
 0x158   :  { %v872_v44 = vsel %vm871_vm3, %v855_v42, %v774_v43 }
 0x159   :  { %v586_v45 = vpop.permute.xlu1 %585  ;;  %6811 = vmatprep.mubr.msk.f32.mxu0 %vm905_vm4, %v872_v44  ;;  %219 = vrot.lane.b32.xlu0 %v7363_v2, %s7314_s19 }
 0x15a   :  { %v823_v55 = vsel %vm154_vm0, %v487_v54, %v586_v45 }
 0x15b   :  { %v776_v48 = vpop.permute.xlu0 %775  ;;  %225 = vrot.lane.b32.xlu1 %v7378_v5, %s7314_s19 }
 0x15c   :  { %v873_v49 = vsel %vm871_vm3, %v856_v47, %v776_v48 }
 0x15d   :  { %v588_v50 = vpop.permute.xlu1 %587  ;;  %6812 = vmatmul.mubr.msk.f32.vlgmr.msra.gmra.mxu0 %vm905_vm4, %v873_v49  ;;  %223 = vrot.lane.b32.xlu0 %v7371_v4, %s7314_s19  ;;  %v493_v49 = vld [vmem:[#allocation3 + $0xfe] sm:$0xff] }
 0x15f   :  { %v650_v51 = vpop.permute.xlu0 %649  ;;  %229 = vrot.lane.b32.xlu1 %v7388_v7, %s7314_s19  ;;  %v824_v7 = vsel %vm154_vm0, %v488_v57, %v588_v50 }
 0x160   :  { %v840_v58 = vsel %vm837_vm1, %v823_v55, %v650_v51 }
 0x161   :  { %v656_v52 = vpop.permute.xlu1 %655  ;;  %227 = vrot.lane.b32.xlu0 %v7381_v6, %s7314_s19 }
 0x163   :  { %v714_v53 = vpop.permute.xlu0 %713  ;;  %233 = vrot.lane.b32.xlu1 %v7398_v9, %s7314_s19 }
 0x164   :  { %v857_v59 = vsel %vm854_vm2, %v840_v58, %v714_v53 }
 0x165   :  { %v716_v56 = vpop.permute.xlu1 %715  ;;  %231 = vrot.lane.b32.xlu0 %v7391_v8, %s7314_s19  ;;  %v841_v8 = vsel %vm837_vm1, %v824_v7, %v652_v32 }
 0x166   :  { %v858_v62 = vsel %vm854_vm2, %v841_v8, %v716_v56 }
 0x167   :  { %v778_v60 = vpop.permute.xlu0 %777  ;;  %237 = vrot.lane.b32.xlu1 %v7408_v11, %s7314_s19 }
 0x168   :  { %v874_v9 = vsel %vm871_vm3, %v857_v59, %v778_v60 }
 0x169   :  { %v590_v61 = vpop.permute.xlu1 %589  ;;  %6814 = vmatprep.mubr.msk.f32.mxu0 %vm905_vm4, %v874_v9  ;;  %235 = vrot.lane.b32.xlu0 %v7401_v10, %s7314_s19 }
 0x16b   :  { %v780_v63 = vpop.permute.xlu0 %779  ;;  %241 = vrot.lane.b32.xlu1 %v7418_v13, %s7314_s19  ;;  %v489_v13 = vld [vmem:[#allocation3 + $0x5e] sm:$0xff] }
 0x16c   :  { %v875_v0 = vsel %vm871_vm3, %v858_v62, %v780_v63  ;;  %v825_v19 = vsel %vm154_vm0, %v489_v13, %v590_v61 }
 0x16d   :  { %v592_v1 = vpop.permute.xlu1 %591  ;;  %6815 = vmatmul.mubr.msk.f32.gmra.mxu0 %vm905_vm4, %v875_v0  ;;  %239 = vrot.lane.b32.xlu0 %v7411_v12, %s7314_s19  ;;  %v495_v0 = vld [vmem:[#allocation3 + $0x10e] sm:$0xff] }
 0x16f   :  { %v654_v11 = vpop.permute.xlu0 %653  ;;  %245 = vrot.lane.b32.xlu1 %v7428_v15, %s7314_s19 }
 0x170   :  { %v842_v12 = vsel %vm837_vm1, %v825_v19, %v654_v11 }
 0x171   :  { %v660_v10 = vpop.permute.xlu1 %659  ;;  %243 = vrot.lane.b32.xlu0 %v7421_v14, %s7314_s19  ;;  %v490_v14 = vld [vmem:[#allocation3 + $0x66] sm:$0xff] }
 0x173   :  { %v718_v18 = vpop.permute.xlu0 %717  ;;  %249 = vrot.lane.b32.xlu1 %v7438_v17, %s7314_s19  ;;  %v826_v17 = vsel %vm154_vm0, %v490_v14, %v592_v1 }
 0x174   :  { %v859_v22 = vsel %vm854_vm2, %v842_v12, %v718_v18  ;;  %v843_v27 = vsel %vm837_vm1, %v826_v17, %v656_v52  ;;  %v494_v52 = vld [vmem:[#allocation3 + $0x106] sm:$0xff] }
 0x175   :  { %v724_v20 = vpop.permute.xlu1 %723  ;;  %247 = vrot.lane.b32.xlu0 %v7431_v16, %s7314_s19 }
 0x177   :  { %v782_v15 = vpop.permute.xlu0 %781 }
 0x178   :  { %v876_v23 = vsel %vm871_vm3, %v859_v22, %v782_v15 }
 0x179   :  { %v720_v24 = vpop.permute.xlu1 %719  ;;  %6817 = vmatprep.mubr.msk.f32.mxu1 %vm905_vm4, %v876_v23 }
 0x17a   :  { %v860_v28 = vsel %vm854_vm2, %v843_v27, %v720_v24 }
 0x17b   :  { %v788_v25 = vpop.permute.xlu0 %787 }
 0x17d   :  { %v594_v26 = vpop.permute.xlu1 %593 }
 0x17e   :  { %v827_v37 = vsel %vm154_vm0, %v491_v36, %v594_v26 }
 0x17f   :  { %v784_v16 = vpop.permute.xlu0 %783 }
 0x180   :  { %v877_v29 = vsel %vm871_vm3, %v860_v28, %v784_v16  ;;  %v497_v28 = vld [vmem:[#allocation3 + $0x11e] sm:$0xff] }
 0x181   :  { %v596_v30 = vpop.permute.xlu1 %595  ;;  %6818 = vmatmul.mubr.msk.f32.vlgmr.msra.gmra.mxu1 %vm905_vm4, %v877_v29  ;;  %v498_v29 = vld [vmem:[#allocation3 + $0x126] sm:$0xff] }
 0x182   :  { %v828_v32 = vsel %vm154_vm0, %v492_v31, %v596_v30 }
 0x183   :  { %v658_v21 = vpop.permute.xlu0 %657  ;;  %v845_v34 = vsel %vm837_vm1, %v828_v32, %v660_v10  ;;  %v496_v10 = vld [vmem:[#allocation3 + $0x116] sm:$0xff] }
 0x184   :  { %v844_v39 = vsel %vm837_vm1, %v827_v37, %v658_v21  ;;  %v862_v40 = vsel %vm854_vm2, %v845_v34, %v724_v20 }
 0x185   :  { %v664_v33 = vpop.permute.xlu1 %663  ;;  %v879_v45 = vsel %vm871_vm3, %v862_v40, %v788_v25 }
 0x187   :  { %v722_v35 = vpop.permute.xlu0 %721 }
 0x188   :  { %v861_v41 = vsel %vm854_vm2, %v844_v39, %v722_v35 }
 0x189   :  { %v598_v38 = vpop.permute.xlu1 %597 }
 0x18a   :  { %v829_v50 = vsel %vm154_vm0, %v493_v49, %v598_v38 }
 0x18b   :  { %v786_v42 = vpop.permute.xlu0 %785 }
 0x18c   :  { %v878_v43 = vsel %vm871_vm3, %v861_v41, %v786_v42  ;;  %v500_v42 = vld [vmem:[#allocation3 + $0x136] sm:$0xff] }
 0x18d   :  { %v600_v44 = vpop.permute.xlu1 %599  ;;  %6820 = vmatprep.mubr.msk.f32.mxu1 %vm905_vm4, %v878_v43 }
 0x18e   :  { %6821 = vmatmul.mubr.msk.f32.gmra.mxu1 %vm905_vm4, %v879_v45  ;;  %v830_v54 = vsel %vm154_vm0, %v494_v52, %v600_v44  ;;  %v499_v44 = vld [vmem:[#allocation3 + $0x12e] sm:$0xff] }
 0x18f   :  { %v662_v46 = vpop.permute.xlu0 %661  ;;  %v847_v7 = vsel %vm837_vm1, %v830_v54, %v664_v33 }
 0x190   :  { %v846_v53 = vsel %vm837_vm1, %v829_v50, %v662_v46 }
 0x191   :  { %v668_v47 = vpop.permute.xlu1 %667 }
 0x193   :  { %v726_v48 = vpop.permute.xlu0 %725 }
 0x194   :  { %v863_v55 = vsel %vm854_vm2, %v846_v53, %v726_v48 }
 0x195   :  { %v728_v51 = vpop.permute.xlu1 %727 }
 0x196   :  { %v864_v59 = vsel %vm854_vm2, %v847_v7, %v728_v51  ;;  %v7705_v7 = vld [vmem:[%s6245_s25] ss:$0 sm:$0xff]  ;;  %s7330_s25 = smov 17  }
 0x197   :  { %v790_v56 = vpop.permute.xlu0 %789  ;;  %s6258_s28 = sld [smem:[%s10767_s0 + %s7330_s25]]   ;;  %s7343_s25 = smov 30  }
 0x198   :  { %v880_v57 = vsel %vm871_vm3, %v863_v55, %v790_v56 }
 0x199   :  { %v602_v58 = vpop.permute.xlu1 %601  ;;  %6823 = vmatprep.mubr.msk.f32.mxu1 %vm905_vm4, %v880_v57 }
 0x19a   :  { %v831_v1 = vsel %vm154_vm0, %v495_v0, %v602_v58 }
 0x19b   :  { %v792_v60 = vpop.permute.xlu0 %791 }
 0x19c   :  { %v881_v9 = vsel %vm871_vm3, %v864_v59, %v792_v60 }
 0x19d   :  { %v604_v61 = vpop.permute.xlu1 %603  ;;  %6824 = vmatmul.mubr.msk.f32.gmra.mxu1 %vm905_vm4, %v881_v9 }
 0x19e   :  { %v832_v13 = vsel %vm154_vm0, %v496_v10, %v604_v61 }
 0x19f   :  { %v666_v8 = vpop.permute.xlu0 %665  ;;  %v849_v15 = vsel %vm837_vm1, %v832_v13, %v668_v47 }
 0x1a0   :  { %v848_v18 = vsel %vm837_vm1, %v831_v1, %v666_v8 }
 0x1a1   :  { %v672_v62 = vpop.permute.xlu1 %671 }
 0x1a3   :  { %v730_v63 = vpop.permute.xlu0 %729 }
 0x1a4   :  { %v865_v19 = vsel %vm854_vm2, %v848_v18, %v730_v63 }
 0x1a5   :  { %v732_v11 = vpop.permute.xlu1 %731 }
 0x1a6   :  { %v866_v23 = vsel %vm854_vm2, %v849_v15, %v732_v11 }
 0x1a7   :  { %v794_v20 = vpop.permute.xlu0 %793 }
 0x1a8   :  { %v882_v12 = vsel %vm871_vm3, %v865_v19, %v794_v20 }
 0x1a9   :  { %v606_v22 = vpop.permute.xlu1 %605  ;;  %6826 = vmatprep.mubr.msk.f32.mxu1 %vm905_vm4, %v882_v12 }
 0x1aa   :  { %v833_v16 = vsel %vm154_vm0, %v497_v28, %v606_v22 }
 0x1ab   :  { %v796_v24 = vpop.permute.xlu0 %795 }
 0x1ac   :  { %v883_v14 = vsel %vm871_vm3, %v866_v23, %v796_v24 }
 0x1ad   :  { %v608_v17 = vpop.permute.xlu1 %607  ;;  %6827 = vmatmul.mubr.msk.f32.gmra.mxu1 %vm905_vm4, %v883_v14 }
 0x1ae   :  { %v834_v31 = vsel %vm154_vm0, %v498_v29, %v608_v17 }
 0x1af   :  { %v670_v25 = vpop.permute.xlu0 %669  ;;  %v851_v35 = vsel %vm837_vm1, %v834_v31, %v672_v62 }
 0x1b0   :  { %v850_v21 = vsel %vm837_vm1, %v833_v16, %v670_v25 }
 0x1b1   :  { %v676_v26 = vpop.permute.xlu1 %675 }
 0x1b3   :  { %v734_v27 = vpop.permute.xlu0 %733 }
 0x1b4   :  { %v867_v32 = vsel %vm854_vm2, %v850_v21, %v734_v27 }
 0x1b5   :  { %v740_v30 = vpop.permute.xlu1 %739 }
 0x1b7   :  { %v798_v33 = vpop.permute.xlu0 %797 }
 0x1b8   :  { %v884_v34 = vsel %vm871_vm3, %v867_v32, %v798_v33 }
 0x1b9   :  { %v736_v36 = vpop.permute.xlu1 %735  ;;  %6829 = vmatprep.mubr.msk.f32.mxu1 %vm905_vm4, %v884_v34 }
 0x1ba   :  { %v868_v37 = vsel %vm854_vm2, %v851_v35, %v736_v36 }
 0x1bb   :  { %v800_v38 = vpop.permute.xlu0 %799 }
 0x1bc   :  { %v885_v39 = vsel %vm871_vm3, %v868_v37, %v800_v38 }
 0x1bd   :  { %v610_v40 = vpop.permute.xlu1 %609  ;;  %6830 = vmatmul.mubr.msk.f32.gmra.mxu1 %vm905_vm4, %v885_v39  ;;  %v7287_v39 = vld [vmem:[%s7360_s9 + $0x28] sm:$0xff] }
 0x1be   :  { %v835_v46 = vsel %vm154_vm0, %v499_v44, %v610_v40 }
 0x1bf   :  { %v674_v41 = vpop.permute.xlu0 %673 }
 0x1c0   :  { %v852_v49 = vsel %vm837_vm1, %v835_v46, %v674_v41  ;;  %v7288_v41 = vld [vmem:[%s7360_s9 + $0x30] sm:$0xff] }
 0x1c1   :  { %v612_v43 = vpop.permute.xlu1 %611 }
 0x1c2   :  { %v836_v45 = vsel %vm154_vm0, %v500_v42, %v612_v43 }
 0x1c3   :  { %v853_v47 = vsel %vm837_vm1, %v836_v45, %v676_v26  ;;  %v738_v48 = vpop.permute.xlu0 %737 }
 0x1c4   :  { %v870_v50 = vsel %vm854_vm2, %v853_v47, %v740_v30  ;;  %v869_v52 = vsel %vm854_vm2, %v852_v49, %v738_v48 }
 0x1c5   :  { %v804_v51 = vpop.permute.xlu1 %803 }
 0x1c6   :  { %v887_v55 = vsel %vm871_vm3, %v870_v50, %v804_v51 }
 0x1c7   :  { %v802_v53 = vpop.permute.xlu0 %801 }
 0x1c8   :  { %v886_v54 = vsel %vm871_vm3, %v869_v52, %v802_v53 }
 0x1c9   :  { %6832 = vmatprep.mubr.msk.f32.mxu1 %vm905_vm4, %v886_v54  ;;  %v222_v0 = vpop.permute.xlu1 %221 }
 0x1ca   :  { %6833 = vmatmul.mubr.msk.f32.gmra.mxu1 %vm905_vm4, %v887_v55  ;;  %v268_v19 = vsel %vm154_vm0, %v7368_v3, %v222_v0 }
 0x1cb   :  { %v220_v9 = vpop.permute.xlu0 %219 }
 0x1cc   :  { %v267_v11 = vsel %vm154_vm0, %v7363_v2, %v220_v9  ;;  %v7290_v9 = vld [vmem:[%s7360_s9 + $0x40] sm:$0xff] }
 0x1cd   :  { %v226_v14 = vpop.permute.xlu1 %225 }
 0x1cf   :  { %v224_v1 = vpop.permute.xlu0 %223 }
 0x1d0   :  { %v269_v20 = vsel %vm154_vm0, %v7371_v4, %v224_v1  ;;  %v270_v4 = vsel %vm154_vm0, %v7378_v5, %v226_v14  ;;  %v1322_v1 = vld [vmem:[%s7743_s29 + $0x8] sm:$0xff] }
 0x1d1   :  { %v230_v5 = vpop.permute.xlu1 %229 }
 0x1d2   :  { %v272_v40 = vsel %vm154_vm0, %v7287_v39, %v230_v5  ;;  %v7294_v39 = vld [vmem:[%s7360_s9 + $0x60] sm:$0xff] }
 0x1d3   :  { %v228_v17 = vpop.permute.xlu0 %227 }
 0x1d4   :  { %v271_v28 = vsel %vm154_vm0, %v7381_v6, %v228_v17  ;;  %v7291_v17 = vld [vmem:[%s7360_s9 + $0x48] sm:$0xff] }
 0x1d5   :  { %v234_v50 = vpop.permute.xlu1 %233 }
 0x1d7   :  { %v232_v6 = vpop.permute.xlu0 %231 }
 0x1d8   :  { %v273_v42 = vsel %vm154_vm0, %v7288_v41, %v232_v6 }
 0x1db   :  { %v236_v52 = vpop.permute.xlu0 %235 }
 0x21d   :  { %v6813_v56 = vpop.f32.mrf.mxu0 }
 0x21e   :  { %v1026_v8 = vadd.f32 %v6813_v56, %v7705_v7 }
 0x21f   :  { %v1020_v57 = vpop.f32.mrf.mxu0 }
 0x220   :  { %v1021_v60 = vadd.f32 %v7705_v7, %v1020_v57  ;;  %v1100_v18 = vmax.f32 %v1026_v8, 0.0  ;;  %v1324_v57 = vld [vmem:[%s7743_s29 + $0x18] sm:$0xff] }
 0x221   :  { %6835 = vmatprep.subr.mxu0 %v1324_v57 }
 0x222   :  { %v1099_v63 = vmax.f32 %v1021_v60, 0.0  ;;  %v7720_v24 = vadd.f32 %v1100_v18, %v268_v19  ;;  %6836 = vmatpush3.msra.mxu0 %v1324_v57  ;;  %v238_v18 = vpop.permute.xlu1 %237  ;;  %v240_v19 = vpop.permute.xlu0 %239 }
 0x224   :  { %v7716_v22 = vadd.f32 %v1099_v63, %v267_v11  ;;  %v1132_v29 = vsel %vm837_vm1, %v7720_v24, 0.0 }
 0x226   :  { %v1131_v3 = vsel %vm837_vm1, %v7716_v22, 0.0  ;;  %v244_v5 = vpop.permute.xlu0 %243 }
 0x227   :  { %v1133_v32 = vadd.f32 %v1132_v29, %v1131_v3  ;;  %v7292_v3 = vld [vmem:[%s7360_s9 + $0x50] sm:$0xff] }
 0x22d   :  { %v6816_v58 = vpop.f32.mrf.mxu0 }
 0x22e   :  { %v1036_v15 = vadd.f32 %v6816_v58, %v7705_v7  ;;  %v1323_v58 = vld [vmem:[%s7743_s29 + $0x10] sm:$0xff] }
 0x22f   :  { %v1030_v59 = vpop.f32.mrf.mxu0  ;;  %6837 = vmatprep.subr.mxu0 %v1323_v58 }
 0x230   :  { %v1031_v62 = vadd.f32 %v7705_v7, %v1030_v59  ;;  %v1102_v26 = vmax.f32 %v1036_v15, 0.0  ;;  %v7289_v59 = vld [vmem:[%s7360_s9 + $0x38] sm:$0xff]  ;;  %6838 = vmatpush3.msra.mxu0 %v1323_v58 }
 0x231   :  { %v274_v60 = vsel %vm154_vm0, %v7289_v59, %v234_v50  ;;  %6839 = vmatprep.subr.mxu0 %v1322_v1  ;;  %v248_v59 = vpop.permute.xlu0 %247 }
 0x232   :  { %v1101_v13 = vmax.f32 %v1031_v62, 0.0  ;;  %v7736_v33 = vadd.f32 %v1102_v26, %v270_v4  ;;  %6840 = vmatpush3.msra.mxu0 %v1322_v1  ;;  %v277_v26 = vsel %vm154_vm0, %v7292_v3, %v240_v19 }
 0x234   :  { %v7722_v2 = vadd.f32 %v1101_v13, %v269_v20  ;;  %v1136_v44 = vsel %vm837_vm1, %v7736_v33, 0.0  ;;  %v1321_v20 = vld [vmem:[%s7743_s29] sm:$0xff]  ;;  %s7331_s29 = smov 18  }
 0x235   :  { %6841 = vmatprep.subr.mxu0 %v1321_v20  ;;  %s6259_s2 = sld [smem:[%s10767_s0 + %s7331_s29]]  }
 0x236   :  { %v1134_v30 = vsel %vm837_vm1, %v7722_v2, 0.0  ;;  %6842 = vmatpush3.msra.mxu0 %v1321_v20 }
 0x237   :  { %v1135_v35 = vadd.f32 %v1134_v30, %v1133_v32 }
 0x239   :  { %v1137_v48 = vadd.f32 %v1136_v44, %v1135_v35 }
 0x241   :  { %v6819_v61 = vpop.f32.mrf.mxu1 }
 0x242   :  { %v1046_v31 = vadd.f32 %v6819_v61, %v7705_v7  ;;  %v275_v61 = vsel %vm154_vm0, %v7290_v9, %v236_v52  ;;  %v7295_v52 = vld [vmem:[%s7360_s9 + $0x68] sm:$0xff] }
 0x243   :  { %v1040_v10 = vpop.f32.mrf.mxu1 }
 0x244   :  { %v1041_v23 = vadd.f32 %v7705_v7, %v1040_v10  ;;  %v1104_v37 = vmax.f32 %v1046_v31, 0.0 }
 0x246   :  { %v1103_v27 = vmax.f32 %v1041_v23, 0.0  ;;  %v7755_v49 = vadd.f32 %v1104_v37, %v272_v40  ;;  %v7293_v37 = vld [vmem:[%s7360_s9 + $0x58] sm:$0xff]  ;;  %v279_v40 = vsel %vm154_vm0, %v7294_v39, %v244_v5 }
 0x248   :  { %v7738_v34 = vadd.f32 %v1103_v27, %v271_v28  ;;  %v1140_v8 = vsel %vm837_vm1, %v7755_v49, 0.0 }
 0x24a   :  { %v1138_v45 = vsel %vm837_vm1, %v7738_v34, 0.0 }
 0x24b   :  { %v1139_v53 = vadd.f32 %v1138_v45, %v1137_v48 }
 0x24d   :  { %v1141_v11 = vadd.f32 %v1140_v8, %v1139_v53 }
 0x24e   :  { %v6822_v12 = vpop.f32.mrf.mxu1 }
 0x24f   :  { %v1056_v46 = vadd.f32 %v6822_v12, %v7705_v7 }
 0x250   :  { %v1050_v25 = vpop.f32.mrf.mxu1 }
 0x251   :  { %v1051_v21 = vadd.f32 %v7705_v7, %v1050_v25  ;;  %v1106_v55 = vmax.f32 %v1056_v46, 0.0  ;;  %v276_v25 = vsel %vm154_vm0, %v7291_v17, %v238_v18 }
 0x253   :  { %v1105_v38 = vmax.f32 %v1051_v21, 0.0  ;;  %v7772_v10 = vadd.f32 %v1106_v55, %v274_v60  ;;  %v242_v21 = vpop.permute.xlu1 %241 }
 0x255   :  { %v7757_v51 = vadd.f32 %v1105_v38, %v273_v42  ;;  %v1144_v27 = vsel %vm837_vm1, %v7772_v10, 0.0  ;;  %v278_v38 = vsel %vm154_vm0, %v7293_v37, %v242_v21 }
 0x257   :  { %v1142_v62 = vsel %vm837_vm1, %v7757_v51, 0.0  ;;  %v246_v46 = vpop.permute.xlu1 %245 }
 0x258   :  { %v1143_v12 = vadd.f32 %v1142_v62, %v1141_v11  ;;  %v280_v53 = vsel %vm154_vm0, %v7295_v52, %v246_v46  ;;  %v7297_v11 = vld [vmem:[%s7360_s9 + $0x70] sm:$0xff] }
 0x259   :  { %v281_v18 = vsel %vm154_vm0, %v7297_v11, %v248_v59 }
 0x25a   :  { %v1145_v29 = vadd.f32 %v1144_v27, %v1143_v12 }
 0x25b   :  { %v250_v58 = vpop.permute.xlu1 %249 }
 0x25d   :  { %v6825_v16 = vpop.f32.mrf.mxu1 }
 0x25e   :  { %v1066_v63 = vadd.f32 %v6825_v16, %v7705_v7 }
 0x25f   :  { %v1060_v36 = vpop.f32.mrf.mxu1 }
 0x260   :  { %v1061_v47 = vadd.f32 %v7705_v7, %v1060_v36  ;;  %v1108_v15 = vmax.f32 %v1066_v63, 0.0 }
 0x262   :  { %v1107_v56 = vmax.f32 %v1061_v47, 0.0  ;;  %v7787_v31 = vadd.f32 %v1108_v15, %v276_v25 }
 0x264   :  { %v7774_v13 = vadd.f32 %v1107_v56, %v275_v61  ;;  %v1148_v41 = vsel %vm837_vm1, %v7787_v31, 0.0 }
 0x266   :  { %v1146_v4 = vsel %vm837_vm1, %v7774_v13, 0.0 }
 0x267   :  { %v1147_v6 = vadd.f32 %v1146_v4, %v1145_v29 }
 0x269   :  { %v1149_v44 = vadd.f32 %v1148_v41, %v1147_v6 }
 0x26d   :  { %v6828_v43 = vpop.f32.mrf.mxu1 }
 0x26e   :  { %v1076_v28 = vadd.f32 %v6828_v43, %v7705_v7 }
 0x26f   :  { %v1070_v54 = vpop.f32.mrf.mxu1 }
 0x270   :  { %v1071_v0 = vadd.f32 %v7705_v7, %v1070_v54  ;;  %v1110_v35 = vmax.f32 %v1076_v28, 0.0 }
 0x272   :  { %v1109_v23 = vmax.f32 %v1071_v0, 0.0  ;;  %v7800_v45 = vadd.f32 %v1110_v35, %v278_v38  ;;  %v7296_v0 = vld [vmem:[%s7360_s9 + $0x78] sm:$0xff]  ;;  %s6255_s9 = sld [smem:[%s10767_s0 + %s7327_s6]]  }
 0x273   :  { %v282_v1 = vsel %vm154_vm0, %v7296_v0, %v250_v58 }
 0x274   :  { %v7789_v32 = vadd.f32 %v1109_v23, %v277_v26  ;;  %v1152_v55 = vsel %vm837_vm1, %v7800_v45, 0.0 }
 0x276   :  { %v1150_v42 = vsel %vm837_vm1, %v7789_v32, 0.0 }
 0x277   :  { %v1151_v48 = vadd.f32 %v1150_v42, %v1149_v44 }
 0x279   :  { %v1153_v60 = vadd.f32 %v1152_v55, %v1151_v48 }
 0x27d   :  { %v6831_v14 = vpop.f32.mrf.mxu1 }
 0x27e   :  { %v1086_v43 = vadd.f32 %v6831_v14, %v7705_v7 }
 0x27f   :  { %v1080_v16 = vpop.f32.mrf.mxu1 }
 0x280   :  { %v1081_v30 = vadd.f32 %v7705_v7, %v1080_v16  ;;  %v1112_v50 = vmax.f32 %v1086_v43, 0.0 }
 0x282   :  { %v1111_v36 = vmax.f32 %v1081_v30, 0.0  ;;  %v7811_v61 = vadd.f32 %v1112_v50, %v280_v53 }
 0x284   :  { %v7802_v47 = vadd.f32 %v1111_v36, %v279_v40  ;;  %v1156_v20 = vsel %vm837_vm1, %v7811_v61, 0.0 }
 0x286   :  { %v1154_v56 = vsel %vm837_vm1, %v7802_v47, 0.0 }
 0x287   :  { %v1155_v63 = vadd.f32 %v1154_v56, %v1153_v60 }
 0x289   :  { %v1157_v23 = vadd.f32 %v1156_v20, %v1155_v63 }
 0x28a   :  { %v6834_v54 = vpop.f32.mrf.mxu1 }
 0x28b   :  { %v1096_v57 = vadd.f32 %v6834_v54, %v7705_v7 }
 0x28c   :  { %v1090_v9 = vpop.f32.mrf.mxu1 }
 0x28d   :  { %v1114_v8 = vmax.f32 %v1096_v57, 0.0  ;;  %v1091_v62 = vadd.f32 %v7705_v7, %v1090_v9 }
 0x28f   :  { %v1113_v19 = vmax.f32 %v1091_v62, 0.0  ;;  %v7820_v12 = vadd.f32 %v1114_v8, %v282_v1 }
 0x291   :  { %v1129_v15 = vadd.f32 %v1113_v19, %v281_v18  ;;  %v1160_v7 = vsel %vm837_vm1, %v7820_v12, 0.0 }
 0x293   :  { %v1158_v14 = vsel %vm837_vm1, %v1129_v15, 0.0 }
 0x294   :  { %v1159_v17 = vadd.f32 %v1158_v14, %v1157_v23 }
 0x296   :  { %v1161_v25 = vadd.f32 %v1160_v7, %v1159_v17 }
 0x298   :  { %v1162_v3 = vrot.slane %v1161_v25, 4 }
 0x29a   :  { %v1163_v26 = vadd.f32 %v1162_v3, %v1161_v25 }
 0x29c   :  { %v1164_v27 = vrot.slane %v1163_v26, 2 }
 0x29e   :  { %v1165_v4 = vadd.f32 %v1164_v27, %v1163_v26 }
 0x2a0   :  { %v1166_v28 = vrot.slane %v1165_v4, 1 }
 0x2a2   :  { %v1167_v16 = vadd.f32 %v1166_v28, %v1165_v4 }
 0x2a4   :  { %v1169_v29 = vmul.f32 0.0078125, %v1167_v16 }
 0x2a6   :  { %v7826_v30 = vsub.f32 %v7716_v22, %v1169_v29  ;;  %v7829_v21 = vsub.f32 %v7720_v24, %v1169_v29  ;;  %v7832_v5 = vsub.f32 %v7722_v2, %v1169_v29  ;;  %v7835_v6 = vsub.f32 %v7736_v33, %v1169_v29 }
 0x2a7   :  { %v7842_v37 = vsub.f32 %v7738_v34, %v1169_v29  ;;  %v7847_v24 = vsub.f32 %v7755_v49, %v1169_v29  ;;  %v7854_v40 = vsub.f32 %v7757_v51, %v1169_v29  ;;  %v7860_v49 = vsub.f32 %v7772_v10, %v1169_v29 }
 0x2a8   :  { %v1186_v35 = vmul.f32 %v7826_v30, %v7826_v30  ;;  %v1187_v36 = vmul.f32 %v7829_v21, %v7829_v21  ;;  %v1188_v22 = vmul.f32 %v7832_v5, %v7832_v5  ;;  %v1189_v2 = vmul.f32 %v7835_v6, %v7835_v6 }
 0x2a9   :  { %v1190_v34 = vmul.f32 %v7842_v37, %v7842_v37  ;;  %v1191_v43 = vmul.f32 %v7847_v24, %v7847_v24  ;;  %v7866_v48 = vsub.f32 %v7774_v13, %v1169_v29  ;;  %v1192_v51 = vmul.f32 %v7854_v40, %v7854_v40 }
 0x2aa   :  { %v1202_v33 = vsel %vm837_vm1, %v1186_v35, 0.0  ;;  %v1203_v38 = vsel %vm837_vm1, %v1187_v36, 0.0  ;;  %v1205_v41 = vsel %vm837_vm1, %v1188_v22, 0.0  ;;  %v1207_v44 = vsel %vm837_vm1, %v1189_v2, 0.0 }
 0x2ab   :  { %v1204_v39 = vadd.f32 %v1203_v38, %v1202_v33  ;;  %v1209_v50 = vsel %vm837_vm1, %v1190_v34, 0.0  ;;  %v7872_v53 = vsub.f32 %v7787_v31, %v1169_v29  ;;  %v1193_v10 = vmul.f32 %v7860_v49, %v7860_v49 }
 0x2ac   :  { %v1211_v54 = vsel %vm837_vm1, %v1191_v43, 0.0  ;;  %v7878_v56 = vsub.f32 %v7789_v32, %v1169_v29  ;;  %v1194_v13 = vmul.f32 %v7866_v48, %v7866_v48  ;;  %v1213_v57 = vsel %vm837_vm1, %v1192_v51, 0.0 }
 0x2ad   :  { %v1206_v42 = vadd.f32 %v1205_v41, %v1204_v39  ;;  %v1181_v59 = vsub.f32 %v7800_v45, %v1169_v29  ;;  %v1195_v31 = vmul.f32 %v7872_v53, %v7872_v53  ;;  %v1215_v60 = vsel %vm837_vm1, %v1193_v10, 0.0 }
 0x2ae   :  { %v1182_v8 = vsub.f32 %v7802_v47, %v1169_v29  ;;  %v1196_v32 = vmul.f32 %v7878_v56, %v7878_v56  ;;  %v1217_v62 = vsel %vm837_vm1, %v1194_v13, 0.0  ;;  %v1183_v0 = vsub.f32 %v7811_v61, %v1169_v29 }
 0x2af   :  { %v1208_v46 = vadd.f32 %v1207_v44, %v1206_v42  ;;  %v1197_v1 = vmul.f32 %v1181_v59, %v1181_v59  ;;  %v1219_v11 = vsel %vm837_vm1, %v1195_v31, 0.0  ;;  %v1184_v18 = vsub.f32 %v1129_v15, %v1169_v29  ;;  %v1240_v42 = vld [vmem:[%s6246_s3] sm:$0x1]  ;;  %s7332_s3 = smov 20  }
 0x2b0   :  { %v1198_v19 = vmul.f32 %v1182_v8, %v1182_v8  ;;  %v1221_v20 = vsel %vm837_vm1, %v1196_v32, 0.0  ;;  %v1185_v14 = vsub.f32 %v7820_v12, %v1169_v29  ;;  %v1199_v47 = vmul.f32 %v1183_v0, %v1183_v0  ;;  %s6261_s6 = sld [smem:[%s10767_s0 + %s7332_s3]]  }
 0x2b1   :  { %v1210_v52 = vadd.f32 %v1209_v50, %v1208_v46  ;;  %v1223_v17 = vsel %vm837_vm1, %v1197_v1, 0.0  ;;  %v1200_v25 = vmul.f32 %v1184_v18, %v1184_v18  ;;  %v1245_v34 = vlaneseq  ;;  %v6313_v50 = vld [vmem:[%s6247_s7] ss:$0 sm:$0xff]  ;;  %s7333_s7 = smov 21  }
 0x2b2   :  { %v1225_v3 = vsel %vm837_vm1, %v1198_v19, 0.0  ;;  %v1201_v61 = vmul.f32 %v1185_v14, %v1185_v14  ;;  %v1227_v27 = vsel %vm837_vm1, %v1199_v47, 0.0  ;;  %s9078_s10 = sld [smem:[%s10767_s0 + %s7333_s7]]  }
 0x2b3   :  { %v1212_v55 = vadd.f32 %v1211_v54, %v1210_v52  ;;  %v1229_v15 = vsel %vm837_vm1, %v1200_v25, 0.0  ;;  %v1246_v41 = vshrl.u32 %v1245_v34, 7 }
 0x2b4   :  { %v1231_v16 = vsel %vm837_vm1, %v1201_v61, 0.0 }
 0x2b5   :  { %v1214_v58 = vadd.f32 %v1213_v57, %v1212_v55  ;;  %v7906_v43 = vsub.s32 0, %v1246_v41 }
 0x2b7   :  { %v1216_v9 = vadd.f32 %v1215_v60, %v1214_v58  ;;  %10772 = vst [vmem:[#allocation4_spill] sm:$0xff] %v7906_v43 }
 0x2b9   :  { %v1218_v63 = vadd.f32 %v1217_v62, %v1216_v9 }
 0x2bb   :  { %v1220_v45 = vadd.f32 %v1219_v11, %v1218_v63 }
 0x2bd   :  { %v1222_v23 = vadd.f32 %v1221_v20, %v1220_v45 }
 0x2bf   :  { %v1224_v7 = vadd.f32 %v1223_v17, %v1222_v23 }
 0x2c1   :  { %v1226_v26 = vadd.f32 %v1225_v3, %v1224_v7 }
 0x2c3   :  { %v1228_v4 = vadd.f32 %v1227_v27, %v1226_v26 }
 0x2c5   :  { %v1230_v28 = vadd.f32 %v1229_v15, %v1228_v4 }
 0x2c7   :  { %v1232_v35 = vadd.f32 %v1231_v16, %v1230_v28 }
 0x2c9   :  { %v1233_v36 = vrot.slane %v1232_v35, 4 }
 0x2cb   :  { %v1234_v12 = vadd.f32 %v1233_v36, %v1232_v35  ;;  %v8008_v36 = vld [vmem:[%s6249_s11] ss:$0 sm:$0xff]  ;;  %s7334_s11 = smov 22  }
 0x2cc   :  { %s6263_s14 = sld [smem:[%s10767_s0 + %s7334_s11]]  }
 0x2cd   :  { %v1235_v29 = vrot.slane %v1234_v12, 2 }
 0x2cf   :  { %v1236_v22 = vadd.f32 %v1235_v29, %v1234_v12  ;;  %v1936_v12 = vld [vmem:[%s8006_s15 + $0x48] sm:$0xff]  ;;  %v1935_v29 = vld [vmem:[%s8006_s15 + $0x40] sm:$0xff] }
 0x2d0   :  { %6867 = vmatprep.subr.mxu1 %v1936_v12 }
 0x2d1   :  { %v1237_v2 = vrot.slane %v1236_v22, 1  ;;  %6868 = vmatpush3.msra.mxu1 %v1936_v12 }
 0x2d2   :  { %6869 = vmatprep.subr.mxu1 %v1935_v29 }
 0x2d3   :  { %v1238_v33 = vadd.f32 %v1237_v2, %v1236_v22  ;;  %v1934_v2 = vld [vmem:[%s8006_s15 + $0x38] sm:$0xff]  ;;  %6870 = vmatpush3.msra.mxu1 %v1935_v29 }
 0x2d4   :  { %6871 = vmatprep.subr.mxu1 %v1934_v2 }
 0x2d5   :  { %v1239_v38 = vmul.f32 0.0078125, %v1238_v33  ;;  %6872 = vmatpush3.msra.mxu1 %v1934_v2 }
 0x2d7   :  { %v1241_v39 = vadd.f32 1e-05, %v1239_v38 }
 0x2d9   :  { %7275 = vrsqrt.f32 %v1241_v39  ;;  %v1933_v39 = vld [vmem:[%s8006_s15 + $0x30] sm:$0xff] }
 0x2da   :  { %6873 = vmatprep.subr.mxu1 %v1933_v39 }
 0x2db   :  { %6874 = vmatpush3.msra.mxu1 %v1933_v39 }
 0x2e6   :  { %v7276_v44 = vpop.eup %7275 }
 0x2e7   :  { %v1243_v46 = vmul.f32 %v7276_v44, %v1240_v42  ;;  %v1932_v42 = vld [vmem:[%s8006_s15 + $0x28] sm:$0xff] }
 0x2e8   :  { %6875 = vmatprep.subr.mxu1 %v1932_v42 }
 0x2e9   :  { %v1248_v51 = vrot.slane %v1243_v46, %v7906_v43  ;;  %6876 = vmatpush3.msra.mxu1 %v1932_v42 }
 0x2eb   :  { %v1251_v52 = vmul.f32 %v1248_v51, %v7829_v21  ;;  %v1253_v10 = vmul.f32 %v1248_v51, %v7835_v6  ;;  %v1254_v54 = vmul.f32 %v1248_v51, %v7842_v37  ;;  %v1255_v55 = vmul.f32 %v1248_v51, %v7847_v24 }
 0x2ec   :  { %v1256_v13 = vmul.f32 %v1248_v51, %v7854_v40  ;;  %v1257_v57 = vmul.f32 %v1248_v51, %v7860_v49  ;;  %v1258_v58 = vmul.f32 %v1248_v51, %v7866_v48  ;;  %v1259_v31 = vmul.f32 %v1248_v51, %v7872_v53 }
 0x2ed   :  { %v1260_v60 = vmul.f32 %v1248_v51, %v7878_v56  ;;  %v1261_v9 = vmul.f32 %v1248_v51, %v1181_v59  ;;  %v1262_v32 = vmul.f32 %v1248_v51, %v1182_v8  ;;  %v1263_v62 = vmul.f32 %v1248_v51, %v1183_v0 }
 0x2ee   :  { %v1264_v21 = vmul.f32 %v1248_v51, %v1184_v18  ;;  %v1265_v63 = vmul.f32 %v1248_v51, %v1185_v14  ;;  %v1278_v6 = vadd.f32 %v6313_v50, %v1255_v55  ;;  %v1279_v1 = vadd.f32 %v6313_v50, %v1256_v13 }
 0x2ef   :  { %v1280_v37 = vadd.f32 %v6313_v50, %v1257_v57  ;;  %v1281_v11 = vadd.f32 %v6313_v50, %v1258_v58  ;;  %v1282_v24 = vadd.f32 %v6313_v50, %v1259_v31  ;;  %v1283_v45 = vadd.f32 %v6313_v50, %v1260_v60  ;;  %v1929_v57 = vld [vmem:[%s8006_s15 + $0x10] sm:$0xff] }
 0x2f0   :  { %v1284_v40 = vadd.f32 %v6313_v50, %v1261_v9  ;;  %v1285_v19 = vadd.f32 %v6313_v50, %v1262_v32  ;;  %v1286_v49 = vadd.f32 %v6313_v50, %v1263_v62  ;;  %v1287_v20 = vadd.f32 %v6313_v50, %v1264_v21  ;;  %1294 = vst.msk [vmem:[#allocation2 + $0x28] sm:$0xff] %vm837_vm1, %v1278_v6  ;;  %v1928_v21 = vld [vmem:[%s8006_s15 + $0x8] sm:$0xff] }
 0x2f1   :  { %1295 = vst.msk [vmem:[#allocation2 + $0x30] sm:$0xff] %vm837_vm1, %v1279_v1  ;;  %v1288_v48 = vadd.f32 %v6313_v50, %v1265_v63  ;;  %1296 = vst.msk [vmem:[#allocation2 + $0x38] sm:$0xff] %vm837_vm1, %v1280_v37  ;;  %v1250_v53 = vmul.f32 %v1248_v51, %v7826_v30  ;;  %v1274_v56 = vadd.f32 %v6313_v50, %v1251_v52  ;;  %v1927_v63 = vld [vmem:[%s8006_s15] sm:$0xff] }
 0x2f2   :  { %1297 = vst.msk [vmem:[#allocation2 + $0x40] sm:$0xff] %vm837_vm1, %v1281_v11  ;;  %1298 = vst.msk [vmem:[#allocation2 + $0x48] sm:$0xff] %vm837_vm1, %v1282_v24  ;;  %v1252_v59 = vmul.f32 %v1248_v51, %v7832_v5  ;;  %v1276_v8 = vadd.f32 %v6313_v50, %v1253_v10  ;;  %v1277_v0 = vadd.f32 %v6313_v50, %v1254_v54  ;;  %v1931_v51 = vld [vmem:[%s8006_s15 + $0x20] sm:$0xff]  ;;  %v1930_v10 = vld [vmem:[%s8006_s15 + $0x18] sm:$0xff]  ;;  %s7335_s15 = smov 25  }
 0x2f3   :  { %1299 = vst.msk [vmem:[#allocation2 + $0x50] sm:$0xff] %vm837_vm1, %v1283_v45  ;;  %1300 = vst.msk [vmem:[#allocation2 + $0x58] sm:$0xff] %vm837_vm1, %v1284_v40  ;;  %v1273_v18 = vadd.f32 %v6313_v50, %v1250_v53  ;;  %6877 = vmatprep.subr.mxu1 %v1931_v51  ;;  %s6266_s22 = sld [smem:[%s10767_s0 + %s7335_s15]]  }
 0x2f4   :  { %1301 = vst.msk [vmem:[#allocation2 + $0x60] sm:$0xff] %vm837_vm1, %v1285_v19  ;;  %1302 = vst.msk [vmem:[#allocation2 + $0x68] sm:$0xff] %vm837_vm1, %v1286_v49  ;;  %v1275_v23 = vadd.f32 %v6313_v50, %v1252_v59  ;;  %6878 = vmatpush3.msra.mxu1 %v1931_v51 }
 0x2f5   :  { %1303 = vst.msk [vmem:[#allocation2 + $0x70] sm:$0xff] %vm837_vm1, %v1287_v20  ;;  %1304 = vst.msk [vmem:[#allocation2 + $0x78] sm:$0xff] %vm837_vm1, %v1288_v48  ;;  %6879 = vmatprep.subr.mxu1 %v1930_v10 }
 0x2f6   :  { %1290 = vst.msk [vmem:[#allocation2 + $0x8] sm:$0xff] %vm837_vm1, %v1274_v56  ;;  %1292 = vst.msk [vmem:[#allocation2 + $0x18] sm:$0xff] %vm837_vm1, %v1276_v8  ;;  %6880 = vmatpush3.msra.mxu1 %v1930_v10 }
 0x2f7   :  { %1293 = vst.msk [vmem:[#allocation2 + $0x20] sm:$0xff] %vm837_vm1, %v1277_v0  ;;  %1289 = vst.msk [vmem:[#allocation2] sm:$0xff] %vm837_vm1, %v1273_v18  ;;  %v7956_v7 = vld [vmem:[#allocation2 + $0x28] sm:$0xff]  ;;  %6881 = vmatprep.subr.mxu1 %v1929_v57 }
 0x2f8   :  { %1291 = vst.msk [vmem:[#allocation2 + $0x10] sm:$0xff] %vm837_vm1, %v1275_v23  ;;  %v7960_v25 = vld [vmem:[#allocation2 + $0x30] sm:$0xff]  ;;  %v7964_v3 = vld [vmem:[#allocation2 + $0x38] sm:$0xff]  ;;  %6882 = vmatpush3.msra.mxu1 %v1929_v57 }
 0x2f9   :  { %v7968_v26 = vld [vmem:[#allocation2 + $0x40] sm:$0xff]  ;;  %v7972_v61 = vld [vmem:[#allocation2 + $0x48] sm:$0xff]  ;;  %6883 = vmatprep.subr.mxu1 %v1928_v21 }
 0x2fa   :  { %v7976_v27 = vld [vmem:[#allocation2 + $0x50] sm:$0xff]  ;;  %v7980_v4 = vld [vmem:[#allocation2 + $0x58] sm:$0xff]  ;;  %6884 = vmatpush3.msra.mxu1 %v1928_v21 }
 0x2fb   :  { %v7984_v15 = vld [vmem:[#allocation2 + $0x60] sm:$0xff]  ;;  %v7988_v28 = vld [vmem:[#allocation2 + $0x68] sm:$0xff]  ;;  %6885 = vmatprep.subr.mxu1 %v1927_v63 }
 0x2fc   :  { %v7992_v16 = vld [vmem:[#allocation2 + $0x70] sm:$0xff]  ;;  %v7996_v35 = vld [vmem:[#allocation2 + $0x78] sm:$0xff]  ;;  %6886 = vmatpush3.msra.mxu1 %v1927_v63 }
 0x2fd   :  { %v7936_v30 = vld [vmem:[#allocation2 + $0x8] sm:$0xff]  ;;  %v7948_v47 = vld [vmem:[#allocation2 + $0x18] sm:$0xff] }
 0x2fe   :  { %v7938_v5 = vld [vmem:[#allocation2] sm:$0xff] }
 0x2ff   :  { %6843 = vmatprep.mubr.msk.f32.mxu0 %vm837_vm1, %v7938_v5  ;;  %v7944_v14 = vld [vmem:[#allocation2 + $0x10] sm:$0xff]  ;;  %v7952_v17 = vld [vmem:[#allocation2 + $0x20] sm:$0xff] }
 0x300   :  { %6844 = vmatmul.mubr.msk.f32.vlgmr.msra.gmra.mxu0 %vm837_vm1, %v7936_v30 }
 0x301   :  { %6846 = vmatprep.mubr.msk.f32.mxu0 %vm837_vm1, %v7944_v14 }
 0x304   :  { %6847 = vmatmul.mubr.msk.f32.gmra.mxu0 %vm837_vm1, %v7948_v47 }
 0x305   :  { %6849 = vmatprep.mubr.msk.f32.mxu0 %vm837_vm1, %v7952_v17 }
 0x308   :  { %6850 = vmatmul.mubr.msk.f32.gmra.mxu0 %vm837_vm1, %v7956_v7 }
 0x309   :  { %6852 = vmatprep.mubr.msk.f32.mxu0 %vm837_vm1, %v7960_v25 }
 0x30c   :  { %6853 = vmatmul.mubr.msk.f32.gmra.mxu0 %vm837_vm1, %v7964_v3 }
 0x30d   :  { %6855 = vmatprep.mubr.msk.f32.mxu0 %vm837_vm1, %v7968_v26 }
 0x310   :  { %6856 = vmatmul.mubr.msk.f32.gmra.mxu0 %vm837_vm1, %v7972_v61 }
 0x311   :  { %6858 = vmatprep.mubr.msk.f32.mxu0 %vm837_vm1, %v7976_v27 }
 0x314   :  { %6859 = vmatmul.mubr.msk.f32.gmra.mxu0 %vm837_vm1, %v7980_v4 }
 0x315   :  { %6861 = vmatprep.mubr.msk.f32.mxu0 %vm837_vm1, %v7984_v15 }
 0x318   :  { %6862 = vmatmul.mubr.msk.f32.gmra.mxu0 %vm837_vm1, %v7988_v28 }
 0x319   :  { %6864 = vmatprep.mubr.msk.f32.mxu0 %vm837_vm1, %v7992_v16 }
 0x31c   :  { %6865 = vmatmul.mubr.msk.f32.gmra.mxu0 %vm837_vm1, %v7996_v35 }
 0x3c0   :  { %v6845_v22 = vpop.f32.mrf.mxu0 }
 0x3c1   :  { %v1452_v33 = vadd.f32 %v6845_v22, %v8008_v36 }
 0x3c2   :  { %v1446_v38 = vpop.f32.mrf.mxu0 }
 0x3c3   :  { %1526 = vst.msk [vmem:[#allocation3 + $0x48] sm:$0xff] %vm154_vm0, %v1452_v33  ;;  %v1447_v34 = vadd.f32 %v8008_v36, %v1446_v38 }
 0x3c4   :  { %v6848_v41 = vpop.f32.mrf.mxu0 }
 0x3c5   :  { %1525 = vst.msk [vmem:[#allocation3 + $0x40] sm:$0xff] %vm154_vm0, %v1447_v34  ;;  %v1462_v44 = vadd.f32 %v6848_v41, %v8008_v36 }
 0x3c6   :  { %v1456_v46 = vpop.f32.mrf.mxu0 }
 0x3c7   :  { %1528 = vst.msk [vmem:[#allocation3 + $0x58] sm:$0xff] %vm154_vm0, %v1462_v44  ;;  %v1457_v50 = vadd.f32 %v8008_v36, %v1456_v46 }
 0x3c8   :  { %v6851_v52 = vpop.f32.mrf.mxu0 }
 0x3c9   :  { %1527 = vst.msk [vmem:[#allocation3 + $0x50] sm:$0xff] %vm154_vm0, %v1457_v50  ;;  %v1472_v54 = vadd.f32 %v6851_v52, %v8008_v36 }
 0x3ca   :  { %v1466_v55 = vpop.f32.mrf.mxu0  ;;  %v1574_v13 = vld [vmem:[#allocation3 + $0x48] sm:$0xff] }
 0x3cb   :  { %1530 = vst.msk [vmem:[#allocation3 + $0x68] sm:$0xff] %vm154_vm0, %v1472_v54  ;;  %v1467_v58 = vadd.f32 %v8008_v36, %v1466_v55  ;;  %1689 = vrot.lane.b32.xlu1 %v1574_v13, %s7313_s18 }
 0x3cc   :  { %v6854_v31 = vpop.f32.mrf.mxu0  ;;  %v1557_v60 = vld [vmem:[#allocation3 + $0x3e] sm:$0xff]  ;;  %v1558_v62 = vld [vmem:[#allocation3 + $0x46] sm:$0xff] }
 0x3cd   :  { %1529 = vst.msk [vmem:[#allocation3 + $0x60] sm:$0xff] %vm154_vm0, %v1467_v58  ;;  %v1482_v9 = vadd.f32 %v6854_v31, %v8008_v36  ;;  %1623 = vrot.lane.b32.xlu0 %v1557_v60, %s7314_s19  ;;  %v1573_v37 = vld [vmem:[#allocation3 + $0x40] sm:$0xff] }
 0x3ce   :  { %v1476_v32 = vpop.f32.mrf.mxu0  ;;  %v1576_v45 = vld [vmem:[#allocation3 + $0x58] sm:$0xff]  ;;  %v1589_v49 = vld [vmem:[#allocation3 + $0x42] sm:$0xff] }
 0x3cf   :  { %1532 = vst.msk [vmem:[#allocation3 + $0x78] sm:$0xff] %vm154_vm0, %v1482_v9  ;;  %v1477_v6 = vadd.f32 %v8008_v36, %v1476_v32  ;;  %1625 = vrot.lane.b32.xlu1 %v1558_v62, %s7314_s19  ;;  %v8050_v8 = vld [vmem:[#allocation3 + $0x44] sm:$0xff] }
 0x3d0   :  { %v6857_v1 = vpop.f32.mrf.mxu0  ;;  %v1590_v53 = vld [vmem:[#allocation3 + $0x4a] sm:$0xff]  ;;  %v1560_v38 = vld [vmem:[#allocation3 + $0x56] sm:$0xff] }
 0x3d1   :  { %1531 = vst.msk [vmem:[#allocation3 + $0x70] sm:$0xff] %vm154_vm0, %v1477_v6  ;;  %v1492_v11 = vadd.f32 %v6857_v1, %v8008_v36  ;;  %1687 = vrot.lane.b32.xlu0 %v1573_v37, %s7313_s18  ;;  %v1559_v23 = vld [vmem:[#allocation3 + $0x4e] sm:$0xff] }
 0x3d2   :  { %v1486_v24 = vpop.f32.mrf.mxu0  ;;  %v8059_v22 = vld [vmem:[#allocation3 + $0x4c] sm:$0xff]  ;;  %v8073_v46 = vld [vmem:[#allocation3 + $0x54] sm:$0xff] }
 0x3d3   :  { %1534 = vst.msk [vmem:[#allocation3 + $0x108] sm:$0xff] %vm154_vm0, %v1492_v11  ;;  %v1487_v40 = vadd.f32 %v8008_v36, %v1486_v24  ;;  %1693 = vrot.lane.b32.xlu1 %v1576_v45, %s7313_s18  ;;  %v1575_v34 = vld [vmem:[#allocation3 + $0x50] sm:$0xff]  ;;  %v1578_v41 = vld [vmem:[#allocation3 + $0x68] sm:$0xff] }
 0x3d4   :  { %v6860_v19 = vpop.f32.mrf.mxu0  ;;  %v1591_v42 = vld [vmem:[#allocation3 + $0x52] sm:$0xff]  ;;  %v1592_v44 = vld [vmem:[#allocation3 + $0x5a] sm:$0xff]  ;;  %v1562_v50 = vld [vmem:[#allocation3 + $0x66] sm:$0xff] }
 0x3d5   :  { %1533 = vst.msk [vmem:[#allocation3 + $0x100] sm:$0xff] %vm154_vm0, %v1487_v40  ;;  %v1502_v20 = vadd.f32 %v6860_v19, %v8008_v36  ;;  %1751 = vrot.lane.b32.xlu0 %v1589_v49, %s7315_s20  ;;  %v8078_v51 = vld [vmem:[#allocation3 + $0x5c] sm:$0xff]  ;;  %v8087_v13 = vld [vmem:[#allocation3 + $0x64] sm:$0xff] }
 0x3d6   :  { %v1496_v48 = vpop.f32.mrf.mxu0  ;;  %v1577_v52 = vld [vmem:[#allocation3 + $0x60] sm:$0xff]  ;;  %v1580_v10 = vld [vmem:[#allocation3 + $0x78] sm:$0xff] }
 0x3d7   :  { %1536 = vst.msk [vmem:[#allocation3 + $0x118] sm:$0xff] %vm154_vm0, %v1502_v20  ;;  %v1497_v56 = vadd.f32 %v8008_v36, %v1496_v48  ;;  %1753 = vrot.lane.b32.xlu1 %v1590_v53, %s7315_s20  ;;  %v1593_v54 = vld [vmem:[#allocation3 + $0x62] sm:$0xff]  ;;  %v1596_v55 = vld [vmem:[#allocation3 + $0x7a] sm:$0xff] }
 0x3d8   :  { %v6863_v59 = vpop.f32.mrf.mxu0  ;;  %v1594_v57 = vld [vmem:[#allocation3 + $0x6a] sm:$0xff]  ;;  %v1605_v58 = vld [vmem:[#allocation3 + $0x7c] sm:$0xff]  ;;  %v1595_v21 = vld [vmem:[#allocation3 + $0x72] sm:$0xff] }
 0x3d9   :  { %1535 = vst.msk [vmem:[#allocation3 + $0x110] sm:$0xff] %vm154_vm0, %v1497_v56  ;;  %v1512_v0 = vadd.f32 %v6863_v59, %v8008_v36  ;;  %1815 = vrot.lane.b32.xlu0 %v8050_v8, %s7316_s21  ;;  %v1563_v31 = vld [vmem:[#allocation3 + $0x6e] sm:$0xff]  ;;  %v1564_v9 = vld [vmem:[#allocation3 + $0x76] sm:$0xff] }
 0x3da   :  { %v1506_v18 = vpop.f32.mrf.mxu0  ;;  %v8094_v60 = vld [vmem:[#allocation3 + $0x6c] sm:$0xff]  ;;  %v8103_v6 = vld [vmem:[#allocation3 + $0x74] sm:$0xff] }
 0x3db   :  { %1538 = vst.msk [vmem:[#allocation3 + $0x128] sm:$0xff] %vm154_vm0, %v1512_v0  ;;  %v1507_v12 = vadd.f32 %v8008_v36, %v1506_v18  ;;  %1627 = vrot.lane.b32.xlu1 %v1559_v23, %s7314_s19  ;;  %v1579_v32 = vld [vmem:[#allocation3 + $0x70] sm:$0xff]  ;;  %v1582_v62 = vld [vmem:[#allocation3 + $0x108] sm:$0xff] }
 0x3dc   :  { %v6866_v29 = vpop.f32.mrf.mxu0  ;;  %v1565_v63 = vld [vmem:[#allocation3 + $0xfe] sm:$0xff]  ;;  %v1566_v1 = vld [vmem:[#allocation3 + $0x106] sm:$0xff] }
 0x3dd   :  { %1537 = vst.msk [vmem:[#allocation3 + $0x120] sm:$0xff] %vm154_vm0, %v1507_v12  ;;  %v1522_v2 = vadd.f32 %v6866_v29, %v8008_v36  ;;  %1817 = vrot.lane.b32.xlu0 %v8059_v22, %s7316_s21  ;;  %v1581_v37 = vld [vmem:[#allocation3 + $0x100] sm:$0xff] }
 0x3de   :  { %v1516_v33 = vpop.f32.mrf.mxu0  ;;  %v1584_v11 = vld [vmem:[#allocation3 + $0x118] sm:$0xff]  ;;  %v1597_v24 = vld [vmem:[#allocation3 + $0x102] sm:$0xff] }
 0x3df   :  { %1540 = vst.msk [vmem:[#allocation3 + $0x138] sm:$0xff] %vm154_vm0, %v1522_v2  ;;  %v1517_v39 = vadd.f32 %v8008_v36, %v1516_v33  ;;  %1629 = vrot.lane.b32.xlu1 %v1560_v38, %s7314_s19  ;;  %v1561_v36 = vld [vmem:[#allocation3 + $0x5e] sm:$0xff] }
 0x3e0   :  { %v1598_v45 = vld [vmem:[#allocation3 + $0x10a] sm:$0xff]  ;;  %v1568_v20 = vld [vmem:[#allocation3 + $0x116] sm:$0xff] }
 0x3e1   :  { %1539 = vst.msk [vmem:[#allocation3 + $0x130] sm:$0xff] %vm154_vm0, %v1517_v39  ;;  %1691 = vrot.lane.b32.xlu0 %v1575_v34, %s7313_s18  ;;  %v8112_v40 = vld [vmem:[#allocation3 + $0x104] sm:$0xff]  ;;  %v1567_v19 = vld [vmem:[#allocation3 + $0x10e] sm:$0xff] }
 0x3e2   :  { %v8117_v49 = vld [vmem:[#allocation3 + $0x10c] sm:$0xff]  ;;  %v8126_v0 = vld [vmem:[#allocation3 + $0x114] sm:$0xff] }
 0x3e3   :  { %1697 = vrot.lane.b32.xlu1 %v1578_v41, %s7313_s18  ;;  %v1583_v48 = vld [vmem:[#allocation3 + $0x110] sm:$0xff]  ;;  %v1586_v53 = vld [vmem:[#allocation3 + $0x128] sm:$0xff] }
 0x3e4   :  { %v1599_v56 = vld [vmem:[#allocation3 + $0x112] sm:$0xff]  ;;  %v1600_v59 = vld [vmem:[#allocation3 + $0x11a] sm:$0xff]  ;;  %v1570_v12 = vld [vmem:[#allocation3 + $0x126] sm:$0xff] }
 0x3e5   :  { %1755 = vrot.lane.b32.xlu0 %v1591_v42, %s7315_s20  ;;  %v1569_v18 = vld [vmem:[#allocation3 + $0x11e] sm:$0xff] }
 0x3e6   :  { %v8131_v23 = vld [vmem:[#allocation3 + $0x11c] sm:$0xff]  ;;  %v8140_v39 = vld [vmem:[#allocation3 + $0x124] sm:$0xff] }
 0x3e7   :  { %1757 = vrot.lane.b32.xlu1 %v1592_v44, %s7315_s20  ;;  %v1585_v29 = vld [vmem:[#allocation3 + $0x120] sm:$0xff]  ;;  %v1588_v2 = vld [vmem:[#allocation3 + $0x138] sm:$0xff] }
 0x3e8   :  { %v1601_v33 = vld [vmem:[#allocation3 + $0x122] sm:$0xff]  ;;  %v1604_v38 = vld [vmem:[#allocation3 + $0x13a] sm:$0xff]  ;;  %v1602_v34 = vld [vmem:[#allocation3 + $0x12a] sm:$0xff] }
 0x3e9   :  { %1819 = vrot.lane.b32.xlu0 %v8073_v46, %s7316_s21  ;;  %v8145_v41 = vld [vmem:[#allocation3 + $0x12c] sm:$0xff] }
 0x3ea   :  { %v1571_v44 = vld [vmem:[#allocation3 + $0x12e] sm:$0xff] }
 0x3eb   :  { %1631 = vrot.lane.b32.xlu1 %v1561_v36, %s7314_s19 }
 0x3ed   :  { %1821 = vrot.lane.b32.xlu0 %v8078_v51, %s7316_s21 }
 0x3ef   :  { %1633 = vrot.lane.b32.xlu1 %v1562_v50, %s7314_s19  ;;  %v1587_v50 = vld [vmem:[#allocation3 + $0x130] sm:$0xff] }
 0x3f1   :  { %1695 = vrot.lane.b32.xlu0 %v1577_v52, %s7313_s18 }
 0x3f3   :  { %1701 = vrot.lane.b32.xlu1 %v1580_v10, %s7313_s18  ;;  %v1572_v10 = vld [vmem:[#allocation3 + $0x136] sm:$0xff] }
 0x3f5   :  { %1759 = vrot.lane.b32.xlu0 %v1593_v54, %s7315_s20 }
 0x3f7   :  { %1765 = vrot.lane.b32.xlu1 %v1596_v55, %s7315_s20  ;;  %v1603_v55 = vld [vmem:[#allocation3 + $0x132] sm:$0xff] }
 0x3f9   :  { %1823 = vrot.lane.b32.xlu0 %v8087_v13, %s7316_s21 }
 0x3fb   :  { %1761 = vrot.lane.b32.xlu1 %v1594_v57, %s7315_s20 }
 0x3fd   :  { %1829 = vrot.lane.b32.xlu0 %v1605_v58, %s7316_s21  ;;  %v1606_v58 = vld [vmem:[#allocation3 + $0x13c] sm:$0xff] }
 0x3ff   :  { %1635 = vrot.lane.b32.xlu1 %v1563_v31, %s7314_s19 }
 0x401   :  { %1825 = vrot.lane.b32.xlu0 %v8094_v60, %s7316_s21 }
 0x403   :  { %1637 = vrot.lane.b32.xlu1 %v1564_v9, %s7314_s19  ;;  %v1541_v9 = vld [vmem:[#allocation3 + $0x3c] sm:$0xff] }
 0x405   :  { %1699 = vrot.lane.b32.xlu0 %v1579_v32, %s7313_s18  ;;  %v8154_v32 = vld [vmem:[#allocation3 + $0x134] sm:$0xff] }
 0x407   :  { %1705 = vrot.lane.b32.xlu1 %v1582_v62, %s7313_s18 }
 0x409   :  { %1763 = vrot.lane.b32.xlu0 %v1595_v21, %s7315_s20 }
 0x40b   :  { %1639 = vrot.lane.b32.xlu1 %v1565_v63, %s7314_s19 }
 0x40d   :  { %1827 = vrot.lane.b32.xlu0 %v8103_v6, %s7316_s21 }
 0x40f   :  { %1641 = vrot.lane.b32.xlu1 %v1566_v1, %s7314_s19 }
 0x411   :  { %1703 = vrot.lane.b32.xlu0 %v1581_v37, %s7313_s18 }
 0x413   :  { %1709 = vrot.lane.b32.xlu1 %v1584_v11, %s7313_s18 }
 0x415   :  { %1767 = vrot.lane.b32.xlu0 %v1597_v24, %s7315_s20 }
 0x417   :  { %1769 = vrot.lane.b32.xlu1 %v1598_v45, %s7315_s20 }
 0x419   :  { %1831 = vrot.lane.b32.xlu0 %v8112_v40, %s7316_s21 }
 0x41b   :  { %1643 = vrot.lane.b32.xlu1 %v1567_v19, %s7314_s19 }
 0x41d   :  { %1833 = vrot.lane.b32.xlu0 %v8117_v49, %s7316_s21 }
 0x41f   :  { %1645 = vrot.lane.b32.xlu1 %v1568_v20, %s7314_s19 }
 0x421   :  { %1707 = vrot.lane.b32.xlu0 %v1583_v48, %s7313_s18 }
 0x423   :  { %1713 = vrot.lane.b32.xlu1 %v1586_v53, %s7313_s18 }
 0x425   :  { %1771 = vrot.lane.b32.xlu0 %v1599_v56, %s7315_s20 }
 0x427   :  { %1773 = vrot.lane.b32.xlu1 %v1600_v59, %s7315_s20 }
 0x429   :  { %1835 = vrot.lane.b32.xlu0 %v8126_v0, %s7316_s21 }
 0x42b   :  { %1647 = vrot.lane.b32.xlu1 %v1569_v18, %s7314_s19 }
 0x42d   :  { %1837 = vrot.lane.b32.xlu0 %v8131_v23, %s7316_s21 }
 0x42f   :  { %1649 = vrot.lane.b32.xlu1 %v1570_v12, %s7314_s19 }
 0x431   :  { %1711 = vrot.lane.b32.xlu0 %v1585_v29, %s7313_s18 }
 0x433   :  { %1717 = vrot.lane.b32.xlu1 %v1588_v2, %s7313_s18 }
 0x435   :  { %1775 = vrot.lane.b32.xlu0 %v1601_v33, %s7315_s20 }
 0x437   :  { %1781 = vrot.lane.b32.xlu1 %v1604_v38, %s7315_s20 }
 0x439   :  { %1839 = vrot.lane.b32.xlu0 %v8140_v39, %s7316_s21 }
 0x43b   :  { %1777 = vrot.lane.b32.xlu1 %v1602_v34, %s7315_s20 }
 0x43d   :  { %v1690_v42 = vpop.permute.xlu1 %1689  ;;  %1841 = vrot.lane.b32.xlu0 %v8145_v41, %s7316_s21 }
 0x43f   :  { %1651 = vrot.lane.b32.xlu1 %v1571_v44, %s7314_s19  ;;  %v1624_v36 = vpop.permute.xlu0 %1623 }
 0x440   :  { %v1863_v62 = vsel %vm154_vm0, %v1541_v9, %v1624_v36 }
 0x441   :  { %v1626_v52 = vpop.permute.xlu1 %1625  ;;  %1715 = vrot.lane.b32.xlu0 %v1587_v50, %s7313_s18 }
 0x442   :  { %v1864_v1 = vsel %vm154_vm0, %v8050_v8, %v1626_v52 }
 0x443   :  { %1653 = vrot.lane.b32.xlu1 %v1572_v10, %s7314_s19  ;;  %v1688_v54 = vpop.permute.xlu0 %1687  ;;  %v1880_v19 = vsel %vm837_vm1, %v1864_v1, %v1690_v42 }
 0x444   :  { %v1879_v63 = vsel %vm837_vm1, %v1863_v62, %v1688_v54 }
 0x445   :  { %v1694_v57 = vpop.permute.xlu1 %1693  ;;  %1779 = vrot.lane.b32.xlu0 %v1603_v55, %s7315_s20 }
 0x447   :  { %1845 = vrot.lane.b32.xlu1 %v1606_v58, %s7316_s21  ;;  %v1752_v31 = vpop.permute.xlu0 %1751 }
 0x448   :  { %v1895_v37 = vsel %vm854_vm2, %v1879_v63, %v1752_v31 }
 0x449   :  { %v1754_v21 = vpop.permute.xlu1 %1753  ;;  %1843 = vrot.lane.b32.xlu0 %v8154_v32, %s7316_s21 }
 0x44a   :  { %v1896_v20 = vsel %vm854_vm2, %v1880_v19, %v1754_v21 }
 0x44b   :  { %v1816_v11 = vpop.permute.xlu0 %1815 }
 0x44c   :  { %v1911_v24 = vsel %vm871_vm3, %v1895_v37, %v1816_v11 }
 0x44d   :  { %v1628_v45 = vpop.permute.xlu1 %1627  ;;  %6887 = vmatprep.mubr.msk.f32.mxu1 %vm905_vm4, %v1911_v24 }
 0x44e   :  { %v1865_v12 = vsel %vm154_vm0, %v8059_v22, %v1628_v45 }
 0x44f   :  { %v1818_v48 = vpop.permute.xlu0 %1817 }
 0x450   :  { %v1912_v53 = vsel %vm871_vm3, %v1896_v20, %v1818_v48 }
 0x451   :  { %v1630_v56 = vpop.permute.xlu1 %1629  ;;  %6888 = vmatmul.mubr.msk.f32.vlgmr.msra.gmra.mxu1 %vm905_vm4, %v1912_v53 }
 0x452   :  { %v1866_v33 = vsel %vm154_vm0, %v8073_v46, %v1630_v56 }
 0x453   :  { %v1692_v59 = vpop.permute.xlu0 %1691  ;;  %v1882_v36 = vsel %vm837_vm1, %v1866_v33, %v1694_v57 }
 0x454   :  { %v1881_v2 = vsel %vm837_vm1, %v1865_v12, %v1692_v59 }
 0x455   :  { %v1698_v8 = vpop.permute.xlu1 %1697 }
 0x457   :  { %v1756_v18 = vpop.permute.xlu0 %1755 }
 0x458   :  { %v1897_v38 = vsel %vm854_vm2, %v1881_v2, %v1756_v18 }
 0x459   :  { %v1758_v29 = vpop.permute.xlu1 %1757 }
 0x45a   :  { %v1898_v50 = vsel %vm854_vm2, %v1882_v36, %v1758_v29  ;;  %v1549_v36 = vld [vmem:[#allocation3 + $0xfc] sm:$0xff] }
 0x45b   :  { %v1820_v34 = vpop.permute.xlu0 %1819 }
 0x45c   :  { %v1913_v42 = vsel %vm871_vm3, %v1897_v38, %v1820_v34 }
 0x45d   :  { %v1632_v44 = vpop.permute.xlu1 %1631  ;;  %6890 = vmatprep.mubr.msk.f32.mxu1 %vm905_vm4, %v1913_v42 }
 0x45e   :  { %v1867_v58 = vsel %vm154_vm0, %v8078_v51, %v1632_v44 }
 0x45f   :  { %v1822_v52 = vpop.permute.xlu0 %1821 }
 0x460   :  { %v1914_v22 = vsel %vm871_vm3, %v1898_v50, %v1822_v52 }
 0x461   :  { %v1634_v10 = vpop.permute.xlu1 %1633  ;;  %6891 = vmatmul.mubr.msk.f32.gmra.mxu1 %vm905_vm4, %v1914_v22 }
 0x462   :  { %v1868_v1 = vsel %vm154_vm0, %v8087_v13, %v1634_v10 }
 0x463   :  { %v1696_v54 = vpop.permute.xlu0 %1695  ;;  %v1884_v24 = vsel %vm837_vm1, %v1868_v1, %v1698_v8 }
 0x464   :  { %v1883_v9 = vsel %vm837_vm1, %v1867_v58, %v1696_v54 }
 0x465   :  { %v1702_v46 = vpop.permute.xlu1 %1701 }
 0x467   :  { %v1760_v55 = vpop.permute.xlu0 %1759 }
 0x468   :  { %v1899_v62 = vsel %vm854_vm2, %v1883_v9, %v1760_v55 }
 0x469   :  { %v1766_v31 = vpop.permute.xlu1 %1765 }
 0x46b   :  { %v1824_v57 = vpop.permute.xlu0 %1823 }
 0x46c   :  { %v1915_v21 = vsel %vm871_vm3, %v1899_v62, %v1824_v57 }
 0x46d   :  { %v1762_v63 = vpop.permute.xlu1 %1761  ;;  %6893 = vmatprep.mubr.msk.f32.mxu1 %vm905_vm4, %v1915_v21 }
 0x46e   :  { %v1900_v51 = vsel %vm854_vm2, %v1884_v24, %v1762_v63 }
 0x46f   :  { %v1830_v37 = vpop.permute.xlu0 %1829 }
 0x471   :  { %v1636_v11 = vpop.permute.xlu1 %1635 }
 0x472   :  { %v1869_v18 = vsel %vm154_vm0, %v8094_v60, %v1636_v11 }
 0x473   :  { %v1826_v45 = vpop.permute.xlu0 %1825 }
 0x474   :  { %v1916_v19 = vsel %vm871_vm3, %v1900_v51, %v1826_v45 }
 0x475   :  { %v1638_v20 = vpop.permute.xlu1 %1637  ;;  %6894 = vmatmul.mubr.msk.f32.gmra.mxu1 %vm905_vm4, %v1916_v19 }
 0x476   :  { %v1870_v53 = vsel %vm154_vm0, %v8103_v6, %v1638_v20 }
 0x477   :  { %v1700_v48 = vpop.permute.xlu0 %1699  ;;  %v1886_v59 = vsel %vm837_vm1, %v1870_v53, %v1702_v46 }
 0x478   :  { %v1885_v12 = vsel %vm837_vm1, %v1869_v18, %v1700_v48  ;;  %v1902_v29 = vsel %vm854_vm2, %v1886_v59, %v1766_v31 }
 0x479   :  { %v1706_v56 = vpop.permute.xlu1 %1705  ;;  %v1918_v6 = vsel %vm871_vm3, %v1902_v29, %v1830_v37 }
 0x47b   :  { %v1764_v13 = vpop.permute.xlu0 %1763 }
 0x47c   :  { %v1901_v2 = vsel %vm854_vm2, %v1885_v12, %v1764_v13 }
 0x47d   :  { %v1640_v8 = vpop.permute.xlu1 %1639 }
 0x47e   :  { %v1871_v50 = vsel %vm154_vm0, %v1549_v36, %v1640_v8 }
 0x47f   :  { %v1828_v33 = vpop.permute.xlu0 %1827 }
 0x480   :  { %v1917_v38 = vsel %vm871_vm3, %v1901_v2, %v1828_v33 }
 0x481   :  { %v1642_v34 = vpop.permute.xlu1 %1641  ;;  %6896 = vmatprep.mubr.msk.f32.mxu1 %vm905_vm4, %v1917_v38 }
 0x482   :  { %6897 = vmatmul.mubr.msk.f32.gmra.mxu1 %vm905_vm4, %v1918_v6  ;;  %v1872_v10 = vsel %vm154_vm0, %v8112_v40, %v1642_v34 }
 0x483   :  { %v1704_v42 = vpop.permute.xlu0 %1703  ;;  %v1888_v31 = vsel %vm837_vm1, %v1872_v10, %v1706_v56 }
 0x484   :  { %v1887_v22 = vsel %vm837_vm1, %v1871_v50, %v1704_v42 }
 0x485   :  { %v1710_v44 = vpop.permute.xlu1 %1709 }
 0x487   :  { %v1768_v60 = vpop.permute.xlu0 %1767 }
 0x488   :  { %v1903_v54 = vsel %vm854_vm2, %v1887_v22, %v1768_v60 }
 0x489   :  { %v1770_v52 = vpop.permute.xlu1 %1769 }
 0x48a   :  { %v1904_v9 = vsel %vm854_vm2, %v1888_v31, %v1770_v52 }
 0x48b   :  { %v1832_v46 = vpop.permute.xlu0 %1831 }
 0x48c   :  { %v1919_v55 = vsel %vm871_vm3, %v1903_v54, %v1832_v46 }
 0x48d   :  { %v1644_v58 = vpop.permute.xlu1 %1643  ;;  %6899 = vmatprep.mubr.msk.f32.mxu1 %vm905_vm4, %v1919_v55 }
 0x48e   :  { %v1873_v37 = vsel %vm154_vm0, %v8117_v49, %v1644_v58 }
 0x48f   :  { %v1834_v62 = vpop.permute.xlu0 %1833 }
 0x490   :  { %v1920_v57 = vsel %vm871_vm3, %v1904_v9, %v1834_v62 }
 0x491   :  { %v1646_v21 = vpop.permute.xlu1 %1645  ;;  %6900 = vmatmul.mubr.msk.f32.gmra.mxu1 %vm905_vm4, %v1920_v57 }
 0x492   :  { %v1874_v51 = vsel %vm154_vm0, %v8126_v0, %v1646_v21 }
 0x493   :  { %v1708_v63 = vpop.permute.xlu0 %1707  ;;  %v1890_v53 = vsel %vm837_vm1, %v1874_v51, %v1710_v44 }
 0x494   :  { %v1889_v24 = vsel %vm837_vm1, %v1873_v37, %v1708_v63 }
 0x495   :  { %v1714_v40 = vpop.permute.xlu1 %1713 }
 0x497   :  { %v1772_v1 = vpop.permute.xlu0 %1771 }
 0x498   :  { %v1905_v45 = vsel %vm854_vm2, %v1889_v24, %v1772_v1 }
 0x499   :  { %v1774_v11 = vpop.permute.xlu1 %1773 }
 0x49a   :  { %v1906_v56 = vsel %vm854_vm2, %v1890_v53, %v1774_v11 }
 0x49b   :  { %v1836_v19 = vpop.permute.xlu0 %1835 }
 0x49c   :  { %v1921_v20 = vsel %vm871_vm3, %v1905_v45, %v1836_v19 }
 0x49d   :  { %v1648_v48 = vpop.permute.xlu1 %1647  ;;  %6902 = vmatprep.mubr.msk.f32.mxu1 %vm905_vm4, %v1921_v20 }
 0x49e   :  { %v1875_v12 = vsel %vm154_vm0, %v8131_v23, %v1648_v48 }
 0x49f   :  { %v1838_v59 = vpop.permute.xlu0 %1837 }
 0x4a0   :  { %v1922_v49 = vsel %vm871_vm3, %v1906_v56, %v1838_v59 }
 0x4a1   :  { %v1650_v13 = vpop.permute.xlu1 %1649  ;;  %6903 = vmatmul.mubr.msk.f32.gmra.mxu1 %vm905_vm4, %v1922_v49 }
 0x4a2   :  { %v1876_v2 = vsel %vm154_vm0, %v8140_v39, %v1650_v13 }
 0x4a3   :  { %v1712_v18 = vpop.permute.xlu0 %1711  ;;  %v1892_v42 = vsel %vm837_vm1, %v1876_v2, %v1714_v40  ;;  %v8255_v40 = vld [vmem:[%s6251_s23] ss:$0 sm:$0xff]  ;;  %s7336_s23 = smov 23  }
 0x4a4   :  { %v1891_v33 = vsel %vm837_vm1, %v1875_v12, %v1712_v18  ;;  %s6264_s26 = sld [smem:[%s10767_s0 + %s7336_s23]]  }
 0x4a5   :  { %v1718_v0 = vpop.permute.xlu1 %1717 }
 0x4a7   :  { %v1776_v8 = vpop.permute.xlu0 %1775 }
 0x4a8   :  { %v1907_v38 = vsel %vm854_vm2, %v1891_v33, %v1776_v8 }
 0x4a9   :  { %v1782_v29 = vpop.permute.xlu1 %1781 }
 0x4ab   :  { %v1840_v34 = vpop.permute.xlu0 %1839 }
 0x4ac   :  { %v1923_v6 = vsel %vm871_vm3, %v1907_v38, %v1840_v34 }
 0x4ad   :  { %v1778_v44 = vpop.permute.xlu1 %1777  ;;  %6905 = vmatprep.mubr.msk.f32.mxu1 %vm905_vm4, %v1923_v6 }
 0x4ae   :  { %v1908_v60 = vsel %vm854_vm2, %v1892_v42, %v1778_v44 }
 0x4af   :  { %v1842_v36 = vpop.permute.xlu0 %1841 }
 0x4b0   :  { %v1924_v23 = vsel %vm871_vm3, %v1908_v60, %v1842_v36 }
 0x4b1   :  { %v1652_v50 = vpop.permute.xlu1 %1651  ;;  %6906 = vmatmul.mubr.msk.f32.gmra.mxu1 %vm905_vm4, %v1924_v23 }
 0x4b2   :  { %v1877_v10 = vsel %vm154_vm0, %v8145_v41, %v1652_v50 }
 0x4b3   :  { %v1716_v39 = vpop.permute.xlu0 %1715 }
 0x4b4   :  { %v1893_v55 = vsel %vm837_vm1, %v1877_v10, %v1716_v39 }
 0x4b5   :  { %v1654_v52 = vpop.permute.xlu1 %1653 }
 0x4b6   :  { %v1878_v22 = vsel %vm154_vm0, %v8154_v32, %v1654_v52 }
 0x4b7   :  { %v1894_v54 = vsel %vm837_vm1, %v1878_v22, %v1718_v0  ;;  %v1780_v46 = vpop.permute.xlu0 %1779 }
 0x4b8   :  { %v1910_v58 = vsel %vm854_vm2, %v1894_v54, %v1782_v29  ;;  %v1909_v9 = vsel %vm854_vm2, %v1893_v55, %v1780_v46 }
 0x4b9   :  { %v1846_v31 = vpop.permute.xlu1 %1845 }
 0x4ba   :  { %v1926_v21 = vsel %vm871_vm3, %v1910_v58, %v1846_v31  ;;  %v2361_v31 = vld [vmem:[%s6254_s27 + $0x18] sm:$0xff] }
 0x4bb   :  { %v1844_v62 = vpop.permute.xlu0 %1843  ;;  %6911 = vmatprep.subr.mxu0 %v2361_v31 }
 0x4bc   :  { %v1925_v57 = vsel %vm871_vm3, %v1909_v9, %v1844_v62  ;;  %v2360_v9 = vld [vmem:[%s6254_s27 + $0x10] sm:$0xff]  ;;  %6912 = vmatpush3.msra.mxu0 %v2361_v31 }
 0x4bd   :  { %6908 = vmatprep.mubr.msk.f32.mxu1 %vm905_vm4, %v1925_v57  ;;  %6913 = vmatprep.subr.mxu0 %v2360_v9 }
 0x4be   :  { %6909 = vmatmul.mubr.msk.f32.gmra.mxu1 %vm905_vm4, %v1926_v21  ;;  %6914 = vmatpush3.msra.mxu0 %v2360_v9 }
 0x511   :  { %v6889_v41 = vpop.f32.mrf.mxu1 }
 0x512   :  { %v2064_v24 = vadd.f32 %v6889_v41, %v8255_v40 }
 0x513   :  { %v2058_v32 = vpop.f32.mrf.mxu1 }
 0x514   :  { %v2059_v37 = vadd.f32 %v8255_v40, %v2058_v32  ;;  %v2138_v20 = vmax.f32 %v2064_v24, 0.0 }
 0x516   :  { %v2137_v45 = vmax.f32 %v2059_v37, 0.0  ;;  %v8266_v13 = vadd.f32 %v2138_v20, %v7936_v30  ;;  %v2358_v37 = vld [vmem:[%s6254_s27] sm:$0xff] }
 0x518   :  { %v8261_v56 = vadd.f32 %v2137_v45, %v7938_v5  ;;  %v2170_v5 = vsel %vm837_vm1, %v8266_v13, 0.0 }
 0x51a   :  { %v2169_v8 = vsel %vm837_vm1, %v8261_v56, 0.0 }
 0x51b   :  { %v2171_v34 = vadd.f32 %v2170_v5, %v2169_v8 }
 0x521   :  { %v6892_v63 = vpop.f32.mrf.mxu1 }
 0x522   :  { %v2074_v59 = vadd.f32 %v6892_v63, %v8255_v40 }
 0x523   :  { %v2068_v1 = vpop.f32.mrf.mxu1 }
 0x524   :  { %v2069_v51 = vadd.f32 %v8255_v40, %v2068_v1  ;;  %v2140_v12 = vmax.f32 %v2074_v59, 0.0 }
 0x526   :  { %v2139_v48 = vmax.f32 %v2069_v51, 0.0 }
 0x528   :  { %v8269_v18 = vadd.f32 %v2139_v48, %v7944_v14  ;;  %v8280_v14 = vadd.f32 %v2140_v12, %v7948_v47 }
 0x52a   :  { %v2172_v33 = vsel %vm837_vm1, %v8269_v18, 0.0  ;;  %v2174_v50 = vsel %vm837_vm1, %v8280_v14, 0.0 }
 0x52b   :  { %v2173_v42 = vadd.f32 %v2172_v33, %v2171_v34 }
 0x52d   :  { %v2175_v52 = vadd.f32 %v2174_v50, %v2173_v42 }
 0x535   :  { %v6895_v11 = vpop.f32.mrf.mxu1 }
 0x536   :  { %v2084_v38 = vadd.f32 %v6895_v11, %v8255_v40 }
 0x537   :  { %v2078_v19 = vpop.f32.mrf.mxu1 }
 0x538   :  { %v2079_v49 = vadd.f32 %v8255_v40, %v2078_v19  ;;  %v2142_v60 = vmax.f32 %v2084_v38, 0.0 }
 0x53a   :  { %v2141_v29 = vmax.f32 %v2079_v49, 0.0  ;;  %v8295_v22 = vadd.f32 %v2142_v60, %v7956_v7 }
 0x53c   :  { %v8283_v6 = vadd.f32 %v2141_v29, %v7952_v17  ;;  %v2178_v62 = vsel %vm837_vm1, %v8295_v22, 0.0 }
 0x53e   :  { %v2176_v47 = vsel %vm837_vm1, %v8283_v6, 0.0 }
 0x53f   :  { %v2177_v54 = vadd.f32 %v2176_v47, %v2175_v52 }
 0x541   :  { %v2179_v41 = vadd.f32 %v2178_v62, %v2177_v54 }
 0x542   :  { %v6898_v53 = vpop.f32.mrf.mxu1 }
 0x543   :  { %v2094_v39 = vadd.f32 %v6898_v53, %v8255_v40 }
 0x544   :  { %v2088_v0 = vpop.f32.mrf.mxu1 }
 0x545   :  { %v2089_v30 = vadd.f32 %v8255_v40, %v2088_v0  ;;  %v2144_v55 = vmax.f32 %v2094_v39, 0.0 }
 0x547   :  { %v2143_v36 = vmax.f32 %v2089_v30, 0.0  ;;  %v8307_v32 = vadd.f32 %v2144_v55, %v7964_v3 }
 0x549   :  { %v8298_v10 = vadd.f32 %v2143_v36, %v7960_v25  ;;  %v2359_v25 = vld [vmem:[%s6254_s27 + $0x8] sm:$0xff]  ;;  %v2182_v45 = vsel %vm837_vm1, %v8307_v32, 0.0  ;;  %s7337_s27 = smov 24  }
 0x54a   :  { %6915 = vmatprep.subr.mxu0 %v2359_v25  ;;  %s6265_s30 = sld [smem:[%s10767_s0 + %s7337_s27]]  }
 0x54b   :  { %v2180_v57 = vsel %vm837_vm1, %v8298_v10, 0.0  ;;  %6916 = vmatpush3.msra.mxu0 %v2359_v25 }
 0x54c   :  { %v2181_v1 = vadd.f32 %v2180_v57, %v2179_v41  ;;  %6917 = vmatprep.subr.mxu0 %v2358_v37 }
 0x54d   :  { %6918 = vmatpush3.msra.mxu0 %v2358_v37 }
 0x551   :  { %v6901_v2 = vpop.f32.mrf.mxu1 }
 0x552   :  { %v2104_v21 = vadd.f32 %v6901_v2, %v8255_v40 }
 0x553   :  { %v2098_v44 = vpop.f32.mrf.mxu1 }
 0x554   :  { %v2099_v17 = vadd.f32 %v8255_v40, %v2098_v44  ;;  %v2146_v11 = vmax.f32 %v2104_v21, 0.0 }
 0x556   :  { %v2145_v58 = vmax.f32 %v2099_v17, 0.0  ;;  %v8319_v53 = vadd.f32 %v2146_v11, %v7972_v61 }
 0x558   :  { %v8310_v63 = vadd.f32 %v2145_v58, %v7968_v26  ;;  %v2183_v26 = vadd.f32 %v2182_v45, %v2181_v1  ;;  %v2186_v12 = vsel %vm837_vm1, %v8319_v53, 0.0 }
 0x55a   :  { %v2184_v19 = vsel %vm837_vm1, %v8310_v63, 0.0 }
 0x55b   :  { %v2185_v49 = vadd.f32 %v2184_v19, %v2183_v26 }
 0x55d   :  { %v2187_v5 = vadd.f32 %v2186_v12, %v2185_v49 }
 0x561   :  { %v6904_v23 = vpop.f32.mrf.mxu1 }
 0x562   :  { %v2114_v3 = vadd.f32 %v6904_v23, %v8255_v40 }
 0x563   :  { %v2108_v46 = vpop.f32.mrf.mxu1 }
 0x564   :  { %v2109_v7 = vadd.f32 %v8255_v40, %v2108_v46  ;;  %v2148_v0 = vmax.f32 %v2114_v3, 0.0 }
 0x566   :  { %v2147_v24 = vmax.f32 %v2109_v7, 0.0  ;;  %v8330_v33 = vadd.f32 %v2148_v0, %v7980_v4 }
 0x568   :  { %v8322_v59 = vadd.f32 %v2147_v24, %v7976_v27  ;;  %v2190_v34 = vsel %vm837_vm1, %v8330_v33, 0.0 }
 0x56a   :  { %v2188_v29 = vsel %vm837_vm1, %v8322_v59, 0.0 }
 0x56b   :  { %v2189_v27 = vadd.f32 %v2188_v29, %v2187_v5 }
 0x56d   :  { %v2191_v60 = vadd.f32 %v2190_v34, %v2189_v27 }
 0x571   :  { %v6907_v51 = vpop.f32.mrf.mxu1 }
 0x572   :  { %v2124_v2 = vadd.f32 %v6907_v51, %v8255_v40 }
 0x573   :  { %v2118_v20 = vpop.f32.mrf.mxu1 }
 0x574   :  { %v2119_v48 = vadd.f32 %v8255_v40, %v2118_v20  ;;  %v2150_v38 = vmax.f32 %v2124_v2, 0.0 }
 0x576   :  { %v2149_v8 = vmax.f32 %v2119_v48, 0.0  ;;  %v2166_v23 = vadd.f32 %v2150_v38, %v7988_v28 }
 0x578   :  { %v8333_v61 = vadd.f32 %v2149_v8, %v7984_v15  ;;  %v2194_v39 = vsel %vm837_vm1, %v2166_v23, 0.0 }
 0x57a   :  { %v2192_v42 = vsel %vm837_vm1, %v8333_v61, 0.0 }
 0x57b   :  { %v2193_v15 = vadd.f32 %v2192_v42, %v2191_v60 }
 0x57d   :  { %v2195_v54 = vadd.f32 %v2194_v39, %v2193_v15 }
 0x57e   :  { %v6910_v30 = vpop.f32.mrf.mxu1 }
 0x57f   :  { %v2134_v44 = vadd.f32 %v6910_v30, %v8255_v40 }
 0x580   :  { %v2128_v36 = vpop.f32.mrf.mxu1 }
 0x581   :  { %v2152_v4 = vmax.f32 %v2134_v44, 0.0  ;;  %v2129_v50 = vadd.f32 %v8255_v40, %v2128_v36 }
 0x583   :  { %v2151_v47 = vmax.f32 %v2129_v50, 0.0  ;;  %v8344_v17 = vadd.f32 %v2152_v4, %v7996_v35 }
 0x585   :  { %v2167_v52 = vadd.f32 %v2151_v47, %v7992_v16  ;;  %v2198_v58 = vsel %vm837_vm1, %v8344_v17, 0.0 }
 0x587   :  { %v2196_v46 = vsel %vm837_vm1, %v2167_v52, 0.0 }
 0x588   :  { %v2197_v55 = vadd.f32 %v2196_v46, %v2195_v54 }
 0x58a   :  { %v2199_v28 = vadd.f32 %v2198_v58, %v2197_v55 }
 0x58c   :  { %v2200_v31 = vrot.slane %v2199_v28, 4 }
 0x58e   :  { %v2201_v9 = vadd.f32 %v2200_v31, %v2199_v28 }
 0x590   :  { %v2202_v40 = vrot.slane %v2201_v9, 2 }
 0x592   :  { %v2203_v62 = vadd.f32 %v2202_v40, %v2201_v9 }
 0x594   :  { %v2204_v57 = vrot.slane %v2203_v62, 1 }
 0x596   :  { %v2205_v21 = vadd.f32 %v2204_v57, %v2203_v62 }
 0x598   :  { %v2206_v7 = vmul.f32 0.0078125, %v2205_v21 }
 0x59a   :  { %v8351_v35 = vsub.f32 %v8261_v56, %v2206_v7  ;;  %v8354_v16 = vsub.f32 %v8266_v13, %v2206_v7  ;;  %v8357_v41 = vsub.f32 %v8269_v18, %v2206_v7  ;;  %v8360_v25 = vsub.f32 %v8280_v14, %v2206_v7 }
 0x59b   :  { %v8367_v11 = vsub.f32 %v8283_v6, %v2206_v7  ;;  %v8372_v13 = vsub.f32 %v8295_v22, %v2206_v7  ;;  %v8379_v45 = vsub.f32 %v8298_v10, %v2206_v7  ;;  %v8385_v22 = vsub.f32 %v8307_v32, %v2206_v7 }
 0x59c   :  { %v2223_v1 = vmul.f32 %v8351_v35, %v8351_v35  ;;  %v2224_v37 = vmul.f32 %v8354_v16, %v8354_v16  ;;  %v2225_v56 = vmul.f32 %v8357_v41, %v8357_v41  ;;  %v2226_v18 = vmul.f32 %v8360_v25, %v8360_v25 }
 0x59d   :  { %v2227_v6 = vmul.f32 %v8367_v11, %v8367_v11  ;;  %v2228_v20 = vmul.f32 %v8372_v13, %v8372_v13  ;;  %v8391_v49 = vsub.f32 %v8310_v63, %v2206_v7  ;;  %v2229_v10 = vmul.f32 %v8379_v45, %v8379_v45 }
 0x59e   :  { %v2239_v14 = vsel %vm837_vm1, %v2223_v1, 0.0  ;;  %v2240_v24 = vsel %vm837_vm1, %v2224_v37, 0.0  ;;  %v2242_v19 = vsel %vm837_vm1, %v2225_v56, 0.0  ;;  %v2244_v26 = vsel %vm837_vm1, %v2226_v18, 0.0 }
 0x59f   :  { %v2241_v51 = vadd.f32 %v2240_v24, %v2239_v14  ;;  %v2246_v0 = vsel %vm837_vm1, %v2227_v6, 0.0  ;;  %v8397_v12 = vsub.f32 %v8319_v53, %v2206_v7  ;;  %v2230_v32 = vmul.f32 %v8385_v22, %v8385_v22 }
 0x5a0   :  { %v2248_v29 = vsel %vm837_vm1, %v2228_v20, 0.0  ;;  %v2217_v5 = vsub.f32 %v8322_v59, %v2206_v7  ;;  %v2231_v63 = vmul.f32 %v8391_v49, %v8391_v49  ;;  %v2250_v27 = vsel %vm837_vm1, %v2229_v10, 0.0 }
 0x5a1   :  { %v2243_v3 = vadd.f32 %v2242_v19, %v2241_v51  ;;  %v2218_v30 = vsub.f32 %v8330_v33, %v2206_v7  ;;  %v2232_v53 = vmul.f32 %v8397_v12, %v8397_v12  ;;  %v2252_v34 = vsel %vm837_vm1, %v2230_v32, 0.0  ;;  %v2277_v19 = vld [vmem:[%s6252_s1] sm:$0x1]  ;;  %s7338_s1 = smov 26  }
 0x5a2   :  { %v2219_v44 = vsub.f32 %v8333_v61, %v2206_v7  ;;  %v2233_v60 = vmul.f32 %v2217_v5, %v2217_v5  ;;  %v2254_v36 = vsel %vm837_vm1, %v2231_v63, 0.0  ;;  %v2220_v4 = vsub.f32 %v2166_v23, %v2206_v7  ;;  %s6267_s4 = sld [smem:[%s10767_s0 + %s7338_s1]]  }
 0x5a3   :  { %v2245_v48 = vadd.f32 %v2244_v26, %v2243_v3  ;;  %v2234_v50 = vmul.f32 %v2218_v30, %v2218_v30  ;;  %v2256_v15 = vsel %vm837_vm1, %v2232_v53, 0.0  ;;  %v2221_v39 = vsub.f32 %v2167_v52, %v2206_v7  ;;  %s6273_s1 = sld [smem:[%s10767_s0 + %s7313_s18]]  }
 0x5a4   :  { %v2235_v54 = vmul.f32 %v2219_v44, %v2219_v44  ;;  %v2258_v33 = vsel %vm837_vm1, %v2233_v60, 0.0  ;;  %v2222_v55 = vsub.f32 %v8344_v17, %v2206_v7  ;;  %v2236_v58 = vmul.f32 %v2220_v4, %v2220_v4 }
 0x5a5   :  { %v2247_v8 = vadd.f32 %v2246_v0, %v2245_v48  ;;  %v2260_v28 = vsel %vm837_vm1, %v2234_v50, 0.0  ;;  %v2237_v31 = vmul.f32 %v2221_v39, %v2221_v39 }
 0x5a6   :  { %v2262_v9 = vsel %vm837_vm1, %v2235_v54, 0.0  ;;  %v2238_v23 = vmul.f32 %v2222_v55, %v2222_v55  ;;  %v2264_v62 = vsel %vm837_vm1, %v2236_v58, 0.0 }
 0x5a7   :  { %v2249_v2 = vadd.f32 %v2248_v29, %v2247_v8  ;;  %v2266_v52 = vsel %vm837_vm1, %v2237_v31, 0.0 }
 0x5a8   :  { %v2268_v1 = vsel %vm837_vm1, %v2238_v23, 0.0 }
 0x5a9   :  { %v2251_v38 = vadd.f32 %v2250_v27, %v2249_v2  ;;  %v6348_v27 = vld [vmem:[%s6253_s5] ss:$0 sm:$0xff]  ;;  %s7339_s5 = smov 27  }
 0x5aa   :  { %s9663_s8 = sld [smem:[%s10767_s0 + %s7339_s5]]  }
 0x5ab   :  { %v2253_v42 = vadd.f32 %v2252_v34, %v2251_v38 }
 0x5ad   :  { %v2255_v59 = vadd.f32 %v2254_v36, %v2253_v42 }
 0x5af   :  { %v2257_v47 = vadd.f32 %v2256_v15, %v2255_v59 }
 0x5b1   :  { %v2259_v46 = vadd.f32 %v2258_v33, %v2257_v47 }
 0x5b3   :  { %v2261_v61 = vadd.f32 %v2260_v28, %v2259_v46 }
 0x5b5   :  { %v2263_v40 = vadd.f32 %v2262_v9, %v2261_v61 }
 0x5b7   :  { %v2265_v57 = vadd.f32 %v2264_v62, %v2263_v40 }
 0x5b9   :  { %v2267_v21 = vadd.f32 %v2266_v52, %v2265_v57 }
 0x5bb   :  { %v2269_v37 = vadd.f32 %v2268_v1, %v2267_v21  ;;  %v2614_v1 = vld [vmem:[#allocation3 + $0x80] sm:$0xff] }
 0x5bc   :  { %2810 = vrot.lane.b32.xlu0 %v2614_v1, %s7316_s21 }
 0x5bd   :  { %v2270_v56 = vrot.slane %v2269_v37, 4 }
 0x5bf   :  { %v2271_v17 = vadd.f32 %v2270_v56, %v2269_v37  ;;  %v8526_v37 = vld [vmem:[%s6255_s9] ss:$0 sm:$0xff]  ;;  %s7340_s9 = smov 28  }
 0x5c0   :  { %s6269_s12 = sld [smem:[%s10767_s0 + %s7340_s9]]  }
 0x5c1   :  { %v2272_v7 = vrot.slane %v2271_v17, 2 }
 0x5c3   :  { %v2273_v18 = vadd.f32 %v2272_v7, %v2271_v17  ;;  %v2917_v17 = vld [vmem:[%s8524_s13 + $0x48] sm:$0xff]  ;;  %v2916_v7 = vld [vmem:[%s8524_s13 + $0x40] sm:$0xff] }
 0x5c4   :  { %6943 = vmatprep.subr.mxu1 %v2917_v17 }
 0x5c5   :  { %v2274_v14 = vrot.slane %v2273_v18, 1  ;;  %6944 = vmatpush3.msra.mxu1 %v2917_v17 }
 0x5c6   :  { %6945 = vmatprep.subr.mxu1 %v2916_v7 }
 0x5c7   :  { %v2275_v24 = vadd.f32 %v2274_v14, %v2273_v18  ;;  %6946 = vmatpush3.msra.mxu1 %v2916_v7 }
 0x5c9   :  { %v2276_v51 = vmul.f32 0.0078125, %v2275_v24  ;;  %v2915_v24 = vld [vmem:[%s8524_s13 + $0x38] sm:$0xff] }
 0x5ca   :  { %6947 = vmatprep.subr.mxu1 %v2915_v24 }
 0x5cb   :  { %v2278_v6 = vadd.f32 1e-05, %v2276_v51  ;;  %6948 = vmatpush3.msra.mxu1 %v2915_v24 }
 0x5cd   :  { %7277 = vrsqrt.f32 %v2278_v6 }
 0x5da   :  { %v7278_v3 = vpop.eup %7277 }
 0x5db   :  { %v2280_v20 = vmul.f32 %v7278_v3, %v2277_v19  ;;  %v2914_v19 = vld [vmem:[%s8524_s13 + $0x30] sm:$0xff] }
 0x5dc   :  { %6949 = vmatprep.subr.mxu1 %v2914_v19 }
 0x5dd   :  { %v2285_v26 = vrot.slane %v2280_v20, %v7906_v43  ;;  %6950 = vmatpush3.msra.mxu1 %v2914_v19 }
 0x5df   :  { %v2287_v48 = vmul.f32 %v2285_v26, %v8351_v35  ;;  %v2288_v10 = vmul.f32 %v2285_v26, %v8354_v16  ;;  %v2289_v0 = vmul.f32 %v2285_v26, %v8357_v41  ;;  %v2290_v8 = vmul.f32 %v2285_v26, %v8360_v25 }
 0x5e0   :  { %v2291_v32 = vmul.f32 %v2285_v26, %v8367_v11  ;;  %v2292_v29 = vmul.f32 %v2285_v26, %v8372_v13  ;;  %v2293_v2 = vmul.f32 %v2285_v26, %v8379_v45  ;;  %v2294_v63 = vmul.f32 %v2285_v26, %v8385_v22 }
 0x5e1   :  { %v2295_v38 = vmul.f32 %v2285_v26, %v8391_v49  ;;  %v2296_v53 = vmul.f32 %v2285_v26, %v8397_v12  ;;  %v2297_v35 = vmul.f32 %v2285_v26, %v2217_v5  ;;  %v2298_v34 = vmul.f32 %v2285_v26, %v2218_v30 }
 0x5e2   :  { %v2299_v16 = vmul.f32 %v2285_v26, %v2219_v44  ;;  %v2300_v42 = vmul.f32 %v2285_v26, %v2220_v4  ;;  %v2301_v41 = vmul.f32 %v2285_v26, %v2221_v39  ;;  %v2302_v60 = vmul.f32 %v2285_v26, %v2222_v55  ;;  %v2913_v26 = vld [vmem:[%s8524_s13 + $0x28] sm:$0xff] }
 0x5e3   :  { %v2311_v25 = vadd.f32 %v6348_v27, %v2288_v10  ;;  %v2312_v36 = vadd.f32 %v6348_v27, %v2289_v0  ;;  %v2313_v11 = vadd.f32 %v6348_v27, %v2290_v8  ;;  %v2314_v59 = vadd.f32 %v6348_v27, %v2291_v32  ;;  %6951 = vmatprep.subr.mxu1 %v2913_v26  ;;  %v2912_v8 = vld [vmem:[%s8524_s13 + $0x20] sm:$0xff] }
 0x5e4   :  { %v2315_v13 = vadd.f32 %v6348_v27, %v2292_v29  ;;  %v2316_v50 = vadd.f32 %v6348_v27, %v2293_v2  ;;  %v2317_v45 = vadd.f32 %v6348_v27, %v2294_v63  ;;  %v2318_v15 = vadd.f32 %v6348_v27, %v2295_v38  ;;  %6952 = vmatpush3.msra.mxu1 %v2913_v26  ;;  %v2911_v63 = vld [vmem:[%s8524_s13 + $0x18] sm:$0xff] }
 0x5e5   :  { %v2319_v22 = vadd.f32 %v6348_v27, %v2296_v53  ;;  %v2320_v47 = vadd.f32 %v6348_v27, %v2297_v35  ;;  %v2321_v54 = vadd.f32 %v6348_v27, %v2298_v34  ;;  %v2322_v49 = vadd.f32 %v6348_v27, %v2299_v16  ;;  %2327 = vst.msk [vmem:[#allocation2 + $0x8] sm:$0xff] %vm837_vm1, %v2311_v25  ;;  %v2910_v16 = vld [vmem:[%s8524_s13 + $0x10] sm:$0xff]  ;;  %v2909_v25 = vld [vmem:[%s8524_s13 + $0x8] sm:$0xff] }
 0x5e6   :  { %2328 = vst.msk [vmem:[#allocation2 + $0x10] sm:$0xff] %vm837_vm1, %v2312_v36  ;;  %2329 = vst.msk [vmem:[#allocation2 + $0x18] sm:$0xff] %vm837_vm1, %v2313_v11  ;;  %v2323_v12 = vadd.f32 %v6348_v27, %v2300_v42  ;;  %v2324_v5 = vadd.f32 %v6348_v27, %v2301_v41  ;;  %v2325_v30 = vadd.f32 %v6348_v27, %v2302_v60  ;;  %6953 = vmatprep.subr.mxu1 %v2912_v8 }
 0x5e7   :  { %2330 = vst.msk [vmem:[#allocation2 + $0x20] sm:$0xff] %vm837_vm1, %v2314_v59  ;;  %2331 = vst.msk [vmem:[#allocation2 + $0x28] sm:$0xff] %vm837_vm1, %v2315_v13  ;;  %v2310_v44 = vadd.f32 %v6348_v27, %v2287_v48  ;;  %6954 = vmatpush3.msra.mxu1 %v2912_v8 }
 0x5e8   :  { %2332 = vst.msk [vmem:[#allocation2 + $0x30] sm:$0xff] %vm837_vm1, %v2316_v50  ;;  %2333 = vst.msk [vmem:[#allocation2 + $0x38] sm:$0xff] %vm837_vm1, %v2317_v45  ;;  %6955 = vmatprep.subr.mxu1 %v2911_v63  ;;  %v2908_v50 = vld [vmem:[%s8524_s13] sm:$0xff]  ;;  %s7341_s13 = smov 31  }
 0x5e9   :  { %2334 = vst.msk [vmem:[#allocation2 + $0x40] sm:$0xff] %vm837_vm1, %v2318_v15  ;;  %2336 = vst.msk [vmem:[#allocation2 + $0x50] sm:$0xff] %vm837_vm1, %v2320_v47  ;;  %6956 = vmatpush3.msra.mxu1 %v2911_v63 }
 0x5ea   :  { %2337 = vst.msk [vmem:[#allocation2 + $0x58] sm:$0xff] %vm837_vm1, %v2321_v54  ;;  %2338 = vst.msk [vmem:[#allocation2 + $0x60] sm:$0xff] %vm837_vm1, %v2322_v49  ;;  %6957 = vmatprep.subr.mxu1 %v2910_v16 }
 0x5eb   :  { %2335 = vst.msk [vmem:[#allocation2 + $0x48] sm:$0xff] %vm837_vm1, %v2319_v22  ;;  %2339 = vst.msk [vmem:[#allocation2 + $0x68] sm:$0xff] %vm837_vm1, %v2323_v12  ;;  %6958 = vmatpush3.msra.mxu1 %v2910_v16 }
 0x5ec   :  { %2340 = vst.msk [vmem:[#allocation2 + $0x70] sm:$0xff] %vm837_vm1, %v2324_v5  ;;  %2341 = vst.msk [vmem:[#allocation2 + $0x78] sm:$0xff] %vm837_vm1, %v2325_v30  ;;  %v8453_v4 = vld [vmem:[#allocation2 + $0x8] sm:$0xff]  ;;  %6959 = vmatprep.subr.mxu1 %v2909_v25 }
 0x5ed   :  { %2326 = vst.msk [vmem:[#allocation2] sm:$0xff] %vm837_vm1, %v2310_v44  ;;  %v8461_v33 = vld [vmem:[#allocation2 + $0x10] sm:$0xff]  ;;  %v8465_v46 = vld [vmem:[#allocation2 + $0x18] sm:$0xff]  ;;  %6960 = vmatpush3.msra.mxu1 %v2909_v25 }
 0x5ee   :  { %v8469_v55 = vld [vmem:[#allocation2 + $0x20] sm:$0xff]  ;;  %v8473_v58 = vld [vmem:[#allocation2 + $0x28] sm:$0xff]  ;;  %6961 = vmatprep.subr.mxu1 %v2908_v50 }
 0x5ef   :  { %v8477_v28 = vld [vmem:[#allocation2 + $0x30] sm:$0xff]  ;;  %v8481_v61 = vld [vmem:[#allocation2 + $0x38] sm:$0xff]  ;;  %6962 = vmatpush3.msra.mxu1 %v2908_v50 }
 0x5f0   :  { %v8485_v31 = vld [vmem:[#allocation2 + $0x40] sm:$0xff]  ;;  %v8493_v40 = vld [vmem:[#allocation2 + $0x50] sm:$0xff] }
 0x5f1   :  { %v8497_v23 = vld [vmem:[#allocation2 + $0x58] sm:$0xff]  ;;  %v8501_v62 = vld [vmem:[#allocation2 + $0x60] sm:$0xff] }
 0x5f2   :  { %v8489_v9 = vld [vmem:[#allocation2 + $0x48] sm:$0xff] }
 0x5f3   :  { %v8505_v57 = vld [vmem:[#allocation2 + $0x68] sm:$0xff]  ;;  %v8509_v52 = vld [vmem:[#allocation2 + $0x70] sm:$0xff]  ;;  %v8513_v21 = vld [vmem:[#allocation2 + $0x78] sm:$0xff] }
 0x5f4   :  { %v8455_v39 = vld [vmem:[#allocation2] sm:$0xff] }
 0x5f5   :  { %6919 = vmatprep.mubr.msk.f32.mxu0 %vm837_vm1, %v8455_v39 }
 0x5f6   :  { %6920 = vmatmul.mubr.msk.f32.vlgmr.msra.gmra.mxu0 %vm837_vm1, %v8453_v4 }
 0x5f7   :  { %6922 = vmatprep.mubr.msk.f32.mxu0 %vm837_vm1, %v8461_v33 }
 0x5fa   :  { %6923 = vmatmul.mubr.msk.f32.gmra.mxu0 %vm837_vm1, %v8465_v46 }
 0x5fb   :  { %6925 = vmatprep.mubr.msk.f32.mxu0 %vm837_vm1, %v8469_v55 }
 0x5fe   :  { %6926 = vmatmul.mubr.msk.f32.gmra.mxu0 %vm837_vm1, %v8473_v58 }
 0x5ff   :  { %6928 = vmatprep.mubr.msk.f32.mxu0 %vm837_vm1, %v8477_v28 }
 0x602   :  { %6929 = vmatmul.mubr.msk.f32.gmra.mxu0 %vm837_vm1, %v8481_v61 }
 0x603   :  { %6931 = vmatprep.mubr.msk.f32.mxu0 %vm837_vm1, %v8485_v31 }
 0x606   :  { %6932 = vmatmul.mubr.msk.f32.gmra.mxu0 %vm837_vm1, %v8489_v9 }
 0x607   :  { %6934 = vmatprep.mubr.msk.f32.mxu0 %vm837_vm1, %v8493_v40 }
 0x60a   :  { %6935 = vmatmul.mubr.msk.f32.gmra.mxu0 %vm837_vm1, %v8497_v23 }
 0x60b   :  { %6937 = vmatprep.mubr.msk.f32.mxu0 %vm837_vm1, %v8501_v62 }
 0x60e   :  { %6938 = vmatmul.mubr.msk.f32.gmra.mxu0 %vm837_vm1, %v8505_v57 }
 0x60f   :  { %6940 = vmatprep.mubr.msk.f32.mxu0 %vm837_vm1, %v8509_v52 }
 0x612   :  { %6941 = vmatmul.mubr.msk.f32.gmra.mxu0 %vm837_vm1, %v8513_v21 }
 0x6b6   :  { %v6921_v56 = vpop.f32.mrf.mxu0 }
 0x6b7   :  { %v2489_v18 = vadd.f32 %v6921_v56, %v8526_v37 }
 0x6b8   :  { %v2483_v14 = vpop.f32.mrf.mxu0 }
 0x6b9   :  { %2563 = vst.msk [vmem:[#allocation3 + $0x48] sm:$0xff] %vm154_vm0, %v2489_v18  ;;  %v2484_v51 = vadd.f32 %v8526_v37, %v2483_v14 }
 0x6ba   :  { %v6924_v6 = vpop.f32.mrf.mxu0 }
 0x6bb   :  { %2562 = vst.msk [vmem:[#allocation3 + $0x40] sm:$0xff] %vm154_vm0, %v2484_v51  ;;  %v2499_v3 = vadd.f32 %v6924_v6, %v8526_v37 }
 0x6bc   :  { %v2493_v20 = vpop.f32.mrf.mxu0 }
 0x6bd   :  { %2565 = vst.msk [vmem:[#allocation3 + $0x58] sm:$0xff] %vm154_vm0, %v2499_v3  ;;  %v2494_v48 = vadd.f32 %v8526_v37, %v2493_v20 }
 0x6be   :  { %v6927_v10 = vpop.f32.mrf.mxu0 }
 0x6bf   :  { %2564 = vst.msk [vmem:[#allocation3 + $0x50] sm:$0xff] %vm154_vm0, %v2494_v48  ;;  %v2509_v0 = vadd.f32 %v6927_v10, %v8526_v37 }
 0x6c0   :  { %v2503_v32 = vpop.f32.mrf.mxu0  ;;  %v8543_v29 = vld [vmem:[#allocation3 + $0x48] sm:$0xff] }
 0x6c1   :  { %2567 = vst.msk [vmem:[#allocation3 + $0x68] sm:$0xff] %vm154_vm0, %v2509_v0  ;;  %v2504_v2 = vadd.f32 %v8526_v37, %v2503_v32  ;;  %2796 = vrot.lane.b32.xlu0 %v8543_v29, %s7316_s21  ;;  %2698 = vrot.lane.b32.xlu1 %v8543_v29, %s7313_s18 }
 0x6c2   :  { %v6930_v27 = vpop.f32.mrf.mxu0  ;;  %v2595_v35 = vld [vmem:[#allocation3 + $0x44] sm:$0xff]  ;;  %v2594_v34 = vld [vmem:[#allocation3 + $0x3c] sm:$0xff] }
 0x6c3   :  { %2566 = vst.msk [vmem:[#allocation3 + $0x60] sm:$0xff] %vm154_vm0, %v2504_v2  ;;  %v2519_v38 = vadd.f32 %v6930_v27, %v8526_v37  ;;  %v8564_v59 = vld [vmem:[#allocation3 + $0x40] sm:$0xff] }
 0x6c4   :  { %v2513_v53 = vpop.f32.mrf.mxu0  ;;  %v8562_v11 = vld [vmem:[#allocation3 + $0x58] sm:$0xff] }
 0x6c5   :  { %2569 = vst.msk [vmem:[#allocation3 + $0x78] sm:$0xff] %vm154_vm0, %v2519_v38  ;;  %v2514_v42 = vadd.f32 %v8526_v37, %v2513_v53  ;;  %2634 = vrot.lane.b32.xlu1 %v2595_v35, %s7314_s19  ;;  %2632 = vrot.lane.b32.xlu0 %v2594_v34, %s7314_s19 }
 0x6c6   :  { %v6933_v41 = vpop.f32.mrf.mxu0  ;;  %v2596_v47 = vld [vmem:[#allocation3 + $0x4c] sm:$0xff]  ;;  %v2597_v17 = vld [vmem:[#allocation3 + $0x54] sm:$0xff] }
 0x6c7   :  { %2568 = vst.msk [vmem:[#allocation3 + $0x70] sm:$0xff] %vm154_vm0, %v2514_v42  ;;  %v2529_v60 = vadd.f32 %v6933_v41, %v8526_v37  ;;  %v8588_v7 = vld [vmem:[#allocation3 + $0x50] sm:$0xff] }
 0x6c8   :  { %v2523_v36 = vpop.f32.mrf.mxu0  ;;  %v8596_v14 = vld [vmem:[#allocation3 + $0x68] sm:$0xff] }
 0x6c9   :  { %2571 = vst.msk [vmem:[#allocation3 + $0x108] sm:$0xff] %vm154_vm0, %v2529_v60  ;;  %v2524_v13 = vadd.f32 %v8526_v37, %v2523_v36  ;;  %2702 = vrot.lane.b32.xlu1 %v8562_v11, %s7313_s18  ;;  %2696 = vrot.lane.b32.xlu0 %v8564_v59, %s7313_s18  ;;  %v8679_v60 = vpop.permute.xlu0 %2810 }
 0x6ca   :  { %v6936_v45 = vpop.f32.mrf.mxu0  ;;  %v2598_v24 = vld [vmem:[#allocation3 + $0x5c] sm:$0xff] }
 0x6cb   :  { %2570 = vst.msk [vmem:[#allocation3 + $0x100] sm:$0xff] %vm154_vm0, %v2524_v13  ;;  %v2539_v15 = vadd.f32 %v6936_v45, %v8526_v37  ;;  %v8607_v51 = vld [vmem:[#allocation3 + $0x60] sm:$0xff] }
 0x6cc   :  { %v2533_v22 = vpop.f32.mrf.mxu0  ;;  %v2610_v6 = vld [vmem:[#allocation3 + $0x78] sm:$0xff] }
 0x6cd   :  { %2573 = vst.msk [vmem:[#allocation3 + $0x118] sm:$0xff] %vm154_vm0, %v2539_v15  ;;  %v2534_v54 = vadd.f32 %v8526_v37, %v2533_v22  ;;  %2748 = vrot.lane.b32.xlu1 %v2596_v47, %s7315_s20  ;;  %2746 = vrot.lane.b32.xlu0 %v2595_v35, %s7315_s20  ;;  %v2612_v19 = vld [vmem:[#allocation3 + $0x7c] sm:$0xff] }
 0x6ce   :  { %v6939_v49 = vpop.f32.mrf.mxu0  ;;  %v2600_v3 = vld [vmem:[#allocation3 + $0x6c] sm:$0xff]  ;;  %v2601_v26 = vld [vmem:[#allocation3 + $0x74] sm:$0xff]  ;;  %v8688_v22 = vld [vmem:[#allocation3 + $0x140] sm:$0xff] }
 0x6cf   :  { %2572 = vst.msk [vmem:[#allocation3 + $0x110] sm:$0xff] %vm154_vm0, %v2534_v54  ;;  %v2549_v12 = vadd.f32 %v6939_v49, %v8526_v37  ;;  %v8619_v20 = vld [vmem:[#allocation3 + $0x70] sm:$0xff] }
 0x6d0   :  { %v2543_v5 = vpop.f32.mrf.mxu0  ;;  %v8627_v48 = vld [vmem:[#allocation3 + $0x108] sm:$0xff] }
 0x6d1   :  { %2575 = vst.msk [vmem:[#allocation3 + $0x128] sm:$0xff] %vm154_vm0, %v2549_v12  ;;  %v2544_v30 = vadd.f32 %v8526_v37, %v2543_v5  ;;  %2636 = vrot.lane.b32.xlu1 %v2596_v47, %s7314_s19  ;;  %2800 = vrot.lane.b32.xlu0 %v8562_v11, %s7316_s21  ;;  %v2578_v47 = vld [vmem:[#allocation3 + $0x38] sm:$0xff] }
 0x6d2   :  { %v6942_v44 = vpop.f32.mrf.mxu0  ;;  %v2602_v10 = vld [vmem:[#allocation3 + $0xfc] sm:$0xff]  ;;  %v2603_v0 = vld [vmem:[#allocation3 + $0x104] sm:$0xff] }
 0x6d3   :  { %2574 = vst.msk [vmem:[#allocation3 + $0x120] sm:$0xff] %vm154_vm0, %v2544_v30  ;;  %v2559_v1 = vadd.f32 %v6942_v44, %v8526_v37  ;;  %v8635_v8 = vld [vmem:[#allocation3 + $0x100] sm:$0xff] }
 0x6d4   :  { %v2553_v56 = vpop.f32.mrf.mxu0  ;;  %v8640_v32 = vld [vmem:[#allocation3 + $0x118] sm:$0xff] }
 0x6d5   :  { %2577 = vst.msk [vmem:[#allocation3 + $0x138] sm:$0xff] %vm154_vm0, %v2559_v1  ;;  %v2554_v18 = vadd.f32 %v8526_v37, %v2553_v56  ;;  %2638 = vrot.lane.b32.xlu1 %v2597_v17, %s7314_s19  ;;  %2798 = vrot.lane.b32.xlu0 %v8588_v7, %s7316_s21  ;;  %v2599_v37 = vld [vmem:[#allocation3 + $0x64] sm:$0xff] }
 0x6d6   :  { %v2604_v2 = vld [vmem:[#allocation3 + $0x10c] sm:$0xff]  ;;  %v2605_v27 = vld [vmem:[#allocation3 + $0x114] sm:$0xff] }
 0x6d7   :  { %2576 = vst.msk [vmem:[#allocation3 + $0x130] sm:$0xff] %vm154_vm0, %v2554_v18  ;;  %v8648_v63 = vld [vmem:[#allocation3 + $0x110] sm:$0xff] }
 0x6d8   :  { %v8656_v38 = vld [vmem:[#allocation3 + $0x128] sm:$0xff] }
 0x6d9   :  { %2706 = vrot.lane.b32.xlu1 %v8596_v14, %s7313_s18  ;;  %2700 = vrot.lane.b32.xlu0 %v8588_v7, %s7313_s18 }
 0x6da   :  { %v2606_v53 = vld [vmem:[#allocation3 + $0x11c] sm:$0xff]  ;;  %v2607_v34 = vld [vmem:[#allocation3 + $0x124] sm:$0xff] }
 0x6db   :  { %v8664_v35 = vld [vmem:[#allocation3 + $0x120] sm:$0xff] }
 0x6dc   :  { %v2611_v16 = vld [vmem:[#allocation3 + $0x138] sm:$0xff] }
 0x6dd   :  { %2752 = vrot.lane.b32.xlu1 %v2598_v24, %s7315_s20  ;;  %2750 = vrot.lane.b32.xlu0 %v2597_v17, %s7315_s20  ;;  %v2613_v42 = vld [vmem:[#allocation3 + $0x13c] sm:$0xff] }
 0x6de   :  { %v8674_v41 = vld [vmem:[#allocation3 + $0x130] sm:$0xff] }
 0x6df   :  { %v2608_v25 = vld [vmem:[#allocation3 + $0x12c] sm:$0xff]  ;;  %v2609_v50 = vld [vmem:[#allocation3 + $0x134] sm:$0xff] }
 0x6e1   :  { %2640 = vrot.lane.b32.xlu1 %v2598_v24, %s7314_s19  ;;  %2804 = vrot.lane.b32.xlu0 %v8596_v14, %s7316_s21 }
 0x6e5   :  { %2642 = vrot.lane.b32.xlu1 %v2599_v37, %s7314_s19  ;;  %2802 = vrot.lane.b32.xlu0 %v8607_v51, %s7316_s21 }
 0x6e9   :  { %2710 = vrot.lane.b32.xlu1 %v2610_v6, %s7313_s18  ;;  %2704 = vrot.lane.b32.xlu0 %v8607_v51, %s7313_s18 }
 0x6ed   :  { %2760 = vrot.lane.b32.xlu1 %v2612_v19, %s7315_s20  ;;  %2754 = vrot.lane.b32.xlu0 %v2599_v37, %s7315_s20 }
 0x6f1   :  { %2756 = vrot.lane.b32.xlu1 %v2600_v3, %s7315_s20  ;;  %2808 = vrot.lane.b32.xlu0 %v2610_v6, %s7316_s21 }
 0x6f5   :  { %2644 = vrot.lane.b32.xlu1 %v2600_v3, %s7314_s19  ;;  %2806 = vrot.lane.b32.xlu0 %v8619_v20, %s7316_s21 }
 0x6f9   :  { %2646 = vrot.lane.b32.xlu1 %v2601_v26, %s7314_s19  ;;  %2708 = vrot.lane.b32.xlu0 %v8619_v20, %s7313_s18 }
 0x6fd   :  { %2714 = vrot.lane.b32.xlu1 %v8627_v48, %s7313_s18  ;;  %2758 = vrot.lane.b32.xlu0 %v2601_v26, %s7315_s20 }
 0x701   :  { %2648 = vrot.lane.b32.xlu1 %v2602_v10, %s7314_s19  ;;  %2812 = vrot.lane.b32.xlu0 %v8627_v48, %s7316_s21 }
 0x705   :  { %2650 = vrot.lane.b32.xlu1 %v2603_v0, %s7314_s19  ;;  %2712 = vrot.lane.b32.xlu0 %v8635_v8, %s7313_s18 }
 0x709   :  { %2718 = vrot.lane.b32.xlu1 %v8640_v32, %s7313_s18  ;;  %2762 = vrot.lane.b32.xlu0 %v2603_v0, %s7315_s20 }
 0x70d   :  { %2764 = vrot.lane.b32.xlu1 %v2604_v2, %s7315_s20  ;;  %2816 = vrot.lane.b32.xlu0 %v8640_v32, %s7316_s21 }
 0x711   :  { %2652 = vrot.lane.b32.xlu1 %v2604_v2, %s7314_s19  ;;  %2814 = vrot.lane.b32.xlu0 %v8648_v63, %s7316_s21 }
 0x715   :  { %2654 = vrot.lane.b32.xlu1 %v2605_v27, %s7314_s19  ;;  %2716 = vrot.lane.b32.xlu0 %v8648_v63, %s7313_s18 }
 0x719   :  { %2722 = vrot.lane.b32.xlu1 %v8656_v38, %s7313_s18  ;;  %2766 = vrot.lane.b32.xlu0 %v2605_v27, %s7315_s20 }
 0x71d   :  { %2768 = vrot.lane.b32.xlu1 %v2606_v53, %s7315_s20  ;;  %2820 = vrot.lane.b32.xlu0 %v8656_v38, %s7316_s21 }
 0x721   :  { %2656 = vrot.lane.b32.xlu1 %v2606_v53, %s7314_s19  ;;  %2818 = vrot.lane.b32.xlu0 %v8664_v35, %s7316_s21 }
 0x725   :  { %2658 = vrot.lane.b32.xlu1 %v2607_v34, %s7314_s19  ;;  %2720 = vrot.lane.b32.xlu0 %v8664_v35, %s7313_s18 }
 0x729   :  { %2726 = vrot.lane.b32.xlu1 %v2611_v16, %s7313_s18  ;;  %2770 = vrot.lane.b32.xlu0 %v2607_v34, %s7315_s20 }
 0x72d   :  { %2776 = vrot.lane.b32.xlu1 %v2613_v42, %s7315_s20  ;;  %2822 = vrot.lane.b32.xlu0 %v8674_v41, %s7316_s21 }
 0x731   :  { %2772 = vrot.lane.b32.xlu1 %v2608_v25, %s7315_s20  ;;  %2724 = vrot.lane.b32.xlu0 %v8674_v41, %s7313_s18 }
 0x733   :  { %v2797_v36 = vpop.permute.xlu0 %2796  ;;  %v2699_v13 = vpop.permute.xlu1 %2698 }
 0x735   :  { %2660 = vrot.lane.b32.xlu1 %v2608_v25, %s7314_s19  ;;  %2774 = vrot.lane.b32.xlu0 %v2609_v50, %s7315_s20 }
 0x737   :  { %v2635_v45 = vpop.permute.xlu1 %2634  ;;  %v2633_v15 = vpop.permute.xlu0 %2632 }
 0x738   :  { %v2844_v12 = vsel %vm154_vm0, %v2578_v47, %v2633_v15  ;;  %v2845_v17 = vsel %vm154_vm0, %v8564_v59, %v2635_v45 }
 0x739   :  { %2662 = vrot.lane.b32.xlu1 %v2609_v50, %s7314_s19  ;;  %2824 = vrot.lane.b32.xlu0 %v2611_v16, %s7316_s21  ;;  %v2861_v37 = vsel %vm837_vm1, %v2845_v17, %v2699_v13 }
 0x73b   :  { %v2703_v54 = vpop.permute.xlu1 %2702  ;;  %v2697_v49 = vpop.permute.xlu0 %2696 }
 0x73c   :  { %v2860_v5 = vsel %vm837_vm1, %v2844_v12, %v2697_v49 }
 0x73d   :  { %2826 = vrot.lane.b32.xlu1 %v8688_v22, %s7316_s21  ;;  %3599 = vrot.lane.b32.xlu0 %v2578_v47, %s7314_s19 }
 0x73f   :  { %v2749_v30 = vpop.permute.xlu1 %2748  ;;  %v2747_v44 = vpop.permute.xlu0 %2746 }
 0x740   :  { %v2876_v1 = vsel %vm854_vm2, %v2860_v5, %v2747_v44  ;;  %v2877_v6 = vsel %vm854_vm2, %v2861_v37, %v2749_v30 }
 0x741   :  { %v2892_v56 = vsel %vm871_vm3, %v2876_v1, %v2797_v36 }
 0x742   :  { %6963 = vmatprep.mubr.msk.f32.mxu1 %vm905_vm4, %v2892_v56 }
 0x743   :  { %v2637_v18 = vpop.permute.xlu1 %2636  ;;  %v2801_v24 = vpop.permute.xlu0 %2800 }
 0x744   :  { %v2846_v2 = vsel %vm154_vm0, %v8543_v29, %v2637_v18 }
 0x747   :  { %v2639_v19 = vpop.permute.xlu1 %2638  ;;  %v2799_v3 = vpop.permute.xlu0 %2798 }
 0x748   :  { %v2893_v26 = vsel %vm871_vm3, %v2877_v6, %v2799_v3  ;;  %v2847_v42 = vsel %vm154_vm0, %v8588_v7, %v2639_v19 }
 0x749   :  { %6964 = vmatmul.mubr.msk.f32.vlgmr.msra.gmra.mxu1 %vm905_vm4, %v2893_v26  ;;  %v2863_v13 = vsel %vm837_vm1, %v2847_v42, %v2703_v54 }
 0x74b   :  { %v2707_v10 = vpop.permute.xlu1 %2706  ;;  %v2701_v0 = vpop.permute.xlu0 %2700 }
 0x74c   :  { %v2862_v27 = vsel %vm837_vm1, %v2846_v2, %v2701_v0 }
 0x74f   :  { %v2753_v59 = vpop.permute.xlu1 %2752  ;;  %v2751_v53 = vpop.permute.xlu0 %2750 }
 0x750   :  { %v2878_v34 = vsel %vm854_vm2, %v2862_v27, %v2751_v53  ;;  %v2879_v50 = vsel %vm854_vm2, %v2863_v13, %v2753_v59 }
 0x751   :  { %v2894_v16 = vsel %vm871_vm3, %v2878_v34, %v2801_v24 }
 0x752   :  { %6966 = vmatprep.mubr.msk.f32.mxu1 %vm905_vm4, %v2894_v16 }
 0x753   :  { %v2641_v25 = vpop.permute.xlu1 %2640  ;;  %v2805_v36 = vpop.permute.xlu0 %2804 }
 0x754   :  { %v2848_v12 = vsel %vm154_vm0, %v8562_v11, %v2641_v25 }
 0x757   :  { %v2643_v29 = vpop.permute.xlu1 %2642  ;;  %v2803_v45 = vpop.permute.xlu0 %2802 }
 0x758   :  { %v2895_v15 = vsel %vm871_vm3, %v2879_v50, %v2803_v45  ;;  %v2849_v1 = vsel %vm154_vm0, %v8607_v51, %v2643_v29 }
 0x759   :  { %6967 = vmatmul.mubr.msk.f32.gmra.mxu1 %vm905_vm4, %v2895_v15  ;;  %v2865_v18 = vsel %vm837_vm1, %v2849_v1, %v2707_v10 }
 0x75b   :  { %v2711_v47 = vpop.permute.xlu1 %2710  ;;  %v2705_v49 = vpop.permute.xlu0 %2704 }
 0x75c   :  { %v2864_v5 = vsel %vm837_vm1, %v2848_v12, %v2705_v49 }
 0x75f   :  { %v2761_v7 = vpop.permute.xlu1 %2760  ;;  %v2755_v30 = vpop.permute.xlu0 %2754 }
 0x760   :  { %v2880_v44 = vsel %vm854_vm2, %v2864_v5, %v2755_v30 }
 0x761   :  { %v2896_v54 = vsel %vm871_vm3, %v2880_v44, %v2805_v36 }
 0x762   :  { %6969 = vmatprep.mubr.msk.f32.mxu1 %vm905_vm4, %v2896_v54 }
 0x763   :  { %v2757_v56 = vpop.permute.xlu1 %2756  ;;  %v2809_v17 = vpop.permute.xlu0 %2808 }
 0x764   :  { %v2881_v24 = vsel %vm854_vm2, %v2865_v18, %v2757_v56 }
 0x767   :  { %v2645_v11 = vpop.permute.xlu1 %2644  ;;  %v2807_v37 = vpop.permute.xlu0 %2806 }
 0x768   :  { %v2897_v6 = vsel %vm871_vm3, %v2881_v24, %v2807_v37  ;;  %v2850_v51 = vsel %vm154_vm0, %v8596_v14, %v2645_v11  ;;  %v8741_v14 = vld [vmem:[#allocation3 + $0xf8] sm:$0xff] }
 0x769   :  { %6970 = vmatmul.mubr.msk.f32.gmra.mxu1 %vm905_vm4, %v2897_v6 }
 0x76b   :  { %v2647_v19 = vpop.permute.xlu1 %2646  ;;  %v2709_v3 = vpop.permute.xlu0 %2708 }
 0x76c   :  { %v2851_v26 = vsel %vm154_vm0, %v8619_v20, %v2647_v19  ;;  %v2866_v10 = vsel %vm837_vm1, %v2850_v51, %v2709_v3 }
 0x76d   :  { %v2867_v0 = vsel %vm837_vm1, %v2851_v26, %v2711_v47 }
 0x76e   :  { %v2883_v59 = vsel %vm854_vm2, %v2867_v0, %v2761_v7 }
 0x76f   :  { %v2715_v2 = vpop.permute.xlu1 %2714  ;;  %v2759_v27 = vpop.permute.xlu0 %2758  ;;  %v2899_v20 = vsel %vm871_vm3, %v2883_v59, %v8679_v60 }
 0x770   :  { %v2882_v53 = vsel %vm854_vm2, %v2866_v10, %v2759_v27 }
 0x771   :  { %v2898_v34 = vsel %vm871_vm3, %v2882_v53, %v2809_v17 }
 0x772   :  { %6972 = vmatprep.mubr.msk.f32.mxu1 %vm905_vm4, %v2898_v34 }
 0x773   :  { %v2649_v16 = vpop.permute.xlu1 %2648  ;;  %v2813_v42 = vpop.permute.xlu0 %2812  ;;  %6973 = vmatmul.mubr.msk.f32.gmra.mxu1 %vm905_vm4, %v2899_v20 }
 0x774   :  { %v2852_v13 = vsel %vm154_vm0, %v8741_v14, %v2649_v16 }
 0x777   :  { %v2651_v25 = vpop.permute.xlu1 %2650  ;;  %v2713_v36 = vpop.permute.xlu0 %2712 }
 0x778   :  { %v2868_v50 = vsel %vm837_vm1, %v2852_v13, %v2713_v36  ;;  %v2853_v60 = vsel %vm154_vm0, %v8635_v8, %v2651_v25 }
 0x779   :  { %v2869_v5 = vsel %vm837_vm1, %v2853_v60, %v2715_v2 }
 0x77b   :  { %v2719_v29 = vpop.permute.xlu1 %2718  ;;  %v2763_v45 = vpop.permute.xlu0 %2762 }
 0x77c   :  { %v2884_v15 = vsel %vm854_vm2, %v2868_v50, %v2763_v45 }
 0x77d   :  { %v2900_v47 = vsel %vm871_vm3, %v2884_v15, %v2813_v42 }
 0x77e   :  { %6975 = vmatprep.mubr.msk.f32.mxu1 %vm905_vm4, %v2900_v47 }
 0x77f   :  { %v2765_v49 = vpop.permute.xlu1 %2764  ;;  %v2817_v12 = vpop.permute.xlu0 %2816 }
 0x780   :  { %v2885_v7 = vsel %vm854_vm2, %v2869_v5, %v2765_v49 }
 0x783   :  { %v2653_v30 = vpop.permute.xlu1 %2652  ;;  %v2815_v44 = vpop.permute.xlu0 %2814 }
 0x784   :  { %v2901_v54 = vsel %vm871_vm3, %v2885_v7, %v2815_v44  ;;  %v2854_v17 = vsel %vm154_vm0, %v8627_v48, %v2653_v30 }
 0x785   :  { %6976 = vmatmul.mubr.msk.f32.gmra.mxu1 %vm905_vm4, %v2901_v54 }
 0x787   :  { %v2655_v1 = vpop.permute.xlu1 %2654  ;;  %v2717_v56 = vpop.permute.xlu0 %2716 }
 0x788   :  { %v2870_v18 = vsel %vm837_vm1, %v2854_v17, %v2717_v56  ;;  %v2855_v6 = vsel %vm154_vm0, %v8648_v63, %v2655_v1 }
 0x789   :  { %v2871_v26 = vsel %vm837_vm1, %v2855_v6, %v2719_v29 }
 0x78b   :  { %v2723_v8 = vpop.permute.xlu1 %2722  ;;  %v2767_v24 = vpop.permute.xlu0 %2766 }
 0x78c   :  { %v2886_v11 = vsel %vm854_vm2, %v2870_v18, %v2767_v24  ;;  %v8795_v18 = vld [vmem:[%s6257_s16] ss:$0 sm:$0xff]  ;;  %s6272_s16 = sld [smem:[%s10767_s0 + %s7341_s13]]  }
 0x78d   :  { %v2902_v37 = vsel %vm871_vm3, %v2886_v11, %v2817_v12 }
 0x78e   :  { %6978 = vmatprep.mubr.msk.f32.mxu1 %vm905_vm4, %v2902_v37 }
 0x78f   :  { %v2769_v19 = vpop.permute.xlu1 %2768  ;;  %v2821_v3 = vpop.permute.xlu0 %2820 }
 0x790   :  { %v2887_v0 = vsel %vm854_vm2, %v2871_v26, %v2769_v19 }
 0x793   :  { %v2657_v48 = vpop.permute.xlu1 %2656  ;;  %v2819_v51 = vpop.permute.xlu0 %2818 }
 0x794   :  { %v2903_v10 = vsel %vm871_vm3, %v2887_v0, %v2819_v51  ;;  %v2856_v59 = vsel %vm154_vm0, %v8640_v32, %v2657_v48 }
 0x795   :  { %6979 = vmatmul.mubr.msk.f32.gmra.mxu1 %vm905_vm4, %v2903_v10 }
 0x797   :  { %v2659_v2 = vpop.permute.xlu1 %2658  ;;  %v2721_v27 = vpop.permute.xlu0 %2720 }
 0x798   :  { %v2872_v53 = vsel %vm837_vm1, %v2856_v59, %v2721_v27  ;;  %v2857_v36 = vsel %vm154_vm0, %v8664_v35, %v2659_v2 }
 0x799   :  { %v2873_v13 = vsel %vm837_vm1, %v2857_v36, %v2723_v8 }
 0x79b   :  { %v2727_v63 = vpop.permute.xlu1 %2726  ;;  %v2771_v34 = vpop.permute.xlu0 %2770 }
 0x79c   :  { %v2888_v20 = vsel %vm854_vm2, %v2872_v53, %v2771_v34 }
 0x79d   :  { %v2904_v16 = vsel %vm871_vm3, %v2888_v20, %v2821_v3 }
 0x79e   :  { %6981 = vmatprep.mubr.msk.f32.mxu1 %vm905_vm4, %v2904_v16 }
 0x79f   :  { %v2777_v42 = vpop.permute.xlu1 %2776  ;;  %v2823_v25 = vpop.permute.xlu0 %2822 }
 0x7a3   :  { %v2773_v50 = vpop.permute.xlu1 %2772  ;;  %v2725_v29 = vpop.permute.xlu0 %2724 }
 0x7a4   :  { %v2889_v32 = vsel %vm854_vm2, %v2873_v13, %v2773_v50 }
 0x7a5   :  { %v2905_v45 = vsel %vm871_vm3, %v2889_v32, %v2823_v25 }
 0x7a6   :  { %6982 = vmatmul.mubr.msk.f32.gmra.mxu1 %vm905_vm4, %v2905_v45 }
 0x7a7   :  { %v2661_v15 = vpop.permute.xlu1 %2660  ;;  %v2775_v47 = vpop.permute.xlu0 %2774 }
 0x7a8   :  { %v2858_v60 = vsel %vm154_vm0, %v8656_v38, %v2661_v15 }
 0x7a9   :  { %v2874_v49 = vsel %vm837_vm1, %v2858_v60, %v2725_v29 }
 0x7aa   :  { %v2890_v12 = vsel %vm854_vm2, %v2874_v49, %v2775_v47 }
 0x7ab   :  { %v2663_v35 = vpop.permute.xlu1 %2662  ;;  %v2825_v5 = vpop.permute.xlu0 %2824 }
 0x7ac   :  { %v2859_v7 = vsel %vm154_vm0, %v8674_v41, %v2663_v35  ;;  %v2906_v30 = vsel %vm871_vm3, %v2890_v12, %v2825_v5 }
 0x7ad   :  { %v2875_v44 = vsel %vm837_vm1, %v2859_v7, %v2727_v63  ;;  %6984 = vmatprep.mubr.msk.f32.mxu1 %vm905_vm4, %v2906_v30 }
 0x7ae   :  { %v2891_v54 = vsel %vm854_vm2, %v2875_v44, %v2777_v42 }
 0x7af   :  { %v2827_v1 = vpop.permute.xlu1 %2826 }
 0x7b0   :  { %v2907_v38 = vsel %vm871_vm3, %v2891_v54, %v2827_v1  ;;  %v3342_v54 = vld [vmem:[%s6260_s24 + $0x18] sm:$0xff]  ;;  %v3341_v1 = vld [vmem:[%s6260_s24 + $0x10] sm:$0xff] }
 0x7b1   :  { %6985 = vmatmul.mubr.msk.f32.gmra.mxu1 %vm905_vm4, %v2907_v38  ;;  %6987 = vmatprep.subr.mxu0 %v3342_v54 }
 0x7b2   :  { %6988 = vmatpush3.msra.mxu0 %v3342_v54 }
 0x7b3   :  { %6989 = vmatprep.subr.mxu0 %v3341_v1 }
 0x7b4   :  { %6990 = vmatpush3.msra.mxu0 %v3341_v1 }
 0x809   :  { %v6965_v56 = vpop.f32.mrf.mxu1 }
 0x80a   :  { %v3045_v37 = vadd.f32 %v6965_v56, %v8795_v18 }
 0x80b   :  { %v3039_v41 = vpop.f32.mrf.mxu1 }
 0x80c   :  { %v3040_v24 = vadd.f32 %v8795_v18, %v3039_v41  ;;  %v3119_v26 = vmax.f32 %v3045_v37, 0.0  ;;  %v3339_v37 = vld [vmem:[%s6260_s24] sm:$0xff] }
 0x80e   :  { %v3118_v19 = vmax.f32 %v3040_v24, 0.0  ;;  %v8806_v27 = vadd.f32 %v3119_v26, %v8453_v4 }
 0x810   :  { %v8801_v51 = vadd.f32 %v3118_v19, %v8455_v39  ;;  %v3151_v39 = vsel %vm837_vm1, %v8806_v27, 0.0 }
 0x812   :  { %v3150_v63 = vsel %vm837_vm1, %v8801_v51, 0.0 }
 0x813   :  { %v3152_v36 = vadd.f32 %v3151_v39, %v3150_v63 }
 0x819   :  { %v6968_v17 = vpop.f32.mrf.mxu1 }
 0x81a   :  { %v3055_v10 = vadd.f32 %v6968_v17, %v8795_v18 }
 0x81b   :  { %v3049_v8 = vpop.f32.mrf.mxu1 }
 0x81c   :  { %v3050_v6 = vadd.f32 %v8795_v18, %v3049_v8  ;;  %v3121_v34 = vmax.f32 %v3055_v10, 0.0 }
 0x81e   :  { %v3120_v0 = vmax.f32 %v3050_v6, 0.0 }
 0x820   :  { %v8809_v59 = vadd.f32 %v3120_v0, %v8461_v33  ;;  %v8820_v33 = vadd.f32 %v3121_v34, %v8465_v46 }
 0x822   :  { %v3153_v42 = vsel %vm837_vm1, %v8809_v59, 0.0  ;;  %v3155_v47 = vsel %vm837_vm1, %v8820_v33, 0.0 }
 0x823   :  { %v3154_v50 = vadd.f32 %v3153_v42, %v3152_v36 }
 0x825   :  { %v3156_v49 = vadd.f32 %v3155_v47, %v3154_v50 }
 0x829   :  { %v6971_v11 = vpop.f32.mrf.mxu1 }
 0x82a   :  { %v3065_v25 = vadd.f32 %v6971_v11, %v8795_v18 }
 0x82b   :  { %v3059_v3 = vpop.f32.mrf.mxu1 }
 0x82c   :  { %v3060_v2 = vadd.f32 %v8795_v18, %v3059_v3  ;;  %v3123_v32 = vmax.f32 %v3065_v25, 0.0 }
 0x82e   :  { %v3122_v20 = vmax.f32 %v3060_v2, 0.0  ;;  %v8835_v12 = vadd.f32 %v3123_v32, %v8473_v58 }
 0x830   :  { %v8823_v13 = vadd.f32 %v3122_v20, %v8469_v55  ;;  %v3159_v38 = vsel %vm837_vm1, %v8835_v12, 0.0 }
 0x832   :  { %v3157_v46 = vsel %vm837_vm1, %v8823_v13, 0.0 }
 0x833   :  { %v6974_v48 = vpop.f32.mrf.mxu1  ;;  %v3158_v5 = vadd.f32 %v3157_v46, %v3156_v49 }
 0x834   :  { %v3075_v60 = vadd.f32 %v6974_v48, %v8795_v18 }
 0x835   :  { %v3069_v53 = vpop.f32.mrf.mxu1  ;;  %v3160_v17 = vadd.f32 %v3159_v38, %v3158_v5 }
 0x836   :  { %v3070_v4 = vadd.f32 %v8795_v18, %v3069_v53  ;;  %v3125_v30 = vmax.f32 %v3075_v60, 0.0 }
 0x838   :  { %v3124_v45 = vmax.f32 %v3070_v4, 0.0  ;;  %v8847_v8 = vadd.f32 %v3125_v30, %v8481_v61 }
 0x83a   :  { %v8838_v35 = vadd.f32 %v3124_v45, %v8477_v28  ;;  %v3340_v28 = vld [vmem:[%s6260_s24 + $0x8] sm:$0xff]  ;;  %v3163_v3 = vsel %vm837_vm1, %v8847_v8, 0.0  ;;  %s6270_s24 = sld [smem:[%s10767_s0 + %s7342_s17]]  }
 0x83b   :  { %6991 = vmatprep.subr.mxu0 %v3340_v28 }
 0x83c   :  { %v3161_v56 = vsel %vm837_vm1, %v8838_v35, 0.0  ;;  %6992 = vmatpush3.msra.mxu0 %v3340_v28 }
 0x83d   :  { %v3162_v11 = vadd.f32 %v3161_v56, %v3160_v17  ;;  %6993 = vmatprep.subr.mxu0 %v3339_v37 }
 0x83e   :  { %6994 = vmatpush3.msra.mxu0 %v3339_v37 }
 0x845   :  { %v6977_v16 = vpop.f32.mrf.mxu1 }
 0x846   :  { %v3085_v41 = vadd.f32 %v6977_v16, %v8795_v18 }
 0x847   :  { %v3079_v29 = vpop.f32.mrf.mxu1 }
 0x848   :  { %v3080_v55 = vadd.f32 %v8795_v18, %v3079_v29  ;;  %v3127_v6 = vmax.f32 %v3085_v41, 0.0  ;;  %v3579_v41 = vld [vmem:[#allocation3 + $0x80] sm:$0xff] }
 0x849   :  { %3713 = vrot.lane.b32.xlu1 %v3579_v41, %s7315_s20  ;;  %3761 = vrot.lane.b32.xlu0 %v3579_v41, %s7316_s21 }
 0x84a   :  { %v3126_v44 = vmax.f32 %v3080_v55, 0.0  ;;  %v8858_v48 = vadd.f32 %v3127_v6, %v8489_v9 }
 0x84c   :  { %v8850_v24 = vadd.f32 %v3126_v44, %v8485_v31  ;;  %v3164_v31 = vadd.f32 %v3163_v3, %v3162_v11  ;;  %v3167_v16 = vsel %vm837_vm1, %v8858_v48, 0.0 }
 0x84d   :  { %3615 = vrot.lane.b32.xlu1 %v8741_v14, %s7314_s19 }
 0x84e   :  { %v3165_v26 = vsel %vm837_vm1, %v8850_v24, 0.0 }
 0x84f   :  { %v3166_v53 = vadd.f32 %v3165_v26, %v3164_v31 }
 0x851   :  { %v3168_v25 = vadd.f32 %v3167_v16, %v3166_v53  ;;  %3729 = vrot.lane.b32.xlu1 %v8688_v22, %s7315_s20 }
 0x855   :  { %v6980_v15 = vpop.f32.mrf.mxu1 }
 0x856   :  { %v3095_v61 = vadd.f32 %v6980_v15, %v8795_v18 }
 0x857   :  { %v3089_v7 = vpop.f32.mrf.mxu1 }
 0x858   :  { %v3090_v58 = vadd.f32 %v8795_v18, %v3089_v7  ;;  %v3129_v34 = vmax.f32 %v3095_v61, 0.0 }
 0x85a   :  { %v3128_v19 = vmax.f32 %v3090_v58, 0.0  ;;  %v8870_v9 = vadd.f32 %v3129_v34, %v8497_v23 }
 0x85c   :  { %v8861_v10 = vadd.f32 %v3128_v19, %v8493_v40  ;;  %v3171_v29 = vsel %vm837_vm1, %v8870_v9, 0.0 }
 0x85e   :  { %v3169_v39 = vsel %vm837_vm1, %v8861_v10, 0.0 }
 0x85f   :  { %v3170_v4 = vadd.f32 %v3169_v39, %v3168_v25 }
 0x861   :  { %v3172_v15 = vadd.f32 %v3171_v29, %v3170_v4 }
 0x866   :  { %v6983_v0 = vpop.f32.mrf.mxu1 }
 0x867   :  { %v3105_v42 = vadd.f32 %v6983_v0, %v8795_v18 }
 0x868   :  { %v3099_v2 = vpop.f32.mrf.mxu1 }
 0x869   :  { %v3100_v63 = vadd.f32 %v8795_v18, %v3099_v2  ;;  %v3131_v36 = vmax.f32 %v3105_v42, 0.0 }
 0x86b   :  { %v3130_v20 = vmax.f32 %v3100_v63, 0.0  ;;  %v8881_v46 = vadd.f32 %v3131_v36, %v8505_v57 }
 0x86d   :  { %v8873_v40 = vadd.f32 %v3130_v20, %v8501_v62  ;;  %v3175_v49 = vsel %vm837_vm1, %v8881_v46, 0.0 }
 0x86f   :  { %v3173_v32 = vsel %vm837_vm1, %v8873_v40, 0.0 }
 0x870   :  { %v3174_v60 = vadd.f32 %v3173_v32, %v3172_v15 }
 0x871   :  { %v6986_v50 = vpop.f32.mrf.mxu1 }
 0x872   :  { %v3115_v45 = vadd.f32 %v6986_v50, %v8795_v18  ;;  %v3176_v30 = vadd.f32 %v3175_v49, %v3174_v60 }
 0x873   :  { %v3109_v47 = vpop.f32.mrf.mxu1 }
 0x874   :  { %v3133_v23 = vmax.f32 %v3115_v45, 0.0  ;;  %v3110_v62 = vadd.f32 %v8795_v18, %v3109_v47 }
 0x876   :  { %v3132_v55 = vmax.f32 %v3110_v62, 0.0  ;;  %v8887_v5 = vadd.f32 %v3133_v23, %v8513_v21 }
 0x878   :  { %v8890_v7 = vadd.f32 %v3132_v55, %v8509_v52  ;;  %v3179_v54 = vsel %vm837_vm1, %v8887_v5, 0.0 }
 0x87a   :  { %v3177_v44 = vsel %vm837_vm1, %v8890_v7, 0.0 }
 0x87b   :  { %v3178_v57 = vadd.f32 %v3177_v44, %v3176_v30 }
 0x87d   :  { %v3180_v18 = vadd.f32 %v3179_v54, %v3178_v57 }
 0x87f   :  { %v3181_v1 = vrot.slane %v3180_v18, 4 }
 0x881   :  { %v3182_v38 = vadd.f32 %v3181_v1, %v3180_v18 }
 0x883   :  { %v3183_v56 = vrot.slane %v3182_v38, 2 }
 0x885   :  { %v3184_v58 = vadd.f32 %v3183_v56, %v3182_v38 }
 0x887   :  { %v3185_v52 = vrot.slane %v3184_v58, 1 }
 0x889   :  { %v3186_v21 = vadd.f32 %v3185_v52, %v3184_v58 }
 0x88b   :  { %v3187_v17 = vmul.f32 0.0078125, %v3186_v21 }
 0x88d   :  { %v8901_v28 = vsub.f32 %v8801_v51, %v3187_v17  ;;  %v8904_v11 = vsub.f32 %v8806_v27, %v3187_v17  ;;  %v8909_v37 = vsub.f32 %v8809_v59, %v3187_v17  ;;  %v8912_v6 = vsub.f32 %v8820_v33, %v3187_v17 }
 0x88e   :  { %v8919_v51 = vsub.f32 %v8823_v13, %v3187_v17  ;;  %v8924_v22 = vsub.f32 %v8835_v12, %v3187_v17  ;;  %v8931_v61 = vsub.f32 %v8838_v35, %v3187_v17  ;;  %v8937_v12 = vsub.f32 %v8847_v8, %v3187_v17 }
 0x88f   :  { %v3204_v19 = vmul.f32 %v8901_v28, %v8901_v28  ;;  %v3205_v14 = vmul.f32 %v8904_v11, %v8904_v11  ;;  %v3206_v27 = vmul.f32 %v8909_v37, %v8909_v37  ;;  %v3207_v59 = vmul.f32 %v8912_v6, %v8912_v6 }
 0x890   :  { %v3208_v13 = vmul.f32 %v8919_v51, %v8919_v51  ;;  %v3209_v2 = vmul.f32 %v8924_v22, %v8924_v22  ;;  %v8943_v34 = vsub.f32 %v8850_v24, %v3187_v17  ;;  %v3210_v35 = vmul.f32 %v8931_v61, %v8931_v61 }
 0x891   :  { %v3220_v33 = vsel %vm837_vm1, %v3204_v19, 0.0  ;;  %v3221_v3 = vsel %vm837_vm1, %v3205_v14, 0.0  ;;  %v3223_v0 = vsel %vm837_vm1, %v3206_v27, 0.0  ;;  %v3225_v53 = vsel %vm837_vm1, %v3207_v59, 0.0 }
 0x892   :  { %v3222_v26 = vadd.f32 %v3221_v3, %v3220_v33  ;;  %v3227_v20 = vsel %vm837_vm1, %v3208_v13, 0.0  ;;  %v8949_v39 = vsub.f32 %v8858_v48, %v3187_v17  ;;  %v3211_v8 = vmul.f32 %v8937_v12, %v8937_v12 }
 0x893   :  { %v3229_v42 = vsel %vm837_vm1, %v3209_v2, 0.0  ;;  %v3198_v4 = vsub.f32 %v8861_v10, %v3187_v17  ;;  %v3212_v24 = vmul.f32 %v8943_v34, %v8943_v34  ;;  %v3231_v36 = vsel %vm837_vm1, %v3210_v35, 0.0 }
 0x894   :  { %v3224_v31 = vadd.f32 %v3223_v0, %v3222_v26  ;;  %v3199_v29 = vsub.f32 %v8870_v9, %v3187_v17  ;;  %v3213_v48 = vmul.f32 %v8949_v39, %v8949_v39  ;;  %v3233_v32 = vsel %vm837_vm1, %v3211_v8, 0.0  ;;  %v3258_v0 = vld [vmem:[%s6258_s28] sm:$0x1]  ;;  %s6271_s28 = sld [smem:[%s10767_s0 + %s7343_s25]]  }
 0x895   :  { %v3200_v15 = vsub.f32 %v8873_v40, %v3187_v17  ;;  %v3214_v47 = vmul.f32 %v3198_v4, %v3198_v4  ;;  %v3235_v23 = vsel %vm837_vm1, %v3212_v24, 0.0  ;;  %v3201_v62 = vsub.f32 %v8881_v46, %v3187_v17 }
 0x896   :  { %v3226_v63 = vadd.f32 %v3225_v53, %v3224_v31  ;;  %v3215_v60 = vmul.f32 %v3199_v29, %v3199_v29  ;;  %v3237_v55 = vsel %vm837_vm1, %v3213_v48, 0.0  ;;  %v3202_v9 = vsub.f32 %v8890_v7, %v3187_v17 }
 0x897   :  { %v3216_v30 = vmul.f32 %v3200_v15, %v3200_v15  ;;  %v3239_v44 = vsel %vm837_vm1, %v3214_v47, 0.0  ;;  %v3203_v54 = vsub.f32 %v8887_v5, %v3187_v17  ;;  %v3217_v18 = vmul.f32 %v3201_v62, %v3201_v62 }
 0x898   :  { %v3228_v16 = vadd.f32 %v3227_v20, %v3226_v63  ;;  %v3241_v40 = vsel %vm837_vm1, %v3215_v60, 0.0  ;;  %v3218_v38 = vmul.f32 %v3202_v9, %v3202_v9 }
 0x899   :  { %v3243_v56 = vsel %vm837_vm1, %v3216_v30, 0.0  ;;  %v3219_v41 = vmul.f32 %v3203_v54, %v3203_v54  ;;  %v3245_v58 = vsel %vm837_vm1, %v3217_v18, 0.0 }
 0x89a   :  { %v3230_v25 = vadd.f32 %v3229_v42, %v3228_v16  ;;  %v3247_v7 = vsel %vm837_vm1, %v3218_v38, 0.0 }
 0x89b   :  { %v3249_v19 = vsel %vm837_vm1, %v3219_v41, 0.0 }
 0x89c   :  { %v3232_v50 = vadd.f32 %v3231_v36, %v3230_v25  ;;  %v6383_v36 = vld [vmem:[%s6259_s2] ss:$0 sm:$0xff]  ;;  %s7344_s2 = smov 33  }
 0x89d   :  { %s10301_s5 = sld [smem:[%s10767_s0 + %s7344_s2]]  }
 0x89e   :  { %v3234_v45 = vadd.f32 %v3233_v32, %v3232_v50 }
 0x8a0   :  { %v3236_v10 = vadd.f32 %v3235_v23, %v3234_v45 }
 0x8a2   :  { %v3238_v49 = vadd.f32 %v3237_v55, %v3236_v10 }
 0x8a4   :  { %v3240_v57 = vadd.f32 %v3239_v44, %v3238_v49 }
 0x8a6   :  { %v3242_v1 = vadd.f32 %v3241_v40, %v3240_v57 }
 0x8a8   :  { %v3244_v46 = vadd.f32 %v3243_v56, %v3242_v1 }
 0x8aa   :  { %v3246_v52 = vadd.f32 %v3245_v58, %v3244_v46 }
 0x8ac   :  { %v3248_v21 = vadd.f32 %v3247_v7, %v3246_v52 }
 0x8ae   :  { %v3250_v14 = vadd.f32 %v3249_v19, %v3248_v21  ;;  %v3581_v19 = vld [vmem:[#allocation3 + $0x88] sm:$0xff] }
 0x8af   :  { %3763 = vrot.lane.b32.xlu0 %v3581_v19, %s7316_s21 }
 0x8b0   :  { %v3251_v27 = vrot.slane %v3250_v14, 4 }
 0x8b2   :  { %v3252_v5 = vadd.f32 %v3251_v27, %v3250_v14  ;;  %v9080_v14 = vld [vmem:[%s6261_s6] ss:$0 sm:$0xff]  ;;  %s7346_s6 = smov 35  }
 0x8b3   :  { %s6276_s9 = sld [smem:[%s10767_s0 + %s7346_s6]]  }
 0x8b4   :  { %v3253_v17 = vrot.slane %v3252_v5, 2 }
 0x8b6   :  { %v3254_v59 = vadd.f32 %v3253_v17, %v3252_v5  ;;  %v3870_v17 = vld [vmem:[%s9078_s10 + $0x48] sm:$0xff] }
 0x8b7   :  { %7019 = vmatprep.subr.mxu1 %v3870_v17 }
 0x8b8   :  { %v3255_v33 = vrot.slane %v3254_v59, 1  ;;  %7020 = vmatpush3.msra.mxu1 %v3870_v17 }
 0x8ba   :  { %v3256_v3 = vadd.f32 %v3255_v33, %v3254_v59  ;;  %v3869_v33 = vld [vmem:[%s9078_s10 + $0x40] sm:$0xff] }
 0x8bb   :  { %7021 = vmatprep.subr.mxu1 %v3869_v33 }
 0x8bc   :  { %v3257_v26 = vmul.f32 0.0078125, %v3256_v3  ;;  %7022 = vmatpush3.msra.mxu1 %v3869_v33 }
 0x8be   :  { %v3259_v13 = vadd.f32 1e-05, %v3257_v26  ;;  %v3868_v26 = vld [vmem:[%s9078_s10 + $0x38] sm:$0xff] }
 0x8bf   :  { %7023 = vmatprep.subr.mxu1 %v3868_v26 }
 0x8c0   :  { %7279 = vrsqrt.f32 %v3259_v13  ;;  %7024 = vmatpush3.msra.mxu1 %v3868_v26 }
 0x8cd   :  { %v7280_v31 = vpop.eup %7279 }
 0x8ce   :  { %v3261_v2 = vmul.f32 %v7280_v31, %v3258_v0 }
 0x8d0   :  { %v3266_v53 = vrot.slane %v3261_v2, %v7906_v43  ;;  %v3867_v2 = vld [vmem:[%s9078_s10 + $0x30] sm:$0xff] }
 0x8d1   :  { %7025 = vmatprep.subr.mxu1 %v3867_v2 }
 0x8d2   :  { %v3268_v63 = vmul.f32 %v3266_v53, %v8901_v28  ;;  %v3269_v35 = vmul.f32 %v3266_v53, %v8904_v11  ;;  %v3270_v20 = vmul.f32 %v3266_v53, %v8909_v37  ;;  %v3271_v16 = vmul.f32 %v3266_v53, %v8912_v6  ;;  %7026 = vmatpush3.msra.mxu1 %v3867_v2  ;;  %v9240_v2 = vpop.permute.xlu1 %3713 }
 0x8d3   :  { %v3272_v8 = vmul.f32 %v3266_v53, %v8919_v51  ;;  %v3273_v42 = vmul.f32 %v3266_v53, %v8924_v22  ;;  %v3274_v25 = vmul.f32 %v3266_v53, %v8931_v61  ;;  %v3275_v24 = vmul.f32 %v3266_v53, %v8937_v12 }
 0x8d4   :  { %v3276_v50 = vmul.f32 %v3266_v53, %v8943_v34  ;;  %v3277_v48 = vmul.f32 %v3266_v53, %v8949_v39  ;;  %v3278_v28 = vmul.f32 %v3266_v53, %v3198_v4  ;;  %v3279_v32 = vmul.f32 %v3266_v53, %v3199_v29 }
 0x8d5   :  { %v3280_v11 = vmul.f32 %v3266_v53, %v3200_v15  ;;  %v3281_v45 = vmul.f32 %v3266_v53, %v3201_v62  ;;  %v3282_v37 = vmul.f32 %v3266_v53, %v3202_v9  ;;  %v3283_v47 = vmul.f32 %v3266_v53, %v3203_v54 }
 0x8d6   :  { %v3292_v6 = vadd.f32 %v6383_v36, %v3269_v35  ;;  %v3293_v23 = vadd.f32 %v6383_v36, %v3270_v20  ;;  %v3294_v51 = vadd.f32 %v6383_v36, %v3271_v16  ;;  %v3295_v10 = vadd.f32 %v6383_v36, %v3272_v8 }
 0x8d7   :  { %v3296_v22 = vadd.f32 %v6383_v36, %v3273_v42  ;;  %v3297_v60 = vadd.f32 %v6383_v36, %v3274_v25  ;;  %v3298_v61 = vadd.f32 %v6383_v36, %v3275_v24  ;;  %v3299_v55 = vadd.f32 %v6383_v36, %v3276_v50  ;;  %v3865_v42 = vld [vmem:[%s9078_s10 + $0x20] sm:$0xff]  ;;  %v3864_v50 = vld [vmem:[%s9078_s10 + $0x18] sm:$0xff] }
 0x8d8   :  { %v3300_v12 = vadd.f32 %v6383_v36, %v3277_v48  ;;  %v3301_v49 = vadd.f32 %v6383_v36, %v3278_v28  ;;  %v3302_v30 = vadd.f32 %v6383_v36, %v3279_v32  ;;  %v3303_v34 = vadd.f32 %v6383_v36, %v3280_v11  ;;  %3308 = vst.msk [vmem:[#allocation2 + $0x8] sm:$0xff] %vm837_vm1, %v3292_v6  ;;  %v3863_v11 = vld [vmem:[%s9078_s10 + $0x10] sm:$0xff] }
 0x8d9   :  { %3309 = vst.msk [vmem:[#allocation2 + $0x10] sm:$0xff] %vm837_vm1, %v3293_v23  ;;  %3310 = vst.msk [vmem:[#allocation2 + $0x18] sm:$0xff] %vm837_vm1, %v3294_v51  ;;  %v3304_v39 = vadd.f32 %v6383_v36, %v3281_v45  ;;  %v3305_v4 = vadd.f32 %v6383_v36, %v3282_v37  ;;  %v3306_v29 = vadd.f32 %v6383_v36, %v3283_v47  ;;  %v3862_v23 = vld [vmem:[%s9078_s10 + $0x8] sm:$0xff] }
 0x8da   :  { %3311 = vst.msk [vmem:[#allocation2 + $0x20] sm:$0xff] %vm837_vm1, %v3295_v10  ;;  %3312 = vst.msk [vmem:[#allocation2 + $0x28] sm:$0xff] %vm837_vm1, %v3296_v22  ;;  %v3291_v15 = vadd.f32 %v6383_v36, %v3268_v63  ;;  %v3866_v63 = vld [vmem:[%s9078_s10 + $0x28] sm:$0xff] }
 0x8db   :  { %3313 = vst.msk [vmem:[#allocation2 + $0x30] sm:$0xff] %vm837_vm1, %v3297_v60  ;;  %3314 = vst.msk [vmem:[#allocation2 + $0x38] sm:$0xff] %vm837_vm1, %v3298_v61  ;;  %7027 = vmatprep.subr.mxu1 %v3866_v63  ;;  %v3861_v60 = vld [vmem:[%s9078_s10] sm:$0xff]  ;;  %s7347_s10 = smov 36  }
 0x8dc   :  { %3315 = vst.msk [vmem:[#allocation2 + $0x40] sm:$0xff] %vm837_vm1, %v3299_v55  ;;  %3317 = vst.msk [vmem:[#allocation2 + $0x50] sm:$0xff] %vm837_vm1, %v3301_v49  ;;  %7028 = vmatpush3.msra.mxu1 %v3866_v63  ;;  %v9244_v63 = vpop.permute.xlu1 %3615  ;;  %s6277_s13 = sld [smem:[%s10767_s0 + %s7347_s10]]  }
 0x8dd   :  { %3318 = vst.msk [vmem:[#allocation2 + $0x58] sm:$0xff] %vm837_vm1, %v3302_v30  ;;  %3319 = vst.msk [vmem:[#allocation2 + $0x60] sm:$0xff] %vm837_vm1, %v3303_v34  ;;  %7029 = vmatprep.subr.mxu1 %v3865_v42 }
 0x8de   :  { %3316 = vst.msk [vmem:[#allocation2 + $0x48] sm:$0xff] %vm837_vm1, %v3300_v12  ;;  %3320 = vst.msk [vmem:[#allocation2 + $0x68] sm:$0xff] %vm837_vm1, %v3304_v39  ;;  %7030 = vmatpush3.msra.mxu1 %v3865_v42 }
 0x8df   :  { %3321 = vst.msk [vmem:[#allocation2 + $0x70] sm:$0xff] %vm837_vm1, %v3305_v4  ;;  %3322 = vst.msk [vmem:[#allocation2 + $0x78] sm:$0xff] %vm837_vm1, %v3306_v29  ;;  %v9007_v62 = vld [vmem:[#allocation2 + $0x8] sm:$0xff]  ;;  %7031 = vmatprep.subr.mxu1 %v3864_v50 }
 0x8e0   :  { %3307 = vst.msk [vmem:[#allocation2] sm:$0xff] %vm837_vm1, %v3291_v15  ;;  %v9015_v44 = vld [vmem:[#allocation2 + $0x10] sm:$0xff]  ;;  %v9019_v57 = vld [vmem:[#allocation2 + $0x18] sm:$0xff]  ;;  %7032 = vmatpush3.msra.mxu1 %v3864_v50 }
 0x8e1   :  { %v9023_v54 = vld [vmem:[#allocation2 + $0x20] sm:$0xff]  ;;  %v9027_v18 = vld [vmem:[#allocation2 + $0x28] sm:$0xff]  ;;  %7033 = vmatprep.subr.mxu1 %v3863_v11 }
 0x8e2   :  { %v9031_v40 = vld [vmem:[#allocation2 + $0x30] sm:$0xff]  ;;  %v9035_v1 = vld [vmem:[#allocation2 + $0x38] sm:$0xff]  ;;  %7034 = vmatpush3.msra.mxu1 %v3863_v11 }
 0x8e3   :  { %v9039_v38 = vld [vmem:[#allocation2 + $0x40] sm:$0xff]  ;;  %v9047_v46 = vld [vmem:[#allocation2 + $0x50] sm:$0xff]  ;;  %7035 = vmatprep.subr.mxu1 %v3862_v23 }
 0x8e4   :  { %v9051_v41 = vld [vmem:[#allocation2 + $0x58] sm:$0xff]  ;;  %v9055_v58 = vld [vmem:[#allocation2 + $0x60] sm:$0xff]  ;;  %7036 = vmatpush3.msra.mxu1 %v3862_v23 }
 0x8e5   :  { %v9043_v56 = vld [vmem:[#allocation2 + $0x48] sm:$0xff]  ;;  %7037 = vmatprep.subr.mxu1 %v3861_v60 }
 0x8e6   :  { %v9059_v52 = vld [vmem:[#allocation2 + $0x68] sm:$0xff]  ;;  %v9063_v7 = vld [vmem:[#allocation2 + $0x70] sm:$0xff]  ;;  %v9067_v21 = vld [vmem:[#allocation2 + $0x78] sm:$0xff]  ;;  %7038 = vmatpush3.msra.mxu1 %v3861_v60 }
 0x8e7   :  { %v9009_v9 = vld [vmem:[#allocation2] sm:$0xff] }
 0x8e8   :  { %6995 = vmatprep.mubr.msk.f32.mxu0 %vm837_vm1, %v9009_v9 }
 0x8e9   :  { %6996 = vmatmul.mubr.msk.f32.vlgmr.msra.gmra.mxu0 %vm837_vm1, %v9007_v62 }
 0x8ea   :  { %6998 = vmatprep.mubr.msk.f32.mxu0 %vm837_vm1, %v9015_v44 }
 0x8ed   :  { %6999 = vmatmul.mubr.msk.f32.gmra.mxu0 %vm837_vm1, %v9019_v57 }
 0x8ee   :  { %7001 = vmatprep.mubr.msk.f32.mxu0 %vm837_vm1, %v9023_v54 }
 0x8f1   :  { %7002 = vmatmul.mubr.msk.f32.gmra.mxu0 %vm837_vm1, %v9027_v18 }
 0x8f2   :  { %7004 = vmatprep.mubr.msk.f32.mxu0 %vm837_vm1, %v9031_v40 }
 0x8f5   :  { %7005 = vmatmul.mubr.msk.f32.gmra.mxu0 %vm837_vm1, %v9035_v1 }
 0x8f6   :  { %7007 = vmatprep.mubr.msk.f32.mxu0 %vm837_vm1, %v9039_v38 }
 0x8f9   :  { %7008 = vmatmul.mubr.msk.f32.gmra.mxu0 %vm837_vm1, %v9043_v56 }
 0x8fa   :  { %7010 = vmatprep.mubr.msk.f32.mxu0 %vm837_vm1, %v9047_v46 }
 0x8fd   :  { %7011 = vmatmul.mubr.msk.f32.gmra.mxu0 %vm837_vm1, %v9051_v41 }
 0x8fe   :  { %7013 = vmatprep.mubr.msk.f32.mxu0 %vm837_vm1, %v9055_v58 }
 0x901   :  { %7014 = vmatmul.mubr.msk.f32.gmra.mxu0 %vm837_vm1, %v9059_v52 }
 0x902   :  { %7016 = vmatprep.mubr.msk.f32.mxu0 %vm837_vm1, %v9063_v7 }
 0x905   :  { %7017 = vmatmul.mubr.msk.f32.gmra.mxu0 %vm837_vm1, %v9067_v21 }
 0x9a9   :  { %v6997_v27 = vpop.f32.mrf.mxu0 }
 0x9aa   :  { %v3470_v5 = vadd.f32 %v6997_v27, %v9080_v14 }
 0x9ab   :  { %v3464_v59 = vpop.f32.mrf.mxu0 }
 0x9ac   :  { %3544 = vst.msk [vmem:[#allocation3 + $0x48] sm:$0xff] %vm154_vm0, %v3470_v5  ;;  %v3465_v3 = vadd.f32 %v9080_v14, %v3464_v59 }
 0x9ad   :  { %v7000_v13 = vpop.f32.mrf.mxu0 }
 0x9ae   :  { %3543 = vst.msk [vmem:[#allocation3 + $0x40] sm:$0xff] %vm154_vm0, %v3465_v3  ;;  %v3480_v0 = vadd.f32 %v7000_v13, %v9080_v14 }
 0x9af   :  { %v3474_v31 = vpop.f32.mrf.mxu0 }
 0x9b0   :  { %3546 = vst.msk [vmem:[#allocation3 + $0x58] sm:$0xff] %vm154_vm0, %v3480_v0  ;;  %v3475_v53 = vadd.f32 %v9080_v14, %v3474_v31 }
 0x9b1   :  { %v7003_v35 = vpop.f32.mrf.mxu0 }
 0x9b2   :  { %3545 = vst.msk [vmem:[#allocation3 + $0x50] sm:$0xff] %vm154_vm0, %v3475_v53  ;;  %v3490_v20 = vadd.f32 %v7003_v35, %v9080_v14  ;;  %v3600_v53 = vpop.permute.xlu0 %3599 }
 0x9b3   :  { %v3484_v16 = vpop.f32.mrf.mxu0  ;;  %v9096_v8 = vld [vmem:[#allocation3 + $0x48] sm:$0xff] }
 0x9b4   :  { %3548 = vst.msk [vmem:[#allocation3 + $0x68] sm:$0xff] %vm154_vm0, %v3490_v20  ;;  %v3485_v25 = vadd.f32 %v9080_v14, %v3484_v16  ;;  %3699 = vrot.lane.b32.xlu0 %v9096_v8, %s7315_s20  ;;  %3651 = vrot.lane.b32.xlu1 %v9096_v8, %s7313_s18  ;;  %v9252_v16 = vpop.permute.xlu1 %3729 }
 0x9b5   :  { %v7006_v24 = vpop.f32.mrf.mxu0  ;;  %v9108_v28 = vld [vmem:[#allocation3 + $0x40] sm:$0xff] }
 0x9b6   :  { %3547 = vst.msk [vmem:[#allocation3 + $0x60] sm:$0xff] %vm154_vm0, %v3485_v25  ;;  %v3500_v36 = vadd.f32 %v7006_v24, %v9080_v14  ;;  %v9246_v35 = vpop.permute.xlu0 %3761  ;;  %v9256_v25 = vld [vmem:[#allocation3 + $0x148] sm:$0xff]  ;;  %v7298_v24 = vld [vmem:[#allocation3 + $0x140] sm:$0xff] }
 0x9b7   :  { %v3494_v48 = vpop.f32.mrf.mxu0  ;;  %v9119_v6 = vld [vmem:[#allocation3 + $0x58] sm:$0xff] }
 0x9b8   :  { %3550 = vst.msk [vmem:[#allocation3 + $0x78] sm:$0xff] %vm154_vm0, %v3500_v36  ;;  %v3495_v32 = vadd.f32 %v9080_v14, %v3494_v48  ;;  %3603 = vrot.lane.b32.xlu1 %v9096_v8, %s7314_s19  ;;  %3649 = vrot.lane.b32.xlu0 %v9108_v28, %s7313_s18  ;;  %v3559_v48 = vld [vmem:[#allocation3 + $0x30] sm:$0xff] }
 0x9b9   :  { %v7009_v45 = vpop.f32.mrf.mxu0  ;;  %v9139_v34 = vld [vmem:[#allocation3 + $0x50] sm:$0xff] }
 0x9ba   :  { %3549 = vst.msk [vmem:[#allocation3 + $0x70] sm:$0xff] %vm154_vm0, %v3495_v32  ;;  %v3510_v37 = vadd.f32 %v7009_v45, %v9080_v14  ;;  %v9254_v42 = vpop.permute.xlu0 %3763 }
 0x9bb   :  { %v3504_v47 = vpop.f32.mrf.mxu0  ;;  %v9156_v27 = vld [vmem:[#allocation3 + $0x68] sm:$0xff] }
 0x9bc   :  { %3552 = vst.msk [vmem:[#allocation3 + $0x108] sm:$0xff] %vm154_vm0, %v3510_v37  ;;  %v3505_v51 = vadd.f32 %v9080_v14, %v3504_v47  ;;  %3751 = vrot.lane.b32.xlu0 %v9119_v6, %s7316_s21  ;;  %3601 = vrot.lane.b32.xlu1 %v9108_v28, %s7314_s19  ;;  %v3797_v47 = vsel %vm154_vm0, %v3559_v48, %v3600_v53 }
 0x9bd   :  { %v7012_v10 = vpop.f32.mrf.mxu0 }
 0x9be   :  { %3551 = vst.msk [vmem:[#allocation3 + $0x100] sm:$0xff] %vm154_vm0, %v3505_v51  ;;  %v3520_v22 = vadd.f32 %v7012_v10, %v9080_v14 }
 0x9bf   :  { %v3514_v61 = vpop.f32.mrf.mxu0  ;;  %v3577_v5 = vld [vmem:[#allocation3 + $0x78] sm:$0xff] }
 0x9c0   :  { %3554 = vst.msk [vmem:[#allocation3 + $0x118] sm:$0xff] %vm154_vm0, %v3520_v22  ;;  %v3515_v55 = vadd.f32 %v9080_v14, %v3514_v61  ;;  %3703 = vrot.lane.b32.xlu0 %v9119_v6, %s7315_s20  ;;  %3655 = vrot.lane.b32.xlu1 %v9119_v6, %s7313_s18 }
 0x9c1   :  { %v7015_v12 = vpop.f32.mrf.mxu0  ;;  %v3575_v17 = vld [vmem:[#allocation3 + $0x70] sm:$0xff] }
 0x9c2   :  { %3553 = vst.msk [vmem:[#allocation3 + $0x110] sm:$0xff] %vm154_vm0, %v3515_v55  ;;  %v3530_v49 = vadd.f32 %v7015_v12, %v9080_v14  ;;  %v7299_v55 = vld [vmem:[#allocation3 + $0x38] sm:$0xff] }
 0x9c3   :  { %v3524_v30 = vpop.f32.mrf.mxu0  ;;  %v9185_v59 = vld [vmem:[#allocation3 + $0x108] sm:$0xff] }
 0x9c4   :  { %3556 = vst.msk [vmem:[#allocation3 + $0x128] sm:$0xff] %vm154_vm0, %v3530_v49  ;;  %v3525_v39 = vadd.f32 %v9080_v14, %v3524_v30  ;;  %3749 = vrot.lane.b32.xlu0 %v9139_v34, %s7316_s21  ;;  %3607 = vrot.lane.b32.xlu1 %v9119_v6, %s7314_s19 }
 0x9c5   :  { %v7018_v4 = vpop.f32.mrf.mxu0  ;;  %v9191_v33 = vld [vmem:[#allocation3 + $0x100] sm:$0xff] }
 0x9c6   :  { %3555 = vst.msk [vmem:[#allocation3 + $0x120] sm:$0xff] %vm154_vm0, %v3525_v39  ;;  %v3540_v29 = vadd.f32 %v7018_v4, %v9080_v14 }
 0x9c7   :  { %v3534_v15 = vpop.f32.mrf.mxu0  ;;  %v9197_v3 = vld [vmem:[#allocation3 + $0x118] sm:$0xff] }
 0x9c8   :  { %3558 = vst.msk [vmem:[#allocation3 + $0x138] sm:$0xff] %vm154_vm0, %v3540_v29  ;;  %v3535_v19 = vadd.f32 %v9080_v14, %v3534_v15  ;;  %3653 = vrot.lane.b32.xlu0 %v9139_v34, %s7313_s18  ;;  %3701 = vrot.lane.b32.xlu1 %v9139_v34, %s7315_s20  ;;  %v9166_v14 = vld [vmem:[#allocation3 + $0x60] sm:$0xff] }
 0x9c9   :  { %v9207_v26 = vld [vmem:[#allocation3 + $0x110] sm:$0xff] }
 0x9ca   :  { %3557 = vst.msk [vmem:[#allocation3 + $0x130] sm:$0xff] %vm154_vm0, %v3535_v19 }
 0x9cb   :  { %v9217_v13 = vld [vmem:[#allocation3 + $0x128] sm:$0xff] }
 0x9cc   :  { %3755 = vrot.lane.b32.xlu0 %v9156_v27, %s7316_s21  ;;  %3605 = vrot.lane.b32.xlu1 %v9139_v34, %s7314_s19 }
 0x9cd   :  { %v9227_v0 = vld [vmem:[#allocation3 + $0x120] sm:$0xff] }
 0x9cf   :  { %v3578_v31 = vld [vmem:[#allocation3 + $0x138] sm:$0xff] }
 0x9d0   :  { %3707 = vrot.lane.b32.xlu0 %v9156_v27, %s7315_s20  ;;  %3659 = vrot.lane.b32.xlu1 %v9156_v27, %s7313_s18 }
 0x9d1   :  { %v3576_v20 = vld [vmem:[#allocation3 + $0x130] sm:$0xff] }
 0x9d4   :  { %3753 = vrot.lane.b32.xlu0 %v9166_v14, %s7316_s21  ;;  %3611 = vrot.lane.b32.xlu1 %v9156_v27, %s7314_s19 }
 0x9d8   :  { %3657 = vrot.lane.b32.xlu0 %v9166_v14, %s7313_s18  ;;  %3705 = vrot.lane.b32.xlu1 %v9166_v14, %s7315_s20 }
 0x9dc   :  { %3759 = vrot.lane.b32.xlu0 %v3577_v5, %s7316_s21  ;;  %3609 = vrot.lane.b32.xlu1 %v9166_v14, %s7314_s19 }
 0x9e0   :  { %3711 = vrot.lane.b32.xlu0 %v3577_v5, %s7315_s20  ;;  %3663 = vrot.lane.b32.xlu1 %v3577_v5, %s7313_s18 }
 0x9e4   :  { %3757 = vrot.lane.b32.xlu0 %v3575_v17, %s7316_s21  ;;  %3709 = vrot.lane.b32.xlu1 %v3575_v17, %s7315_s20 }
 0x9e8   :  { %3661 = vrot.lane.b32.xlu0 %v3575_v17, %s7313_s18  ;;  %3613 = vrot.lane.b32.xlu1 %v3575_v17, %s7314_s19 }
 0x9ec   :  { %3715 = vrot.lane.b32.xlu0 %v9185_v59, %s7315_s20  ;;  %3667 = vrot.lane.b32.xlu1 %v9185_v59, %s7313_s18 }
 0x9f0   :  { %3665 = vrot.lane.b32.xlu0 %v9191_v33, %s7313_s18  ;;  %3619 = vrot.lane.b32.xlu1 %v9185_v59, %s7314_s19 }
 0x9f4   :  { %3767 = vrot.lane.b32.xlu0 %v9197_v3, %s7316_s21  ;;  %3617 = vrot.lane.b32.xlu1 %v9191_v33, %s7314_s19 }
 0x9f8   :  { %3719 = vrot.lane.b32.xlu0 %v9197_v3, %s7315_s20  ;;  %3671 = vrot.lane.b32.xlu1 %v9197_v3, %s7313_s18 }
 0x9fc   :  { %3765 = vrot.lane.b32.xlu0 %v9207_v26, %s7316_s21  ;;  %3623 = vrot.lane.b32.xlu1 %v9197_v3, %s7314_s19 }
 0xa00   :  { %3669 = vrot.lane.b32.xlu0 %v9207_v26, %s7313_s18  ;;  %3717 = vrot.lane.b32.xlu1 %v9207_v26, %s7315_s20 }
 0xa04   :  { %3771 = vrot.lane.b32.xlu0 %v9217_v13, %s7316_s21  ;;  %3621 = vrot.lane.b32.xlu1 %v9207_v26, %s7314_s19 }
 0xa08   :  { %3723 = vrot.lane.b32.xlu0 %v9217_v13, %s7315_s20  ;;  %3675 = vrot.lane.b32.xlu1 %v9217_v13, %s7313_s18 }
 0xa0c   :  { %3769 = vrot.lane.b32.xlu0 %v9227_v0, %s7316_s21  ;;  %3627 = vrot.lane.b32.xlu1 %v9217_v13, %s7314_s19 }
 0xa10   :  { %3673 = vrot.lane.b32.xlu0 %v9227_v0, %s7313_s18  ;;  %3721 = vrot.lane.b32.xlu1 %v9227_v0, %s7315_s20 }
 0xa14   :  { %3775 = vrot.lane.b32.xlu0 %v3578_v31, %s7316_s21  ;;  %3625 = vrot.lane.b32.xlu1 %v9227_v0, %s7314_s19 }
 0xa18   :  { %3727 = vrot.lane.b32.xlu0 %v3578_v31, %s7315_s20  ;;  %3679 = vrot.lane.b32.xlu1 %v3578_v31, %s7313_s18 }
 0xa1c   :  { %3773 = vrot.lane.b32.xlu0 %v3576_v20, %s7316_s21  ;;  %3725 = vrot.lane.b32.xlu1 %v3576_v20, %s7315_s20 }
 0xa20   :  { %3677 = vrot.lane.b32.xlu0 %v3576_v20, %s7313_s18  ;;  %3629 = vrot.lane.b32.xlu1 %v3576_v20, %s7314_s19 }
 0xa24   :  { %3777 = vrot.lane.b32.xlu0 %v7298_v24, %s7316_s21  ;;  %3779 = vrot.lane.b32.xlu1 %v9256_v25, %s7316_s21 }
 0xa26   :  { %v3700_v36 = vpop.permute.xlu0 %3699  ;;  %v3652_v50 = vpop.permute.xlu1 %3651 }
 0xa28   :  { %4560 = vrot.lane.b32.xlu0 %v3559_v48, %s7314_s19 }
 0xa2a   :  { %v3604_v32 = vpop.permute.xlu1 %3603  ;;  %v3650_v11 = vpop.permute.xlu0 %3649 }
 0xa2b   :  { %v3813_v10 = vsel %vm837_vm1, %v3797_v47, %v3650_v11  ;;  %v3799_v17 = vsel %vm154_vm0, %v9108_v28, %v3604_v32 }
 0xa2c   :  { %v3829_v22 = vsel %vm854_vm2, %v3813_v10, %v3700_v36 }
 0xa2e   :  { %v3752_v45 = vpop.permute.xlu0 %3751  ;;  %v3602_v37 = vpop.permute.xlu1 %3601 }
 0xa2f   :  { %v3798_v12 = vsel %vm154_vm0, %v7299_v55, %v3602_v37 }
 0xa30   :  { %v3814_v39 = vsel %vm837_vm1, %v3798_v12, %v3652_v50 }
 0xa32   :  { %v3704_v23 = vpop.permute.xlu0 %3703  ;;  %v3656_v51 = vpop.permute.xlu1 %3655 }
 0xa36   :  { %v3750_v60 = vpop.permute.xlu0 %3749  ;;  %v3608_v61 = vpop.permute.xlu1 %3607 }
 0xa37   :  { %v3845_v49 = vsel %vm871_vm3, %v3829_v22, %v3750_v60  ;;  %v3801_v22 = vsel %vm154_vm0, %v9139_v34, %v3608_v61 }
 0xa38   :  { %7039 = vmatprep.mubr.msk.f32.mxu1 %vm905_vm4, %v3845_v49 }
 0xa3a   :  { %v3654_v30 = vpop.permute.xlu0 %3653  ;;  %v3702_v4 = vpop.permute.xlu1 %3701 }
 0xa3b   :  { %v3830_v29 = vsel %vm854_vm2, %v3814_v39, %v3702_v4  ;;  %v3815_v20 = vsel %vm837_vm1, %v3799_v17, %v3654_v30 }
 0xa3c   :  { %v3846_v15 = vsel %vm871_vm3, %v3830_v29, %v3752_v45  ;;  %v3831_v36 = vsel %vm854_vm2, %v3815_v20, %v3704_v23 }
 0xa3d   :  { %7040 = vmatmul.mubr.msk.f32.vlgmr.msra.gmra.mxu1 %vm905_vm4, %v3846_v15 }
 0xa3e   :  { %v3756_v19 = vpop.permute.xlu0 %3755  ;;  %v3606_v5 = vpop.permute.xlu1 %3605 }
 0xa3f   :  { %v3800_v48 = vsel %vm154_vm0, %v9096_v8, %v3606_v5 }
 0xa40   :  { %v3816_v37 = vsel %vm837_vm1, %v3800_v48, %v3656_v51 }
 0xa42   :  { %v3708_v31 = vpop.permute.xlu0 %3707  ;;  %v3660_v53 = vpop.permute.xlu1 %3659 }
 0xa46   :  { %v3754_v24 = vpop.permute.xlu0 %3753  ;;  %v3612_v50 = vpop.permute.xlu1 %3611 }
 0xa47   :  { %v3847_v11 = vsel %vm871_vm3, %v3831_v36, %v3754_v24  ;;  %v3803_v61 = vsel %vm154_vm0, %v9166_v14, %v3612_v50 }
 0xa48   :  { %7042 = vmatprep.mubr.msk.f32.mxu1 %vm905_vm4, %v3847_v11 }
 0xa4a   :  { %v3658_v45 = vpop.permute.xlu0 %3657  ;;  %v3706_v47 = vpop.permute.xlu1 %3705 }
 0xa4b   :  { %v3832_v28 = vsel %vm854_vm2, %v3816_v37, %v3706_v47  ;;  %v3817_v55 = vsel %vm837_vm1, %v3801_v22, %v3658_v45  ;;  %v9311_v45 = vld [vmem:[#allocation3 + $0xf0] sm:$0xff] }
 0xa4c   :  { %v3848_v32 = vsel %vm871_vm3, %v3832_v28, %v3756_v19  ;;  %v3833_v49 = vsel %vm854_vm2, %v3817_v55, %v3708_v31 }
 0xa4d   :  { %7043 = vmatmul.mubr.msk.f32.gmra.mxu1 %vm905_vm4, %v3848_v32 }
 0xa4e   :  { %v3760_v10 = vpop.permute.xlu0 %3759  ;;  %v3610_v23 = vpop.permute.xlu1 %3609 }
 0xa4f   :  { %v3802_v12 = vsel %vm154_vm0, %v9119_v6, %v3610_v23 }
 0xa50   :  { %v3818_v30 = vsel %vm837_vm1, %v3802_v12, %v3660_v53 }
 0xa52   :  { %v3712_v8 = vpop.permute.xlu0 %3711  ;;  %v3664_v60 = vpop.permute.xlu1 %3663 }
 0xa56   :  { %v3758_v51 = vpop.permute.xlu0 %3757  ;;  %v3710_v39 = vpop.permute.xlu1 %3709 }
 0xa57   :  { %v3849_v4 = vsel %vm871_vm3, %v3833_v49, %v3758_v51  ;;  %v3834_v29 = vsel %vm854_vm2, %v3818_v30, %v3710_v39 }
 0xa58   :  { %7045 = vmatprep.mubr.msk.f32.mxu1 %vm905_vm4, %v3849_v4  ;;  %v3850_v34 = vsel %vm871_vm3, %v3834_v29, %v3760_v10  ;;  %v7300_v10 = vld [vmem:[#allocation3 + $0xf8] sm:$0xff] }
 0xa59   :  { %7046 = vmatmul.mubr.msk.f32.gmra.mxu1 %vm905_vm4, %v3850_v34 }
 0xa5a   :  { %v3662_v6 = vpop.permute.xlu0 %3661  ;;  %v3614_v15 = vpop.permute.xlu1 %3613 }
 0xa5b   :  { %v3819_v19 = vsel %vm837_vm1, %v3803_v61, %v3662_v6  ;;  %v3804_v5 = vsel %vm154_vm0, %v9156_v27, %v3614_v15 }
 0xa5c   :  { %v3835_v17 = vsel %vm854_vm2, %v3819_v19, %v3712_v8  ;;  %v3820_v31 = vsel %vm837_vm1, %v3804_v5, %v3664_v60 }
 0xa5d   :  { %v3851_v53 = vsel %vm871_vm3, %v3835_v17, %v9246_v35  ;;  %v3836_v20 = vsel %vm854_vm2, %v3820_v31, %v9240_v2  ;;  %v3805_v35 = vsel %vm154_vm0, %v9311_v45, %v9244_v63 }
 0xa5e   :  { %v3716_v24 = vpop.permute.xlu0 %3715  ;;  %v3668_v36 = vpop.permute.xlu1 %3667  ;;  %7048 = vmatprep.mubr.msk.f32.mxu1 %vm905_vm4, %v3851_v53  ;;  %v3852_v14 = vsel %vm871_vm3, %v3836_v20, %v9254_v42 }
 0xa5f   :  { %7049 = vmatmul.mubr.msk.f32.gmra.mxu1 %vm905_vm4, %v3852_v14 }
 0xa62   :  { %v3666_v27 = vpop.permute.xlu0 %3665  ;;  %v3620_v50 = vpop.permute.xlu1 %3619 }
 0xa63   :  { %v3821_v47 = vsel %vm837_vm1, %v3805_v35, %v3666_v27  ;;  %v3807_v30 = vsel %vm154_vm0, %v9191_v33, %v3620_v50 }
 0xa64   :  { %v3837_v28 = vsel %vm854_vm2, %v3821_v47, %v3716_v24 }
 0xa66   :  { %v3768_v48 = vpop.permute.xlu0 %3767  ;;  %v3618_v11 = vpop.permute.xlu1 %3617 }
 0xa67   :  { %v3806_v23 = vsel %vm154_vm0, %v7300_v10, %v3618_v11 }
 0xa68   :  { %v3822_v60 = vsel %vm837_vm1, %v3806_v23, %v3668_v36 }
 0xa6a   :  { %v3720_v2 = vpop.permute.xlu0 %3719  ;;  %v3672_v37 = vpop.permute.xlu1 %3671 }
 0xa6e   :  { %v3766_v32 = vpop.permute.xlu0 %3765  ;;  %v3624_v42 = vpop.permute.xlu1 %3623 }
 0xa6f   :  { %v3853_v22 = vsel %vm871_vm3, %v3837_v28, %v3766_v32  ;;  %v3809_v36 = vsel %vm154_vm0, %v9207_v26, %v3624_v42 }
 0xa70   :  { %7051 = vmatprep.mubr.msk.f32.mxu1 %vm905_vm4, %v3853_v22 }
 0xa72   :  { %v3670_v8 = vpop.permute.xlu0 %3669  ;;  %v3718_v55 = vpop.permute.xlu1 %3717 }
 0xa73   :  { %v3838_v63 = vsel %vm854_vm2, %v3822_v60, %v3718_v55  ;;  %v3823_v29 = vsel %vm837_vm1, %v3807_v30, %v3670_v8 }
 0xa74   :  { %v3854_v12 = vsel %vm871_vm3, %v3838_v63, %v3768_v48  ;;  %v3839_v61 = vsel %vm854_vm2, %v3823_v29, %v3720_v2 }
 0xa75   :  { %7052 = vmatmul.mubr.msk.f32.gmra.mxu1 %vm905_vm4, %v3854_v12 }
 0xa76   :  { %v3772_v51 = vpop.permute.xlu0 %3771  ;;  %v3622_v49 = vpop.permute.xlu1 %3621 }
 0xa77   :  { %v3808_v15 = vsel %vm154_vm0, %v9185_v59, %v3622_v49 }
 0xa78   :  { %v3824_v17 = vsel %vm837_vm1, %v3808_v15, %v3672_v37 }
 0xa7a   :  { %v3724_v39 = vpop.permute.xlu0 %3723  ;;  %v3676_v4 = vpop.permute.xlu1 %3675 }
 0xa7e   :  { %v3770_v34 = vpop.permute.xlu0 %3769  ;;  %v3628_v6 = vpop.permute.xlu1 %3627 }
 0xa7f   :  { %v3855_v19 = vsel %vm871_vm3, %v3839_v61, %v3770_v34  ;;  %v3811_v28 = vsel %vm154_vm0, %v9227_v0, %v3628_v6 }
 0xa80   :  { %7054 = vmatprep.mubr.msk.f32.mxu1 %vm905_vm4, %v3855_v19 }
 0xa82   :  { %v3674_v5 = vpop.permute.xlu0 %3673  ;;  %v3722_v31 = vpop.permute.xlu1 %3721 }
 0xa83   :  { %v3840_v33 = vsel %vm854_vm2, %v3824_v17, %v3722_v31  ;;  %v3825_v27 = vsel %vm837_vm1, %v3809_v36, %v3674_v5 }
 0xa84   :  { %v3856_v53 = vsel %vm871_vm3, %v3840_v33, %v3772_v51  ;;  %v3841_v11 = vsel %vm854_vm2, %v3825_v27, %v3724_v39  ;;  %v9365_v51 = vld [vmem:[%s6263_s14] ss:$0 sm:$0xff]  ;;  %s7348_s14 = smov 37  }
 0xa85   :  { %7055 = vmatmul.mubr.msk.f32.gmra.mxu1 %vm905_vm4, %v3856_v53  ;;  %s10721_s17 = sld [smem:[%s10767_s0 + %s7348_s14]]  }
 0xa86   :  { %v3776_v20 = vpop.permute.xlu0 %3775  ;;  %v3626_v24 = vpop.permute.xlu1 %3625 }
 0xa87   :  { %v3810_v50 = vsel %vm154_vm0, %v9197_v3, %v3626_v24 }
 0xa88   :  { %v3826_v35 = vsel %vm837_vm1, %v3810_v50, %v3676_v4 }
 0xa8a   :  { %v3728_v59 = vpop.permute.xlu0 %3727  ;;  %v3680_v14 = vpop.permute.xlu1 %3679 }
 0xa8e   :  { %v3774_v48 = vpop.permute.xlu0 %3773  ;;  %v3726_v2 = vpop.permute.xlu1 %3725 }
 0xa8f   :  { %v3857_v37 = vsel %vm871_vm3, %v3841_v11, %v3774_v48  ;;  %v3842_v47 = vsel %vm854_vm2, %v3826_v35, %v3726_v2 }
 0xa90   :  { %7057 = vmatprep.mubr.msk.f32.mxu1 %vm905_vm4, %v3857_v37  ;;  %v3858_v26 = vsel %vm871_vm3, %v3842_v47, %v3776_v20 }
 0xa91   :  { %7058 = vmatmul.mubr.msk.f32.gmra.mxu1 %vm905_vm4, %v3858_v26 }
 0xa92   :  { %v3678_v3 = vpop.permute.xlu0 %3677  ;;  %v3630_v32 = vpop.permute.xlu1 %3629 }
 0xa93   :  { %v3827_v42 = vsel %vm837_vm1, %v3811_v28, %v3678_v3  ;;  %v3812_v10 = vsel %vm154_vm0, %v9217_v13, %v3630_v32 }
 0xa94   :  { %v3828_v23 = vsel %vm837_vm1, %v3812_v10, %v3680_v14  ;;  %v3843_v60 = vsel %vm854_vm2, %v3827_v42, %v3728_v59 }
 0xa95   :  { %v3844_v22 = vsel %vm854_vm2, %v3828_v23, %v9252_v16 }
 0xa96   :  { %v3778_v8 = vpop.permute.xlu0 %3777  ;;  %v3780_v55 = vpop.permute.xlu1 %3779 }
 0xa97   :  { %v3859_v63 = vsel %vm871_vm3, %v3843_v60, %v3778_v8  ;;  %v3860_v0 = vsel %vm871_vm3, %v3844_v22, %v3780_v55  ;;  %v4295_v55 = vld [vmem:[%s6266_s22 + $0x18] sm:$0xff] }
 0xa98   :  { %7060 = vmatprep.mubr.msk.f32.mxu1 %vm905_vm4, %v3859_v63  ;;  %v4294_v63 = vld [vmem:[%s6266_s22 + $0x10] sm:$0xff]  ;;  %7063 = vmatprep.subr.mxu0 %v4295_v55 }
 0xa99   :  { %7061 = vmatmul.mubr.msk.f32.gmra.mxu1 %vm905_vm4, %v3860_v0  ;;  %7064 = vmatpush3.msra.mxu0 %v4295_v55 }
 0xa9a   :  { %7065 = vmatprep.subr.mxu0 %v4294_v63 }
 0xa9b   :  { %7066 = vmatpush3.msra.mxu0 %v4294_v63 }
 0xafd   :  { %v7041_v12 = vpop.f32.mrf.mxu1 }
 0xafe   :  { %v3998_v4 = vadd.f32 %v7041_v12, %v9365_v51 }
 0xaff   :  { %v3992_v13 = vpop.f32.mrf.mxu1 }
 0xb00   :  { %v3993_v30 = vadd.f32 %v9365_v51, %v3992_v13  ;;  %v4072_v6 = vmax.f32 %v3998_v4, 0.0  ;;  %v4292_v4 = vld [vmem:[%s6266_s22] sm:$0xff] }
 0xb02   :  { %v4071_v34 = vmax.f32 %v3993_v30, 0.0  ;;  %v9376_v33 = vadd.f32 %v4072_v6, %v9007_v62 }
 0xb04   :  { %v9371_v5 = vadd.f32 %v4071_v34, %v9009_v9  ;;  %v4104_v9 = vsel %vm837_vm1, %v9376_v33, 0.0 }
 0xb06   :  { %v4103_v24 = vsel %vm837_vm1, %v9371_v5, 0.0 }
 0xb07   :  { %v4105_v48 = vadd.f32 %v4104_v9, %v4103_v24 }
 0xb0d   :  { %v7044_v16 = vpop.f32.mrf.mxu1 }
 0xb0e   :  { %v4008_v17 = vadd.f32 %v7044_v16, %v9365_v51  ;;  %v4293_v16 = vld [vmem:[%s6266_s22 + $0x8] sm:$0xff] }
 0xb0f   :  { %v4002_v49 = vpop.f32.mrf.mxu1  ;;  %7067 = vmatprep.subr.mxu0 %v4293_v16 }
 0xb10   :  { %v4003_v29 = vadd.f32 %v9365_v51, %v4002_v49  ;;  %v4074_v36 = vmax.f32 %v4008_v17, 0.0  ;;  %7068 = vmatpush3.msra.mxu0 %v4293_v16 }
 0xb11   :  { %7069 = vmatprep.subr.mxu0 %v4292_v4 }
 0xb12   :  { %v4073_v15 = vmax.f32 %v4003_v29, 0.0  ;;  %7070 = vmatpush3.msra.mxu0 %v4292_v4 }
 0xb14   :  { %v9379_v53 = vadd.f32 %v4073_v15, %v9015_v44  ;;  %v9390_v44 = vadd.f32 %v4074_v36, %v9019_v57 }
 0xb16   :  { %v4106_v27 = vsel %vm837_vm1, %v9379_v53, 0.0  ;;  %v4108_v26 = vsel %vm837_vm1, %v9390_v44, 0.0 }
 0xb17   :  { %v4107_v35 = vadd.f32 %v4106_v27, %v4105_v48 }
 0xb19   :  { %v7047_v39 = vpop.f32.mrf.mxu1  ;;  %v4109_v3 = vadd.f32 %v4108_v26, %v4107_v35 }
 0xb1a   :  { %v4018_v50 = vadd.f32 %v7047_v39, %v9365_v51 }
 0xb1b   :  { %v4012_v61 = vpop.f32.mrf.mxu1 }
 0xb1c   :  { %v4013_v31 = vadd.f32 %v9365_v51, %v4012_v61  ;;  %v4076_v37 = vmax.f32 %v4018_v50, 0.0 }
 0xb1e   :  { %v4075_v59 = vmax.f32 %v4013_v31, 0.0  ;;  %v9405_v32 = vadd.f32 %v4076_v37, %v9027_v18 }
 0xb1f   :  { %v7050_v19 = vpop.f32.mrf.mxu1 }
 0xb20   :  { %v9393_v11 = vadd.f32 %v4075_v59, %v9023_v54  ;;  %v4028_v57 = vadd.f32 %v7050_v19, %v9365_v51  ;;  %v4112_v0 = vsel %vm837_vm1, %v9405_v32, 0.0 }
 0xb21   :  { %v4022_v20 = vpop.f32.mrf.mxu1 }
 0xb22   :  { %v4023_v62 = vadd.f32 %v9365_v51, %v4022_v20  ;;  %v4110_v28 = vsel %vm837_vm1, %v9393_v11, 0.0  ;;  %v4078_v22 = vmax.f32 %v4028_v57, 0.0 }
 0xb23   :  { %v4111_v10 = vadd.f32 %v4110_v28, %v4109_v3 }
 0xb24   :  { %v4077_v47 = vmax.f32 %v4023_v62, 0.0  ;;  %v9417_v49 = vadd.f32 %v4078_v22, %v9035_v1 }
 0xb26   :  { %v9408_v42 = vadd.f32 %v4077_v47, %v9031_v40  ;;  %v4113_v40 = vadd.f32 %v4112_v0, %v4111_v10  ;;  %v4116_v61 = vsel %vm837_vm1, %v9417_v49, 0.0 }
 0xb28   :  { %v4114_v12 = vsel %vm837_vm1, %v9408_v42, 0.0 }
 0xb29   :  { %v4115_v39 = vadd.f32 %v4114_v12, %v4113_v40 }
 0xb2b   :  { %v4117_v15 = vadd.f32 %v4116_v61, %v4115_v39 }
 0xb35   :  { %v7053_v14 = vpop.f32.mrf.mxu1 }
 0xb36   :  { %v4038_v13 = vadd.f32 %v7053_v14, %v9365_v51 }
 0xb37   :  { %v4032_v2 = vpop.f32.mrf.mxu1 }
 0xb38   :  { %v4033_v54 = vadd.f32 %v9365_v51, %v4032_v2  ;;  %v4080_v29 = vmax.f32 %v4038_v13, 0.0  ;;  %v4536_v13 = vld [vmem:[#allocation3 + $0x80] sm:$0xff] }
 0xb39   :  { %4724 = vrot.lane.b32.xlu0 %v4536_v13, %s7316_s21 }
 0xb3a   :  { %v4079_v8 = vmax.f32 %v4033_v54, 0.0 }
 0xb3c   :  { %v9420_v30 = vadd.f32 %v4079_v8, %v9039_v38  ;;  %v9428_v38 = vadd.f32 %v4080_v29, %v9043_v56 }
 0xb3e   :  { %v4118_v6 = vsel %vm837_vm1, %v9420_v30, 0.0  ;;  %v4120_v36 = vsel %vm837_vm1, %v9428_v38, 0.0 }
 0xb3f   :  { %v4119_v17 = vadd.f32 %v4118_v6, %v4117_v15 }
 0xb41   :  { %v4121_v27 = vadd.f32 %v4120_v36, %v4119_v17 }
 0xb45   :  { %v7056_v23 = vpop.f32.mrf.mxu1 }
 0xb46   :  { %v4048_v1 = vadd.f32 %v7056_v23, %v9365_v51 }
 0xb47   :  { %v4042_v60 = vpop.f32.mrf.mxu1 }
 0xb48   :  { %v4043_v18 = vadd.f32 %v9365_v51, %v4042_v60  ;;  %v4082_v20 = vmax.f32 %v4048_v1, 0.0 }
 0xb4a   :  { %v4081_v34 = vmax.f32 %v4043_v18, 0.0  ;;  %v9440_v56 = vadd.f32 %v4082_v20, %v9051_v41  ;;  %v9466_v18 = vld [vmem:[#allocation3 + $0x38] sm:$0xff] }
 0xb4b   :  { %4562 = vrot.lane.b32.xlu1 %v9466_v18, %s7314_s19 }
 0xb4c   :  { %v9431_v19 = vadd.f32 %v4081_v34, %v9047_v46  ;;  %v4124_v2 = vsel %vm837_vm1, %v9440_v56, 0.0  ;;  %v4540_v34 = vld [vmem:[#allocation3 + $0x90] sm:$0xff] }
 0xb4e   :  { %v4122_v59 = vsel %vm837_vm1, %v9431_v19, 0.0 }
 0xb4f   :  { %v4123_v50 = vadd.f32 %v4122_v59, %v4121_v27 }
 0xb51   :  { %v7059_v31 = vpop.f32.mrf.mxu1  ;;  %v4125_v26 = vadd.f32 %v4124_v2, %v4123_v50 }
 0xb52   :  { %v4058_v14 = vadd.f32 %v7059_v31, %v9365_v51 }
 0xb53   :  { %v4052_v24 = vpop.f32.mrf.mxu1 }
 0xb54   :  { %v4053_v9 = vadd.f32 %v9365_v51, %v4052_v24  ;;  %v4084_v62 = vmax.f32 %v4058_v14, 0.0 }
 0xb56   :  { %v4083_v46 = vmax.f32 %v4053_v9, 0.0  ;;  %v9451_v41 = vadd.f32 %v4084_v62, %v9059_v52 }
 0xb58   :  { %v9443_v48 = vadd.f32 %v4083_v46, %v9055_v58  ;;  %v4128_v10 = vsel %vm837_vm1, %v9451_v41, 0.0 }
 0xb59   :  { %v7062_v35 = vpop.f32.mrf.mxu1 }
 0xb5a   :  { %v4126_v37 = vsel %vm837_vm1, %v9443_v48, 0.0  ;;  %v4068_v47 = vadd.f32 %v7062_v35, %v9365_v51 }
 0xb5b   :  { %v4062_v28 = vpop.f32.mrf.mxu1  ;;  %v4127_v3 = vadd.f32 %v4126_v37, %v4125_v26 }
 0xb5c   :  { %v4086_v57 = vmax.f32 %v4068_v47, 0.0  ;;  %v4063_v54 = vadd.f32 %v9365_v51, %v4062_v28 }
 0xb5d   :  { %v4129_v8 = vadd.f32 %v4128_v10, %v4127_v3 }
 0xb5e   :  { %v4085_v58 = vmax.f32 %v4063_v54, 0.0  ;;  %v9457_v23 = vadd.f32 %v4086_v57, %v9067_v21 }
 0xb60   :  { %v9460_v22 = vadd.f32 %v4085_v58, %v9063_v7  ;;  %v4132_v55 = vsel %vm837_vm1, %v9457_v23, 0.0  ;;  %v4537_v7 = vld [vmem:[#allocation3 + $0x88] sm:$0xff] }
 0xb61   :  { %4726 = vrot.lane.b32.xlu0 %v4537_v7, %s7316_s21  ;;  %4678 = vrot.lane.b32.xlu1 %v4537_v7, %s7315_s20 }
 0xb62   :  { %v4130_v60 = vsel %vm837_vm1, %v9460_v22, 0.0 }
 0xb63   :  { %v4131_v52 = vadd.f32 %v4130_v60, %v4129_v8 }
 0xb65   :  { %v4133_v51 = vadd.f32 %v4132_v55, %v4131_v52  ;;  %4676 = vrot.lane.b32.xlu0 %v4536_v13, %s7315_s20  ;;  %4576 = vrot.lane.b32.xlu1 %v9311_v45, %s7314_s19 }
 0xb67   :  { %v4134_v63 = vrot.slane %v4133_v51, 4 }
 0xb69   :  { %v4135_v0 = vadd.f32 %v4134_v63, %v4133_v51  ;;  %4728 = vrot.lane.b32.xlu0 %v4540_v34, %s7316_s21 }
 0xb6b   :  { %v4136_v12 = vrot.slane %v4135_v0, 2 }
 0xb6d   :  { %v4137_v21 = vadd.f32 %v4136_v12, %v4135_v0 }
 0xb6f   :  { %v4138_v40 = vrot.slane %v4137_v21, 1 }
 0xb71   :  { %v4139_v16 = vadd.f32 %v4138_v40, %v4137_v21 }
 0xb73   :  { %v4140_v39 = vmul.f32 0.0078125, %v4139_v16 }
 0xb75   :  { %v9474_v4 = vsub.f32 %v9371_v5, %v4140_v39  ;;  %v9477_v29 = vsub.f32 %v9376_v33, %v4140_v39  ;;  %v9483_v61 = vsub.f32 %v9379_v53, %v4140_v39  ;;  %v9486_v6 = vsub.f32 %v9390_v44, %v4140_v39  ;;  %v4541_v33 = vld [vmem:[#allocation3 + $0x98] sm:$0xff] }
 0xb76   :  { %v9494_v15 = vsub.f32 %v9393_v11, %v4140_v39  ;;  %v9499_v53 = vsub.f32 %v9405_v32, %v4140_v39  ;;  %4730 = vrot.lane.b32.xlu0 %v4541_v33, %s7316_s21  ;;  %v9507_v24 = vsub.f32 %v9408_v42, %v4140_v39  ;;  %v9513_v59 = vsub.f32 %v9417_v49, %v4140_v39 }
 0xb77   :  { %v4157_v1 = vmul.f32 %v9474_v4, %v9474_v4  ;;  %v4158_v5 = vmul.f32 %v9477_v29, %v9477_v29  ;;  %v4159_v45 = vmul.f32 %v9483_v61, %v9483_v61  ;;  %v4160_v44 = vmul.f32 %v9486_v6, %v9486_v6 }
 0xb78   :  { %v4161_v11 = vmul.f32 %v9494_v15, %v9494_v15  ;;  %v4162_v14 = vmul.f32 %v9499_v53, %v9499_v53  ;;  %v9519_v46 = vsub.f32 %v9420_v30, %v4140_v39  ;;  %v4163_v42 = vmul.f32 %v9507_v24, %v9507_v24 }
 0xb79   :  { %v4173_v17 = vsel %vm837_vm1, %v4157_v1, 0.0  ;;  %v4174_v31 = vsel %vm837_vm1, %v4158_v5, 0.0  ;;  %v4176_v36 = vsel %vm837_vm1, %v4159_v45, 0.0  ;;  %v4178_v9 = vsel %vm837_vm1, %v4160_v44, 0.0 }
 0xb7a   :  { %v4175_v20 = vadd.f32 %v4174_v31, %v4173_v17  ;;  %v4180_v50 = vsel %vm837_vm1, %v4161_v11, 0.0  ;;  %v9525_v35 = vsub.f32 %v9428_v38, %v4140_v39  ;;  %v4164_v49 = vmul.f32 %v9513_v59, %v9513_v59 }
 0xb7b   :  { %v4182_v2 = vsel %vm837_vm1, %v4162_v14, 0.0  ;;  %v4151_v47 = vsub.f32 %v9431_v19, %v4140_v39  ;;  %v4165_v30 = vmul.f32 %v9519_v46, %v9519_v46  ;;  %v4184_v26 = vsel %vm837_vm1, %v4163_v42, 0.0  ;;  %v4211_v14 = vld [vmem:[%s6264_s26] sm:$0x1] }
 0xb7c   :  { %v4177_v32 = vadd.f32 %v4176_v36, %v4175_v20  ;;  %v4152_v57 = vsub.f32 %v9440_v56, %v4140_v39  ;;  %v4166_v38 = vmul.f32 %v9525_v35, %v9525_v35  ;;  %v4186_v54 = vsel %vm837_vm1, %v4164_v49, 0.0 }
 0xb7d   :  { %v4153_v58 = vsub.f32 %v9443_v48, %v4140_v39  ;;  %v4167_v10 = vmul.f32 %v4151_v47, %v4151_v47  ;;  %v4188_v8 = vsel %vm837_vm1, %v4165_v30, 0.0  ;;  %v4154_v60 = vsub.f32 %v9451_v41, %v4140_v39 }
 0xb7e   :  { %v4179_v27 = vadd.f32 %v4178_v9, %v4177_v32  ;;  %v4168_v52 = vmul.f32 %v4152_v57, %v4152_v57  ;;  %v4190_v55 = vsel %vm837_vm1, %v4166_v38, 0.0  ;;  %v4155_v56 = vsub.f32 %v9460_v22, %v4140_v39  ;;  %v6418_v38 = vld [vmem:[%s6265_s30] ss:$0 sm:$0xff] }
 0xb7f   :  { %v4169_v63 = vmul.f32 %v4153_v58, %v4153_v58  ;;  %v4192_v0 = vsel %vm837_vm1, %v4167_v10, 0.0  ;;  %v4156_v13 = vsub.f32 %v9457_v23, %v4140_v39  ;;  %v4170_v21 = vmul.f32 %v4154_v60, %v4154_v60 }
 0xb80   :  { %v4181_v62 = vadd.f32 %v4180_v50, %v4179_v27  ;;  %v4194_v48 = vsel %vm837_vm1, %v4168_v52, 0.0  ;;  %v4171_v40 = vmul.f32 %v4155_v56, %v4155_v56 }
 0xb81   :  { %v4196_v16 = vsel %vm837_vm1, %v4169_v63, 0.0  ;;  %v4172_v34 = vmul.f32 %v4156_v13, %v4156_v13  ;;  %v4198_v1 = vsel %vm837_vm1, %v4170_v21, 0.0 }
 0xb82   :  { %v4183_v37 = vadd.f32 %v4182_v2, %v4181_v62  ;;  %v4200_v22 = vsel %vm837_vm1, %v4171_v40, 0.0 }
 0xb83   :  { %v4202_v45 = vsel %vm837_vm1, %v4172_v34, 0.0 }
 0xb84   :  { %v4185_v28 = vadd.f32 %v4184_v26, %v4183_v37 }
 0xb86   :  { %v4187_v3 = vadd.f32 %v4186_v54, %v4185_v28 }
 0xb88   :  { %v4189_v19 = vadd.f32 %v4188_v8, %v4187_v3 }
 0xb8a   :  { %v4191_v51 = vadd.f32 %v4190_v55, %v4189_v19 }
 0xb8c   :  { %v4193_v12 = vadd.f32 %v4192_v0, %v4191_v51 }
 0xb8e   :  { %v4195_v7 = vadd.f32 %v4194_v48, %v4193_v12 }
 0xb90   :  { %v4197_v41 = vadd.f32 %v4196_v16, %v4195_v7 }
 0xb92   :  { %v4199_v5 = vadd.f32 %v4198_v1, %v4197_v41 }
 0xb94   :  { %v4201_v33 = vadd.f32 %v4200_v22, %v4199_v5 }
 0xb96   :  { %v4203_v44 = vadd.f32 %v4202_v45, %v4201_v33 }
 0xb98   :  { %v4204_v17 = vrot.slane %v4203_v44, 4 }
 0xb9a   :  { %v4205_v23 = vadd.f32 %v4204_v17, %v4203_v44  ;;  %v4538_v17 = vld [vmem:[#allocation3 + $0x140] sm:$0xff] }
 0xb9b   :  { %4740 = vrot.lane.b32.xlu0 %v4538_v17, %s7316_s21 }
 0xb9c   :  { %v4206_v39 = vrot.slane %v4205_v23, 2 }
 0xb9e   :  { %v4207_v31 = vadd.f32 %v4206_v39, %v4205_v23  ;;  %v9648_v23 = vld [vmem:[#allocation3 + $0xf8] sm:$0xff]  ;;  %v9665_v39 = vld [vmem:[%s6267_s4] ss:$0 sm:$0xff] }
 0xb9f   :  { %4578 = vrot.lane.b32.xlu1 %v9648_v23, %s7314_s19  ;;  %4742 = vrot.lane.b32.xlu0 %v9256_v25, %s7316_s21 }
 0xba0   :  { %v4208_v20 = vrot.slane %v4207_v31, 1 }
 0xba2   :  { %v4209_v11 = vadd.f32 %v4208_v20, %v4207_v31  ;;  %v4836_v20 = vld [vmem:[%s9663_s8 + $0x40] sm:$0xff] }
 0xba3   :  { %4694 = vrot.lane.b32.xlu1 %v9256_v25, %s7315_s20  ;;  %4692 = vrot.lane.b32.xlu0 %v4538_v17, %s7315_s20  ;;  %v4837_v25 = vld [vmem:[%s9663_s8 + $0x48] sm:$0xff] }
 0xba4   :  { %v4210_v36 = vmul.f32 0.0078125, %v4209_v11  ;;  %7095 = vmatprep.subr.mxu1 %v4837_v25 }
 0xba5   :  { %7096 = vmatpush3.msra.mxu1 %v4837_v25 }
 0xba6   :  { %v4212_v32 = vadd.f32 1e-05, %v4210_v36  ;;  %7097 = vmatprep.subr.mxu1 %v4836_v20 }
 0xba7   :  { %7098 = vmatpush3.msra.mxu1 %v4836_v20 }
 0xba8   :  { %7281 = vrsqrt.f32 %v4212_v32  ;;  %v4835_v32 = vld [vmem:[%s9663_s8 + $0x38] sm:$0xff] }
 0xba9   :  { %7099 = vmatprep.subr.mxu1 %v4835_v32 }
 0xbaa   :  { %7100 = vmatpush3.msra.mxu1 %v4835_v32 }
 0xbb5   :  { %v7282_v9 = vpop.eup %7281 }
 0xbb6   :  { %v4214_v27 = vmul.f32 %v7282_v9, %v4211_v14 }
 0xbb8   :  { %v4219_v42 = vrot.slane %v4214_v27, %v7906_v43  ;;  %v4834_v27 = vld [vmem:[%s9663_s8 + $0x30] sm:$0xff] }
 0xbb9   :  { %7101 = vmatprep.subr.mxu1 %v4834_v27 }
 0xbba   :  { %v4221_v50 = vmul.f32 %v4219_v42, %v9474_v4  ;;  %v4222_v62 = vmul.f32 %v4219_v42, %v9477_v29  ;;  %v4223_v49 = vmul.f32 %v4219_v42, %v9483_v61  ;;  %v4224_v2 = vmul.f32 %v4219_v42, %v9486_v6  ;;  %7102 = vmatpush3.msra.mxu1 %v4834_v27 }
 0xbbb   :  { %v4225_v37 = vmul.f32 %v4219_v42, %v9494_v15  ;;  %v4226_v30 = vmul.f32 %v4219_v42, %v9499_v53  ;;  %v4227_v26 = vmul.f32 %v4219_v42, %v9507_v24  ;;  %v4228_v28 = vmul.f32 %v4219_v42, %v9513_v59 }
 0xbbc   :  { %v4229_v54 = vmul.f32 %v4219_v42, %v9519_v46  ;;  %v4230_v3 = vmul.f32 %v4219_v42, %v9525_v35  ;;  %v4231_v4 = vmul.f32 %v4219_v42, %v4151_v47  ;;  %v4232_v10 = vmul.f32 %v4219_v42, %v4152_v57 }
 0xbbd   :  { %v4233_v29 = vmul.f32 %v4219_v42, %v4153_v58  ;;  %v4234_v8 = vmul.f32 %v4219_v42, %v4154_v60  ;;  %v4235_v61 = vmul.f32 %v4219_v42, %v4155_v56  ;;  %v4236_v19 = vmul.f32 %v4219_v42, %v4156_v13 }
 0xbbe   :  { %v4245_v6 = vadd.f32 %v6418_v38, %v4222_v62  ;;  %v4246_v52 = vadd.f32 %v6418_v38, %v4223_v49  ;;  %v4247_v15 = vadd.f32 %v6418_v38, %v4224_v2  ;;  %v4248_v55 = vadd.f32 %v6418_v38, %v4225_v37  ;;  %v4833_v62 = vld [vmem:[%s9663_s8 + $0x28] sm:$0xff]  ;;  %v4832_v37 = vld [vmem:[%s9663_s8 + $0x20] sm:$0xff] }
 0xbbf   :  { %v4249_v53 = vadd.f32 %v6418_v38, %v4226_v30  ;;  %v4250_v51 = vadd.f32 %v6418_v38, %v4227_v26  ;;  %v4251_v24 = vadd.f32 %v6418_v38, %v4228_v28  ;;  %v4252_v63 = vadd.f32 %v6418_v38, %v4229_v54  ;;  %7103 = vmatprep.subr.mxu1 %v4833_v62 }
 0xbc0   :  { %v4253_v59 = vadd.f32 %v6418_v38, %v4230_v3  ;;  %v4254_v0 = vadd.f32 %v6418_v38, %v4231_v4  ;;  %v4255_v12 = vadd.f32 %v6418_v38, %v4232_v10  ;;  %v4256_v46 = vadd.f32 %v6418_v38, %v4233_v29  ;;  %4261 = vst.msk [vmem:[#allocation2 + $0x8] sm:$0xff] %vm837_vm1, %v4245_v6  ;;  %v4830_v10 = vld [vmem:[%s9663_s8 + $0x10] sm:$0xff] }
 0xbc1   :  { %4262 = vst.msk [vmem:[#allocation2 + $0x10] sm:$0xff] %vm837_vm1, %v4246_v52  ;;  %4263 = vst.msk [vmem:[#allocation2 + $0x18] sm:$0xff] %vm837_vm1, %v4247_v15  ;;  %v4257_v35 = vadd.f32 %v6418_v38, %v4234_v8  ;;  %v4258_v47 = vadd.f32 %v6418_v38, %v4235_v61  ;;  %v4259_v57 = vadd.f32 %v6418_v38, %v4236_v19  ;;  %7104 = vmatpush3.msra.mxu1 %v4833_v62  ;;  %v4829_v61 = vld [vmem:[%s9663_s8 + $0x8] sm:$0xff]  ;;  %v4828_v15 = vld [vmem:[%s9663_s8] sm:$0xff] }
 0xbc2   :  { %4264 = vst.msk [vmem:[#allocation2 + $0x20] sm:$0xff] %vm837_vm1, %v4248_v55  ;;  %4265 = vst.msk [vmem:[#allocation2 + $0x28] sm:$0xff] %vm837_vm1, %v4249_v53  ;;  %v4244_v58 = vadd.f32 %v6418_v38, %v4221_v50  ;;  %7105 = vmatprep.subr.mxu1 %v4832_v37  ;;  %v4831_v38 = vld [vmem:[%s9663_s8 + $0x18] sm:$0xff] }
 0xbc3   :  { %4266 = vst.msk [vmem:[#allocation2 + $0x30] sm:$0xff] %vm837_vm1, %v4250_v51  ;;  %4267 = vst.msk [vmem:[#allocation2 + $0x38] sm:$0xff] %vm837_vm1, %v4251_v24  ;;  %7106 = vmatpush3.msra.mxu1 %v4832_v37 }
 0xbc4   :  { %4268 = vst.msk [vmem:[#allocation2 + $0x40] sm:$0xff] %vm837_vm1, %v4252_v63  ;;  %4270 = vst.msk [vmem:[#allocation2 + $0x50] sm:$0xff] %vm837_vm1, %v4254_v0  ;;  %7107 = vmatprep.subr.mxu1 %v4831_v38 }
 0xbc5   :  { %4271 = vst.msk [vmem:[#allocation2 + $0x58] sm:$0xff] %vm837_vm1, %v4255_v12  ;;  %4272 = vst.msk [vmem:[#allocation2 + $0x60] sm:$0xff] %vm837_vm1, %v4256_v46  ;;  %7108 = vmatpush3.msra.mxu1 %v4831_v38  ;;  %v4563_v38 = vpop.permute.xlu1 %4562 }
 0xbc6   :  { %4269 = vst.msk [vmem:[#allocation2 + $0x48] sm:$0xff] %vm837_vm1, %v4253_v59  ;;  %4273 = vst.msk [vmem:[#allocation2 + $0x68] sm:$0xff] %vm837_vm1, %v4257_v35  ;;  %7109 = vmatprep.subr.mxu1 %v4830_v10 }
 0xbc7   :  { %4274 = vst.msk [vmem:[#allocation2 + $0x70] sm:$0xff] %vm837_vm1, %v4258_v47  ;;  %4275 = vst.msk [vmem:[#allocation2 + $0x78] sm:$0xff] %vm837_vm1, %v4259_v57  ;;  %v9583_v60 = vld [vmem:[#allocation2 + $0x8] sm:$0xff]  ;;  %7110 = vmatpush3.msra.mxu1 %v4830_v10 }
 0xbc8   :  { %4260 = vst.msk [vmem:[#allocation2] sm:$0xff] %vm837_vm1, %v4244_v58  ;;  %v9591_v13 = vld [vmem:[#allocation2 + $0x10] sm:$0xff]  ;;  %v9595_v21 = vld [vmem:[#allocation2 + $0x18] sm:$0xff]  ;;  %7111 = vmatprep.subr.mxu1 %v4829_v61 }
 0xbc9   :  { %v9599_v48 = vld [vmem:[#allocation2 + $0x20] sm:$0xff]  ;;  %v9603_v7 = vld [vmem:[#allocation2 + $0x28] sm:$0xff]  ;;  %7112 = vmatpush3.msra.mxu1 %v4829_v61 }
 0xbca   :  { %v9607_v40 = vld [vmem:[#allocation2 + $0x30] sm:$0xff]  ;;  %v9611_v16 = vld [vmem:[#allocation2 + $0x38] sm:$0xff]  ;;  %7113 = vmatprep.subr.mxu1 %v4828_v15 }
 0xbcb   :  { %v9615_v41 = vld [vmem:[#allocation2 + $0x40] sm:$0xff]  ;;  %v9623_v1 = vld [vmem:[#allocation2 + $0x50] sm:$0xff]  ;;  %7114 = vmatpush3.msra.mxu1 %v4828_v15 }
 0xbcc   :  { %v9627_v5 = vld [vmem:[#allocation2 + $0x58] sm:$0xff]  ;;  %v9631_v22 = vld [vmem:[#allocation2 + $0x60] sm:$0xff] }
 0xbcd   :  { %v9619_v34 = vld [vmem:[#allocation2 + $0x48] sm:$0xff] }
 0xbce   :  { %v9635_v33 = vld [vmem:[#allocation2 + $0x68] sm:$0xff]  ;;  %v9639_v45 = vld [vmem:[#allocation2 + $0x70] sm:$0xff]  ;;  %v9643_v44 = vld [vmem:[#allocation2 + $0x78] sm:$0xff] }
 0xbcf   :  { %v9585_v56 = vld [vmem:[#allocation2] sm:$0xff] }
 0xbd0   :  { %7071 = vmatprep.mubr.msk.f32.mxu0 %vm837_vm1, %v9585_v56 }
 0xbd1   :  { %7072 = vmatmul.mubr.msk.f32.vlgmr.msra.gmra.mxu0 %vm837_vm1, %v9583_v60 }
 0xbd2   :  { %7074 = vmatprep.mubr.msk.f32.mxu0 %vm837_vm1, %v9591_v13 }
 0xbd3   :  { %v9802_v10 = vpop.permute.xlu1 %4678 }
 0xbd5   :  { %7075 = vmatmul.mubr.msk.f32.gmra.mxu0 %vm837_vm1, %v9595_v21 }
 0xbd6   :  { %7077 = vmatprep.mubr.msk.f32.mxu0 %vm837_vm1, %v9599_v48 }
 0xbd7   :  { %v9809_v61 = vpop.permute.xlu1 %4576 }
 0xbd9   :  { %7078 = vmatmul.mubr.msk.f32.gmra.mxu0 %vm837_vm1, %v9603_v7 }
 0xbda   :  { %7080 = vmatprep.mubr.msk.f32.mxu0 %vm837_vm1, %v9607_v40 }
 0xbdd   :  { %7081 = vmatmul.mubr.msk.f32.gmra.mxu0 %vm837_vm1, %v9611_v16 }
 0xbde   :  { %7083 = vmatprep.mubr.msk.f32.mxu0 %vm837_vm1, %v9615_v41 }
 0xbe1   :  { %7084 = vmatmul.mubr.msk.f32.gmra.mxu0 %vm837_vm1, %v9619_v34 }
 0xbe2   :  { %7086 = vmatprep.mubr.msk.f32.mxu0 %vm837_vm1, %v9623_v1 }
 0xbe5   :  { %7087 = vmatmul.mubr.msk.f32.gmra.mxu0 %vm837_vm1, %v9627_v5 }
 0xbe6   :  { %7089 = vmatprep.mubr.msk.f32.mxu0 %vm837_vm1, %v9631_v22 }
 0xbe9   :  { %7090 = vmatmul.mubr.msk.f32.gmra.mxu0 %vm837_vm1, %v9635_v33 }
 0xbea   :  { %7092 = vmatprep.mubr.msk.f32.mxu0 %vm837_vm1, %v9639_v45 }
 0xbed   :  { %7093 = vmatmul.mubr.msk.f32.gmra.mxu0 %vm837_vm1, %v9643_v44 }
 0xc11   :  { %v9816_v15 = vpop.permute.xlu1 %4578 }
 0xc91   :  { %v7073_v31 = vpop.f32.mrf.mxu0 }
 0xc92   :  { %v4423_v11 = vadd.f32 %v7073_v31, %v9665_v39 }
 0xc93   :  { %v4417_v36 = vpop.f32.mrf.mxu0 }
 0xc94   :  { %4497 = vst.msk [vmem:[#allocation3 + $0x48] sm:$0xff] %vm154_vm0, %v4423_v11  ;;  %v4418_v14 = vadd.f32 %v9665_v39, %v4417_v36 }
 0xc95   :  { %v7076_v9 = vpop.f32.mrf.mxu0 }
 0xc96   :  { %4496 = vst.msk [vmem:[#allocation3 + $0x40] sm:$0xff] %vm154_vm0, %v4418_v14  ;;  %v4433_v42 = vadd.f32 %v7076_v9, %v9665_v39 }
 0xc97   :  { %v4427_v50 = vpop.f32.mrf.mxu0 }
 0xc98   :  { %4499 = vst.msk [vmem:[#allocation3 + $0x58] sm:$0xff] %vm154_vm0, %v4433_v42  ;;  %v4428_v49 = vadd.f32 %v9665_v39, %v4427_v50  ;;  %v4561_v50 = vpop.permute.xlu0 %4560 }
 0xc99   :  { %v7079_v2 = vpop.f32.mrf.mxu0 }
 0xc9a   :  { %4498 = vst.msk [vmem:[#allocation3 + $0x50] sm:$0xff] %vm154_vm0, %v4428_v49  ;;  %v4443_v30 = vadd.f32 %v7079_v2, %v9665_v39 }
 0xc9b   :  { %v4437_v26 = vpop.f32.mrf.mxu0  ;;  %v9682_v28 = vld [vmem:[#allocation3 + $0x48] sm:$0xff] }
 0xc9c   :  { %4501 = vst.msk [vmem:[#allocation3 + $0x68] sm:$0xff] %vm154_vm0, %v4443_v30  ;;  %v4438_v54 = vadd.f32 %v9665_v39, %v4437_v26  ;;  %4614 = vrot.lane.b32.xlu1 %v9682_v28, %s7313_s18  ;;  %v9778_v49 = vpop.permute.xlu0 %4724 }
 0xc9d   :  { %v7082_v3 = vpop.f32.mrf.mxu0  ;;  %v9689_v4 = vld [vmem:[#allocation3 + $0x40] sm:$0xff] }
 0xc9e   :  { %4500 = vst.msk [vmem:[#allocation3 + $0x60] sm:$0xff] %vm154_vm0, %v4438_v54  ;;  %v4453_v29 = vadd.f32 %v7082_v3, %v9665_v39  ;;  %4612 = vrot.lane.b32.xlu0 %v9689_v4, %s7313_s18  ;;  %v9797_v3 = vld [vmem:[#allocation3 + $0x150] sm:$0xff] }
 0xc9f   :  { %v4447_v8 = vpop.f32.mrf.mxu0  ;;  %v9716_v0 = vld [vmem:[#allocation3 + $0x58] sm:$0xff] }
 0xca0   :  { %4503 = vst.msk [vmem:[#allocation3 + $0x78] sm:$0xff] %vm154_vm0, %v4453_v29  ;;  %v4448_v19 = vadd.f32 %v9665_v39, %v4447_v8  ;;  %4566 = vrot.lane.b32.xlu1 %v9682_v28, %s7314_s19  ;;  %v9784_v37 = vpop.permute.xlu0 %4726  ;;  %v4512_v8 = vld [vmem:[#allocation3 + $0x20] sm:$0xff] }
 0xca1   :  { %v7085_v6 = vpop.f32.mrf.mxu0  ;;  %v9701_v52 = vld [vmem:[#allocation3 + $0x50] sm:$0xff] }
 0xca2   :  { %4502 = vst.msk [vmem:[#allocation3 + $0x70] sm:$0xff] %vm154_vm0, %v4448_v19  ;;  %v4463_v55 = vadd.f32 %v7085_v6, %v9665_v39  ;;  %4664 = vrot.lane.b32.xlu0 %v9701_v52, %s7315_s20  ;;  %v9814_v6 = vld [vmem:[#allocation3 + $0x158] sm:$0xff] }
 0xca3   :  { %v4457_v53 = vpop.f32.mrf.mxu0  ;;  %v4529_v35 = vld [vmem:[#allocation3 + $0x68] sm:$0xff] }
 0xca4   :  { %4505 = vst.msk [vmem:[#allocation3 + $0x108] sm:$0xff] %vm154_vm0, %v4463_v55  ;;  %v4458_v51 = vadd.f32 %v9665_v39, %v4457_v53  ;;  %4564 = vrot.lane.b32.xlu1 %v9689_v4, %s7314_s19  ;;  %v9790_v26 = vpop.permute.xlu0 %4676  ;;  %v4513_v53 = vld [vmem:[#allocation3 + $0x28] sm:$0xff] }
 0xca5   :  { %v7088_v24 = vpop.f32.mrf.mxu0  ;;  %v4528_v25 = vld [vmem:[#allocation3 + $0x60] sm:$0xff] }
 0xca6   :  { %4504 = vst.msk [vmem:[#allocation3 + $0x100] sm:$0xff] %vm154_vm0, %v4458_v51  ;;  %v4473_v63 = vadd.f32 %v7088_v24, %v9665_v39  ;;  %4616 = vrot.lane.b32.xlu0 %v9701_v52, %s7313_s18  ;;  %v9822_v51 = vpop.permute.xlu1 %4694 }
 0xca7   :  { %v4467_v59 = vpop.f32.mrf.mxu0  ;;  %v4533_v36 = vld [vmem:[#allocation3 + $0x78] sm:$0xff] }
 0xca8   :  { %4507 = vst.msk [vmem:[#allocation3 + $0x118] sm:$0xff] %vm154_vm0, %v4473_v63  ;;  %v4468_v12 = vadd.f32 %v9665_v39, %v4467_v59  ;;  %4666 = vrot.lane.b32.xlu1 %v9716_v0, %s7315_s20  ;;  %v9795_v54 = vpop.permute.xlu0 %4728 }
 0xca9   :  { %v7091_v46 = vpop.f32.mrf.mxu0 }
 0xcaa   :  { %4506 = vst.msk [vmem:[#allocation3 + $0x110] sm:$0xff] %vm154_vm0, %v4468_v12  ;;  %v4483_v47 = vadd.f32 %v7091_v46, %v9665_v39  ;;  %4718 = vrot.lane.b32.xlu0 %v4529_v35, %s7316_s21 }
 0xcab   :  { %v4477_v57 = vpop.f32.mrf.mxu0  ;;  %v9759_v9 = vld [vmem:[#allocation3 + $0x108] sm:$0xff] }
 0xcac   :  { %4509 = vst.msk [vmem:[#allocation3 + $0x128] sm:$0xff] %vm154_vm0, %v4483_v47  ;;  %v4478_v58 = vadd.f32 %v9665_v39, %v4477_v57  ;;  %4618 = vrot.lane.b32.xlu1 %v9716_v0, %s7313_s18  ;;  %v9805_v29 = vpop.permute.xlu0 %4730 }
 0xcad   :  { %v7094_v17 = vpop.f32.mrf.mxu0  ;;  %v9750_v32 = vld [vmem:[#allocation3 + $0x100] sm:$0xff] }
 0xcae   :  { %4508 = vst.msk [vmem:[#allocation3 + $0x120] sm:$0xff] %vm154_vm0, %v4478_v58  ;;  %v4493_v31 = vadd.f32 %v7094_v17, %v9665_v39  ;;  %4716 = vrot.lane.b32.xlu0 %v4528_v25, %s7316_s21  ;;  %v4765_v17 = vsel %vm154_vm0, %v4513_v53, %v4563_v38 }
 0xcaf   :  { %v4487_v20 = vpop.f32.mrf.mxu0  ;;  %v9771_v62 = vld [vmem:[#allocation3 + $0x118] sm:$0xff] }
 0xcb0   :  { %4511 = vst.msk [vmem:[#allocation3 + $0x138] sm:$0xff] %vm154_vm0, %v4493_v31  ;;  %v4488_v11 = vadd.f32 %v9665_v39, %v4487_v20  ;;  %4570 = vrot.lane.b32.xlu1 %v9716_v0, %s7314_s19  ;;  %v4532_v39 = vld [vmem:[#allocation3 + $0x70] sm:$0xff]  ;;  %v9811_v19 = vpop.permute.xlu0 %4740 }
 0xcb1   :  { %v9755_v14 = vld [vmem:[#allocation3 + $0x110] sm:$0xff] }
 0xcb2   :  { %4510 = vst.msk [vmem:[#allocation3 + $0x130] sm:$0xff] %vm154_vm0, %v4488_v11  ;;  %4668 = vrot.lane.b32.xlu0 %v4528_v25, %s7315_s20 }
 0xcb3   :  { %v4531_v27 = vld [vmem:[#allocation3 + $0x128] sm:$0xff] }
 0xcb4   :  { %4568 = vrot.lane.b32.xlu1 %v9701_v52, %s7314_s19  ;;  %v9820_v55 = vpop.permute.xlu0 %4742 }
 0xcb5   :  { %v4530_v42 = vld [vmem:[#allocation3 + $0x120] sm:$0xff] }
 0xcb6   :  { %4620 = vrot.lane.b32.xlu0 %v4528_v25, %s7313_s18 }
 0xcb7   :  { %v4535_v2 = vld [vmem:[#allocation3 + $0x138] sm:$0xff] }
 0xcb8   :  { %4670 = vrot.lane.b32.xlu1 %v4529_v35, %s7315_s20  ;;  %v9825_v24 = vpop.permute.xlu0 %4692 }
 0xcb9   :  { %v4534_v30 = vld [vmem:[#allocation3 + $0x130] sm:$0xff] }
 0xcba   :  { %4722 = vrot.lane.b32.xlu0 %v4533_v36, %s7316_s21 }
 0xcbc   :  { %4622 = vrot.lane.b32.xlu1 %v4529_v35, %s7313_s18 }
 0xcbe   :  { %4720 = vrot.lane.b32.xlu0 %v4532_v39, %s7316_s21 }
 0xcc0   :  { %4574 = vrot.lane.b32.xlu1 %v4529_v35, %s7314_s19 }
 0xcc2   :  { %4672 = vrot.lane.b32.xlu0 %v4532_v39, %s7315_s20 }
 0xcc4   :  { %4572 = vrot.lane.b32.xlu1 %v4528_v25, %s7314_s19  ;;  %v4764_v25 = vsel %vm154_vm0, %v4512_v8, %v4561_v50 }
 0xcc6   :  { %4624 = vrot.lane.b32.xlu0 %v4532_v39, %s7313_s18 }
 0xcc8   :  { %4674 = vrot.lane.b32.xlu1 %v4533_v36, %s7315_s20 }
 0xcca   :  { %4628 = vrot.lane.b32.xlu0 %v9750_v32, %s7313_s18 }
 0xccc   :  { %4626 = vrot.lane.b32.xlu1 %v4533_v36, %s7313_s18 }
 0xcce   :  { %4680 = vrot.lane.b32.xlu0 %v9755_v14, %s7315_s20 }
 0xcd0   :  { %4630 = vrot.lane.b32.xlu1 %v9759_v9, %s7313_s18 }
 0xcd2   :  { %4632 = vrot.lane.b32.xlu0 %v9755_v14, %s7313_s18 }
 0xcd4   :  { %4582 = vrot.lane.b32.xlu1 %v9759_v9, %s7314_s19 }
 0xcd6   :  { %4734 = vrot.lane.b32.xlu0 %v4531_v27, %s7316_s21 }
 0xcd8   :  { %4580 = vrot.lane.b32.xlu1 %v9750_v32, %s7314_s19 }
 0xcda   :  { %4732 = vrot.lane.b32.xlu0 %v4530_v42, %s7316_s21 }
 0xcdc   :  { %4682 = vrot.lane.b32.xlu1 %v9771_v62, %s7315_s20 }
 0xcde   :  { %4684 = vrot.lane.b32.xlu0 %v4530_v42, %s7315_s20 }
 0xce0   :  { %4634 = vrot.lane.b32.xlu1 %v9771_v62, %s7313_s18 }
 0xce2   :  { %4636 = vrot.lane.b32.xlu0 %v4530_v42, %s7313_s18 }
 0xce4   :  { %4586 = vrot.lane.b32.xlu1 %v9771_v62, %s7314_s19 }
 0xce6   :  { %4738 = vrot.lane.b32.xlu0 %v4535_v2, %s7316_s21 }
 0xce8   :  { %4584 = vrot.lane.b32.xlu1 %v9755_v14, %s7314_s19 }
 0xcea   :  { %4736 = vrot.lane.b32.xlu0 %v4534_v30, %s7316_s21 }
 0xcec   :  { %4686 = vrot.lane.b32.xlu1 %v4531_v27, %s7315_s20 }
 0xcee   :  { %4688 = vrot.lane.b32.xlu0 %v4534_v30, %s7315_s20 }
 0xcf0   :  { %4638 = vrot.lane.b32.xlu1 %v4531_v27, %s7313_s18 }
 0xcf2   :  { %4640 = vrot.lane.b32.xlu0 %v4534_v30, %s7313_s18 }
 0xcf4   :  { %4590 = vrot.lane.b32.xlu1 %v4531_v27, %s7314_s19 }
 0xcf6   :  { %4744 = vrot.lane.b32.xlu0 %v9797_v3, %s7316_s21 }
 0xcf8   :  { %4588 = vrot.lane.b32.xlu1 %v4530_v42, %s7314_s19 }
 0xcfa   :  { %5543 = vrot.lane.b32.xlu0 %v4512_v8, %s7314_s19 }
 0xcfc   :  { %4690 = vrot.lane.b32.xlu1 %v4535_v2, %s7315_s20 }
 0xd00   :  { %4642 = vrot.lane.b32.xlu1 %v4535_v2, %s7313_s18 }
 0xd04   :  { %4746 = vrot.lane.b32.xlu1 %v9814_v6, %s7316_s21 }
 0xd08   :  { %5545 = vrot.lane.b32.xlu1 %v4513_v53, %s7314_s19 }
 0xd0e   :  { %v4615_v63 = vpop.permute.xlu1 %4614 }
 0xd0f   :  { %v4781_v31 = vsel %vm837_vm1, %v4765_v17, %v4615_v63  ;;  %v7301_v63 = vld [vmem:[#allocation3 + $0x30] sm:$0xff] }
 0xd10   :  { %v4613_v59 = vpop.permute.xlu0 %4612 }
 0xd11   :  { %v4780_v11 = vsel %vm837_vm1, %v4764_v25, %v4613_v59 }
 0xd12   :  { %v4567_v12 = vpop.permute.xlu1 %4566 }
 0xd14   :  { %v4665_v46 = vpop.permute.xlu0 %4664 }
 0xd15   :  { %v4796_v39 = vsel %vm854_vm2, %v4780_v11, %v4665_v46  ;;  %v4767_v46 = vsel %vm154_vm0, %v9466_v18, %v4567_v12 }
 0xd16   :  { %v4565_v35 = vpop.permute.xlu1 %4564 }
 0xd17   :  { %v4766_v59 = vsel %vm154_vm0, %v7301_v63, %v4565_v35 }
 0xd18   :  { %v4617_v47 = vpop.permute.xlu0 %4616 }
 0xd1a   :  { %v4667_v57 = vpop.permute.xlu1 %4666 }
 0xd1b   :  { %v4797_v36 = vsel %vm854_vm2, %v4781_v31, %v4667_v57 }
 0xd1c   :  { %v4719_v58 = vpop.permute.xlu0 %4718 }
 0xd1d   :  { %v4813_v2 = vsel %vm871_vm3, %v4797_v36, %v4719_v58  ;;  %v4782_v58 = vsel %vm837_vm1, %v4766_v59, %v4617_v47 }
 0xd1e   :  { %v4619_v20 = vpop.permute.xlu1 %4618 }
 0xd1f   :  { %v4783_v17 = vsel %vm837_vm1, %v4767_v46, %v4619_v20 }
 0xd20   :  { %v4717_v27 = vpop.permute.xlu0 %4716 }
 0xd21   :  { %v4812_v42 = vsel %vm871_vm3, %v4796_v39, %v4717_v27 }
 0xd22   :  { %v4571_v30 = vpop.permute.xlu1 %4570  ;;  %7115 = vmatprep.mubr.msk.f32.mxu1 %vm905_vm4, %v4812_v42 }
 0xd23   :  { %7116 = vmatmul.mubr.msk.f32.vlgmr.msra.gmra.mxu1 %vm905_vm4, %v4813_v2 }
 0xd24   :  { %v4669_v50 = vpop.permute.xlu0 %4668 }
 0xd25   :  { %v4798_v11 = vsel %vm854_vm2, %v4782_v58, %v4669_v50 }
 0xd26   :  { %v4569_v38 = vpop.permute.xlu1 %4568 }
 0xd27   :  { %v4768_v39 = vsel %vm154_vm0, %v9689_v4, %v4569_v38  ;;  %v4769_v38 = vsel %vm154_vm0, %v9682_v28, %v4571_v30 }
 0xd28   :  { %v4621_v8 = vpop.permute.xlu0 %4620 }
 0xd29   :  { %v4784_v18 = vsel %vm837_vm1, %v4768_v39, %v4621_v8  ;;  %v9883_v39 = vld [vmem:[#allocation3 + $0xe8] sm:$0xff] }
 0xd2a   :  { %v4671_v53 = vpop.permute.xlu1 %4670 }
 0xd2b   :  { %v4799_v31 = vsel %vm854_vm2, %v4783_v17, %v4671_v53 }
 0xd2c   :  { %v4723_v57 = vpop.permute.xlu0 %4722 }
 0xd2d   :  { %v4815_v35 = vsel %vm871_vm3, %v4799_v31, %v4723_v57 }
 0xd2e   :  { %v4623_v25 = vpop.permute.xlu1 %4622 }
 0xd2f   :  { %v4785_v8 = vsel %vm837_vm1, %v4769_v38, %v4623_v25 }
 0xd30   :  { %v4721_v36 = vpop.permute.xlu0 %4720 }
 0xd31   :  { %v4814_v27 = vsel %vm871_vm3, %v4798_v11, %v4721_v36  ;;  %v9878_v11 = vld [vmem:[#allocation3 + $0xe0] sm:$0xff] }
 0xd32   :  { %v4575_v42 = vpop.permute.xlu1 %4574  ;;  %7118 = vmatprep.mubr.msk.f32.mxu1 %vm905_vm4, %v4814_v27  ;;  %v4772_v36 = vsel %vm154_vm0, %v9878_v11, %v9809_v61 }
 0xd33   :  { %7119 = vmatmul.mubr.msk.f32.gmra.mxu1 %vm905_vm4, %v4815_v35  ;;  %v4771_v28 = vsel %vm154_vm0, %v9716_v0, %v4575_v42  ;;  %v4773_v42 = vsel %vm154_vm0, %v9883_v39, %v9816_v15 }
 0xd34   :  { %v4673_v12 = vpop.permute.xlu0 %4672 }
 0xd35   :  { %v4800_v47 = vsel %vm854_vm2, %v4784_v18, %v4673_v12 }
 0xd36   :  { %v4573_v20 = vpop.permute.xlu1 %4572  ;;  %v4816_v2 = vsel %vm871_vm3, %v4800_v47, %v9778_v49 }
 0xd37   :  { %v4770_v4 = vsel %vm154_vm0, %v9701_v52, %v4573_v20  ;;  %7121 = vmatprep.mubr.msk.f32.mxu1 %vm905_vm4, %v4816_v2 }
 0xd38   :  { %v4625_v50 = vpop.permute.xlu0 %4624 }
 0xd39   :  { %v4786_v53 = vsel %vm837_vm1, %v4770_v4, %v4625_v50 }
 0xd3a   :  { %v4802_v63 = vsel %vm854_vm2, %v4786_v53, %v9790_v26  ;;  %v4675_v59 = vpop.permute.xlu1 %4674  ;;  %v7302_v53 = vld [vmem:[#allocation3 + $0xf0] sm:$0xff] }
 0xd3b   :  { %v4801_v57 = vsel %vm854_vm2, %v4785_v8, %v4675_v59  ;;  %v4818_v46 = vsel %vm871_vm3, %v4802_v63, %v9795_v54 }
 0xd3c   :  { %v4629_v49 = vpop.permute.xlu0 %4628  ;;  %v4817_v52 = vsel %vm871_vm3, %v4801_v57, %v9784_v37 }
 0xd3d   :  { %7122 = vmatmul.mubr.msk.f32.gmra.mxu1 %vm905_vm4, %v4817_v52 }
 0xd3e   :  { %v4627_v30 = vpop.permute.xlu1 %4626  ;;  %7124 = vmatprep.mubr.msk.f32.mxu1 %vm905_vm4, %v4818_v46 }
 0xd3f   :  { %v4787_v26 = vsel %vm837_vm1, %v4771_v28, %v4627_v30 }
 0xd40   :  { %v4803_v17 = vsel %vm854_vm2, %v4787_v26, %v9802_v10  ;;  %v4681_v25 = vpop.permute.xlu0 %4680  ;;  %v4788_v10 = vsel %vm837_vm1, %v4772_v36, %v4629_v49 }
 0xd41   :  { %v4819_v37 = vsel %vm871_vm3, %v4803_v17, %v9805_v29  ;;  %v4804_v35 = vsel %vm854_vm2, %v4788_v10, %v4681_v25 }
 0xd42   :  { %v4631_v58 = vpop.permute.xlu1 %4630  ;;  %7125 = vmatmul.mubr.msk.f32.gmra.mxu1 %vm905_vm4, %v4819_v37 }
 0xd43   :  { %v4789_v12 = vsel %vm837_vm1, %v4773_v42, %v4631_v58 }
 0xd44   :  { %v4633_v31 = vpop.permute.xlu0 %4632 }
 0xd46   :  { %v4583_v54 = vpop.permute.xlu1 %4582 }
 0xd47   :  { %v4775_v52 = vsel %vm154_vm0, %v9648_v23, %v4583_v54 }
 0xd48   :  { %v4735_v0 = vpop.permute.xlu0 %4734 }
 0xd4a   :  { %v4581_v27 = vpop.permute.xlu1 %4580 }
 0xd4b   :  { %v4774_v15 = vsel %vm154_vm0, %v7302_v53, %v4581_v27 }
 0xd4c   :  { %v4733_v29 = vpop.permute.xlu0 %4732  ;;  %v4790_v59 = vsel %vm837_vm1, %v4774_v15, %v4633_v31 }
 0xd4d   :  { %v4820_v18 = vsel %vm871_vm3, %v4804_v35, %v4733_v29 }
 0xd4e   :  { %v4683_v47 = vpop.permute.xlu1 %4682  ;;  %7127 = vmatprep.mubr.msk.f32.mxu1 %vm905_vm4, %v4820_v18 }
 0xd4f   :  { %v4805_v61 = vsel %vm854_vm2, %v4789_v12, %v4683_v47 }
 0xd50   :  { %v4685_v20 = vpop.permute.xlu0 %4684  ;;  %v4821_v2 = vsel %vm871_vm3, %v4805_v61, %v4735_v0 }
 0xd51   :  { %7128 = vmatmul.mubr.msk.f32.gmra.mxu1 %vm905_vm4, %v4821_v2  ;;  %v4806_v57 = vsel %vm854_vm2, %v4790_v59, %v4685_v20 }
 0xd52   :  { %v4635_v4 = vpop.permute.xlu1 %4634 }
 0xd53   :  { %v4791_v30 = vsel %vm837_vm1, %v4775_v52, %v4635_v4 }
 0xd54   :  { %v4637_v50 = vpop.permute.xlu0 %4636 }
 0xd56   :  { %v4587_v38 = vpop.permute.xlu1 %4586 }
 0xd57   :  { %v4777_v35 = vsel %vm154_vm0, %v9759_v9, %v4587_v38  ;;  %v9938_v38 = vld [vmem:[%s6269_s12] ss:$0 sm:$0xff] }
 0xd58   :  { %v4739_v8 = vpop.permute.xlu0 %4738 }
 0xd5a   :  { %v4585_v63 = vpop.permute.xlu1 %4584 }
 0xd5b   :  { %v4776_v46 = vsel %vm154_vm0, %v9750_v32, %v4585_v63 }
 0xd5c   :  { %v4737_v49 = vpop.permute.xlu0 %4736  ;;  %v4792_v25 = vsel %vm837_vm1, %v4776_v46, %v4637_v50 }
 0xd5d   :  { %v4822_v28 = vsel %vm871_vm3, %v4806_v57, %v4737_v49 }
 0xd5e   :  { %v4687_v26 = vpop.permute.xlu1 %4686  ;;  %7130 = vmatprep.mubr.msk.f32.mxu1 %vm905_vm4, %v4822_v28 }
 0xd5f   :  { %v4807_v17 = vsel %vm854_vm2, %v4791_v30, %v4687_v26 }
 0xd60   :  { %v4689_v37 = vpop.permute.xlu0 %4688  ;;  %v4823_v58 = vsel %vm871_vm3, %v4807_v17, %v4739_v8 }
 0xd61   :  { %v4808_v31 = vsel %vm854_vm2, %v4792_v25, %v4689_v37  ;;  %7131 = vmatmul.mubr.msk.f32.gmra.mxu1 %vm905_vm4, %v4823_v58 }
 0xd62   :  { %v4639_v23 = vpop.permute.xlu1 %4638  ;;  %v4824_v32 = vsel %vm871_vm3, %v4808_v31, %v9811_v19 }
 0xd63   :  { %7133 = vmatprep.mubr.msk.f32.mxu1 %vm905_vm4, %v4824_v32  ;;  %v4793_v29 = vsel %vm837_vm1, %v4777_v35, %v4639_v23 }
 0xd64   :  { %v4641_v0 = vpop.permute.xlu0 %4640 }
 0xd66   :  { %v4591_v54 = vpop.permute.xlu1 %4590 }
 0xd68   :  { %v4745_v18 = vpop.permute.xlu0 %4744 }
 0xd6a   :  { %v4589_v36 = vpop.permute.xlu1 %4588 }
 0xd6b   :  { %v4778_v27 = vsel %vm154_vm0, %v9755_v14, %v4589_v36  ;;  %v4779_v14 = vsel %vm154_vm0, %v9771_v62, %v4591_v54 }
 0xd6c   :  { %v4794_v10 = vsel %vm837_vm1, %v4778_v27, %v4641_v0 }
 0xd6d   :  { %v4810_v42 = vsel %vm854_vm2, %v4794_v10, %v9825_v24 }
 0xd6e   :  { %v4691_v19 = vpop.permute.xlu1 %4690  ;;  %v4826_v61 = vsel %vm871_vm3, %v4810_v42, %v4745_v18 }
 0xd6f   :  { %v4809_v12 = vsel %vm854_vm2, %v4793_v29, %v4691_v19 }
 0xd70   :  { %v4825_v47 = vsel %vm871_vm3, %v4809_v12, %v9820_v55 }
 0xd71   :  { %7134 = vmatmul.mubr.msk.f32.gmra.mxu1 %vm905_vm4, %v4825_v47 }
 0xd72   :  { %v4643_v9 = vpop.permute.xlu1 %4642  ;;  %7136 = vmatprep.mubr.msk.f32.mxu1 %vm905_vm4, %v4826_v61 }
 0xd73   :  { %v4795_v20 = vsel %vm837_vm1, %v4779_v14, %v4643_v9 }
 0xd74   :  { %v4811_v24 = vsel %vm854_vm2, %v4795_v20, %v9822_v51 }
 0xd76   :  { %v4747_v2 = vpop.permute.xlu1 %4746 }
 0xd77   :  { %v4827_v4 = vsel %vm871_vm3, %v4811_v24, %v4747_v2 }
 0xd78   :  { %7137 = vmatmul.mubr.msk.f32.gmra.mxu1 %vm905_vm4, %v4827_v4 }
 0xde3   :  { %v7117_v55 = vpop.f32.mrf.mxu1 }
 0xde4   :  { %v4965_v51 = vadd.f32 %v7117_v55, %v9938_v38 }
 0xde5   :  { %v4959_v62 = vpop.f32.mrf.mxu1 }
 0xde6   :  { %v4960_v15 = vadd.f32 %v9938_v38, %v4959_v62  ;;  %v5039_v49 = vmax.f32 %v4965_v51, 0.0  ;;  %v5262_v62 = vld [vmem:[%s6272_s16 + $0x18] sm:$0xff] }
 0xde7   :  { %7139 = vmatprep.subr.mxu0 %v5262_v62 }
 0xde8   :  { %v5038_v59 = vmax.f32 %v4960_v15, 0.0  ;;  %v9949_v17 = vadd.f32 %v5039_v49, %v9583_v60  ;;  %7140 = vmatpush3.msra.mxu0 %v5262_v62 }
 0xdea   :  { %v9944_v46 = vadd.f32 %v5038_v59, %v9585_v56  ;;  %v5071_v56 = vsel %vm837_vm1, %v9949_v17, 0.0  ;;  %v5259_v59 = vld [vmem:[%s6272_s16] sm:$0xff] }
 0xdec   :  { %v5070_v37 = vsel %vm837_vm1, %v9944_v46, 0.0 }
 0xded   :  { %v5072_v0 = vadd.f32 %v5071_v56, %v5070_v37 }
 0xdf3   :  { %v7120_v50 = vpop.f32.mrf.mxu1 }
 0xdf4   :  { %v4975_v28 = vadd.f32 %v7120_v50, %v9938_v38  ;;  %v5261_v50 = vld [vmem:[%s6272_s16 + $0x10] sm:$0xff] }
 0xdf5   :  { %v4969_v53 = vpop.f32.mrf.mxu1  ;;  %7141 = vmatprep.subr.mxu0 %v5261_v50 }
 0xdf6   :  { %v4970_v63 = vadd.f32 %v9938_v38, %v4969_v53  ;;  %v5041_v58 = vmax.f32 %v4975_v28, 0.0  ;;  %7142 = vmatpush3.msra.mxu0 %v5261_v50 }
 0xdf8   :  { %v5040_v52 = vmax.f32 %v4970_v63, 0.0  ;;  %v9962_v36 = vadd.f32 %v5041_v58, %v9595_v21 }
 0xdfa   :  { %v9952_v25 = vadd.f32 %v5040_v52, %v9591_v13  ;;  %v5075_v42 = vsel %vm837_vm1, %v9962_v36, 0.0 }
 0xdfc   :  { %v5073_v32 = vsel %vm837_vm1, %v9952_v25, 0.0 }
 0xdfd   :  { %v7123_v8 = vpop.f32.mrf.mxu1  ;;  %v5074_v10 = vadd.f32 %v5073_v32, %v5072_v0 }
 0xdfe   :  { %v4985_v54 = vadd.f32 %v7123_v8, %v9938_v38 }
 0xdff   :  { %v4979_v57 = vpop.f32.mrf.mxu1  ;;  %v5076_v12 = vadd.f32 %v5075_v42, %v5074_v10 }
 0xe00   :  { %v4980_v30 = vadd.f32 %v9938_v38, %v4979_v57  ;;  %v5043_v35 = vmax.f32 %v4985_v54, 0.0 }
 0xe02   :  { %v7126_v26 = vpop.f32.mrf.mxu1  ;;  %v5042_v31 = vmax.f32 %v4980_v30, 0.0  ;;  %v9976_v21 = vadd.f32 %v5043_v35, %v9603_v7 }
 0xe04   :  { %v4989_v23 = vpop.f32.mrf.mxu1  ;;  %v9965_v13 = vadd.f32 %v5042_v31, %v9599_v48  ;;  %v4995_v48 = vadd.f32 %v7126_v26, %v9938_v38  ;;  %v5079_v24 = vsel %vm837_vm1, %v9976_v21, 0.0 }
 0xe05   :  { %v4990_v27 = vadd.f32 %v9938_v38, %v4989_v23 }
 0xe06   :  { %v5077_v18 = vsel %vm837_vm1, %v9965_v13, 0.0  ;;  %v5045_v2 = vmax.f32 %v4995_v48, 0.0 }
 0xe07   :  { %v5044_v19 = vmax.f32 %v4990_v27, 0.0  ;;  %v5078_v14 = vadd.f32 %v5077_v18, %v5076_v12 }
 0xe08   :  { %v9990_v8 = vadd.f32 %v5045_v2, %v9611_v16 }
 0xe09   :  { %v9981_v9 = vadd.f32 %v5044_v19, %v9607_v40  ;;  %v5080_v55 = vadd.f32 %v5079_v24, %v5078_v14  ;;  %v5260_v40 = vld [vmem:[%s6272_s16 + $0x8] sm:$0xff] }
 0xe0a   :  { %7143 = vmatprep.subr.mxu0 %v5260_v40  ;;  %v5083_v52 = vsel %vm837_vm1, %v9990_v8, 0.0 }
 0xe0b   :  { %v5081_v7 = vsel %vm837_vm1, %v9981_v9, 0.0  ;;  %7144 = vmatpush3.msra.mxu0 %v5260_v40 }
 0xe0c   :  { %v5082_v63 = vadd.f32 %v5081_v7, %v5080_v55  ;;  %7145 = vmatprep.subr.mxu0 %v5259_v59 }
 0xe0d   :  { %7146 = vmatpush3.msra.mxu0 %v5259_v59  ;;  %v10044_v59 = vld [vmem:[#allocation3 + $0x38] sm:$0xff] }
 0xe0e   :  { %v5084_v30 = vadd.f32 %v5083_v52, %v5082_v63  ;;  %v10040_v63 = vld [vmem:[#allocation3 + $0x30] sm:$0xff] }
 0xe0f   :  { %5547 = vrot.lane.b32.xlu1 %v10040_v63, %s7314_s19 }
 0xe11   :  { %v7129_v60 = vpop.f32.mrf.mxu1 }
 0xe12   :  { %v5005_v53 = vadd.f32 %v7129_v60, %v9938_v38 }
 0xe13   :  { %v4999_v29 = vpop.f32.mrf.mxu1  ;;  %5549 = vrot.lane.b32.xlu1 %v10044_v59, %s7314_s19 }
 0xe14   :  { %v5000_v47 = vadd.f32 %v9938_v38, %v4999_v29  ;;  %v5047_v57 = vmax.f32 %v5005_v53, 0.0 }
 0xe16   :  { %v5046_v4 = vmax.f32 %v5000_v47, 0.0 }
 0xe18   :  { %v9993_v51 = vadd.f32 %v5046_v4, %v9615_v41  ;;  %v10001_v41 = vadd.f32 %v5047_v57, %v9619_v34 }
 0xe1a   :  { %v5085_v28 = vsel %vm837_vm1, %v9993_v51, 0.0  ;;  %v5087_v23 = vsel %vm837_vm1, %v10001_v41, 0.0 }
 0xe1b   :  { %v5086_v37 = vadd.f32 %v5085_v28, %v5084_v30  ;;  %v5514_v30 = vld [vmem:[#allocation3 + $0x98] sm:$0xff] }
 0xe1d   :  { %v5088_v0 = vadd.f32 %v5087_v23, %v5086_v37 }
 0xe21   :  { %v7132_v61 = vpop.f32.mrf.mxu1 }
 0xe22   :  { %v5015_v16 = vadd.f32 %v7132_v61, %v9938_v38 }
 0xe23   :  { %v5009_v20 = vpop.f32.mrf.mxu1 }
 0xe24   :  { %v5010_v15 = vadd.f32 %v9938_v38, %v5009_v20  ;;  %v5049_v58 = vmax.f32 %v5015_v16, 0.0 }
 0xe26   :  { %v5048_v49 = vmax.f32 %v5010_v15, 0.0  ;;  %v10013_v34 = vadd.f32 %v5049_v58, %v9627_v5  ;;  %v5511_v15 = vld [vmem:[#allocation3 + $0x80] sm:$0xff] }
 0xe27   :  { %5711 = vrot.lane.b32.xlu0 %v5511_v15, %s7316_s21 }
 0xe28   :  { %v10004_v26 = vadd.f32 %v5048_v49, %v9623_v1  ;;  %v5091_v42 = vsel %vm837_vm1, %v10013_v34, 0.0  ;;  %v5513_v49 = vld [vmem:[#allocation3 + $0x90] sm:$0xff] }
 0xe2a   :  { %v5089_v56 = vsel %vm837_vm1, %v10004_v26, 0.0 }
 0xe2b   :  { %v5090_v1 = vadd.f32 %v5089_v56, %v5088_v0 }
 0xe2d   :  { %v5092_v19 = vadd.f32 %v5091_v42, %v5090_v1  ;;  %v5520_v42 = vld [vmem:[#allocation3 + $0xa8] sm:$0xff] }
 0xe31   :  { %v7135_v31 = vpop.f32.mrf.mxu1 }
 0xe32   :  { %v5025_v32 = vadd.f32 %v7135_v31, %v9938_v38 }
 0xe33   :  { %v5019_v54 = vpop.f32.mrf.mxu1 }
 0xe34   :  { %v5020_v60 = vadd.f32 %v9938_v38, %v5019_v54  ;;  %v5051_v10 = vmax.f32 %v5025_v32, 0.0  ;;  %v5519_v54 = vld [vmem:[#allocation3 + $0xa0] sm:$0xff] }
 0xe36   :  { %v5050_v27 = vmax.f32 %v5020_v60, 0.0  ;;  %v10024_v5 = vadd.f32 %v5051_v10, %v9635_v33 }
 0xe38   :  { %v10016_v35 = vadd.f32 %v5050_v27, %v9631_v22  ;;  %v7138_v29 = vpop.f32.mrf.mxu1  ;;  %v5095_v20 = vsel %vm837_vm1, %v10024_v5, 0.0 }
 0xe39   :  { %v5035_v18 = vadd.f32 %v7138_v29, %v9938_v38 }
 0xe3a   :  { %v5093_v12 = vsel %vm837_vm1, %v10016_v35, 0.0  ;;  %v5029_v48 = vpop.f32.mrf.mxu1 }
 0xe3b   :  { %v5053_v47 = vmax.f32 %v5035_v18, 0.0  ;;  %v5030_v61 = vadd.f32 %v9938_v38, %v5029_v48  ;;  %v5094_v14 = vadd.f32 %v5093_v12, %v5092_v19  ;;  %v10116_v12 = vld [vmem:[#allocation3 + $0xf0] sm:$0xff] }
 0xe3d   :  { %v5052_v22 = vmax.f32 %v5030_v61, 0.0  ;;  %v10030_v24 = vadd.f32 %v5053_v47, %v9643_v44  ;;  %v5096_v4 = vadd.f32 %v5095_v20, %v5094_v14  ;;  %v5512_v44 = vld [vmem:[#allocation3 + $0x88] sm:$0xff] }
 0xe3e   :  { %5713 = vrot.lane.b32.xlu0 %v5512_v44, %s7316_s21  ;;  %5665 = vrot.lane.b32.xlu1 %v5512_v44, %s7315_s20 }
 0xe3f   :  { %v10033_v2 = vadd.f32 %v5052_v22, %v9639_v45  ;;  %v5099_v62 = vsel %vm837_vm1, %v10030_v24, 0.0 }
 0xe41   :  { %v5097_v55 = vsel %vm837_vm1, %v10033_v2, 0.0 }
 0xe42   :  { %v5098_v33 = vadd.f32 %v5097_v55, %v5096_v4  ;;  %5715 = vrot.lane.b32.xlu0 %v5513_v49, %s7316_s21  ;;  %5669 = vrot.lane.b32.xlu1 %v5514_v30, %s7315_s20 }
 0xe44   :  { %v5100_v38 = vadd.f32 %v5099_v62, %v5098_v33  ;;  %v5521_v33 = vld [vmem:[#allocation3 + $0xb0] sm:$0xff] }
 0xe46   :  { %v5101_v50 = vrot.slane %v5100_v38, 4  ;;  %5717 = vrot.lane.b32.xlu0 %v5514_v30, %s7316_s21  ;;  %5559 = vrot.lane.b32.xlu1 %v9878_v11, %s7314_s19 }
 0xe48   :  { %v5102_v7 = vadd.f32 %v5101_v50, %v5100_v38 }
 0xe4a   :  { %v5103_v53 = vrot.slane %v5102_v7, 2  ;;  %5663 = vrot.lane.b32.xlu0 %v5511_v15, %s7315_s20  ;;  %5561 = vrot.lane.b32.xlu1 %v9883_v39, %s7314_s19 }
 0xe4c   :  { %v5104_v40 = vadd.f32 %v5103_v53, %v5102_v7 }
 0xe4e   :  { %v5105_v45 = vrot.slane %v5104_v40, 1  ;;  %5719 = vrot.lane.b32.xlu0 %v5519_v54, %s7316_s21  ;;  %5563 = vrot.lane.b32.xlu1 %v10116_v12, %s7314_s19 }
 0xe50   :  { %v5106_v57 = vadd.f32 %v5105_v45, %v5104_v40 }
 0xe52   :  { %v10047_v52 = vmul.f32 0.0078125, %v5106_v57  ;;  %5721 = vrot.lane.b32.xlu0 %v5520_v42, %s7316_s21 }
 0xe54   :  { %v10053_v28 = vsub.f32 %v9944_v46, %v10047_v52  ;;  %v10057_v16 = vsub.f32 %v9949_v17, %v10047_v52  ;;  %v10062_v37 = vsub.f32 %v9952_v25, %v10047_v52  ;;  %v10067_v58 = vsub.f32 %v9962_v36, %v10047_v52 }
 0xe55   :  { %v10076_v31 = vsub.f32 %v9965_v13, %v10047_v52  ;;  %v10083_v36 = vsub.f32 %v9976_v21, %v10047_v52  ;;  %v10092_v0 = vsub.f32 %v9981_v9, %v10047_v52  ;;  %v10101_v27 = vsub.f32 %v9990_v8, %v10047_v52 }
 0xe56   :  { %v5124_v46 = vmul.f32 %v10053_v28, %v10053_v28  ;;  %v5125_v17 = vmul.f32 %v10057_v16, %v10057_v16  ;;  %v5126_v25 = vmul.f32 %v10062_v37, %v10062_v37  ;;  %v5127_v23 = vmul.f32 %v10067_v58, %v10067_v58  ;;  %5667 = vrot.lane.b32.xlu0 %v5513_v49, %s7315_s20 }
 0xe57   :  { %v5128_v60 = vmul.f32 %v10076_v31, %v10076_v31  ;;  %v5129_v10 = vmul.f32 %v10083_v36, %v10083_v36  ;;  %v10109_v18 = vsub.f32 %v9993_v51, %v10047_v52  ;;  %v5130_v11 = vmul.f32 %v10092_v0, %v10092_v0 }
 0xe58   :  { %v5140_v56 = vsel %vm837_vm1, %v5124_v46, 0.0  ;;  %v5141_v32 = vsel %vm837_vm1, %v5125_v17, 0.0  ;;  %v5143_v21 = vsel %vm837_vm1, %v5126_v25, 0.0  ;;  %v5145_v29 = vsel %vm837_vm1, %v5127_v23, 0.0  ;;  %v5515_v25 = vld [vmem:[#allocation3 + $0x140] sm:$0xff] }
 0xe59   :  { %v5142_v13 = vadd.f32 %v5141_v32, %v5140_v56  ;;  %v5147_v19 = vsel %vm837_vm1, %v5128_v60, 0.0  ;;  %v10120_v48 = vsub.f32 %v10001_v41, %v10047_v52  ;;  %v5131_v47 = vmul.f32 %v10101_v27, %v10101_v27 }
 0xe5a   :  { %v5149_v51 = vsel %vm837_vm1, %v5129_v10, 0.0  ;;  %v10128_v14 = vsub.f32 %v10004_v26, %v10047_v52  ;;  %v5132_v39 = vmul.f32 %v10109_v18, %v10109_v18  ;;  %v5151_v22 = vsel %vm837_vm1, %v5130_v11, 0.0  ;;  %5723 = vrot.lane.b32.xlu0 %v5521_v33, %s7316_s21 }
 0xe5b   :  { %v5144_v1 = vadd.f32 %v5143_v21, %v5142_v13  ;;  %v10137_v20 = vsub.f32 %v10013_v34, %v10047_v52  ;;  %v5133_v4 = vmul.f32 %v10120_v48, %v10120_v48  ;;  %v5153_v55 = vsel %vm837_vm1, %v5131_v47, 0.0 }
 0xe5c   :  { %v10145_v62 = vsub.f32 %v10016_v35, %v10047_v52  ;;  %v5134_v38 = vmul.f32 %v10128_v14, %v10128_v14  ;;  %v5155_v50 = vsel %vm837_vm1, %v5132_v39, 0.0  ;;  %v10152_v7 = vsub.f32 %v10024_v5, %v10047_v52  ;;  %v5522_v35 = vld [vmem:[#allocation3 + $0xb8] sm:$0xff] }
 0xe5d   :  { %v5146_v9 = vadd.f32 %v5145_v29, %v5144_v1  ;;  %v5135_v53 = vmul.f32 %v10137_v20, %v10137_v20  ;;  %v5157_v15 = vsel %vm837_vm1, %v5133_v4, 0.0  ;;  %v5122_v44 = vsub.f32 %v10033_v2, %v10047_v52 }
 0xe5e   :  { %v5136_v45 = vmul.f32 %v10145_v62, %v10145_v62  ;;  %v5159_v57 = vsel %vm837_vm1, %v5134_v38, 0.0  ;;  %v5123_v5 = vsub.f32 %v10030_v24, %v10047_v52  ;;  %v5137_v30 = vmul.f32 %v10152_v7, %v10152_v7  ;;  %5725 = vrot.lane.b32.xlu0 %v5522_v35, %s7316_s21  ;;  %v10172_v24 = vld [vmem:[#allocation3 + $0x148] sm:$0xff] }
 0xe5f   :  { %v5148_v8 = vadd.f32 %v5147_v19, %v5146_v9  ;;  %v5161_v46 = vsel %vm837_vm1, %v5135_v53, 0.0  ;;  %v5138_v23 = vmul.f32 %v5122_v44, %v5122_v44 }
 0xe60   :  { %v5163_v2 = vsel %vm837_vm1, %v5136_v45, 0.0  ;;  %v5139_v32 = vmul.f32 %v5123_v5, %v5123_v5  ;;  %v5165_v13 = vsel %vm837_vm1, %v5137_v30, 0.0 }
 0xe61   :  { %v5150_v61 = vadd.f32 %v5149_v51, %v5148_v8  ;;  %v5167_v52 = vsel %vm837_vm1, %v5138_v23, 0.0 }
 0xe62   :  { %5727 = vrot.lane.b32.xlu0 %v5515_v25, %s7316_s21  ;;  %v5169_v21 = vsel %vm837_vm1, %v5139_v32, 0.0 }
 0xe63   :  { %v5152_v41 = vadd.f32 %v5151_v22, %v5150_v61 }
 0xe65   :  { %v5154_v26 = vadd.f32 %v5153_v55, %v5152_v41 }
 0xe66   :  { %5729 = vrot.lane.b32.xlu0 %v10172_v24, %s7316_s21 }
 0xe67   :  { %v5156_v34 = vadd.f32 %v5155_v50, %v5154_v26  ;;  %v6453_v50 = vld [vmem:[%s6271_s28] ss:$0 sm:$0xff] }
 0xe69   :  { %v5158_v40 = vadd.f32 %v5157_v15, %v5156_v34 }
 0xe6a   :  { %5731 = vrot.lane.b32.xlu0 %v9797_v3, %s7316_s21  ;;  %v5178_v3 = vld [vmem:[%s6270_s24] sm:$0x1] }
 0xe6b   :  { %v5160_v49 = vadd.f32 %v5159_v57, %v5158_v40 }
 0xe6d   :  { %v5162_v17 = vadd.f32 %v5161_v46, %v5160_v49 }
 0xe6e   :  { %5733 = vrot.lane.b32.xlu0 %v9814_v6, %s7316_s21 }
 0xe6f   :  { %v5164_v56 = vadd.f32 %v5163_v2, %v5162_v17 }
 0xe71   :  { %v5166_v54 = vadd.f32 %v5165_v13, %v5164_v56 }
 0xe72   :  { %5679 = vrot.lane.b32.xlu0 %v5515_v25, %s7315_s20 }
 0xe73   :  { %v5168_v60 = vadd.f32 %v5167_v52, %v5166_v54 }
 0xe75   :  { %v5170_v1 = vadd.f32 %v5169_v21, %v5168_v60 }
 0xe77   :  { %v5171_v10 = vrot.slane %v5170_v1, 4 }
 0xe79   :  { %v5172_v29 = vadd.f32 %v5171_v10, %v5170_v1 }
 0xe7b   :  { %v5173_v9 = vrot.slane %v5172_v29, 2 }
 0xe7d   :  { %v5174_v42 = vadd.f32 %v5173_v9, %v5172_v29  ;;  %v10284_v9 = vld [vmem:[#allocation3 + $0xf8] sm:$0xff] }
 0xe7e   :  { %5565 = vrot.lane.b32.xlu1 %v10284_v9, %s7314_s19 }
 0xe7f   :  { %v5175_v11 = vrot.slane %v5174_v42, 1 }
 0xe81   :  { %v5176_v19 = vadd.f32 %v5175_v11, %v5174_v42  ;;  %v5523_v42 = vld [vmem:[#allocation3 + $0x160] sm:$0xff]  ;;  %v5524_v11 = vld [vmem:[#allocation3 + $0x168] sm:$0xff] }
 0xe82   :  { %5735 = vrot.lane.b32.xlu0 %v5523_v42, %s7316_s21  ;;  %5681 = vrot.lane.b32.xlu1 %v10172_v24, %s7315_s20 }
 0xe83   :  { %v5177_v8 = vmul.f32 0.0078125, %v5176_v19  ;;  %v10296_v19 = vld [vmem:[%s6273_s1] ss:$0 sm:$0xff] }
 0xe85   :  { %v5179_v47 = vadd.f32 1e-05, %v5177_v8 }
 0xe86   :  { %5737 = vrot.lane.b32.xlu0 %v5524_v11, %s7316_s21 }
 0xe87   :  { %7283 = vrsqrt.f32 %v5179_v47 }
 0xe94   :  { %v7284_v6 = vpop.eup %7283 }
 0xe95   :  { %v5181_v51 = vmul.f32 %v7284_v6, %v5178_v3 }
 0xe97   :  { %v5186_v61 = vrot.slane %v5181_v51, %v7906_v43  ;;  %v5481_v43 = vld [vmem:[#allocation3 + $0x10] sm:$0xff] }
 0xe99   :  { %v5188_v39 = vmul.f32 %v5186_v61, %v10053_v28  ;;  %v5189_v22 = vmul.f32 %v5186_v61, %v10057_v16  ;;  %v5190_v41 = vmul.f32 %v5186_v61, %v10062_v37  ;;  %v5191_v4 = vmul.f32 %v5186_v61, %v10067_v58 }
 0xe9a   :  { %v5192_v55 = vmul.f32 %v5186_v61, %v10076_v31  ;;  %v5193_v26 = vmul.f32 %v5186_v61, %v10083_v36  ;;  %v5194_v33 = vmul.f32 %v5186_v61, %v10092_v0  ;;  %v5195_v38 = vmul.f32 %v5186_v61, %v10101_v27 }
 0xe9b   :  { %v5196_v34 = vmul.f32 %v5186_v61, %v10109_v18  ;;  %v5197_v53 = vmul.f32 %v5186_v61, %v10120_v48  ;;  %v5198_v28 = vmul.f32 %v5186_v61, %v10128_v14  ;;  %v5199_v16 = vmul.f32 %v5186_v61, %v10137_v20 }
 0xe9c   :  { %v5200_v37 = vmul.f32 %v5186_v61, %v10145_v62  ;;  %v5201_v58 = vmul.f32 %v5186_v61, %v10152_v7  ;;  %v5202_v31 = vmul.f32 %v5186_v61, %v5122_v44  ;;  %v5203_v15 = vmul.f32 %v5186_v61, %v5123_v5  ;;  %v5832_v61 = vld [vmem:[%s10301_s5 + $0x48] sm:$0xff] }
 0xe9d   :  { %v5212_v36 = vadd.f32 %v6453_v50, %v5189_v22  ;;  %v5213_v40 = vadd.f32 %v6453_v50, %v5190_v41  ;;  %v5214_v0 = vadd.f32 %v6453_v50, %v5191_v4  ;;  %v5215_v35 = vadd.f32 %v6453_v50, %v5192_v55  ;;  %7171 = vmatprep.subr.mxu1 %v5832_v61  ;;  %v5831_v22 = vld [vmem:[%s10301_s5 + $0x40] sm:$0xff]  ;;  %v5830_v55 = vld [vmem:[%s10301_s5 + $0x38] sm:$0xff] }
 0xe9e   :  { %v5216_v27 = vadd.f32 %v6453_v50, %v5193_v26  ;;  %v5217_v45 = vadd.f32 %v6453_v50, %v5194_v33  ;;  %v5218_v57 = vadd.f32 %v6453_v50, %v5195_v38  ;;  %v5219_v18 = vadd.f32 %v6453_v50, %v5196_v34  ;;  %7172 = vmatpush3.msra.mxu1 %v5832_v61 }
 0xe9f   :  { %v5220_v49 = vadd.f32 %v6453_v50, %v5197_v53  ;;  %v5221_v48 = vadd.f32 %v6453_v50, %v5198_v28  ;;  %v5222_v30 = vadd.f32 %v6453_v50, %v5199_v16  ;;  %v5223_v14 = vadd.f32 %v6453_v50, %v5200_v37  ;;  %5228 = vst.msk [vmem:[#allocation2 + $0x8] sm:$0xff] %vm837_vm1, %v5212_v36  ;;  %v5828_v37 = vld [vmem:[%s10301_s5 + $0x28] sm:$0xff] }
 0xea0   :  { %5229 = vst.msk [vmem:[#allocation2 + $0x10] sm:$0xff] %vm837_vm1, %v5213_v40  ;;  %5230 = vst.msk [vmem:[#allocation2 + $0x18] sm:$0xff] %vm837_vm1, %v5214_v0  ;;  %v5224_v20 = vadd.f32 %v6453_v50, %v5201_v58  ;;  %v5225_v62 = vadd.f32 %v6453_v50, %v5202_v31  ;;  %v5226_v7 = vadd.f32 %v6453_v50, %v5203_v15  ;;  %7173 = vmatprep.subr.mxu1 %v5831_v22  ;;  %v5827_v31 = vld [vmem:[%s10301_s5 + $0x20] sm:$0xff]  ;;  %v5826_v0 = vld [vmem:[%s10301_s5 + $0x18] sm:$0xff] }
 0xea1   :  { %5231 = vst.msk [vmem:[#allocation2 + $0x20] sm:$0xff] %vm837_vm1, %v5215_v35  ;;  %5232 = vst.msk [vmem:[#allocation2 + $0x28] sm:$0xff] %vm837_vm1, %v5216_v27  ;;  %v5211_v44 = vadd.f32 %v6453_v50, %v5188_v39  ;;  %7174 = vmatpush3.msra.mxu1 %v5831_v22  ;;  %v5829_v50 = vld [vmem:[%s10301_s5 + $0x30] sm:$0xff] }
 0xea2   :  { %5233 = vst.msk [vmem:[#allocation2 + $0x30] sm:$0xff] %vm837_vm1, %v5217_v45  ;;  %5234 = vst.msk [vmem:[#allocation2 + $0x38] sm:$0xff] %vm837_vm1, %v5218_v57  ;;  %7175 = vmatprep.subr.mxu1 %v5830_v55  ;;  %v5825_v45 = vld [vmem:[%s10301_s5 + $0x10] sm:$0xff] }
 0xea3   :  { %5235 = vst.msk [vmem:[#allocation2 + $0x40] sm:$0xff] %vm837_vm1, %v5219_v18  ;;  %5237 = vst.msk [vmem:[#allocation2 + $0x50] sm:$0xff] %vm837_vm1, %v5221_v48  ;;  %7176 = vmatpush3.msra.mxu1 %v5830_v55  ;;  %v10335_v18 = vpop.permute.xlu0 %5543 }
 0xea4   :  { %5238 = vst.msk [vmem:[#allocation2 + $0x58] sm:$0xff] %vm837_vm1, %v5222_v30  ;;  %5239 = vst.msk [vmem:[#allocation2 + $0x60] sm:$0xff] %vm837_vm1, %v5223_v14  ;;  %7177 = vmatprep.subr.mxu1 %v5829_v50  ;;  %v5824_v14 = vld [vmem:[%s10301_s5 + $0x8] sm:$0xff] }
 0xea5   :  { %5236 = vst.msk [vmem:[#allocation2 + $0x48] sm:$0xff] %vm837_vm1, %v5220_v49  ;;  %5240 = vst.msk [vmem:[#allocation2 + $0x68] sm:$0xff] %vm837_vm1, %v5224_v20  ;;  %7178 = vmatpush3.msra.mxu1 %v5829_v50 }
 0xea6   :  { %5241 = vst.msk [vmem:[#allocation2 + $0x70] sm:$0xff] %vm837_vm1, %v5225_v62  ;;  %5242 = vst.msk [vmem:[#allocation2 + $0x78] sm:$0xff] %vm837_vm1, %v5226_v7  ;;  %v10220_v5 = vld [vmem:[#allocation2 + $0x8] sm:$0xff]  ;;  %7179 = vmatprep.subr.mxu1 %v5828_v37 }
 0xea7   :  { %5227 = vst.msk [vmem:[#allocation2] sm:$0xff] %vm837_vm1, %v5211_v44  ;;  %v10228_v17 = vld [vmem:[#allocation2 + $0x10] sm:$0xff]  ;;  %v10232_v25 = vld [vmem:[#allocation2 + $0x18] sm:$0xff]  ;;  %7180 = vmatpush3.msra.mxu1 %v5828_v37  ;;  %v5823_v44 = vld [vmem:[%s10301_s5] sm:$0xff] }
 0xea8   :  { %v10236_v23 = vld [vmem:[#allocation2 + $0x20] sm:$0xff]  ;;  %v10240_v2 = vld [vmem:[#allocation2 + $0x28] sm:$0xff]  ;;  %7181 = vmatprep.subr.mxu1 %v5827_v31 }
 0xea9   :  { %v10244_v56 = vld [vmem:[#allocation2 + $0x30] sm:$0xff]  ;;  %v10248_v32 = vld [vmem:[#allocation2 + $0x38] sm:$0xff]  ;;  %7182 = vmatpush3.msra.mxu1 %v5827_v31 }
 0xeaa   :  { %v10252_v13 = vld [vmem:[#allocation2 + $0x40] sm:$0xff]  ;;  %v10260_v52 = vld [vmem:[#allocation2 + $0x50] sm:$0xff]  ;;  %7183 = vmatprep.subr.mxu1 %v5826_v0 }
 0xeab   :  { %v10264_v60 = vld [vmem:[#allocation2 + $0x58] sm:$0xff]  ;;  %v10268_v21 = vld [vmem:[#allocation2 + $0x60] sm:$0xff]  ;;  %7184 = vmatpush3.msra.mxu1 %v5826_v0  ;;  %v5525_v31 = vld [vmem:[#allocation3 + $0x170] sm:$0xff] }
 0xeac   :  { %v10256_v54 = vld [vmem:[#allocation2 + $0x48] sm:$0xff]  ;;  %7185 = vmatprep.subr.mxu1 %v5825_v45 }
 0xead   :  { %v10272_v1 = vld [vmem:[#allocation2 + $0x68] sm:$0xff]  ;;  %v10276_v10 = vld [vmem:[#allocation2 + $0x70] sm:$0xff]  ;;  %v10280_v29 = vld [vmem:[#allocation2 + $0x78] sm:$0xff]  ;;  %7186 = vmatpush3.msra.mxu1 %v5825_v45 }
 0xeae   :  { %v10222_v46 = vld [vmem:[#allocation2] sm:$0xff]  ;;  %10773 = vst [vmem:[#allocation5_spill] sm:$0xff] %v10272_v1  ;;  %10774 = vst [vmem:[#allocation6_spill] sm:$0xff] %v10276_v10  ;;  %7187 = vmatprep.subr.mxu1 %v5824_v14 }
 0xeaf   :  { %7147 = vmatprep.mubr.msk.f32.mxu0 %vm837_vm1, %v10222_v46  ;;  %10775 = vst [vmem:[#allocation7_spill] sm:$0xff] %v10280_v29  ;;  %7188 = vmatpush3.msra.mxu1 %v5824_v14  ;;  %v7304_v14 = vld [vmem:[#allocation3 + $0x158] sm:$0xff] }
 0xeb0   :  { %7148 = vmatmul.mubr.msk.f32.vlgmr.msra.gmra.mxu0 %vm837_vm1, %v10220_v5  ;;  %7189 = vmatprep.subr.mxu1 %v5823_v44 }
 0xeb1   :  { %7150 = vmatprep.mubr.msk.f32.mxu0 %vm837_vm1, %v10228_v17  ;;  %7190 = vmatpush3.msra.mxu1 %v5823_v44 }
 0xeb4   :  { %7151 = vmatmul.mubr.msk.f32.gmra.mxu0 %vm837_vm1, %v10232_v25 }
 0xeb5   :  { %7153 = vmatprep.mubr.msk.f32.mxu0 %vm837_vm1, %v10236_v23 }
 0xeb8   :  { %7154 = vmatmul.mubr.msk.f32.gmra.mxu0 %vm837_vm1, %v10240_v2 }
 0xeb9   :  { %7156 = vmatprep.mubr.msk.f32.mxu0 %vm837_vm1, %v10244_v56 }
 0xebc   :  { %7157 = vmatmul.mubr.msk.f32.gmra.mxu0 %vm837_vm1, %v10248_v32 }
 0xebd   :  { %7159 = vmatprep.mubr.msk.f32.mxu0 %vm837_vm1, %v10252_v13 }
 0xec0   :  { %7160 = vmatmul.mubr.msk.f32.gmra.mxu0 %vm837_vm1, %v10256_v54 }
 0xec1   :  { %7162 = vmatprep.mubr.msk.f32.mxu0 %vm837_vm1, %v10260_v52 }
 0xec4   :  { %7163 = vmatmul.mubr.msk.f32.gmra.mxu0 %vm837_vm1, %v10264_v60 }
 0xec5   :  { %7165 = vmatprep.mubr.msk.f32.mxu0 %vm837_vm1, %v10268_v21 }
 0xec8   :  { %7166 = vmatmul.mubr.msk.f32.gmra.mxu0 %vm837_vm1, %v10272_v1 }
 0xec9   :  { %7168 = vmatprep.mubr.msk.f32.mxu0 %vm837_vm1, %v10276_v10  ;;  %v5480_v10 = vld [vmem:[#allocation3 + $0x8] sm:$0xff] }
 0xecc   :  { %7169 = vmatmul.mubr.msk.f32.gmra.mxu0 %vm837_vm1, %v10280_v29 }
 0xf70   :  { %v7149_v8 = vpop.f32.mrf.mxu0 }
 0xf71   :  { %v5390_v24 = vadd.f32 %v7149_v8, %v10296_v19  ;;  %v10348_v8 = vpop.permute.xlu0 %5711 }
 0xf72   :  { %v5384_v47 = vpop.f32.mrf.mxu0 }
 0xf73   :  { %5464 = vst.msk [vmem:[#allocation3 + $0x48] sm:$0xff] %vm154_vm0, %v5390_v24  ;;  %v5385_v3 = vadd.f32 %v10296_v19, %v5384_v47 }
 0xf74   :  { %v7152_v6 = vpop.f32.mrf.mxu0 }
 0xf75   :  { %5463 = vst.msk [vmem:[#allocation3 + $0x40] sm:$0xff] %vm154_vm0, %v5385_v3  ;;  %v5400_v51 = vadd.f32 %v7152_v6, %v10296_v19  ;;  %v10359_v22 = vpop.permute.xlu0 %5713 }
 0xf76   :  { %v5394_v39 = vpop.f32.mrf.mxu0 }
 0xf77   :  { %5466 = vst.msk [vmem:[#allocation3 + $0x58] sm:$0xff] %vm154_vm0, %v5400_v51  ;;  %v5395_v41 = vadd.f32 %v10296_v19, %v5394_v39 }
 0xf78   :  { %v7155_v4 = vpop.f32.mrf.mxu0 }
 0xf79   :  { %5465 = vst.msk [vmem:[#allocation3 + $0x50] sm:$0xff] %vm154_vm0, %v5395_v41  ;;  %v5410_v26 = vadd.f32 %v7155_v4, %v10296_v19  ;;  %v10365_v55 = vpop.permute.xlu0 %5715 }
 0xf7a   :  { %v5404_v33 = vpop.f32.mrf.mxu0  ;;  %v5496_v38 = vld [vmem:[#allocation3 + $0x48] sm:$0xff] }
 0xf7b   :  { %5468 = vst.msk [vmem:[#allocation3 + $0x68] sm:$0xff] %vm154_vm0, %v5410_v26  ;;  %v5405_v34 = vadd.f32 %v10296_v19, %v5404_v33  ;;  %5601 = vrot.lane.b32.xlu1 %v5496_v38, %s7313_s18 }
 0xf7c   :  { %v7158_v53 = vpop.f32.mrf.mxu0  ;;  %v5495_v28 = vld [vmem:[#allocation3 + $0x40] sm:$0xff] }
 0xf7d   :  { %5467 = vst.msk [vmem:[#allocation3 + $0x60] sm:$0xff] %vm154_vm0, %v5405_v34  ;;  %v5420_v16 = vadd.f32 %v7158_v53, %v10296_v19  ;;  %5599 = vrot.lane.b32.xlu0 %v5495_v28, %s7313_s18  ;;  %v10370_v33 = vpop.permute.xlu0 %5717 }
 0xf7e   :  { %v5414_v58 = vpop.f32.mrf.mxu0  ;;  %v5498_v62 = vld [vmem:[#allocation3 + $0x58] sm:$0xff] }
 0xf7f   :  { %5470 = vst.msk [vmem:[#allocation3 + $0x78] sm:$0xff] %vm154_vm0, %v5420_v16  ;;  %v5415_v15 = vadd.f32 %v10296_v19, %v5414_v58  ;;  %5553 = vrot.lane.b32.xlu1 %v5496_v38, %s7314_s19  ;;  %v7303_v16 = vld [vmem:[#allocation3 + $0x150] sm:$0xff] }
 0xf80   :  { %v7161_v36 = vpop.f32.mrf.mxu0  ;;  %v5497_v40 = vld [vmem:[#allocation3 + $0x50] sm:$0xff] }
 0xf81   :  { %5469 = vst.msk [vmem:[#allocation3 + $0x70] sm:$0xff] %vm154_vm0, %v5415_v15  ;;  %v5430_v35 = vadd.f32 %v7161_v36, %v10296_v19  ;;  %5603 = vrot.lane.b32.xlu0 %v5497_v40, %s7313_s18  ;;  %v10375_v50 = vpop.permute.xlu0 %5663  ;;  %v5546_v15 = vpop.permute.xlu1 %5545 }
 0xf82   :  { %v5424_v27 = vpop.f32.mrf.mxu0  ;;  %v5504_v41 = vld [vmem:[#allocation3 + $0x68] sm:$0xff] }
 0xf83   :  { %5472 = vst.msk [vmem:[#allocation3 + $0x108] sm:$0xff] %vm154_vm0, %v5430_v35  ;;  %v5425_v57 = vadd.f32 %v10296_v19, %v5424_v27  ;;  %5551 = vrot.lane.b32.xlu1 %v5495_v28, %s7314_s19 }
 0xf84   :  { %v7164_v49 = vpop.f32.mrf.mxu0  ;;  %v5503_v48 = vld [vmem:[#allocation3 + $0x60] sm:$0xff] }
 0xf85   :  { %5471 = vst.msk [vmem:[#allocation3 + $0x100] sm:$0xff] %vm154_vm0, %v5425_v57  ;;  %v5440_v30 = vadd.f32 %v7164_v49, %v10296_v19  ;;  %5655 = vrot.lane.b32.xlu0 %v5503_v48, %s7315_s20  ;;  %v10380_v28 = vpop.permute.xlu0 %5719 }
 0xf86   :  { %v5434_v20 = vpop.f32.mrf.mxu0 }
 0xf87   :  { %5474 = vst.msk [vmem:[#allocation3 + $0x118] sm:$0xff] %vm154_vm0, %v5440_v30  ;;  %v5435_v7 = vadd.f32 %v10296_v19, %v5434_v20  ;;  %5605 = vrot.lane.b32.xlu1 %v5498_v62, %s7313_s18 }
 0xf88   :  { %v7167_v42 = vpop.f32.mrf.mxu0  ;;  %v5505_v6 = vld [vmem:[#allocation3 + $0x70] sm:$0xff] }
 0xf89   :  { %5473 = vst.msk [vmem:[#allocation3 + $0x110] sm:$0xff] %vm154_vm0, %v5435_v7  ;;  %v5450_v11 = vadd.f32 %v7167_v42, %v10296_v19  ;;  %5607 = vrot.lane.b32.xlu0 %v5503_v48, %s7313_s18  ;;  %v10385_v37 = vpop.permute.xlu0 %5721 }
 0xf8a   :  { %v5444_v24 = vpop.f32.mrf.mxu0  ;;  %v5500_v34 = vld [vmem:[#allocation3 + $0x108] sm:$0xff] }
 0xf8b   :  { %5476 = vst.msk [vmem:[#allocation3 + $0x128] sm:$0xff] %vm154_vm0, %v5450_v11  ;;  %v5445_v47 = vadd.f32 %v10296_v19, %v5444_v24  ;;  %5557 = vrot.lane.b32.xlu1 %v5498_v62, %s7314_s19  ;;  %v5526_v62 = vld [vmem:[#allocation3 + $0x178] sm:$0xff] }
 0xf8c   :  { %v7170_v3 = vpop.f32.mrf.mxu0  ;;  %v5499_v4 = vld [vmem:[#allocation3 + $0x100] sm:$0xff] }
 0xf8d   :  { %5475 = vst.msk [vmem:[#allocation3 + $0x120] sm:$0xff] %vm154_vm0, %v5445_v47  ;;  %v5460_v51 = vadd.f32 %v7170_v3, %v10296_v19  ;;  %5659 = vrot.lane.b32.xlu0 %v5505_v6, %s7315_s20  ;;  %v10390_v36 = vpop.permute.xlu0 %5667 }
 0xf8e   :  { %v5454_v61 = vpop.f32.mrf.mxu0  ;;  %v5502_v58 = vld [vmem:[#allocation3 + $0x118] sm:$0xff] }
 0xf8f   :  { %5478 = vst.msk [vmem:[#allocation3 + $0x138] sm:$0xff] %vm154_vm0, %v5460_v51  ;;  %v5455_v39 = vadd.f32 %v10296_v19, %v5454_v61  ;;  %5555 = vrot.lane.b32.xlu1 %v5497_v40, %s7314_s19  ;;  %v5506_v19 = vld [vmem:[#allocation3 + $0x78] sm:$0xff]  ;;  %v5548_v40 = vpop.permute.xlu1 %5547 }
 0xf90   :  { %v5501_v26 = vld [vmem:[#allocation3 + $0x110] sm:$0xff]  ;;  %v5761_v1 = vsel %vm154_vm0, %v5481_v43, %v5548_v40  ;;  %v5482_v40 = vld [vmem:[#allocation3 + $0x18] sm:$0xff] }
 0xf91   :  { %5477 = vst.msk [vmem:[#allocation3 + $0x130] sm:$0xff] %vm154_vm0, %v5455_v39  ;;  %5611 = vrot.lane.b32.xlu0 %v5505_v6, %s7313_s18  ;;  %v10393_v0 = vpop.permute.xlu0 %5723 }
 0xf92   :  { %v5508_v35 = vld [vmem:[#allocation3 + $0x128] sm:$0xff] }
 0xf93   :  { %5657 = vrot.lane.b32.xlu1 %v5504_v41, %s7315_s20  ;;  %v10396_v27 = vpop.permute.xlu1 %5549 }
 0xf94   :  { %v5507_v38 = vld [vmem:[#allocation3 + $0x120] sm:$0xff] }
 0xf95   :  { %5615 = vrot.lane.b32.xlu0 %v5499_v4, %s7313_s18  ;;  %v10399_v45 = vpop.permute.xlu0 %5725 }
 0xf96   :  { %v5510_v57 = vld [vmem:[#allocation3 + $0x138] sm:$0xff] }
 0xf97   :  { %5609 = vrot.lane.b32.xlu1 %v5504_v41, %s7313_s18  ;;  %v10402_v49 = vpop.permute.xlu1 %5665 }
 0xf98   :  { %v5509_v53 = vld [vmem:[#allocation3 + $0x130] sm:$0xff] }
 0xf99   :  { %5619 = vrot.lane.b32.xlu0 %v5501_v26, %s7313_s18  ;;  %v10404_v48 = vpop.permute.xlu0 %5727 }
 0xf9b   :  { %5661 = vrot.lane.b32.xlu1 %v5506_v19, %s7315_s20  ;;  %v10407_v30 = vpop.permute.xlu1 %5669 }
 0xf9d   :  { %5671 = vrot.lane.b32.xlu0 %v5507_v38, %s7315_s20  ;;  %v10410_v20 = vpop.permute.xlu0 %5729 }
 0xf9f   :  { %5613 = vrot.lane.b32.xlu1 %v5506_v19, %s7313_s18  ;;  %v10413_v7 = vpop.permute.xlu1 %5559 }
 0xfa1   :  { %5623 = vrot.lane.b32.xlu0 %v5507_v38, %s7313_s18  ;;  %v10415_v44 = vpop.permute.xlu0 %5731 }
 0xfa3   :  { %5617 = vrot.lane.b32.xlu1 %v5500_v34, %s7313_s18  ;;  %v10417_v42 = vpop.permute.xlu1 %5561 }
 0xfa5   :  { %5675 = vrot.lane.b32.xlu0 %v5509_v53, %s7315_s20  ;;  %v10419_v11 = vpop.permute.xlu0 %5733 }
 0xfa7   :  { %5569 = vrot.lane.b32.xlu1 %v5500_v34, %s7314_s19  ;;  %v10421_v24 = vpop.permute.xlu1 %5563 }
 0xfa9   :  { %5683 = vrot.lane.b32.xlu0 %v7303_v16, %s7315_s20  ;;  %v10423_v47 = vpop.permute.xlu0 %5679 }
 0xfab   :  { %5567 = vrot.lane.b32.xlu1 %v5499_v4, %s7314_s19  ;;  %v10425_v3 = vpop.permute.xlu1 %5565 }
 0xfad   :  { %5627 = vrot.lane.b32.xlu0 %v5509_v53, %s7313_s18  ;;  %v10427_v6 = vpop.permute.xlu0 %5735 }
 0xfaf   :  { %5621 = vrot.lane.b32.xlu1 %v5502_v58, %s7313_s18  ;;  %v10429_v51 = vpop.permute.xlu1 %5681 }
 0xfb1   :  { %5739 = vrot.lane.b32.xlu0 %v5525_v31, %s7316_s21  ;;  %v10431_v61 = vpop.permute.xlu0 %5737 }
 0xfb3   :  { %5573 = vrot.lane.b32.xlu1 %v5502_v58, %s7314_s19 }
 0xfb7   :  { %5571 = vrot.lane.b32.xlu1 %v5501_v26, %s7314_s19  ;;  %v5479_v26 = vld [vmem:[#allocation3] sm:$0xff] }
 0xfb8   :  { %v5759_v34 = vsel %vm154_vm0, %v5479_v26, %v10335_v18 }
 0xfbb   :  { %5673 = vrot.lane.b32.xlu1 %v5508_v35, %s7315_s20 }
 0xfbf   :  { %5625 = vrot.lane.b32.xlu1 %v5508_v35, %s7313_s18 }
 0xfc3   :  { %5677 = vrot.lane.b32.xlu1 %v5510_v57, %s7315_s20 }
 0xfc7   :  { %5629 = vrot.lane.b32.xlu1 %v5510_v57, %s7313_s18  ;;  %s7345_s18 = smov 34  }
 0xfcb   :  { %5685 = vrot.lane.b32.xlu1 %v7304_v14, %s7315_s20 }
 0xfcf   :  { %5741 = vrot.lane.b32.xlu1 %v5526_v62, %s7316_s21  ;;  %s6275_s21 = sld [smem:[%s10767_s0 + %s7345_s18]]  }
 0xfed   :  { %v5602_v39 = vpop.permute.xlu1 %5601 }
 0xfef   :  { %v5600_v41 = vpop.permute.xlu0 %5599 }
 0xff0   :  { %v5775_v53 = vsel %vm837_vm1, %v5759_v34, %v5600_v41  ;;  %v5760_v41 = vsel %vm154_vm0, %v5480_v10, %v5546_v15  ;;  %v7305_v10 = vld [vmem:[#allocation3 + $0x20] sm:$0xff] }
 0xff1   :  { %v5554_v4 = vpop.permute.xlu1 %5553  ;;  %v5776_v34 = vsel %vm837_vm1, %v5760_v41, %v5602_v39 }
 0xff3   :  { %v5604_v19 = vpop.permute.xlu0 %5603 }
 0xff4   :  { %v5777_v26 = vsel %vm837_vm1, %v5761_v1, %v5604_v19 }
 0xff5   :  { %v5552_v38 = vpop.permute.xlu1 %5551 }
 0xff6   :  { %v5763_v1 = vsel %vm154_vm0, %v7305_v10, %v5552_v38 }
 0xff7   :  { %v5656_v16 = vpop.permute.xlu0 %5655 }
 0xff8   :  { %v5791_v58 = vsel %vm854_vm2, %v5775_v53, %v5656_v16 }
 0xff9   :  { %v5606_v31 = vpop.permute.xlu1 %5605  ;;  %v5807_v35 = vsel %vm871_vm3, %v5791_v58, %v10348_v8 }
 0xffa   :  { %7191 = vmatprep.mubr.msk.f32.mxu1 %vm905_vm4, %v5807_v35 }
 0xffb   :  { %v5608_v57 = vpop.permute.xlu0 %5607 }
 0xffc   :  { %v5779_v39 = vsel %vm837_vm1, %v5763_v1, %v5608_v57  ;;  %v5489_v1 = vld [vmem:[#allocation3 + $0xd0] sm:$0xff] }
 0xffd   :  { %v5558_v14 = vpop.permute.xlu1 %5557  ;;  %v5795_v38 = vsel %vm854_vm2, %v5779_v39, %v10375_v50 }
 0xffe   :  { %v5766_v50 = vsel %vm154_vm0, %v10044_v59, %v5558_v14 }
 0xfff   :  { %v5660_v62 = vpop.permute.xlu0 %5659 }
0x1000   :  { %v5793_v53 = vsel %vm854_vm2, %v5777_v26, %v5660_v62  ;;  %v7306_v62 = vld [vmem:[#allocation3 + $0x28] sm:$0xff] }
0x1001   :  { %v5556_v29 = vpop.permute.xlu1 %5555  ;;  %v5809_v43 = vsel %vm871_vm3, %v5793_v53, %v10365_v55  ;;  %v5764_v41 = vsel %vm154_vm0, %v7306_v62, %v5554_v4  ;;  %v5811_v4 = vsel %vm871_vm3, %v5795_v38, %v10380_v28 }
0x1002   :  { %v5765_v19 = vsel %vm154_vm0, %v10040_v63, %v5556_v29  ;;  %v5487_v29 = vld [vmem:[#allocation3 + $0xc0] sm:$0xff] }
0x1003   :  { %v5612_v18 = vpop.permute.xlu0 %5611 }
0x1004   :  { %v5781_v57 = vsel %vm837_vm1, %v5765_v19, %v5612_v18 }
0x1005   :  { %v5658_v8 = vpop.permute.xlu1 %5657 }
0x1006   :  { %v5792_v16 = vsel %vm854_vm2, %v5776_v34, %v5658_v8 }
0x1007   :  { %v5808_v58 = vsel %vm871_vm3, %v5792_v16, %v10359_v22  ;;  %v5616_v35 = vpop.permute.xlu0 %5615  ;;  %v5762_v22 = vsel %vm154_vm0, %v5482_v40, %v10396_v27 }
0x1008   :  { %7192 = vmatmul.mubr.msk.f32.vlgmr.msra.gmra.mxu1 %vm905_vm4, %v5808_v58  ;;  %v5778_v55 = vsel %vm837_vm1, %v5762_v22, %v5606_v31  ;;  %v5797_v31 = vsel %vm854_vm2, %v5781_v57, %v10390_v36  ;;  %v5769_v22 = vsel %vm154_vm0, %v5489_v1, %v10421_v24  ;;  %v5490_v24 = vld [vmem:[#allocation3 + $0xd8] sm:$0xff] }
0x1009   :  { %v5610_v15 = vpop.permute.xlu1 %5609  ;;  %7194 = vmatprep.mubr.msk.f32.mxu1 %vm905_vm4, %v5809_v43  ;;  %v5813_v36 = vsel %vm871_vm3, %v5797_v31, %v10393_v0 }
0x100a   :  { %v5780_v34 = vsel %vm837_vm1, %v5764_v41, %v5610_v15  ;;  %v5488_v15 = vld [vmem:[#allocation3 + $0xc8] sm:$0xff] }
0x100b   :  { %v5620_v26 = vpop.permute.xlu0 %5619  ;;  %v5796_v27 = vsel %vm854_vm2, %v5780_v34, %v10402_v49  ;;  %v5767_v49 = vsel %vm154_vm0, %v5487_v29, %v10413_v7 }
0x100c   :  { %v5812_v58 = vsel %vm871_vm3, %v5796_v27, %v10385_v37  ;;  %v5783_v28 = vsel %vm837_vm1, %v5767_v49, %v5616_v35  ;;  %v5785_v62 = vsel %vm837_vm1, %v5769_v22, %v5620_v26  ;;  %v5770_v27 = vsel %vm154_vm0, %v5490_v24, %v10425_v3 }
0x100d   :  { %v5662_v53 = vpop.permute.xlu1 %5661 }
0x100e   :  { %v5794_v8 = vsel %vm854_vm2, %v5778_v55, %v5662_v53  ;;  %v7307_v53 = vld [vmem:[#allocation3 + $0xe0] sm:$0xff] }
0x100f   :  { %v5810_v63 = vsel %vm871_vm3, %v5794_v8, %v10370_v33  ;;  %v5672_v16 = vpop.permute.xlu0 %5671 }
0x1010   :  { %7195 = vmatmul.mubr.msk.f32.gmra.mxu1 %vm905_vm4, %v5810_v63  ;;  %v5799_v14 = vsel %vm854_vm2, %v5783_v28, %v5672_v16 }
0x1011   :  { %v5614_v18 = vpop.permute.xlu1 %5613  ;;  %7197 = vmatprep.mubr.msk.f32.mxu1 %vm905_vm4, %v5811_v4  ;;  %v5815_v37 = vsel %vm871_vm3, %v5799_v14, %v10404_v48  ;;  %v7308_v4 = vld [vmem:[#allocation3 + $0xe8] sm:$0xff] }
0x1012   :  { %v5782_v33 = vsel %vm837_vm1, %v5766_v50, %v5614_v18 }
0x1013   :  { %v5798_v59 = vsel %vm854_vm2, %v5782_v33, %v10407_v30  ;;  %v5624_v10 = vpop.permute.xlu0 %5623 }
0x1014   :  { %7198 = vmatmul.mubr.msk.f32.gmra.mxu1 %vm905_vm4, %v5812_v58  ;;  %v5814_v7 = vsel %vm871_vm3, %v5798_v59, %v10399_v45  ;;  %v5768_v45 = vsel %vm154_vm0, %v5488_v15, %v10417_v42 }
0x1015   :  { %v5618_v43 = vpop.permute.xlu1 %5617  ;;  %7200 = vmatprep.mubr.msk.f32.mxu1 %vm905_vm4, %v5813_v36 }
0x1016   :  { %v5784_v48 = vsel %vm837_vm1, %v5768_v45, %v5618_v43 }
0x1017   :  { %v5676_v39 = vpop.permute.xlu0 %5675 }
0x1018   :  { %7201 = vmatmul.mubr.msk.f32.gmra.mxu1 %vm905_vm4, %v5814_v7  ;;  %v5801_v41 = vsel %vm854_vm2, %v5785_v62, %v5676_v39 }
0x1019   :  { %v5570_v35 = vpop.permute.xlu1 %5569  ;;  %7203 = vmatprep.mubr.msk.f32.mxu1 %vm905_vm4, %v5815_v37  ;;  %v5817_v42 = vsel %vm871_vm3, %v5801_v41, %v10415_v44 }
0x101b   :  { %v5684_v34 = vpop.permute.xlu0 %5683 }
0x101d   :  { %v5568_v30 = vpop.permute.xlu1 %5567 }
0x101e   :  { %v5771_v57 = vsel %vm154_vm0, %v7307_v53, %v5568_v30 }
0x101f   :  { %v5787_v63 = vsel %vm837_vm1, %v5771_v57, %v5624_v10  ;;  %v5628_v50 = vpop.permute.xlu0 %5627 }
0x1020   :  { %v5803_v16 = vsel %vm854_vm2, %v5787_v63, %v10423_v47 }
0x1021   :  { %v5622_v40 = vpop.permute.xlu1 %5621  ;;  %v5819_v58 = vsel %vm871_vm3, %v5803_v16, %v10427_v6 }
0x1022   :  { %v5786_v31 = vsel %vm837_vm1, %v5770_v27, %v5622_v40  ;;  %v10546_v40 = vld [vmem:[%s6275_s21] ss:$0 sm:$0xff] }
0x1023   :  { %v5740_v59 = vpop.permute.xlu0 %5739 }
0x1025   :  { %v5574_v0 = vpop.permute.xlu1 %5573 }
0x1029   :  { %v5572_v19 = vpop.permute.xlu1 %5571 }
0x102a   :  { %v5773_v29 = vsel %vm154_vm0, %v10116_v12, %v5572_v19 }
0x102b   :  { %v5789_v33 = vsel %vm837_vm1, %v5773_v29, %v5628_v50 }
0x102c   :  { %v5805_v28 = vsel %vm854_vm2, %v5789_v33, %v5684_v34 }
0x102d   :  { %v5674_v55 = vpop.permute.xlu1 %5673  ;;  %v5821_v14 = vsel %vm871_vm3, %v5805_v28, %v5740_v59 }
0x102e   :  { %v5800_v38 = vsel %vm854_vm2, %v5784_v48, %v5674_v55 }
0x102f   :  { %v5816_v8 = vsel %vm871_vm3, %v5800_v38, %v10410_v20  ;;  %v5772_v20 = vsel %vm154_vm0, %v7308_v4, %v5570_v35 }
0x1030   :  { %7204 = vmatmul.mubr.msk.f32.gmra.mxu1 %vm905_vm4, %v5816_v8 }
0x1031   :  { %v5626_v26 = vpop.permute.xlu1 %5625  ;;  %7206 = vmatprep.mubr.msk.f32.mxu1 %vm905_vm4, %v5817_v42 }
0x1032   :  { %v5788_v44 = vsel %vm837_vm1, %v5772_v20, %v5626_v26 }
0x1033   :  { %v5804_v3 = vsel %vm854_vm2, %v5788_v44, %v10429_v51  ;;  %v5774_v51 = vsel %vm154_vm0, %v10284_v9, %v5574_v0 }
0x1034   :  { %v5820_v47 = vsel %vm871_vm3, %v5804_v3, %v10431_v61 }
0x1035   :  { %v5678_v18 = vpop.permute.xlu1 %5677 }
0x1036   :  { %v5802_v49 = vsel %vm854_vm2, %v5786_v31, %v5678_v18 }
0x1037   :  { %v5818_v12 = vsel %vm871_vm3, %v5802_v49, %v10419_v11 }
0x1038   :  { %7207 = vmatmul.mubr.msk.f32.gmra.mxu1 %vm905_vm4, %v5818_v12 }
0x1039   :  { %v5630_v36 = vpop.permute.xlu1 %5629  ;;  %7209 = vmatprep.mubr.msk.f32.mxu1 %vm905_vm4, %v5819_v58 }
0x103a   :  { %v5790_v6 = vsel %vm837_vm1, %v5774_v51, %v5630_v36 }
0x103c   :  { %7210 = vmatmul.mubr.msk.f32.gmra.mxu1 %vm905_vm4, %v5820_v47 }
0x103d   :  { %v5686_v11 = vpop.permute.xlu1 %5685  ;;  %7212 = vmatprep.mubr.msk.f32.mxu1 %vm905_vm4, %v5821_v14 }
0x103e   :  { %v5806_v43 = vsel %vm854_vm2, %v5790_v6, %v5686_v11 }
0x1041   :  { %v5742_v7 = vpop.permute.xlu1 %5741 }
0x1042   :  { %v5822_v37 = vsel %vm871_vm3, %v5806_v43, %v5742_v7 }
0x1043   :  { %7213 = vmatmul.mubr.msk.f32.gmra.mxu1 %vm905_vm4, %v5822_v37 }
0x10c8   :  { %v7193_v61 = vpop.f32.mrf.mxu1 }
0x10c9   :  { %v5960_v0 = vadd.f32 %v7193_v61, %v10546_v40 }
0x10ca   :  { %v5954_v35 = vpop.f32.mrf.mxu1 }
0x10cb   :  { %v5955_v10 = vadd.f32 %v10546_v40, %v5954_v35  ;;  %v6034_v19 = vmax.f32 %v5960_v0, 0.0 }
0x10cd   :  { %v6033_v39 = vmax.f32 %v5955_v10, 0.0  ;;  %v10556_v41 = vadd.f32 %v6034_v19, %v10220_v5 }
0x10cf   :  { %v10552_v62 = vadd.f32 %v6033_v39, %v10222_v46  ;;  %v6066_v8 = vsel %vm837_vm1, %v10556_v41, 0.0 }
0x10d0   :  { %v7196_v30 = vpop.f32.mrf.mxu1 }
0x10d1   :  { %v5970_v48 = vadd.f32 %v7196_v30, %v10546_v40  ;;  %v6065_v53 = vsel %vm837_vm1, %v10552_v62, 0.0 }
0x10d2   :  { %v5964_v9 = vpop.f32.mrf.mxu1  ;;  %v6067_v24 = vadd.f32 %v6066_v8, %v6065_v53 }
0x10d3   :  { %v5965_v1 = vadd.f32 %v10546_v40, %v5964_v9  ;;  %v6036_v57 = vmax.f32 %v5970_v48, 0.0 }
0x10d4   :  { %v7199_v15 = vpop.f32.mrf.mxu1 }
0x10d5   :  { %v6035_v22 = vmax.f32 %v5965_v1, 0.0  ;;  %v10569_v26 = vadd.f32 %v6036_v57, %v10232_v25 }
0x10d6   :  { %v5974_v45 = vpop.f32.mrf.mxu1 }
0x10d7   :  { %v10559_v55 = vadd.f32 %v6035_v22, %v10228_v17  ;;  %v5975_v38 = vadd.f32 %v10546_v40, %v5974_v45  ;;  %v5980_v17 = vadd.f32 %v7199_v15, %v10546_v40  ;;  %v6070_v4 = vsel %vm837_vm1, %v10569_v26, 0.0 }
0x10d8   :  { %v7202_v34 = vpop.f32.mrf.mxu1 }
0x10d9   :  { %v6068_v46 = vsel %vm837_vm1, %v10559_v55, 0.0  ;;  %v6037_v42 = vmax.f32 %v5975_v38, 0.0  ;;  %v6038_v20 = vmax.f32 %v5980_v17, 0.0  ;;  %v5990_v18 = vadd.f32 %v7202_v34, %v10546_v40 }
0x10da   :  { %v5984_v5 = vpop.f32.mrf.mxu1  ;;  %v6069_v63 = vadd.f32 %v6068_v46, %v6067_v24  ;;  %v10776_v24 = vld [vmem:[#allocation5_spill] sm:$0xff] }
0x10db   :  { %v10573_v29 = vadd.f32 %v6037_v42, %v10236_v23  ;;  %v5985_v27 = vadd.f32 %v10546_v40, %v5984_v5  ;;  %v10581_v25 = vadd.f32 %v6038_v20, %v10240_v2  ;;  %v6040_v12 = vmax.f32 %v5990_v18, 0.0 }
0x10dc   :  { %v6071_v50 = vadd.f32 %v6070_v4, %v6069_v63 }
0x10dd   :  { %v6072_v31 = vsel %vm837_vm1, %v10573_v29, 0.0  ;;  %v6039_v44 = vmax.f32 %v5985_v27, 0.0  ;;  %v6074_v49 = vsel %vm837_vm1, %v10581_v25, 0.0  ;;  %v10594_v36 = vadd.f32 %v6040_v12, %v10248_v32 }
0x10de   :  { %v6073_v16 = vadd.f32 %v6072_v31, %v6071_v50  ;;  %v10777_v50 = vld [vmem:[#allocation7_spill] sm:$0xff]  ;;  %v10778_v31 = vld [vmem:[#allocation6_spill] sm:$0xff] }
0x10df   :  { %v10585_v23 = vadd.f32 %v6039_v44, %v10244_v56  ;;  %v6078_v6 = vsel %vm837_vm1, %v10594_v36, 0.0 }
0x10e0   :  { %v6075_v3 = vadd.f32 %v6074_v49, %v6073_v16 }
0x10e1   :  { %v6076_v28 = vsel %vm837_vm1, %v10585_v23, 0.0 }
0x10e2   :  { %v6077_v56 = vadd.f32 %v6076_v28, %v6075_v3 }
0x10e4   :  { %v6079_v37 = vadd.f32 %v6078_v6, %v6077_v56 }
0x10f0   :  { %v7205_v33 = vpop.f32.mrf.mxu1 }
0x10f1   :  { %v6000_v59 = vadd.f32 %v7205_v33, %v10546_v40 }
0x10f2   :  { %v5994_v58 = vpop.f32.mrf.mxu1 }
0x10f3   :  { %v5995_v2 = vadd.f32 %v10546_v40, %v5994_v58  ;;  %v6042_v14 = vmax.f32 %v6000_v59, 0.0 }
0x10f5   :  { %v6041_v47 = vmax.f32 %v5995_v2, 0.0  ;;  %v10605_v32 = vadd.f32 %v6042_v14, %v10256_v54 }
0x10f7   :  { %v10597_v11 = vadd.f32 %v6041_v47, %v10252_v13  ;;  %v6082_v15 = vsel %vm837_vm1, %v10605_v32, 0.0 }
0x10f8   :  { %v7208_v51 = vpop.f32.mrf.mxu1 }
0x10f9   :  { %v6080_v43 = vsel %vm837_vm1, %v10597_v11, 0.0  ;;  %v6010_v7 = vadd.f32 %v7208_v51, %v10546_v40 }
0x10fa   :  { %v6004_v61 = vpop.f32.mrf.mxu1  ;;  %v6081_v9 = vadd.f32 %v6080_v43, %v6079_v37 }
0x10fb   :  { %v6044_v35 = vmax.f32 %v6010_v7, 0.0  ;;  %v6005_v30 = vadd.f32 %v10546_v40, %v6004_v61 }
0x10fc   :  { %v7211_v13 = vpop.f32.mrf.mxu1  ;;  %v6083_v22 = vadd.f32 %v6082_v15, %v6081_v9 }
0x10fd   :  { %v6043_v10 = vmax.f32 %v6005_v30, 0.0  ;;  %v6020_v0 = vadd.f32 %v7211_v13, %v10546_v40  ;;  %v10612_v39 = vadd.f32 %v6044_v35, %v10264_v60 }
0x10fe   :  { %v6014_v1 = vpop.f32.mrf.mxu1 }
0x10ff   :  { %v10615_v19 = vadd.f32 %v6043_v10, %v10260_v52  ;;  %v6015_v54 = vadd.f32 %v10546_v40, %v6014_v1  ;;  %v6046_v34 = vmax.f32 %v6020_v0, 0.0  ;;  %v6086_v53 = vsel %vm837_vm1, %v10612_v39, 0.0 }
0x1101   :  { %v6084_v45 = vsel %vm837_vm1, %v10615_v19, 0.0  ;;  %v6045_v48 = vmax.f32 %v6015_v54, 0.0  ;;  %v6062_v5 = vadd.f32 %v6046_v34, %v10776_v24 }
0x1102   :  { %v6085_v38 = vadd.f32 %v6084_v45, %v6083_v22 }
0x1103   :  { %v10623_v57 = vadd.f32 %v6045_v48, %v10268_v21  ;;  %v7214_v60 = vpop.f32.mrf.mxu1  ;;  %v6090_v20 = vsel %vm837_vm1, %v6062_v5, 0.0 }
0x1104   :  { %v6087_v8 = vadd.f32 %v6086_v53, %v6085_v38  ;;  %v6030_v52 = vadd.f32 %v7214_v60, %v10546_v40 }
0x1105   :  { %v6088_v46 = vsel %vm837_vm1, %v10623_v57, 0.0  ;;  %v6024_v42 = vpop.f32.mrf.mxu1 }
0x1106   :  { %v6048_v17 = vmax.f32 %v6030_v52, 0.0  ;;  %v6025_v63 = vadd.f32 %v10546_v40, %v6024_v42  ;;  %v6089_v27 = vadd.f32 %v6088_v46, %v6087_v8 }
0x1108   :  { %v6047_v4 = vmax.f32 %v6025_v63, 0.0  ;;  %v10632_v21 = vadd.f32 %v6048_v17, %v10777_v50  ;;  %v6091_v18 = vadd.f32 %v6090_v20, %v6089_v27 }
0x110a   :  { %v6063_v44 = vadd.f32 %v6047_v4, %v10778_v31  ;;  %v6094_v49 = vsel %vm837_vm1, %v10632_v21, 0.0 }
0x110c   :  { %v6092_v16 = vsel %vm837_vm1, %v6063_v44, 0.0 }
0x110d   :  { %v6093_v33 = vadd.f32 %v6092_v16, %v6091_v18 }
0x110f   :  { %v6095_v12 = vadd.f32 %v6094_v49, %v6093_v33 }
0x1111   :  { %v6096_v3 = vrot.slane %v6095_v12, 4 }
0x1113   :  { %v6097_v58 = vadd.f32 %v6096_v3, %v6095_v12 }
0x1115   :  { %v6098_v40 = vrot.slane %v6097_v58, 2 }
0x1117   :  { %v6099_v28 = vadd.f32 %v6098_v40, %v6097_v58 }
0x1119   :  { %v6100_v59 = vrot.slane %v6099_v28, 1 }
0x111b   :  { %v6101_v2 = vadd.f32 %v6100_v59, %v6099_v28 }
0x111d   :  { %v6102_v47 = vmul.f32 0.0078125, %v6101_v2 }
0x111f   :  { %v10639_v56 = vsub.f32 %v10552_v62, %v6102_v47  ;;  %v10642_v14 = vsub.f32 %v10556_v41, %v6102_v47  ;;  %v10645_v51 = vsub.f32 %v10559_v55, %v6102_v47  ;;  %v10648_v6 = vsub.f32 %v10569_v26, %v6102_v47 }
0x1120   :  { %v10655_v37 = vsub.f32 %v10573_v29, %v6102_v47  ;;  %v10660_v41 = vsub.f32 %v10581_v25, %v6102_v47  ;;  %v10667_v30 = vsub.f32 %v10585_v23, %v6102_v47  ;;  %v10673_v25 = vsub.f32 %v10594_v36, %v6102_v47 }
0x1121   :  { %v6119_v43 = vmul.f32 %v10639_v56, %v10639_v56  ;;  %v6120_v7 = vmul.f32 %v10642_v14, %v10642_v14  ;;  %v6121_v62 = vmul.f32 %v10645_v51, %v10645_v51  ;;  %v6122_v55 = vmul.f32 %v10648_v6, %v10648_v6 }
0x1122   :  { %v6123_v29 = vmul.f32 %v10655_v37, %v10655_v37  ;;  %v6124_v10 = vmul.f32 %v10660_v41, %v10660_v41  ;;  %v10679_v15 = vsub.f32 %v10597_v11, %v6102_v47  ;;  %v6125_v23 = vmul.f32 %v10667_v30, %v10667_v30 }
0x1123   :  { %v6135_v26 = vsel %vm837_vm1, %v6119_v43, 0.0  ;;  %v6136_v61 = vsel %vm837_vm1, %v6120_v7, 0.0  ;;  %v6138_v9 = vsel %vm837_vm1, %v6121_v62, 0.0  ;;  %v6140_v0 = vsel %vm837_vm1, %v6122_v55, 0.0 }
0x1124   :  { %v6137_v35 = vadd.f32 %v6136_v61, %v6135_v26  ;;  %v6142_v54 = vsel %vm837_vm1, %v6123_v29, 0.0  ;;  %v10685_v45 = vsub.f32 %v10605_v32, %v6102_v47  ;;  %v6126_v36 = vmul.f32 %v10673_v25, %v10673_v25  ;;  %v6173_v29 = vld [vmem:[%s6276_s9] sm:$0x1] }
0x1125   :  { %v6144_v48 = vsel %vm837_vm1, %v6124_v10, 0.0  ;;  %v10691_v34 = vsub.f32 %v10615_v19, %v6102_v47  ;;  %v6127_v11 = vmul.f32 %v10679_v15, %v10679_v15  ;;  %v6146_v53 = vsel %vm837_vm1, %v6125_v23, 0.0  ;;  %v10779_v10 = vld [vmem:[#allocation4_spill] sm:$0xff] }
0x1126   :  { %v6139_v13 = vadd.f32 %v6138_v9, %v6137_v35  ;;  %v6114_v8 = vsub.f32 %v10612_v39, %v6102_v47  ;;  %v6128_v32 = vmul.f32 %v10685_v45, %v10685_v45  ;;  %v6148_v52 = vsel %vm837_vm1, %v6126_v36, 0.0 }
0x1127   :  { %v6115_v42 = vsub.f32 %v10623_v57, %v6102_v47  ;;  %v6129_v19 = vmul.f32 %v10691_v34, %v10691_v34  ;;  %v6150_v24 = vsel %vm837_vm1, %v6127_v11, 0.0  ;;  %v6116_v63 = vsub.f32 %v6062_v5, %v6102_v47 }
0x1128   :  { %v6141_v1 = vadd.f32 %v6140_v0, %v6139_v13  ;;  %v6130_v27 = vmul.f32 %v6114_v8, %v6114_v8  ;;  %v6152_v4 = vsel %vm837_vm1, %v6128_v32, 0.0  ;;  %v6117_v39 = vsub.f32 %v6063_v44, %v6102_v47 }
0x1129   :  { %v6131_v50 = vmul.f32 %v6115_v42, %v6115_v42  ;;  %v6154_v31 = vsel %vm837_vm1, %v6129_v19, 0.0  ;;  %v6118_v16 = vsub.f32 %v10632_v21, %v6102_v47  ;;  %v6132_v33 = vmul.f32 %v6116_v63, %v6116_v63 }
0x112a   :  { %v6143_v22 = vadd.f32 %v6142_v54, %v6141_v1  ;;  %v6156_v57 = vsel %vm837_vm1, %v6130_v27, 0.0  ;;  %v6133_v12 = vmul.f32 %v6117_v39, %v6117_v39 }
0x112b   :  { %v6158_v3 = vsel %vm837_vm1, %v6131_v50, 0.0  ;;  %v6134_v5 = vmul.f32 %v6118_v16, %v6118_v16  ;;  %v6160_v40 = vsel %vm837_vm1, %v6132_v33, 0.0 }
0x112c   :  { %v6145_v38 = vadd.f32 %v6144_v48, %v6143_v22  ;;  %v6162_v44 = vsel %vm837_vm1, %v6133_v12, 0.0 }
0x112d   :  { %v6164_v2 = vsel %vm837_vm1, %v6134_v5, 0.0 }
0x112e   :  { %v6147_v60 = vadd.f32 %v6146_v53, %v6145_v38  ;;  %v6488_v53 = vld [vmem:[%s6277_s13] ss:$0 sm:$0xff] }
0x1130   :  { %v6149_v46 = vadd.f32 %v6148_v52, %v6147_v60 }
0x1132   :  { %v6151_v17 = vadd.f32 %v6150_v24, %v6149_v46 }
0x1134   :  { %v6153_v20 = vadd.f32 %v6152_v4, %v6151_v17 }
0x1136   :  { %v6155_v18 = vadd.f32 %v6154_v31, %v6153_v20 }
0x1138   :  { %v6157_v49 = vadd.f32 %v6156_v57, %v6155_v18 }
0x113a   :  { %v6159_v58 = vadd.f32 %v6158_v3, %v6157_v49 }
0x113c   :  { %v6161_v28 = vadd.f32 %v6160_v40, %v6159_v58 }
0x113e   :  { %v6163_v59 = vadd.f32 %v6162_v44, %v6161_v28 }
0x1140   :  { %v6165_v43 = vadd.f32 %v6164_v2, %v6163_v59 }
0x1142   :  { %v6166_v7 = vrot.slane %v6165_v43, 4 }
0x1144   :  { %v6167_v21 = vadd.f32 %v6166_v7, %v6165_v43 }
0x1146   :  { %v6168_v47 = vrot.slane %v6167_v21, 2 }
0x1148   :  { %v6169_v62 = vadd.f32 %v6168_v47, %v6167_v21 }
0x114a   :  { %v6170_v55 = vrot.slane %v6169_v62, 1 }
0x114c   :  { %v6171_v26 = vadd.f32 %v6170_v55, %v6169_v62 }
0x114e   :  { %v6172_v61 = vmul.f32 0.0078125, %v6171_v26 }
0x1150   :  { %v6174_v35 = vadd.f32 1e-05, %v6172_v61 }
0x1152   :  { %7285 = vrsqrt.f32 %v6174_v35 }
0x115f   :  { %v7286_v9 = vpop.eup %7285 }
0x1160   :  { %v6176_v13 = vmul.f32 %v7286_v9, %v6173_v29 }
0x1162   :  { %v6181_v0 = vrot.slane %v6176_v13, %v10779_v10 }
0x1164   :  { %v6183_v1 = vmul.f32 %v6181_v0, %v10639_v56  ;;  %v6184_v23 = vmul.f32 %v6181_v0, %v10642_v14  ;;  %v6185_v54 = vmul.f32 %v6181_v0, %v10645_v51  ;;  %v6186_v22 = vmul.f32 %v6181_v0, %v10648_v6 }
0x1165   :  { %v6187_v36 = vmul.f32 %v6181_v0, %v10655_v37  ;;  %v6188_v48 = vmul.f32 %v6181_v0, %v10660_v41  ;;  %v6189_v38 = vmul.f32 %v6181_v0, %v10667_v30  ;;  %v6190_v11 = vmul.f32 %v6181_v0, %v10673_v25 }
0x1166   :  { %v6191_v60 = vmul.f32 %v6181_v0, %v10679_v15  ;;  %v6192_v32 = vmul.f32 %v6181_v0, %v10685_v45  ;;  %v6193_v56 = vmul.f32 %v6181_v0, %v10691_v34  ;;  %v6194_v14 = vmul.f32 %v6181_v0, %v6114_v8 }
0x1167   :  { %v6195_v52 = vmul.f32 %v6181_v0, %v6115_v42  ;;  %v6196_v51 = vmul.f32 %v6181_v0, %v6116_v63  ;;  %v6197_v6 = vmul.f32 %v6181_v0, %v6117_v39  ;;  %v6198_v37 = vmul.f32 %v6181_v0, %v6118_v16 }
0x1168   :  { %v6206_v41 = vadd.f32 %v6488_v53, %v6183_v1  ;;  %v6207_v30 = vadd.f32 %v6488_v53, %v6184_v23  ;;  %v6208_v46 = vadd.f32 %v6488_v53, %v6185_v54  ;;  %v6209_v25 = vadd.f32 %v6488_v53, %v6186_v22 }
0x1169   :  { %v6210_v19 = vadd.f32 %v6488_v53, %v6187_v36  ;;  %v6211_v15 = vadd.f32 %v6488_v53, %v6188_v48  ;;  %v6212_v45 = vadd.f32 %v6488_v53, %v6189_v38  ;;  %v6213_v34 = vadd.f32 %v6488_v53, %v6190_v11 }
0x116a   :  { %v6214_v8 = vadd.f32 %v6488_v53, %v6191_v60  ;;  %v6215_v42 = vadd.f32 %v6488_v53, %v6192_v32  ;;  %v6216_v24 = vadd.f32 %v6488_v53, %v6193_v56  ;;  %v6217_v17 = vadd.f32 %v6488_v53, %v6194_v14  ;;  %6222 = vst.msk [vmem:[%s10721_s17] sm:$0xff] %vm837_vm1, %v6206_v41 }
0x116b   :  { %6223 = vst.msk [vmem:[%s10721_s17 + $0x8] sm:$0xff] %vm837_vm1, %v6207_v30  ;;  %6224 = vst.msk [vmem:[%s10721_s17 + $0x10] sm:$0xff] %vm837_vm1, %v6208_v46  ;;  %v6218_v63 = vadd.f32 %v6488_v53, %v6195_v52  ;;  %v6219_v27 = vadd.f32 %v6488_v53, %v6196_v51  ;;  %v6220_v4 = vadd.f32 %v6488_v53, %v6197_v6 }
0x116c   :  { %6225 = vst.msk [vmem:[%s10721_s17 + $0x18] sm:$0xff] %vm837_vm1, %v6209_v25  ;;  %v6221_v20 = vadd.f32 %v6488_v53, %v6198_v37  ;;  %6226 = vst.msk [vmem:[%s10721_s17 + $0x20] sm:$0xff] %vm837_vm1, %v6210_v19 }
0x116d   :  { %6227 = vst.msk [vmem:[%s10721_s17 + $0x28] sm:$0xff] %vm837_vm1, %v6211_v15  ;;  %6228 = vst.msk [vmem:[%s10721_s17 + $0x30] sm:$0xff] %vm837_vm1, %v6212_v45 }
0x116e   :  { %6229 = vst.msk [vmem:[%s10721_s17 + $0x38] sm:$0xff] %vm837_vm1, %v6213_v34  ;;  %6230 = vst.msk [vmem:[%s10721_s17 + $0x40] sm:$0xff] %vm837_vm1, %v6214_v8 }
0x116f   :  { %6231 = vst.msk [vmem:[%s10721_s17 + $0x48] sm:$0xff] %vm837_vm1, %v6215_v42  ;;  %6232 = vst.msk [vmem:[%s10721_s17 + $0x50] sm:$0xff] %vm837_vm1, %v6216_v24 }
0x1170   :  { %6233 = vst.msk [vmem:[%s10721_s17 + $0x58] sm:$0xff] %vm837_vm1, %v6217_v17  ;;  %6234 = vst.msk [vmem:[%s10721_s17 + $0x60] sm:$0xff] %vm837_vm1, %v6218_v63 }
0x1171   :  { %6235 = vst.msk [vmem:[%s10721_s17 + $0x68] sm:$0xff] %vm837_vm1, %v6219_v27  ;;  %6236 = vst.msk [vmem:[%s10721_s17 + $0x70] sm:$0xff] %vm837_vm1, %v6220_v4 }
0x1172   :  { %6237 = vst.msk [vmem:[%s10721_s17 + $0x78] sm:$0xff] %vm837_vm1, %v6221_v20 }

</bundles_post_ra>
